<compile_context>
chip_gen: v7x
topology: tpu7x:2x2x1
jax: 0.10.0
libtpu: 0.0.40
codegen_flags: <defaults>
</compile_context>

<pallas_src>
import functools

import jax
import jax.numpy as jnp
from jax.experimental import pallas as pl
from jax.experimental.pallas import tpu as pltpu


# ----------------------------------------------------------------------------
# small helpers
# ----------------------------------------------------------------------------
def _round_up(x, m):
    return ((x + m - 1) // m) * m


def _pick_row_tile(n, max_tile=512):
    """Row tile (multiple of 16 for bf16 sublane packing) and padded extent."""
    n16 = _round_up(max(n, 1), 16)
    t = min(max_tile, n16)
    return t, _round_up(n16, t)


def _pick_k_tile(k_pad):
    for t in (512, 256, 128):
        if k_pad % t == 0:
            return t
    return 128


def _pick_n_tile(n_pad):
    # Widest divisor <= 512: a single j-tile for Cout <= 512 means the (large,
    # im2col-expanded) A operand is streamed from HBM exactly once.
    for t in (512, 384, 256, 128):
        if n_pad % t == 0:
            return t
    return 128


def _pad2d(x, rows, cols):
    r, c = x.shape
    if r == rows and c == cols:
        return x
    return jnp.pad(x, ((0, rows - r), (0, cols - c)))


def _mosaic_params(dims, working_set_bytes=0):
    kw = dict(dimension_semantics=dims)
    # Raise the scoped-VMEM limit only when the tiles actually need it; cap at
    # 48 MiB so the configuration also fits v7x's 64 MiB physical VMEM.
    if working_set_bytes > 24 * 1024 * 1024:
        kw["vmem_limit_bytes"] = min(int(working_set_bytes * 2), 48 * 1024 * 1024)
    return pltpu.CompilerParams(**kw)


# ----------------------------------------------------------------------------
# matmul + bias (+ fused residual) kernel  -- every Conv3d / 1x1x1 conv
# ----------------------------------------------------------------------------
def _matmul_kernel(*refs, has_residual):
    if has_residual:
        a_ref, b_ref, bias_ref, res_ref, o_ref, acc_ref = refs
    else:
        a_ref, b_ref, bias_ref, o_ref, acc_ref = refs
        res_ref = None
    k = pl.program_id(2)

    @pl.when(k == 0)
    def _():
        acc_ref[...] = jnp.zeros_like(acc_ref)

    acc_ref[...] += jnp.dot(a_ref[...], b_ref[...],
                            preferred_element_type=jnp.float32)

    @pl.when(k == pl.num_programs(2) - 1)
    def _():
        out = acc_ref[...] + bias_ref[...]
        if has_residual:
            out = out + res_ref[...].astype(jnp.float32)
        o_ref[...] = out.astype(o_ref.dtype)


def pallas_matmul_bias(a, b, bias, residual=None, out_dtype=jnp.bfloat16):
    """C = a @ b + bias (+ residual).  bf16 operands on the MXU, fp32 accumulation.

    Tiled over (M, N, K): parallel M/N axes and an 'arbitrary' K reduction axis
    accumulating into a VMEM scratch tile.  bias (1, tn) and residual (tm, tn)
    blocks keep a constant index across K so they are fetched once per output
    tile; the residual is added in the k==last epilogue (fused skip connection).
    """
    M, K = a.shape
    K2, N = b.shape
    assert K == K2

    tm, M_pad = _pick_row_tile(M)
    N_pad = _round_up(N, 128)
    tn = _pick_n_tile(N_pad)
    K_pad = _round_up(K, 128)
    tk = _pick_k_tile(K_pad)

    a_p = _pad2d(a.astype(jnp.bfloat16), M_pad, K_pad)
    b_p = _pad2d(b.astype(jnp.bfloat16), K_pad, N_pad)
    bias_p = _pad2d(bias.reshape(1, N).astype(jnp.float32), 1, N_pad)

    operands = [a_p, b_p, bias_p]
    in_specs = [
        pl.BlockSpec((tm, tk), lambda i, j, k: (i, k)),
        pl.BlockSpec((tk, tn), lambda i, j, k: (k, j)),
        pl.BlockSpec((1, tn), lambda i, j, k: (0, j)),
    ]
    has_residual = residual is not None
    if has_residual:
        res_p = _pad2d(residual.astype(jnp.bfloat16), M_pad, N_pad)
        operands.append(res_p)
        in_specs.append(pl.BlockSpec((tm, tn), lambda i, j, k: (i, j)))

    grid = (M_pad // tm, N_pad // tn, K_pad // tk)
    ws = (2 * (tm * tk + tk * tn) * 2 + 2 * tm * tn * 2 + tm * tn * 4
          + (2 * tm * tn * 2 if has_residual else 0))
    cost = pl.CostEstimate(
        flops=2 * M_pad * K_pad * N_pad,
        transcendentals=0,
        bytes_accessed=(M_pad * K_pad * 2 + K_pad * N_pad * 2
                        + M_pad * N_pad * 2 + N_pad * 4
                        + (M_pad * N_pad * 2 if has_residual else 0)),
    )
    out = pl.pallas_call(
        functools.partial(_matmul_kernel, has_residual=has_residual),
        out_shape=jax.ShapeDtypeStruct((M_pad, N_pad), out_dtype),
        grid=grid,
        in_specs=in_specs,
        out_specs=pl.BlockSpec((tm, tn), lambda i, j, k: (i, j)),
        scratch_shapes=[pltpu.VMEM((tm, tn), jnp.float32)],
        compiler_params=_mosaic_params(("parallel", "parallel", "arbitrary"), ws),
        cost_estimate=cost,
    )(*operands)
    return out[:M, :N]


# ----------------------------------------------------------------------------
# BatchNorm3d (training-mode batch stats) + optional swish
# ----------------------------------------------------------------------------
_BN_SHARDS = 2  # independent partial-sum blocks; megacore-shardable on v7x


def _bn_stats_kernel(x_ref, sum_ref, sq_ref):
    @pl.when(pl.program_id(1) == 0)
    def _():
        sum_ref[...] = jnp.zeros_like(sum_ref)
        sq_ref[...] = jnp.zeros_like(sq_ref)

    x = x_ref[...].astype(jnp.float32)
    sum_ref[...] += jnp.sum(x, axis=0, keepdims=True)[None]
    sq_ref[...] += jnp.sum(x * x, axis=0, keepdims=True)[None]


def _bn_apply_kernel(x_ref, scale_ref, shift_ref, o_ref, *, apply_swish):
    y = x_ref[...].astype(jnp.float32) * scale_ref[...] + shift_ref[...]
    if apply_swish:
        # swish = y * sigmoid(y); the reciprocal uses the (otherwise idle) EUP slot
        y = y * pl.reciprocal(1.0 + jnp.exp(-y), approx=True)
    o_ref[...] = y.astype(o_ref.dtype)


def pallas_bn_act(x_flat, gamma, beta, *, apply_swish, eps=1e-5):
    """BatchNorm3d (training-mode batch statistics) + optional swish.

    Two tiled passes so the statistics stay *global* while every block fits VMEM:
      pass 1: per-channel sum / sum-of-squares, accumulated in fp32 from bf16
              inputs into _BN_SHARDS independent partial blocks (leading
              'parallel' grid axis), reduced in JAX.
      pass 2: apply (x - mean) * rsqrt(var + eps) * gamma + beta (+ swish),
              emitted in bf16.
    Zero-padded rows contribute nothing to the sums; the divisor uses true M.
    """
    M, C = x_flat.shape
    tm, _ = _pick_row_tile(M)
    M_pad = _round_up(M, _BN_SHARDS * tm)
    steps = M_pad // (_BN_SHARDS * tm)
    x_p = _pad2d(x_flat.astype(jnp.bfloat16), M_pad, C)

    sums, sqs = pl.pallas_call(
        _bn_stats_kernel,
        out_shape=(jax.ShapeDtypeStruct((_BN_SHARDS, 1, C), jnp.float32),
                   jax.ShapeDtypeStruct((_BN_SHARDS, 1, C), jnp.float32)),
        grid=(_BN_SHARDS, steps),
        in_specs=[pl.BlockSpec((tm, C), lambda c, i: (c * steps + i, 0))],
        out_specs=(pl.BlockSpec((1, 1, C), lambda c, i: (c, 0, 0)),
                   pl.BlockSpec((1, 1, C), lambda c, i: (c, 0, 0))),
        compiler_params=_mosaic_params(("parallel", "arbitrary")),
    )(x_p)

    s = jnp.sum(sums, axis=0)          # (1, C)
    sq = jnp.sum(sqs, axis=0)          # (1, C)
    mean = s / M
    var = jnp.maximum(sq / M - mean * mean, 0.0)   # biased variance (training mode)
    inv = jax.lax.rsqrt(var + eps)
    scale = gamma.reshape(1, C).astype(jnp.float32) * inv
    shift = beta.reshape(1, C).astype(jnp.float32) - mean * scale

    out = pl.pallas_call(
        functools.partial(_bn_apply_kernel, apply_swish=apply_swish),
        out_shape=jax.ShapeDtypeStruct((M_pad, C), jnp.bfloat16),
        grid=(M_pad // tm,),
        in_specs=[
            pl.BlockSpec((tm, C), lambda i: (i, 0)),
            pl.BlockSpec((1, C), lambda i: (0, 0)),
            pl.BlockSpec((1, C), lambda i: (0, 0)),
        ],
        out_specs=pl.BlockSpec((tm, C), lambda i: (i, 0)),
        compiler_params=_mosaic_params(("parallel",)),
    )(x_p, scale, shift)
    return out[:M]


# ----------------------------------------------------------------------------
# channel attention in [B, S, C] layout (no JAX-level transposes)
# ----------------------------------------------------------------------------
def _attn_logits_kernel(q_ref, k_ref, o_ref, acc_ref, *, scale):
    s = pl.program_id(1)

    @pl.when(s == 0)
    def _():
        acc_ref[...] = jnp.zeros_like(acc_ref)

    # attn[i, j] = sum_s q[s, i] * k[s, j]  -- contraction over S expressed
    # directly (no in-kernel .T relayout of the [ts, C] tile), bf16 operands.
    acc_ref[...] += jax.lax.dot_general(
        q_ref[0], k_ref[0], (((0,), (0,)), ((), ())),
        preferred_element_type=jnp.float32)

    @pl.when(s == pl.num_programs(1) - 1)
    def _():
        att = acc_ref[...] * scale
        m = jnp.max(att, axis=-1, keepdims=True)
        e = jnp.exp(att - m)
        p = e * pl.reciprocal(jnp.sum(e, axis=-1, keepdims=True), approx=True)
        o_ref[0] = p.astype(o_ref.dtype)


def _attn_apply_kernel(v_ref, att_ref, o_ref):
    # out[s, i] = sum_j v[s, j] * att[i, j]   (v @ attn^T), bf16 operands
    o_ref[0] = jax.lax.dot_general(
        v_ref[0], att_ref[0], (((1,), (1,)), ((), ())),
        preferred_element_type=jnp.float32).astype(o_ref.dtype)


def pallas_attention(q, k, v, scale):
    """Channel attention on [B, S, C] tensors.

    Stage 1: attn = softmax_j(q^T k * scale)  -- S-tiled reduction into [B, C, C].
    Stage 2: out  = v @ attn^T                -- S-tiled, fully parallel.
    Softmax is over the channel axis, so S can be tiled freely.
    """
    B, S, C = q.shape
    ts, S_pad = _pick_row_tile(S)

    def pad(x):
        x = x.astype(jnp.bfloat16)
        if S_pad == S:
            return x
        return jnp.pad(x, ((0, 0), (0, S_pad - S), (0, 0)))

    q_p, k_p, v_p = pad(q), pad(k), pad(v)
    grid = (B, S_pad // ts)
    sc_spec = pl.BlockSpec((1, ts, C), lambda b, s: (b, s, 0))
    att_spec = pl.BlockSpec((1, C, C), lambda b, s: (b, 0, 0))

    att = pl.pallas_call(
        functools.partial(_attn_logits_kernel, scale=scale),
        out_shape=jax.ShapeDtypeStruct((B, C, C), jnp.bfloat16),
        grid=grid,
        in_specs=[sc_spec, sc_spec],
        out_specs=att_spec,
        scratch_shapes=[pltpu.VMEM((C, C), jnp.float32)],
        compiler_params=_mosaic_params(("parallel", "arbitrary")),
    )(q_p, k_p)

    out = pl.pallas_call(
        _attn_apply_kernel,
        out_shape=jax.ShapeDtypeStruct((B, S_pad, C), jnp.bfloat16),
        grid=grid,
        in_specs=[sc_spec, att_spec],
        out_specs=pl.BlockSpec((1, ts, C), lambda b, s: (b, s, 0)),
        compiler_params=_mosaic_params(("parallel", "parallel")),
    )(v_p, att)
    return out[:, :S, :]


# ----------------------------------------------------------------------------
# JAX glue: im2col, conv / norm / block wrappers
# ----------------------------------------------------------------------------
def _im2col(x, ksize, stride, pad):
    """x: [B, D, H, W, C] -> patches [B*Do*Ho*Wo, kd*kh*kw*C] (tap-major columns)."""
    B, D, H, W, C = x.shape
    kd, kh, kw = ksize
    pd, ph, pw = pad
    xp = jnp.pad(x, ((0, 0), (pd, pd), (ph, ph), (pw, pw), (0, 0)))
    Do = (D + 2 * pd - kd) // stride + 1
    Ho = (H + 2 * ph - kh) // stride + 1
    Wo = (W + 2 * pw - kw) // stride + 1
    patches = []
    for dz in range(kd):
        for dy in range(kh):
            for dx in range(kw):
                sl = xp[
                    :,
                    dz: dz + stride * Do: stride,
                    dy: dy + stride * Ho: stride,
                    dx: dx + stride * Wo: stride,
                    :,
                ]
                patches.append(sl)
    patches = jnp.concatenate(patches, axis=-1)  # [B, Do, Ho, Wo, kd*kh*kw*C]
    return patches.reshape(B * Do * Ho * Wo, kd * kh * kw * C), (B, Do, Ho, Wo)


def conv3d(x, w, b, *, stride=1, pad=(1, 1, 1), residual=None):
    """x: [B,D,H,W,C] NDHWC (bf16);  w: [Cout, Cin, kd, kh, kw] (PyTorch layout).

    Optional `residual` ([B,Do,Ho,Wo,Cout]) is added in the matmul epilogue.
    """
    cout = w.shape[0]
    ksize = tuple(w.shape[2:5])
    patches, (B, Do, Ho, Wo) = _im2col(x.astype(jnp.bfloat16), ksize, stride, pad)
    wm = jnp.transpose(w, (2, 3, 4, 1, 0)).reshape(-1, cout)  # [kd*kh*kw*Cin, Cout]
    res = None if residual is None else residual.reshape(-1, cout)
    out = pallas_matmul_bias(patches, wm, b, residual=res)
    return out.reshape(B, Do, Ho, Wo, cout)


def conv1x1(x, w, b, residual=None):
    """1x1x1 conv == per-voxel matmul.  w: [Cout, Cin, 1, 1, 1]."""
    B, D, H, W, C = x.shape
    cout = w.shape[0]
    wm = w.reshape(cout, C).T  # [Cin, Cout]
    res = None if residual is None else residual.reshape(-1, cout)
    out = pallas_matmul_bias(x.reshape(-1, C), wm, b, residual=res)
    return out.reshape(B, D, H, W, cout)


def batchnorm(x, gamma, beta, *, apply_swish):
    # TODO(synk): running_mean/running_var momentum updates (training side-effect)
    # are not replicated; they do not affect the training-mode forward output.
    B, D, H, W, C = x.shape
    out = pallas_bn_act(x.reshape(-1, C), gamma, beta, apply_swish=apply_swish)
    return out.reshape(B, D, H, W, C)


def resnet_block(x, p):
    h = batchnorm(x, p["norm1_gamma"], p["norm1_beta"], apply_swish=True)
    h = conv3d(h, p["conv1_w"], p["conv1_b"], stride=1, pad=(1, 1, 1))
    h = batchnorm(h, p["norm2_gamma"], p["norm2_beta"], apply_swish=True)
    if "nin_w" in p:
        xs = conv1x1(x, p["nin_w"], p["nin_b"])
    else:
        xs = x
    # residual add fused into the conv2 matmul epilogue
    return conv3d(h, p["conv2_w"], p["conv2_b"], stride=1, pad=(1, 1, 1), residual=xs)


def attn_block(x, p):
    xn = batchnorm(x, p["norm_gamma"], p["norm_beta"], apply_swish=False)
    B, D, H, W, C = x.shape
    S = D * H * W
    xn_f = xn.reshape(B * S, C)
    # q/k/v 1x1 convs as tiled matmuls; keep everything in [B, S, C] so no
    # HBM-level transposes are needed around the attention kernels.
    q = pallas_matmul_bias(xn_f, p["q_w"].reshape(C, C).T, p["q_b"]).reshape(B, S, C)
    k = pallas_matmul_bias(xn_f, p["k_w"].reshape(C, C).T, p["k_b"]).reshape(B, S, C)
    v = pallas_matmul_bias(xn_f, p["v_w"].reshape(C, C).T, p["v_b"]).reshape(B, S, C)
    out = pallas_attention(q, k, v, float(C) ** (-0.5))  # [B, S, C]
    out = out.reshape(B, D, H, W, C)
    # residual add fused into the proj_out matmul epilogue
    return conv1x1(out, p["proj_w"], p["proj_b"], residual=x)


def encoder_forward(img_ncdhw, params):
    # img: [B, Cin, D, H, W] (PyTorch convention) -> NDHWC bf16 internally
    x = jnp.transpose(img_ncdhw, (0, 2, 3, 4, 1)).astype(jnp.bfloat16)
    x = conv3d(x, params["conv_in_w"], params["conv_in_b"], stride=1, pad=(1, 1, 1))
    for down in params["down"]:
        for block in down["blocks"]:
            x = resnet_block(x, block)
        if down["downsample"] is not None:
            x = conv3d(
                x, down["downsample"]["w"], down["downsample"]["b"],
                stride=2, pad=(0, 0, 0),
            )
    x = resnet_block(x, params["mid_block1"])
    x = attn_block(x, params["mid_attn"])
    x = resnet_block(x, params["mid_block2"])
    x = batchnorm(x, params["norm_out_gamma"], params["norm_out_beta"], apply_swish=True)
    x = conv3d(x, params["conv_out_w"], params["conv_out_b"], stride=1, pad=(2, 2, 2))
    return jnp.transpose(x, (0, 4, 1, 2, 3)).astype(jnp.float32)  # back to N C D H W


# ----------------------------------------------------------------------------
# Deterministic parameter init (shapes from Encoder.__init__)
# ----------------------------------------------------------------------------
class _KeyGen:
    def __init__(self, key):
        self.key = key
        self.i = 0

    def __call__(self):
        self.i += 1
        return jax.random.fold_in(self.key, self.i)


def init_encoder_params(key, *, channels, channel_multipliers, n_resnet_blocks,
                        in_channels, z_channels):
    kg = _KeyGen(key)

    def conv_p(cin, cout, k):
        if isinstance(k, int):
            k = (k, k, k)
        w = 0.1 * jax.random.normal(kg(), (cout, cin) + k, jnp.float32)
        b = 0.02 * jax.random.normal(kg(), (cout,), jnp.float32)
        return w, b

    def bn_p(c):
        return jnp.ones((c,), jnp.float32), jnp.zeros((c,), jnp.float32)

    def resnet_p(cin, cout):
        p = {}
        p["norm1_gamma"], p["norm1_beta"] = bn_p(cin)
        p["conv1_w"], p["conv1_b"] = conv_p(cin, cout, 3)
        p["norm2_gamma"], p["norm2_beta"] = bn_p(cout)
        p["conv2_w"], p["conv2_b"] = conv_p(cout, cout, 3)
        if cin != cout:
            p["nin_w"], p["nin_b"] = conv_p(cin, cout, 1)
        return p

    params = {}
    params["conv_in_w"], params["conv_in_b"] = conv_p(in_channels, channels, 3)
    channels_list = [m * channels for m in [1] + list(channel_multipliers)]
    n_res = len(channel_multipliers)
    c = channels
    downs = []
    for i in range(n_res):
        blocks = []
        for _ in range(n_resnet_blocks):
            blocks.append(resnet_p(c, channels_list[i + 1]))
            c = channels_list[i + 1]
        d = {"blocks": blocks}
        if i != n_res - 1:
            w, b = conv_p(c, c, 3)
            d["downsample"] = {"w": w, "b": b}
        else:
            d["downsample"] = None
        downs.append(d)
    params["down"] = downs
    params["mid_block1"] = resnet_p(c, c)
    ap = {}
    ap["norm_gamma"], ap["norm_beta"] = bn_p(c)
    ap["q_w"], ap["q_b"] = conv_p(c, c, 1)
    ap["k_w"], ap["k_b"] = conv_p(c, c, 1)
    ap["v_w"], ap["v_b"] = conv_p(c, c, 1)
    ap["proj_w"], ap["proj_b"] = conv_p(c, c, 1)
    params["mid_attn"] = ap
    params["mid_block2"] = resnet_p(c, c)
    params["norm_out_gamma"], params["norm_out_beta"] = bn_p(c)
    params["conv_out_w"], params["conv_out_b"] = conv_p(c, 2 * z_channels, 2)
    return params


# ----------------------------------------------------------------------------
if __name__ == "__main__":
    key = jax.random.PRNGKey(0)
    cfg = dict(channels=4, channel_multipliers=[1, 2], n_resnet_blocks=1,
               in_channels=3, z_channels=2)
    params = init_encoder_params(jax.random.fold_in(key, 1), **cfg)

    # input image: [batch, in_channels, D, H, W] = [2, 3, 8, 8, 8]
    img = jax.random.normal(jax.random.fold_in(key, 2), (2, 3, 8, 8, 8), jnp.float32)

    fwd = jax.jit(encoder_forward)
    out = fwd(img, params)
    out = jax.block_until_ready(out)

    # spatial: 8 -> (conv_in/resnet) 8 -> (downsample s2 k3 p0) 3 -> (mid) 3
    #          -> (conv_out k2 p2) 6 ; channels: 2 * z_channels = 4
    assert out.shape == (2, 4, 6, 6, 6), out.shape
    assert bool(jnp.all(jnp.isfinite(out)))
    print("KERNEL_OK")
</pallas_src>

<mosaic_0001>
module attributes {stable_mosaic.version = 11 : i64} {
  func.func @_matmul_kernel(%arg0: i32, %arg1: i32, %arg2: i32, %arg3: memref<512x128xbf16, #tpu.memory_space<vmem>>, %arg4: memref<128x128xbf16, #tpu.memory_space<vmem>>, %arg5: memref<1x128xf32, #tpu.memory_space<vmem>>, %arg6: memref<512x128xbf16, #tpu.memory_space<vmem>>, %arg7: memref<512x128xf32, #tpu.memory_space<vmem>>) attributes {dimension_semantics = [#tpu.dimension_semantics<parallel>, #tpu.dimension_semantics<parallel>, #tpu.dimension_semantics<arbitrary>], iteration_bounds = array<i64: 2, 1, 1>, scalar_prefetch = 0 : i64, scratch_operands = 1 : i64, tpu.core_type = #tpu.core_type<tc>, window_params = [{transform_indices = @transform_0, window_bounds = array<i64: 512, 128>}, {transform_indices = @transform_1, window_bounds = array<i64: 128, 128>}, {transform_indices = @transform_2, window_bounds = array<i64: 1, 128>}, {transform_indices = @transform_3, window_bounds = array<i64: 512, 128>}]} {
    %c0_i32 = arith.constant 0 : i32
    %0 = arith.cmpi eq, %arg2, %c0_i32 : i32
    %1 = arith.extui %0 : i1 to i32
    %c0_i32_0 = arith.constant 0 : i32
    %2 = arith.cmpi ne, %1, %c0_i32_0 : i32
    scf.if %2 {
      %cst_10 = arith.constant 0.000000e+00 : f32
      %12 = vector.broadcast %cst_10 : f32 to vector<512x128xf32>
      %c0_11 = arith.constant 0 : index
      %c0_12 = arith.constant 0 : index
      %13 = vector.load %arg7[%c0_11, %c0_12] : memref<512x128xf32, #tpu.memory_space<vmem>>, vector<512x128xf32>
      tpu.vector_store %arg7[%c0_11, %c0_12], %12 {strides = array<i32>} : memref<512x128xf32, #tpu.memory_space<vmem>>, vector<512x128xf32>,
    } else {
    }
    %c0 = arith.constant 0 : index
    %c0_1 = arith.constant 0 : index
    %3 = vector.load %arg7[%c0, %c0_1] : memref<512x128xf32, #tpu.memory_space<vmem>>, vector<512x128xf32>
    %c0_2 = arith.constant 0 : index
    %c0_3 = arith.constant 0 : index
    %4 = vector.load %arg3[%c0_2, %c0_3] : memref<512x128xbf16, #tpu.memory_space<vmem>>, vector<512x128xbf16>
    %c0_4 = arith.constant 0 : index
    %c0_5 = arith.constant 0 : index
    %5 = vector.load %arg4[%c0_4, %c0_5] : memref<128x128xbf16, #tpu.memory_space<vmem>>, vector<128x128xbf16>
    %cst = arith.constant dense<0.000000e+00> : vector<512x128xf32>
    %6 = tpu.matmul %4, %5, %cst {dimension_numbers = #tpu.dot_dimension_numbers<[1], [0], [0], [1], [0, 0, 1, 1], [], []>} : vector<512x128xbf16>, vector<128x128xbf16>, vector<512x128xf32> -> vector<512x128xf32>
    %7 = arith.addf %3, %6 : vector<512x128xf32>
    %c0_6 = arith.constant 0 : index
    %c0_7 = arith.constant 0 : index
    %8 = vector.load %arg7[%c0_6, %c0_7] : memref<512x128xf32, #tpu.memory_space<vmem>>, vector<512x128xf32>
    tpu.vector_store %arg7[%c0_6, %c0_7], %7 {strides = array<i32>} : memref<512x128xf32, #tpu.memory_space<vmem>>, vector<512x128xf32>,
    %c0_i32_8 = arith.constant 0 : i32
    %9 = arith.cmpi eq, %arg2, %c0_i32_8 : i32
    %10 = arith.extui %9 : i1 to i32
    %c0_i32_9 = arith.constant 0 : i32
    %11 = arith.cmpi ne, %10, %c0_i32_9 : i32
    scf.if %11 {
      %c0_10 = arith.constant 0 : index
      %c0_11 = arith.constant 0 : index
      %12 = vector.load %arg7[%c0_10, %c0_11] : memref<512x128xf32, #tpu.memory_space<vmem>>, vector<512x128xf32>
      %c0_12 = arith.constant 0 : index
      %c0_13 = arith.constant 0 : index
      %13 = vector.load %arg5[%c0_12, %c0_13] : memref<1x128xf32, #tpu.memory_space<vmem>>, vector<1x128xf32>
      %14 = vector.broadcast %13 : vector<1x128xf32> to vector<512x128xf32>
      %15 = arith.addf %12, %14 : vector<512x128xf32>
      %16 = arith.truncf %15 : vector<512x128xf32> to vector<512x128xbf16>
      %c0_14 = arith.constant 0 : index
      %c0_15 = arith.constant 0 : index
      %17 = vector.load %arg6[%c0_14, %c0_15] : memref<512x128xbf16, #tpu.memory_space<vmem>>, vector<512x128xbf16>
      tpu.vector_store %arg6[%c0_14, %c0_15], %16 {strides = array<i32>} : memref<512x128xbf16, #tpu.memory_space<vmem>>, vector<512x128xbf16>,
    } else {
    }
    return
  }
  func.func @transform_0(%arg0: i32, %arg1: i32, %arg2: i32) -> (i32, i32) {
    %c0_i32 = arith.constant 0 : i32
    return %arg0, %arg2 : i32, i32
  }
  func.func @transform_1(%arg0: i32, %arg1: i32, %arg2: i32) -> (i32, i32) {
    %c0_i32 = arith.constant 0 : i32
    return %arg2, %arg1 : i32, i32
  }
  func.func @transform_2(%arg0: i32, %arg1: i32, %arg2: i32) -> (i32, i32) {
    %c0_i32 = arith.constant 0 : i32
    %c0_i32_0 = arith.constant 0 : i32
    return %c0_i32, %arg1 : i32, i32
  }
  func.func @transform_3(%arg0: i32, %arg1: i32, %arg2: i32) -> (i32, i32) {
    %c0_i32 = arith.constant 0 : i32
    return %arg0, %arg1 : i32, i32
  }
}

module attributes {stable_mosaic.version = 11 : i64} {
  func.func @_bn_stats_kernel(%arg0: i32, %arg1: i32, %arg2: memref<512x4xbf16, #tpu.memory_space<vmem>>, %arg3: memref<1x1x4xf32, #tpu.memory_space<vmem>>, %arg4: memref<1x1x4xf32, #tpu.memory_space<vmem>>) attributes {dimension_semantics = [#tpu.dimension_semantics<parallel>, #tpu.dimension_semantics<arbitrary>], iteration_bounds = array<i64: 2, 1>, scalar_prefetch = 0 : i64, scratch_operands = 0 : i64, tpu.core_type = #tpu.core_type<tc>, window_params = [{transform_indices = @transform_0, window_bounds = array<i64: 512, 4>}, {transform_indices = @transform_1, window_bounds = array<i64: 1, 1, 4>}, {transform_indices = @transform_2, window_bounds = array<i64: 1, 1, 4>}]} {
    %c0_i32 = arith.constant 0 : i32
    %0 = arith.cmpi eq, %arg1, %c0_i32 : i32
    %1 = arith.extui %0 : i1 to i32
    %c0_i32_0 = arith.constant 0 : i32
    %2 = arith.cmpi ne, %1, %c0_i32_0 : i32
    scf.if %2 {
      %cst_15 = arith.constant 0.000000e+00 : f32
      %18 = vector.broadcast %cst_15 : f32 to vector<1x1x4xf32>
      %c0_16 = arith.constant 0 : index
      %c0_17 = arith.constant 0 : index
      %c0_18 = arith.constant 0 : index
      %19 = vector.load %arg3[%c0_16, %c0_17, %c0_18] : memref<1x1x4xf32, #tpu.memory_space<vmem>>, vector<1x1x4xf32>
      tpu.vector_store %arg3[%c0_16, %c0_17, %c0_18], %18 {strides = array<i32>} : memref<1x1x4xf32, #tpu.memory_space<vmem>>, vector<1x1x4xf32>,
      %cst_19 = arith.constant 0.000000e+00 : f32
      %20 = vector.broadcast %cst_19 : f32 to vector<1x1x4xf32>
      %c0_20 = arith.constant 0 : index
      %c0_21 = arith.constant 0 : index
      %c0_22 = arith.constant 0 : index
      %21 = vector.load %arg4[%c0_20, %c0_21, %c0_22] : memref<1x1x4xf32, #tpu.memory_space<vmem>>, vector<1x1x4xf32>
      tpu.vector_store %arg4[%c0_20, %c0_21, %c0_22], %20 {strides = array<i32>} : memref<1x1x4xf32, #tpu.memory_space<vmem>>, vector<1x1x4xf32>,
    } else {
    }
    %c0 = arith.constant 0 : index
    %c0_1 = arith.constant 0 : index
    %3 = vector.load %arg2[%c0, %c0_1] : memref<512x4xbf16, #tpu.memory_space<vmem>>, vector<512x4xbf16>
    %4 = arith.extf %3 : vector<512x4xbf16> to vector<512x4xf32>
    %c0_2 = arith.constant 0 : index
    %c0_3 = arith.constant 0 : index
    %c0_4 = arith.constant 0 : index
    %5 = vector.load %arg3[%c0_2, %c0_3, %c0_4] : memref<1x1x4xf32, #tpu.memory_space<vmem>>, vector<1x1x4xf32>
    %cst = arith.constant dense<0.000000e+00> : vector<4xf32>
    %6 = vector.multi_reduction <add>, %4, %cst [0] : vector<512x4xf32> to vector<4xf32>
    %7 = vector.shape_cast %6 : vector<4xf32> to vector<1x4xf32>
    %8 = vector.shape_cast %7 : vector<1x4xf32> to vector<1x1x4xf32>
    %9 = arith.addf %5, %8 : vector<1x1x4xf32>
    %c0_5 = arith.constant 0 : index
    %c0_6 = arith.constant 0 : index
    %c0_7 = arith.constant 0 : index
    %10 = vector.load %arg3[%c0_5, %c0_6, %c0_7] : memref<1x1x4xf32, #tpu.memory_space<vmem>>, vector<1x1x4xf32>
    tpu.vector_store %arg3[%c0_5, %c0_6, %c0_7], %9 {strides = array<i32>} : memref<1x1x4xf32, #tpu.memory_space<vmem>>, vector<1x1x4xf32>,
    %c0_8 = arith.constant 0 : index
    %c0_9 = arith.constant 0 : index
    %c0_10 = arith.constant 0 : index
    %11 = vector.load %arg4[%c0_8, %c0_9, %c0_10] : memref<1x1x4xf32, #tpu.memory_space<vmem>>, vector<1x1x4xf32>
    %12 = arith.mulf %4, %4 : vector<512x4xf32>
    %cst_11 = arith.constant dense<0.000000e+00> : vector<4xf32>
    %13 = vector.multi_reduction <add>, %12, %cst_11 [0] : vector<512x4xf32> to vector<4xf32>
    %14 = vector.shape_cast %13 : vector<4xf32> to vector<1x4xf32>
    %15 = vector.shape_cast %14 : vector<1x4xf32> to vector<1x1x4xf32>
    %16 = arith.addf %11, %15 : vector<1x1x4xf32>
    %c0_12 = arith.constant 0 : index
    %c0_13 = arith.constant 0 : index
    %c0_14 = arith.constant 0 : index
    %17 = vector.load %arg4[%c0_12, %c0_13, %c0_14] : memref<1x1x4xf32, #tpu.memory_space<vmem>>, vector<1x1x4xf32>
    tpu.vector_store %arg4[%c0_12, %c0_13, %c0_14], %16 {strides = array<i32>} : memref<1x1x4xf32, #tpu.memory_space<vmem>>, vector<1x1x4xf32>,
    return
  }
  func.func @transform_0(%arg0: i32, %arg1: i32) -> (i32, i32) {
    %c1_i32 = arith.constant 1 : i32
    %0 = arith.muli %arg0, %c1_i32 : i32
    %1 = arith.addi %0, %arg1 : i32
    %c0_i32 = arith.constant 0 : i32
    %c0_i32_0 = arith.constant 0 : i32
    return %1, %c0_i32 : i32, i32
  }
  func.func @transform_1(%arg0: i32, %arg1: i32) -> (i32, i32, i32) {
    %c0_i32 = arith.constant 0 : i32
    %c0_i32_0 = arith.constant 0 : i32
    %c0_i32_1 = arith.constant 0 : i32
    return %arg0, %c0_i32, %c0_i32_0 : i32, i32, i32
  }
  func.func @transform_2(%arg0: i32, %arg1: i32) -> (i32, i32, i32) {
    %c0_i32 = arith.constant 0 : i32
    %c0_i32_0 = arith.constant 0 : i32
    %c0_i32_1 = arith.constant 0 : i32
    return %arg0, %c0_i32, %c0_i32_0 : i32, i32, i32
  }
}

module attributes {stable_mosaic.version = 11 : i64} {
  func.func @_bn_apply_kernel(%arg0: i32, %arg1: memref<512x4xbf16, #tpu.memory_space<vmem>>, %arg2: memref<1x4xf32, #tpu.memory_space<vmem>>, %arg3: memref<1x4xf32, #tpu.memory_space<vmem>>, %arg4: memref<512x4xbf16, #tpu.memory_space<vmem>>) attributes {dimension_semantics = [#tpu.dimension_semantics<parallel>], iteration_bounds = array<i64: 2>, scalar_prefetch = 0 : i64, scratch_operands = 0 : i64, tpu.core_type = #tpu.core_type<tc>, window_params = [{transform_indices = @transform_0, window_bounds = array<i64: 512, 4>}, {pipeline_mode = #tpu.pipeline_mode<synchronous>, transform_indices = @transform_1, window_bounds = array<i64: 1, 4>}, {pipeline_mode = #tpu.pipeline_mode<synchronous>, transform_indices = @transform_2, window_bounds = array<i64: 1, 4>}, {transform_indices = @transform_3, window_bounds = array<i64: 512, 4>}]} {
    %c0 = arith.constant 0 : index
    %c0_0 = arith.constant 0 : index
    %0 = vector.load %arg1[%c0, %c0_0] : memref<512x4xbf16, #tpu.memory_space<vmem>>, vector<512x4xbf16>
    %1 = arith.extf %0 : vector<512x4xbf16> to vector<512x4xf32>
    %c0_1 = arith.constant 0 : index
    %c0_2 = arith.constant 0 : index
    %2 = vector.load %arg2[%c0_1, %c0_2] : memref<1x4xf32, #tpu.memory_space<vmem>>, vector<1x4xf32>
    %3 = vector.broadcast %2 : vector<1x4xf32> to vector<512x4xf32>
    %4 = arith.mulf %1, %3 : vector<512x4xf32>
    %c0_3 = arith.constant 0 : index
    %c0_4 = arith.constant 0 : index
    %5 = vector.load %arg3[%c0_3, %c0_4] : memref<1x4xf32, #tpu.memory_space<vmem>>, vector<1x4xf32>
    %6 = vector.broadcast %5 : vector<1x4xf32> to vector<512x4xf32>
    %7 = arith.addf %4, %6 : vector<512x4xf32>
    %cst = arith.constant 0.000000e+00 : f32
    %8 = vector.broadcast %cst : f32 to vector<512x4xf32>
    %9 = arith.subf %8, %7 : vector<512x4xf32>
    %10 = math.exp %9 : vector<512x4xf32>
    %cst_5 = arith.constant 1.000000e+00 : f32
    %11 = vector.broadcast %cst_5 : f32 to vector<512x4xf32>
    %12 = arith.addf %11, %10 : vector<512x4xf32>
    %13 = tpu.reciprocal %12 {approx = true} : vector<512x4xf32> -> vector<512x4xf32>
    %14 = arith.mulf %7, %13 : vector<512x4xf32>
    %15 = arith.truncf %14 : vector<512x4xf32> to vector<512x4xbf16>
    %c0_6 = arith.constant 0 : index
    %c0_7 = arith.constant 0 : index
    %16 = vector.load %arg4[%c0_6, %c0_7] : memref<512x4xbf16, #tpu.memory_space<vmem>>, vector<512x4xbf16>
    tpu.vector_store %arg4[%c0_6, %c0_7], %15 {strides = array<i32>} : memref<512x4xbf16, #tpu.memory_space<vmem>>, vector<512x4xbf16>,
    return
  }
  func.func @transform_0(%arg0: i32) -> (i32, i32) {
    %c0_i32 = arith.constant 0 : i32
    %c0_i32_0 = arith.constant 0 : i32
    return %arg0, %c0_i32 : i32, i32
  }
  func.func @transform_1(%arg0: i32) -> (i32, i32) {
    %c0_i32 = arith.constant 0 : i32
    %c0_i32_0 = arith.constant 0 : i32
    %c0_i32_1 = arith.constant 0 : i32
    return %c0_i32, %c0_i32_0 : i32, i32
  }
  func.func @transform_2(%arg0: i32) -> (i32, i32) {
    %c0_i32 = arith.constant 0 : i32
    %c0_i32_0 = arith.constant 0 : i32
    %c0_i32_1 = arith.constant 0 : i32
    return %c0_i32, %c0_i32_0 : i32, i32
  }
  func.func @transform_3(%arg0: i32) -> (i32, i32) {
    %c0_i32 = arith.constant 0 : i32
    %c0_i32_0 = arith.constant 0 : i32
    return %arg0, %c0_i32 : i32, i32
  }
}

module attributes {stable_mosaic.version = 11 : i64} {
  func.func @_matmul_kernel(%arg0: i32, %arg1: i32, %arg2: i32, %arg3: memref<512x128xbf16, #tpu.memory_space<vmem>>, %arg4: memref<128x128xbf16, #tpu.memory_space<vmem>>, %arg5: memref<1x128xf32, #tpu.memory_space<vmem>>, %arg6: memref<512x128xbf16, #tpu.memory_space<vmem>>, %arg7: memref<512x128xbf16, #tpu.memory_space<vmem>>, %arg8: memref<512x128xf32, #tpu.memory_space<vmem>>) attributes {dimension_semantics = [#tpu.dimension_semantics<parallel>, #tpu.dimension_semantics<parallel>, #tpu.dimension_semantics<arbitrary>], iteration_bounds = array<i64: 2, 1, 1>, scalar_prefetch = 0 : i64, scratch_operands = 1 : i64, tpu.core_type = #tpu.core_type<tc>, window_params = [{transform_indices = @transform_0, window_bounds = array<i64: 512, 128>}, {transform_indices = @transform_1, window_bounds = array<i64: 128, 128>}, {transform_indices = @transform_2, window_bounds = array<i64: 1, 128>}, {transform_indices = @transform_3, window_bounds = array<i64: 512, 128>}, {transform_indices = @transform_4, window_bounds = array<i64: 512, 128>}]} {
    %c0_i32 = arith.constant 0 : i32
    %0 = arith.cmpi eq, %arg2, %c0_i32 : i32
    %1 = arith.extui %0 : i1 to i32
    %c0_i32_0 = arith.constant 0 : i32
    %2 = arith.cmpi ne, %1, %c0_i32_0 : i32
    scf.if %2 {
      %cst_10 = arith.constant 0.000000e+00 : f32
      %12 = vector.broadcast %cst_10 : f32 to vector<512x128xf32>
      %c0_11 = arith.constant 0 : index
      %c0_12 = arith.constant 0 : index
      %13 = vector.load %arg8[%c0_11, %c0_12] : memref<512x128xf32, #tpu.memory_space<vmem>>, vector<512x128xf32>
      tpu.vector_store %arg8[%c0_11, %c0_12], %12 {strides = array<i32>} : memref<512x128xf32, #tpu.memory_space<vmem>>, vector<512x128xf32>,
    } else {
    }
    %c0 = arith.constant 0 : index
    %c0_1 = arith.constant 0 : index
    %3 = vector.load %arg8[%c0, %c0_1] : memref<512x128xf32, #tpu.memory_space<vmem>>, vector<512x128xf32>
    %c0_2 = arith.constant 0 : index
    %c0_3 = arith.constant 0 : index
    %4 = vector.load %arg3[%c0_2, %c0_3] : memref<512x128xbf16, #tpu.memory_space<vmem>>, vector<512x128xbf16>
    %c0_4 = arith.constant 0 : index
    %c0_5 = arith.constant 0 : index
    %5 = vector.load %arg4[%c0_4, %c0_5] : memref<128x128xbf16, #tpu.memory_space<vmem>>, vector<128x128xbf16>
    %cst = arith.constant dense<0.000000e+00> : vector<512x128xf32>
    %6 = tpu.matmul %4, %5, %cst {dimension_numbers = #tpu.dot_dimension_numbers<[1], [0], [0], [1], [0, 0, 1, 1], [], []>} : vector<512x128xbf16>, vector<128x128xbf16>, vector<512x128xf32> -> vector<512x128xf32>
    %7 = arith.addf %3, %6 : vector<512x128xf32>
    %c0_6 = arith.constant 0 : index
    %c0_7 = arith.constant 0 : index
    %8 = vector.load %arg8[%c0_6, %c0_7] : memref<512x128xf32, #tpu.memory_space<vmem>>, vector<512x128xf32>
    tpu.vector_store %arg8[%c0_6, %c0_7], %7 {strides = array<i32>} : memref<512x128xf32, #tpu.memory_space<vmem>>, vector<512x128xf32>,
    %c0_i32_8 = arith.constant 0 : i32
    %9 = arith.cmpi eq, %arg2, %c0_i32_8 : i32
    %10 = arith.extui %9 : i1 to i32
    %c0_i32_9 = arith.constant 0 : i32
    %11 = arith.cmpi ne, %10, %c0_i32_9 : i32
    scf.if %11 {
      %c0_10 = arith.constant 0 : index
      %c0_11 = arith.constant 0 : index
      %12 = vector.load %arg8[%c0_10, %c0_11] : memref<512x128xf32, #tpu.memory_space<vmem>>, vector<512x128xf32>
      %c0_12 = arith.constant 0 : index
      %c0_13 = arith.constant 0 : index
      %13 = vector.load %arg5[%c0_12, %c0_13] : memref<1x128xf32, #tpu.memory_space<vmem>>, vector<1x128xf32>
      %14 = vector.broadcast %13 : vector<1x128xf32> to vector<512x128xf32>
      %15 = arith.addf %12, %14 : vector<512x128xf32>
      %c0_14 = arith.constant 0 : index
      %c0_15 = arith.constant 0 : index
      %16 = vector.load %arg6[%c0_14, %c0_15] : memref<512x128xbf16, #tpu.memory_space<vmem>>, vector<512x128xbf16>
      %17 = arith.extf %16 : vector<512x128xbf16> to vector<512x128xf32>
      %18 = arith.addf %15, %17 : vector<512x128xf32>
      %19 = arith.truncf %18 : vector<512x128xf32> to vector<512x128xbf16>
      %c0_16 = arith.constant 0 : index
      %c0_17 = arith.constant 0 : index
      %20 = vector.load %arg7[%c0_16, %c0_17] : memref<512x128xbf16, #tpu.memory_space<vmem>>, vector<512x128xbf16>
      tpu.vector_store %arg7[%c0_16, %c0_17], %19 {strides = array<i32>} : memref<512x128xbf16, #tpu.memory_space<vmem>>, vector<512x128xbf16>,
    } else {
    }
    return
  }
  func.func @transform_0(%arg0: i32, %arg1: i32, %arg2: i32) -> (i32, i32) {
    %c0_i32 = arith.constant 0 : i32
    return %arg0, %arg2 : i32, i32
  }
  func.func @transform_1(%arg0: i32, %arg1: i32, %arg2: i32) -> (i32, i32) {
    %c0_i32 = arith.constant 0 : i32
    return %arg2, %arg1 : i32, i32
  }
  func.func @transform_2(%arg0: i32, %arg1: i32, %arg2: i32) -> (i32, i32) {
    %c0_i32 = arith.constant 0 : i32
    %c0_i32_0 = arith.constant 0 : i32
    return %c0_i32, %arg1 : i32, i32
  }
  func.func @transform_3(%arg0: i32, %arg1: i32, %arg2: i32) -> (i32, i32) {
    %c0_i32 = arith.constant 0 : i32
    return %arg0, %arg1 : i32, i32
  }
  func.func @transform_4(%arg0: i32, %arg1: i32, %arg2: i32) -> (i32, i32) {
    %c0_i32 = arith.constant 0 : i32
    return %arg0, %arg1 : i32, i32
  }
}

module attributes {stable_mosaic.version = 11 : i64} {
  func.func @_matmul_kernel(%arg0: i32, %arg1: i32, %arg2: i32, %arg3: memref<64x128xbf16, #tpu.memory_space<vmem>>, %arg4: memref<128x128xbf16, #tpu.memory_space<vmem>>, %arg5: memref<1x128xf32, #tpu.memory_space<vmem>>, %arg6: memref<64x128xbf16, #tpu.memory_space<vmem>>, %arg7: memref<64x128xf32, #tpu.memory_space<vmem>>) attributes {dimension_semantics = [#tpu.dimension_semantics<parallel>, #tpu.dimension_semantics<parallel>, #tpu.dimension_semantics<arbitrary>], iteration_bounds = array<i64: 1, 1, 1>, scalar_prefetch = 0 : i64, scratch_operands = 1 : i64, tpu.core_type = #tpu.core_type<tc>, window_params = [{transform_indices = @transform_0, window_bounds = array<i64: 64, 128>}, {transform_indices = @transform_1, window_bounds = array<i64: 128, 128>}, {transform_indices = @transform_2, window_bounds = array<i64: 1, 128>}, {transform_indices = @transform_3, window_bounds = array<i64: 64, 128>}]} {
    %c0_i32 = arith.constant 0 : i32
    %0 = arith.cmpi eq, %arg2, %c0_i32 : i32
    %1 = arith.extui %0 : i1 to i32
    %c0_i32_0 = arith.constant 0 : i32
    %2 = arith.cmpi ne, %1, %c0_i32_0 : i32
    scf.if %2 {
      %cst_10 = arith.constant 0.000000e+00 : f32
      %12 = vector.broadcast %cst_10 : f32 to vector<64x128xf32>
      %c0_11 = arith.constant 0 : index
      %c0_12 = arith.constant 0 : index
      %13 = vector.load %arg7[%c0_11, %c0_12] : memref<64x128xf32, #tpu.memory_space<vmem>>, vector<64x128xf32>
      tpu.vector_store %arg7[%c0_11, %c0_12], %12 {strides = array<i32>} : memref<64x128xf32, #tpu.memory_space<vmem>>, vector<64x128xf32>,
    } else {
    }
    %c0 = arith.constant 0 : index
    %c0_1 = arith.constant 0 : index
    %3 = vector.load %arg7[%c0, %c0_1] : memref<64x128xf32, #tpu.memory_space<vmem>>, vector<64x128xf32>
    %c0_2 = arith.constant 0 : index
    %c0_3 = arith.constant 0 : index
    %4 = vector.load %arg3[%c0_2, %c0_3] : memref<64x128xbf16, #tpu.memory_space<vmem>>, vector<64x128xbf16>
    %c0_4 = arith.constant 0 : index
    %c0_5 = arith.constant 0 : index
    %5 = vector.load %arg4[%c0_4, %c0_5] : memref<128x128xbf16, #tpu.memory_space<vmem>>, vector<128x128xbf16>
    %cst = arith.constant dense<0.000000e+00> : vector<64x128xf32>
    %6 = tpu.matmul %4, %5, %cst {dimension_numbers = #tpu.dot_dimension_numbers<[1], [0], [0], [1], [0, 0, 1, 1], [], []>} : vector<64x128xbf16>, vector<128x128xbf16>, vector<64x128xf32> -> vector<64x128xf32>
    %7 = arith.addf %3, %6 : vector<64x128xf32>
    %c0_6 = arith.constant 0 : index
    %c0_7 = arith.constant 0 : index
    %8 = vector.load %arg7[%c0_6, %c0_7] : memref<64x128xf32, #tpu.memory_space<vmem>>, vector<64x128xf32>
    tpu.vector_store %arg7[%c0_6, %c0_7], %7 {strides = array<i32>} : memref<64x128xf32, #tpu.memory_space<vmem>>, vector<64x128xf32>,
    %c0_i32_8 = arith.constant 0 : i32
    %9 = arith.cmpi eq, %arg2, %c0_i32_8 : i32
    %10 = arith.extui %9 : i1 to i32
    %c0_i32_9 = arith.constant 0 : i32
    %11 = arith.cmpi ne, %10, %c0_i32_9 : i32
    scf.if %11 {
      %c0_10 = arith.constant 0 : index
      %c0_11 = arith.constant 0 : index
      %12 = vector.load %arg7[%c0_10, %c0_11] : memref<64x128xf32, #tpu.memory_space<vmem>>, vector<64x128xf32>
      %c0_12 = arith.constant 0 : index
      %c0_13 = arith.constant 0 : index
      %13 = vector.load %arg5[%c0_12, %c0_13] : memref<1x128xf32, #tpu.memory_space<vmem>>, vector<1x128xf32>
      %14 = vector.broadcast %13 : vector<1x128xf32> to vector<64x128xf32>
      %15 = arith.addf %12, %14 : vector<64x128xf32>
      %16 = arith.truncf %15 : vector<64x128xf32> to vector<64x128xbf16>
      %c0_14 = arith.constant 0 : index
      %c0_15 = arith.constant 0 : index
      %17 = vector.load %arg6[%c0_14, %c0_15] : memref<64x128xbf16, #tpu.memory_space<vmem>>, vector<64x128xbf16>
      tpu.vector_store %arg6[%c0_14, %c0_15], %16 {strides = array<i32>} : memref<64x128xbf16, #tpu.memory_space<vmem>>, vector<64x128xbf16>,
    } else {
    }
    return
  }
  func.func @transform_0(%arg0: i32, %arg1: i32, %arg2: i32) -> (i32, i32) {
    %c0_i32 = arith.constant 0 : i32
    return %arg0, %arg2 : i32, i32
  }
  func.func @transform_1(%arg0: i32, %arg1: i32, %arg2: i32) -> (i32, i32) {
    %c0_i32 = arith.constant 0 : i32
    return %arg2, %arg1 : i32, i32
  }
  func.func @transform_2(%arg0: i32, %arg1: i32, %arg2: i32) -> (i32, i32) {
    %c0_i32 = arith.constant 0 : i32
    %c0_i32_0 = arith.constant 0 : i32
    return %c0_i32, %arg1 : i32, i32
  }
  func.func @transform_3(%arg0: i32, %arg1: i32, %arg2: i32) -> (i32, i32) {
    %c0_i32 = arith.constant 0 : i32
    return %arg0, %arg1 : i32, i32
  }
}

module attributes {stable_mosaic.version = 11 : i64} {
  func.func @_bn_stats_kernel(%arg0: i32, %arg1: i32, %arg2: memref<64x4xbf16, #tpu.memory_space<vmem>>, %arg3: memref<1x1x4xf32, #tpu.memory_space<vmem>>, %arg4: memref<1x1x4xf32, #tpu.memory_space<vmem>>) attributes {dimension_semantics = [#tpu.dimension_semantics<parallel>, #tpu.dimension_semantics<arbitrary>], iteration_bounds = array<i64: 2, 1>, scalar_prefetch = 0 : i64, scratch_operands = 0 : i64, tpu.core_type = #tpu.core_type<tc>, window_params = [{transform_indices = @transform_0, window_bounds = array<i64: 64, 4>}, {transform_indices = @transform_1, window_bounds = array<i64: 1, 1, 4>}, {transform_indices = @transform_2, window_bounds = array<i64: 1, 1, 4>}]} {
    %c0_i32 = arith.constant 0 : i32
    %0 = arith.cmpi eq, %arg1, %c0_i32 : i32
    %1 = arith.extui %0 : i1 to i32
    %c0_i32_0 = arith.constant 0 : i32
    %2 = arith.cmpi ne, %1, %c0_i32_0 : i32
    scf.if %2 {
      %cst_15 = arith.constant 0.000000e+00 : f32
      %18 = vector.broadcast %cst_15 : f32 to vector<1x1x4xf32>
      %c0_16 = arith.constant 0 : index
      %c0_17 = arith.constant 0 : index
      %c0_18 = arith.constant 0 : index
      %19 = vector.load %arg3[%c0_16, %c0_17, %c0_18] : memref<1x1x4xf32, #tpu.memory_space<vmem>>, vector<1x1x4xf32>
      tpu.vector_store %arg3[%c0_16, %c0_17, %c0_18], %18 {strides = array<i32>} : memref<1x1x4xf32, #tpu.memory_space<vmem>>, vector<1x1x4xf32>,
      %cst_19 = arith.constant 0.000000e+00 : f32
      %20 = vector.broadcast %cst_19 : f32 to vector<1x1x4xf32>
      %c0_20 = arith.constant 0 : index
      %c0_21 = arith.constant 0 : index
      %c0_22 = arith.constant 0 : index
      %21 = vector.load %arg4[%c0_20, %c0_21, %c0_22] : memref<1x1x4xf32, #tpu.memory_space<vmem>>, vector<1x1x4xf32>
      tpu.vector_store %arg4[%c0_20, %c0_21, %c0_22], %20 {strides = array<i32>} : memref<1x1x4xf32, #tpu.memory_space<vmem>>, vector<1x1x4xf32>,
    } else {
    }
    %c0 = arith.constant 0 : index
    %c0_1 = arith.constant 0 : index
    %3 = vector.load %arg2[%c0, %c0_1] : memref<64x4xbf16, #tpu.memory_space<vmem>>, vector<64x4xbf16>
    %4 = arith.extf %3 : vector<64x4xbf16> to vector<64x4xf32>
    %c0_2 = arith.constant 0 : index
    %c0_3 = arith.constant 0 : index
    %c0_4 = arith.constant 0 : index
    %5 = vector.load %arg3[%c0_2, %c0_3, %c0_4] : memref<1x1x4xf32, #tpu.memory_space<vmem>>, vector<1x1x4xf32>
    %cst = arith.constant dense<0.000000e+00> : vector<4xf32>
    %6 = vector.multi_reduction <add>, %4, %cst [0] : vector<64x4xf32> to vector<4xf32>
    %7 = vector.shape_cast %6 : vector<4xf32> to vector<1x4xf32>
    %8 = vector.shape_cast %7 : vector<1x4xf32> to vector<1x1x4xf32>
    %9 = arith.addf %5, %8 : vector<1x1x4xf32>
    %c0_5 = arith.constant 0 : index
    %c0_6 = arith.constant 0 : index
    %c0_7 = arith.constant 0 : index
    %10 = vector.load %arg3[%c0_5, %c0_6, %c0_7] : memref<1x1x4xf32, #tpu.memory_space<vmem>>, vector<1x1x4xf32>
    tpu.vector_store %arg3[%c0_5, %c0_6, %c0_7], %9 {strides = array<i32>} : memref<1x1x4xf32, #tpu.memory_space<vmem>>, vector<1x1x4xf32>,
    %c0_8 = arith.constant 0 : index
    %c0_9 = arith.constant 0 : index
    %c0_10 = arith.constant 0 : index
    %11 = vector.load %arg4[%c0_8, %c0_9, %c0_10] : memref<1x1x4xf32, #tpu.memory_space<vmem>>, vector<1x1x4xf32>
    %12 = arith.mulf %4, %4 : vector<64x4xf32>
    %cst_11 = arith.constant dense<0.000000e+00> : vector<4xf32>
    %13 = vector.multi_reduction <add>, %12, %cst_11 [0] : vector<64x4xf32> to vector<4xf32>
    %14 = vector.shape_cast %13 : vector<4xf32> to vector<1x4xf32>
    %15 = vector.shape_cast %14 : vector<1x4xf32> to vector<1x1x4xf32>
    %16 = arith.addf %11, %15 : vector<1x1x4xf32>
    %c0_12 = arith.constant 0 : index
    %c0_13 = arith.constant 0 : index
    %c0_14 = arith.constant 0 : index
    %17 = vector.load %arg4[%c0_12, %c0_13, %c0_14] : memref<1x1x4xf32, #tpu.memory_space<vmem>>, vector<1x1x4xf32>
    tpu.vector_store %arg4[%c0_12, %c0_13, %c0_14], %16 {strides = array<i32>} : memref<1x1x4xf32, #tpu.memory_space<vmem>>, vector<1x1x4xf32>,
    return
  }
  func.func @transform_0(%arg0: i32, %arg1: i32) -> (i32, i32) {
    %c1_i32 = arith.constant 1 : i32
    %0 = arith.muli %arg0, %c1_i32 : i32
    %1 = arith.addi %0, %arg1 : i32
    %c0_i32 = arith.constant 0 : i32
    %c0_i32_0 = arith.constant 0 : i32
    return %1, %c0_i32 : i32, i32
  }
  func.func @transform_1(%arg0: i32, %arg1: i32) -> (i32, i32, i32) {
    %c0_i32 = arith.constant 0 : i32
    %c0_i32_0 = arith.constant 0 : i32
    %c0_i32_1 = arith.constant 0 : i32
    return %arg0, %c0_i32, %c0_i32_0 : i32, i32, i32
  }
  func.func @transform_2(%arg0: i32, %arg1: i32) -> (i32, i32, i32) {
    %c0_i32 = arith.constant 0 : i32
    %c0_i32_0 = arith.constant 0 : i32
    %c0_i32_1 = arith.constant 0 : i32
    return %arg0, %c0_i32, %c0_i32_0 : i32, i32, i32
  }
}

module attributes {stable_mosaic.version = 11 : i64} {
  func.func @_bn_apply_kernel(%arg0: i32, %arg1: memref<64x4xbf16, #tpu.memory_space<vmem>>, %arg2: memref<1x4xf32, #tpu.memory_space<vmem>>, %arg3: memref<1x4xf32, #tpu.memory_space<vmem>>, %arg4: memref<64x4xbf16, #tpu.memory_space<vmem>>) attributes {dimension_semantics = [#tpu.dimension_semantics<parallel>], iteration_bounds = array<i64: 2>, scalar_prefetch = 0 : i64, scratch_operands = 0 : i64, tpu.core_type = #tpu.core_type<tc>, window_params = [{transform_indices = @transform_0, window_bounds = array<i64: 64, 4>}, {pipeline_mode = #tpu.pipeline_mode<synchronous>, transform_indices = @transform_1, window_bounds = array<i64: 1, 4>}, {pipeline_mode = #tpu.pipeline_mode<synchronous>, transform_indices = @transform_2, window_bounds = array<i64: 1, 4>}, {transform_indices = @transform_3, window_bounds = array<i64: 64, 4>}]} {
    %c0 = arith.constant 0 : index
    %c0_0 = arith.constant 0 : index
    %0 = vector.load %arg1[%c0, %c0_0] : memref<64x4xbf16, #tpu.memory_space<vmem>>, vector<64x4xbf16>
    %1 = arith.extf %0 : vector<64x4xbf16> to vector<64x4xf32>
    %c0_1 = arith.constant 0 : index
    %c0_2 = arith.constant 0 : index
    %2 = vector.load %arg2[%c0_1, %c0_2] : memref<1x4xf32, #tpu.memory_space<vmem>>, vector<1x4xf32>
    %3 = vector.broadcast %2 : vector<1x4xf32> to vector<64x4xf32>
    %4 = arith.mulf %1, %3 : vector<64x4xf32>
    %c0_3 = arith.constant 0 : index
    %c0_4 = arith.constant 0 : index
    %5 = vector.load %arg3[%c0_3, %c0_4] : memref<1x4xf32, #tpu.memory_space<vmem>>, vector<1x4xf32>
    %6 = vector.broadcast %5 : vector<1x4xf32> to vector<64x4xf32>
    %7 = arith.addf %4, %6 : vector<64x4xf32>
    %cst = arith.constant 0.000000e+00 : f32
    %8 = vector.broadcast %cst : f32 to vector<64x4xf32>
    %9 = arith.subf %8, %7 : vector<64x4xf32>
    %10 = math.exp %9 : vector<64x4xf32>
    %cst_5 = arith.constant 1.000000e+00 : f32
    %11 = vector.broadcast %cst_5 : f32 to vector<64x4xf32>
    %12 = arith.addf %11, %10 : vector<64x4xf32>
    %13 = tpu.reciprocal %12 {approx = true} : vector<64x4xf32> -> vector<64x4xf32>
    %14 = arith.mulf %7, %13 : vector<64x4xf32>
    %15 = arith.truncf %14 : vector<64x4xf32> to vector<64x4xbf16>
    %c0_6 = arith.constant 0 : index
    %c0_7 = arith.constant 0 : index
    %16 = vector.load %arg4[%c0_6, %c0_7] : memref<64x4xbf16, #tpu.memory_space<vmem>>, vector<64x4xbf16>
    tpu.vector_store %arg4[%c0_6, %c0_7], %15 {strides = array<i32>} : memref<64x4xbf16, #tpu.memory_space<vmem>>, vector<64x4xbf16>,
    return
  }
  func.func @transform_0(%arg0: i32) -> (i32, i32) {
    %c0_i32 = arith.constant 0 : i32
    %c0_i32_0 = arith.constant 0 : i32
    return %arg0, %c0_i32 : i32, i32
  }
  func.func @transform_1(%arg0: i32) -> (i32, i32) {
    %c0_i32 = arith.constant 0 : i32
    %c0_i32_0 = arith.constant 0 : i32
    %c0_i32_1 = arith.constant 0 : i32
    return %c0_i32, %c0_i32_0 : i32, i32
  }
  func.func @transform_2(%arg0: i32) -> (i32, i32) {
    %c0_i32 = arith.constant 0 : i32
    %c0_i32_0 = arith.constant 0 : i32
    %c0_i32_1 = arith.constant 0 : i32
    return %c0_i32, %c0_i32_0 : i32, i32
  }
  func.func @transform_3(%arg0: i32) -> (i32, i32) {
    %c0_i32 = arith.constant 0 : i32
    %c0_i32_0 = arith.constant 0 : i32
    return %arg0, %c0_i32 : i32, i32
  }
}

module attributes {stable_mosaic.version = 11 : i64} {
  func.func @_bn_stats_kernel(%arg0: i32, %arg1: i32, %arg2: memref<64x8xbf16, #tpu.memory_space<vmem>>, %arg3: memref<1x1x8xf32, #tpu.memory_space<vmem>>, %arg4: memref<1x1x8xf32, #tpu.memory_space<vmem>>) attributes {dimension_semantics = [#tpu.dimension_semantics<parallel>, #tpu.dimension_semantics<arbitrary>], iteration_bounds = array<i64: 2, 1>, scalar_prefetch = 0 : i64, scratch_operands = 0 : i64, tpu.core_type = #tpu.core_type<tc>, window_params = [{transform_indices = @transform_0, window_bounds = array<i64: 64, 8>}, {transform_indices = @transform_1, window_bounds = array<i64: 1, 1, 8>}, {transform_indices = @transform_2, window_bounds = array<i64: 1, 1, 8>}]} {
    %c0_i32 = arith.constant 0 : i32
    %0 = arith.cmpi eq, %arg1, %c0_i32 : i32
    %1 = arith.extui %0 : i1 to i32
    %c0_i32_0 = arith.constant 0 : i32
    %2 = arith.cmpi ne, %1, %c0_i32_0 : i32
    scf.if %2 {
      %cst_15 = arith.constant 0.000000e+00 : f32
      %18 = vector.broadcast %cst_15 : f32 to vector<1x1x8xf32>
      %c0_16 = arith.constant 0 : index
      %c0_17 = arith.constant 0 : index
      %c0_18 = arith.constant 0 : index
      %19 = vector.load %arg3[%c0_16, %c0_17, %c0_18] : memref<1x1x8xf32, #tpu.memory_space<vmem>>, vector<1x1x8xf32>
      tpu.vector_store %arg3[%c0_16, %c0_17, %c0_18], %18 {strides = array<i32>} : memref<1x1x8xf32, #tpu.memory_space<vmem>>, vector<1x1x8xf32>,
      %cst_19 = arith.constant 0.000000e+00 : f32
      %20 = vector.broadcast %cst_19 : f32 to vector<1x1x8xf32>
      %c0_20 = arith.constant 0 : index
      %c0_21 = arith.constant 0 : index
      %c0_22 = arith.constant 0 : index
      %21 = vector.load %arg4[%c0_20, %c0_21, %c0_22] : memref<1x1x8xf32, #tpu.memory_space<vmem>>, vector<1x1x8xf32>
      tpu.vector_store %arg4[%c0_20, %c0_21, %c0_22], %20 {strides = array<i32>} : memref<1x1x8xf32, #tpu.memory_space<vmem>>, vector<1x1x8xf32>,
    } else {
    }
    %c0 = arith.constant 0 : index
    %c0_1 = arith.constant 0 : index
    %3 = vector.load %arg2[%c0, %c0_1] : memref<64x8xbf16, #tpu.memory_space<vmem>>, vector<64x8xbf16>
    %4 = arith.extf %3 : vector<64x8xbf16> to vector<64x8xf32>
    %c0_2 = arith.constant 0 : index
    %c0_3 = arith.constant 0 : index
    %c0_4 = arith.constant 0 : index
    %5 = vector.load %arg3[%c0_2, %c0_3, %c0_4] : memref<1x1x8xf32, #tpu.memory_space<vmem>>, vector<1x1x8xf32>
    %cst = arith.constant dense<0.000000e+00> : vector<8xf32>
    %6 = vector.multi_reduction <add>, %4, %cst [0] : vector<64x8xf32> to vector<8xf32>
    %7 = vector.shape_cast %6 : vector<8xf32> to vector<1x8xf32>
    %8 = vector.shape_cast %7 : vector<1x8xf32> to vector<1x1x8xf32>
    %9 = arith.addf %5, %8 : vector<1x1x8xf32>
    %c0_5 = arith.constant 0 : index
    %c0_6 = arith.constant 0 : index
    %c0_7 = arith.constant 0 : index
    %10 = vector.load %arg3[%c0_5, %c0_6, %c0_7] : memref<1x1x8xf32, #tpu.memory_space<vmem>>, vector<1x1x8xf32>
    tpu.vector_store %arg3[%c0_5, %c0_6, %c0_7], %9 {strides = array<i32>} : memref<1x1x8xf32, #tpu.memory_space<vmem>>, vector<1x1x8xf32>,
    %c0_8 = arith.constant 0 : index
    %c0_9 = arith.constant 0 : index
    %c0_10 = arith.constant 0 : index
    %11 = vector.load %arg4[%c0_8, %c0_9, %c0_10] : memref<1x1x8xf32, #tpu.memory_space<vmem>>, vector<1x1x8xf32>
    %12 = arith.mulf %4, %4 : vector<64x8xf32>
    %cst_11 = arith.constant dense<0.000000e+00> : vector<8xf32>
    %13 = vector.multi_reduction <add>, %12, %cst_11 [0] : vector<64x8xf32> to vector<8xf32>
    %14 = vector.shape_cast %13 : vector<8xf32> to vector<1x8xf32>
    %15 = vector.shape_cast %14 : vector<1x8xf32> to vector<1x1x8xf32>
    %16 = arith.addf %11, %15 : vector<1x1x8xf32>
    %c0_12 = arith.constant 0 : index
    %c0_13 = arith.constant 0 : index
    %c0_14 = arith.constant 0 : index
    %17 = vector.load %arg4[%c0_12, %c0_13, %c0_14] : memref<1x1x8xf32, #tpu.memory_space<vmem>>, vector<1x1x8xf32>
    tpu.vector_store %arg4[%c0_12, %c0_13, %c0_14], %16 {strides = array<i32>} : memref<1x1x8xf32, #tpu.memory_space<vmem>>, vector<1x1x8xf32>,
    return
  }
  func.func @transform_0(%arg0: i32, %arg1: i32) -> (i32, i32) {
    %c1_i32 = arith.constant 1 : i32
    %0 = arith.muli %arg0, %c1_i32 : i32
    %1 = arith.addi %0, %arg1 : i32
    %c0_i32 = arith.constant 0 : i32
    %c0_i32_0 = arith.constant 0 : i32
    return %1, %c0_i32 : i32, i32
  }
  func.func @transform_1(%arg0: i32, %arg1: i32) -> (i32, i32, i32) {
    %c0_i32 = arith.constant 0 : i32
    %c0_i32_0 = arith.constant 0 : i32
    %c0_i32_1 = arith.constant 0 : i32
    return %arg0, %c0_i32, %c0_i32_0 : i32, i32, i32
  }
  func.func @transform_2(%arg0: i32, %arg1: i32) -> (i32, i32, i32) {
    %c0_i32 = arith.constant 0 : i32
    %c0_i32_0 = arith.constant 0 : i32
    %c0_i32_1 = arith.constant 0 : i32
    return %arg0, %c0_i32, %c0_i32_0 : i32, i32, i32
  }
}

module attributes {stable_mosaic.version = 11 : i64} {
  func.func @_bn_apply_kernel(%arg0: i32, %arg1: memref<64x8xbf16, #tpu.memory_space<vmem>>, %arg2: memref<1x8xf32, #tpu.memory_space<vmem>>, %arg3: memref<1x8xf32, #tpu.memory_space<vmem>>, %arg4: memref<64x8xbf16, #tpu.memory_space<vmem>>) attributes {dimension_semantics = [#tpu.dimension_semantics<parallel>], iteration_bounds = array<i64: 2>, scalar_prefetch = 0 : i64, scratch_operands = 0 : i64, tpu.core_type = #tpu.core_type<tc>, window_params = [{transform_indices = @transform_0, window_bounds = array<i64: 64, 8>}, {pipeline_mode = #tpu.pipeline_mode<synchronous>, transform_indices = @transform_1, window_bounds = array<i64: 1, 8>}, {pipeline_mode = #tpu.pipeline_mode<synchronous>, transform_indices = @transform_2, window_bounds = array<i64: 1, 8>}, {transform_indices = @transform_3, window_bounds = array<i64: 64, 8>}]} {
    %c0 = arith.constant 0 : index
    %c0_0 = arith.constant 0 : index
    %0 = vector.load %arg1[%c0, %c0_0] : memref<64x8xbf16, #tpu.memory_space<vmem>>, vector<64x8xbf16>
    %1 = arith.extf %0 : vector<64x8xbf16> to vector<64x8xf32>
    %c0_1 = arith.constant 0 : index
    %c0_2 = arith.constant 0 : index
    %2 = vector.load %arg2[%c0_1, %c0_2] : memref<1x8xf32, #tpu.memory_space<vmem>>, vector<1x8xf32>
    %3 = vector.broadcast %2 : vector<1x8xf32> to vector<64x8xf32>
    %4 = arith.mulf %1, %3 : vector<64x8xf32>
    %c0_3 = arith.constant 0 : index
    %c0_4 = arith.constant 0 : index
    %5 = vector.load %arg3[%c0_3, %c0_4] : memref<1x8xf32, #tpu.memory_space<vmem>>, vector<1x8xf32>
    %6 = vector.broadcast %5 : vector<1x8xf32> to vector<64x8xf32>
    %7 = arith.addf %4, %6 : vector<64x8xf32>
    %cst = arith.constant 0.000000e+00 : f32
    %8 = vector.broadcast %cst : f32 to vector<64x8xf32>
    %9 = arith.subf %8, %7 : vector<64x8xf32>
    %10 = math.exp %9 : vector<64x8xf32>
    %cst_5 = arith.constant 1.000000e+00 : f32
    %11 = vector.broadcast %cst_5 : f32 to vector<64x8xf32>
    %12 = arith.addf %11, %10 : vector<64x8xf32>
    %13 = tpu.reciprocal %12 {approx = true} : vector<64x8xf32> -> vector<64x8xf32>
    %14 = arith.mulf %7, %13 : vector<64x8xf32>
    %15 = arith.truncf %14 : vector<64x8xf32> to vector<64x8xbf16>
    %c0_6 = arith.constant 0 : index
    %c0_7 = arith.constant 0 : index
    %16 = vector.load %arg4[%c0_6, %c0_7] : memref<64x8xbf16, #tpu.memory_space<vmem>>, vector<64x8xbf16>
    tpu.vector_store %arg4[%c0_6, %c0_7], %15 {strides = array<i32>} : memref<64x8xbf16, #tpu.memory_space<vmem>>, vector<64x8xbf16>,
    return
  }
  func.func @transform_0(%arg0: i32) -> (i32, i32) {
    %c0_i32 = arith.constant 0 : i32
    %c0_i32_0 = arith.constant 0 : i32
    return %arg0, %c0_i32 : i32, i32
  }
  func.func @transform_1(%arg0: i32) -> (i32, i32) {
    %c0_i32 = arith.constant 0 : i32
    %c0_i32_0 = arith.constant 0 : i32
    %c0_i32_1 = arith.constant 0 : i32
    return %c0_i32, %c0_i32_0 : i32, i32
  }
  func.func @transform_2(%arg0: i32) -> (i32, i32) {
    %c0_i32 = arith.constant 0 : i32
    %c0_i32_0 = arith.constant 0 : i32
    %c0_i32_1 = arith.constant 0 : i32
    return %c0_i32, %c0_i32_0 : i32, i32
  }
  func.func @transform_3(%arg0: i32) -> (i32, i32) {
    %c0_i32 = arith.constant 0 : i32
    %c0_i32_0 = arith.constant 0 : i32
    return %arg0, %c0_i32 : i32, i32
  }
}

module attributes {stable_mosaic.version = 11 : i64} {
  func.func @_matmul_kernel(%arg0: i32, %arg1: i32, %arg2: i32, %arg3: memref<64x256xbf16, #tpu.memory_space<vmem>>, %arg4: memref<256x128xbf16, #tpu.memory_space<vmem>>, %arg5: memref<1x128xf32, #tpu.memory_space<vmem>>, %arg6: memref<64x128xbf16, #tpu.memory_space<vmem>>, %arg7: memref<64x128xbf16, #tpu.memory_space<vmem>>, %arg8: memref<64x128xf32, #tpu.memory_space<vmem>>) attributes {dimension_semantics = [#tpu.dimension_semantics<parallel>, #tpu.dimension_semantics<parallel>, #tpu.dimension_semantics<arbitrary>], iteration_bounds = array<i64: 1, 1, 1>, scalar_prefetch = 0 : i64, scratch_operands = 1 : i64, tpu.core_type = #tpu.core_type<tc>, window_params = [{transform_indices = @transform_0, window_bounds = array<i64: 64, 256>}, {transform_indices = @transform_1, window_bounds = array<i64: 256, 128>}, {transform_indices = @transform_2, window_bounds = array<i64: 1, 128>}, {transform_indices = @transform_3, window_bounds = array<i64: 64, 128>}, {transform_indices = @transform_4, window_bounds = array<i64: 64, 128>}]} {
    %c0_i32 = arith.constant 0 : i32
    %0 = arith.cmpi eq, %arg2, %c0_i32 : i32
    %1 = arith.extui %0 : i1 to i32
    %c0_i32_0 = arith.constant 0 : i32
    %2 = arith.cmpi ne, %1, %c0_i32_0 : i32
    scf.if %2 {
      %cst_10 = arith.constant 0.000000e+00 : f32
      %12 = vector.broadcast %cst_10 : f32 to vector<64x128xf32>
      %c0_11 = arith.constant 0 : index
      %c0_12 = arith.constant 0 : index
      %13 = vector.load %arg8[%c0_11, %c0_12] : memref<64x128xf32, #tpu.memory_space<vmem>>, vector<64x128xf32>
      tpu.vector_store %arg8[%c0_11, %c0_12], %12 {strides = array<i32>} : memref<64x128xf32, #tpu.memory_space<vmem>>, vector<64x128xf32>,
    } else {
    }
    %c0 = arith.constant 0 : index
    %c0_1 = arith.constant 0 : index
    %3 = vector.load %arg8[%c0, %c0_1] : memref<64x128xf32, #tpu.memory_space<vmem>>, vector<64x128xf32>
    %c0_2 = arith.constant 0 : index
    %c0_3 = arith.constant 0 : index
    %4 = vector.load %arg3[%c0_2, %c0_3] : memref<64x256xbf16, #tpu.memory_space<vmem>>, vector<64x256xbf16>
    %c0_4 = arith.constant 0 : index
    %c0_5 = arith.constant 0 : index
    %5 = vector.load %arg4[%c0_4, %c0_5] : memref<256x128xbf16, #tpu.memory_space<vmem>>, vector<256x128xbf16>
    %cst = arith.constant dense<0.000000e+00> : vector<64x128xf32>
    %6 = tpu.matmul %4, %5, %cst {dimension_numbers = #tpu.dot_dimension_numbers<[1], [0], [0], [1], [0, 0, 1, 1], [], []>} : vector<64x256xbf16>, vector<256x128xbf16>, vector<64x128xf32> -> vector<64x128xf32>
    %7 = arith.addf %3, %6 : vector<64x128xf32>
    %c0_6 = arith.constant 0 : index
    %c0_7 = arith.constant 0 : index
    %8 = vector.load %arg8[%c0_6, %c0_7] : memref<64x128xf32, #tpu.memory_space<vmem>>, vector<64x128xf32>
    tpu.vector_store %arg8[%c0_6, %c0_7], %7 {strides = array<i32>} : memref<64x128xf32, #tpu.memory_space<vmem>>, vector<64x128xf32>,
    %c0_i32_8 = arith.constant 0 : i32
    %9 = arith.cmpi eq, %arg2, %c0_i32_8 : i32
    %10 = arith.extui %9 : i1 to i32
    %c0_i32_9 = arith.constant 0 : i32
    %11 = arith.cmpi ne, %10, %c0_i32_9 : i32
    scf.if %11 {
      %c0_10 = arith.constant 0 : index
      %c0_11 = arith.constant 0 : index
      %12 = vector.load %arg8[%c0_10, %c0_11] : memref<64x128xf32, #tpu.memory_space<vmem>>, vector<64x128xf32>
      %c0_12 = arith.constant 0 : index
      %c0_13 = arith.constant 0 : index
      %13 = vector.load %arg5[%c0_12, %c0_13] : memref<1x128xf32, #tpu.memory_space<vmem>>, vector<1x128xf32>
      %14 = vector.broadcast %13 : vector<1x128xf32> to vector<64x128xf32>
      %15 = arith.addf %12, %14 : vector<64x128xf32>
      %c0_14 = arith.constant 0 : index
      %c0_15 = arith.constant 0 : index
      %16 = vector.load %arg6[%c0_14, %c0_15] : memref<64x128xbf16, #tpu.memory_space<vmem>>, vector<64x128xbf16>
      %17 = arith.extf %16 : vector<64x128xbf16> to vector<64x128xf32>
      %18 = arith.addf %15, %17 : vector<64x128xf32>
      %19 = arith.truncf %18 : vector<64x128xf32> to vector<64x128xbf16>
      %c0_16 = arith.constant 0 : index
      %c0_17 = arith.constant 0 : index
      %20 = vector.load %arg7[%c0_16, %c0_17] : memref<64x128xbf16, #tpu.memory_space<vmem>>, vector<64x128xbf16>
      tpu.vector_store %arg7[%c0_16, %c0_17], %19 {strides = array<i32>} : memref<64x128xbf16, #tpu.memory_space<vmem>>, vector<64x128xbf16>,
    } else {
    }
    return
  }
  func.func @transform_0(%arg0: i32, %arg1: i32, %arg2: i32) -> (i32, i32) {
    %c0_i32 = arith.constant 0 : i32
    return %arg0, %arg2 : i32, i32
  }
  func.func @transform_1(%arg0: i32, %arg1: i32, %arg2: i32) -> (i32, i32) {
    %c0_i32 = arith.constant 0 : i32
    return %arg2, %arg1 : i32, i32
  }
  func.func @transform_2(%arg0: i32, %arg1: i32, %arg2: i32) -> (i32, i32) {
    %c0_i32 = arith.constant 0 : i32
    %c0_i32_0 = arith.constant 0 : i32
    return %c0_i32, %arg1 : i32, i32
  }
  func.func @transform_3(%arg0: i32, %arg1: i32, %arg2: i32) -> (i32, i32) {
    %c0_i32 = arith.constant 0 : i32
    return %arg0, %arg1 : i32, i32
  }
  func.func @transform_4(%arg0: i32, %arg1: i32, %arg2: i32) -> (i32, i32) {
    %c0_i32 = arith.constant 0 : i32
    return %arg0, %arg1 : i32, i32
  }
}

module attributes {stable_mosaic.version = 11 : i64} {
  func.func @_matmul_kernel(%arg0: i32, %arg1: i32, %arg2: i32, %arg3: memref<64x256xbf16, #tpu.memory_space<vmem>>, %arg4: memref<256x128xbf16, #tpu.memory_space<vmem>>, %arg5: memref<1x128xf32, #tpu.memory_space<vmem>>, %arg6: memref<64x128xbf16, #tpu.memory_space<vmem>>, %arg7: memref<64x128xf32, #tpu.memory_space<vmem>>) attributes {dimension_semantics = [#tpu.dimension_semantics<parallel>, #tpu.dimension_semantics<parallel>, #tpu.dimension_semantics<arbitrary>], iteration_bounds = array<i64: 1, 1, 1>, scalar_prefetch = 0 : i64, scratch_operands = 1 : i64, tpu.core_type = #tpu.core_type<tc>, window_params = [{transform_indices = @transform_0, window_bounds = array<i64: 64, 256>}, {transform_indices = @transform_1, window_bounds = array<i64: 256, 128>}, {transform_indices = @transform_2, window_bounds = array<i64: 1, 128>}, {transform_indices = @transform_3, window_bounds = array<i64: 64, 128>}]} {
    %c0_i32 = arith.constant 0 : i32
    %0 = arith.cmpi eq, %arg2, %c0_i32 : i32
    %1 = arith.extui %0 : i1 to i32
    %c0_i32_0 = arith.constant 0 : i32
    %2 = arith.cmpi ne, %1, %c0_i32_0 : i32
    scf.if %2 {
      %cst_10 = arith.constant 0.000000e+00 : f32
      %12 = vector.broadcast %cst_10 : f32 to vector<64x128xf32>
      %c0_11 = arith.constant 0 : index
      %c0_12 = arith.constant 0 : index
      %13 = vector.load %arg7[%c0_11, %c0_12] : memref<64x128xf32, #tpu.memory_space<vmem>>, vector<64x128xf32>
      tpu.vector_store %arg7[%c0_11, %c0_12], %12 {strides = array<i32>} : memref<64x128xf32, #tpu.memory_space<vmem>>, vector<64x128xf32>,
    } else {
    }
    %c0 = arith.constant 0 : index
    %c0_1 = arith.constant 0 : index
    %3 = vector.load %arg7[%c0, %c0_1] : memref<64x128xf32, #tpu.memory_space<vmem>>, vector<64x128xf32>
    %c0_2 = arith.constant 0 : index
    %c0_3 = arith.constant 0 : index
    %4 = vector.load %arg3[%c0_2, %c0_3] : memref<64x256xbf16, #tpu.memory_space<vmem>>, vector<64x256xbf16>
    %c0_4 = arith.constant 0 : index
    %c0_5 = arith.constant 0 : index
    %5 = vector.load %arg4[%c0_4, %c0_5] : memref<256x128xbf16, #tpu.memory_space<vmem>>, vector<256x128xbf16>
    %cst = arith.constant dense<0.000000e+00> : vector<64x128xf32>
    %6 = tpu.matmul %4, %5, %cst {dimension_numbers = #tpu.dot_dimension_numbers<[1], [0], [0], [1], [0, 0, 1, 1], [], []>} : vector<64x256xbf16>, vector<256x128xbf16>, vector<64x128xf32> -> vector<64x128xf32>
    %7 = arith.addf %3, %6 : vector<64x128xf32>
    %c0_6 = arith.constant 0 : index
    %c0_7 = arith.constant 0 : index
    %8 = vector.load %arg7[%c0_6, %c0_7] : memref<64x128xf32, #tpu.memory_space<vmem>>, vector<64x128xf32>
    tpu.vector_store %arg7[%c0_6, %c0_7], %7 {strides = array<i32>} : memref<64x128xf32, #tpu.memory_space<vmem>>, vector<64x128xf32>,
    %c0_i32_8 = arith.constant 0 : i32
    %9 = arith.cmpi eq, %arg2, %c0_i32_8 : i32
    %10 = arith.extui %9 : i1 to i32
    %c0_i32_9 = arith.constant 0 : i32
    %11 = arith.cmpi ne, %10, %c0_i32_9 : i32
    scf.if %11 {
      %c0_10 = arith.constant 0 : index
      %c0_11 = arith.constant 0 : index
      %12 = vector.load %arg7[%c0_10, %c0_11] : memref<64x128xf32, #tpu.memory_space<vmem>>, vector<64x128xf32>
      %c0_12 = arith.constant 0 : index
      %c0_13 = arith.constant 0 : index
      %13 = vector.load %arg5[%c0_12, %c0_13] : memref<1x128xf32, #tpu.memory_space<vmem>>, vector<1x128xf32>
      %14 = vector.broadcast %13 : vector<1x128xf32> to vector<64x128xf32>
      %15 = arith.addf %12, %14 : vector<64x128xf32>
      %16 = arith.truncf %15 : vector<64x128xf32> to vector<64x128xbf16>
      %c0_14 = arith.constant 0 : index
      %c0_15 = arith.constant 0 : index
      %17 = vector.load %arg6[%c0_14, %c0_15] : memref<64x128xbf16, #tpu.memory_space<vmem>>, vector<64x128xbf16>
      tpu.vector_store %arg6[%c0_14, %c0_15], %16 {strides = array<i32>} : memref<64x128xbf16, #tpu.memory_space<vmem>>, vector<64x128xbf16>,
    } else {
    }
    return
  }
  func.func @transform_0(%arg0: i32, %arg1: i32, %arg2: i32) -> (i32, i32) {
    %c0_i32 = arith.constant 0 : i32
    return %arg0, %arg2 : i32, i32
  }
  func.func @transform_1(%arg0: i32, %arg1: i32, %arg2: i32) -> (i32, i32) {
    %c0_i32 = arith.constant 0 : i32
    return %arg2, %arg1 : i32, i32
  }
  func.func @transform_2(%arg0: i32, %arg1: i32, %arg2: i32) -> (i32, i32) {
    %c0_i32 = arith.constant 0 : i32
    %c0_i32_0 = arith.constant 0 : i32
    return %c0_i32, %arg1 : i32, i32
  }
  func.func @transform_3(%arg0: i32, %arg1: i32, %arg2: i32) -> (i32, i32) {
    %c0_i32 = arith.constant 0 : i32
    return %arg0, %arg1 : i32, i32
  }
}

module attributes {stable_mosaic.version = 11 : i64} {
  func.func @_bn_apply_kernel(%arg0: i32, %arg1: memref<64x8xbf16, #tpu.memory_space<vmem>>, %arg2: memref<1x8xf32, #tpu.memory_space<vmem>>, %arg3: memref<1x8xf32, #tpu.memory_space<vmem>>, %arg4: memref<64x8xbf16, #tpu.memory_space<vmem>>) attributes {dimension_semantics = [#tpu.dimension_semantics<parallel>], iteration_bounds = array<i64: 2>, scalar_prefetch = 0 : i64, scratch_operands = 0 : i64, tpu.core_type = #tpu.core_type<tc>, window_params = [{transform_indices = @transform_0, window_bounds = array<i64: 64, 8>}, {pipeline_mode = #tpu.pipeline_mode<synchronous>, transform_indices = @transform_1, window_bounds = array<i64: 1, 8>}, {pipeline_mode = #tpu.pipeline_mode<synchronous>, transform_indices = @transform_2, window_bounds = array<i64: 1, 8>}, {transform_indices = @transform_3, window_bounds = array<i64: 64, 8>}]} {
    %c0 = arith.constant 0 : index
    %c0_0 = arith.constant 0 : index
    %0 = vector.load %arg1[%c0, %c0_0] : memref<64x8xbf16, #tpu.memory_space<vmem>>, vector<64x8xbf16>
    %1 = arith.extf %0 : vector<64x8xbf16> to vector<64x8xf32>
    %c0_1 = arith.constant 0 : index
    %c0_2 = arith.constant 0 : index
    %2 = vector.load %arg2[%c0_1, %c0_2] : memref<1x8xf32, #tpu.memory_space<vmem>>, vector<1x8xf32>
    %3 = vector.broadcast %2 : vector<1x8xf32> to vector<64x8xf32>
    %4 = arith.mulf %1, %3 : vector<64x8xf32>
    %c0_3 = arith.constant 0 : index
    %c0_4 = arith.constant 0 : index
    %5 = vector.load %arg3[%c0_3, %c0_4] : memref<1x8xf32, #tpu.memory_space<vmem>>, vector<1x8xf32>
    %6 = vector.broadcast %5 : vector<1x8xf32> to vector<64x8xf32>
    %7 = arith.addf %4, %6 : vector<64x8xf32>
    %8 = arith.truncf %7 : vector<64x8xf32> to vector<64x8xbf16>
    %c0_5 = arith.constant 0 : index
    %c0_6 = arith.constant 0 : index
    %9 = vector.load %arg4[%c0_5, %c0_6] : memref<64x8xbf16, #tpu.memory_space<vmem>>, vector<64x8xbf16>
    tpu.vector_store %arg4[%c0_5, %c0_6], %8 {strides = array<i32>} : memref<64x8xbf16, #tpu.memory_space<vmem>>, vector<64x8xbf16>,
    return
  }
  func.func @transform_0(%arg0: i32) -> (i32, i32) {
    %c0_i32 = arith.constant 0 : i32
    %c0_i32_0 = arith.constant 0 : i32
    return %arg0, %c0_i32 : i32, i32
  }
  func.func @transform_1(%arg0: i32) -> (i32, i32) {
    %c0_i32 = arith.constant 0 : i32
    %c0_i32_0 = arith.constant 0 : i32
    %c0_i32_1 = arith.constant 0 : i32
    return %c0_i32, %c0_i32_0 : i32, i32
  }
  func.func @transform_2(%arg0: i32) -> (i32, i32) {
    %c0_i32 = arith.constant 0 : i32
    %c0_i32_0 = arith.constant 0 : i32
    %c0_i32_1 = arith.constant 0 : i32
    return %c0_i32, %c0_i32_0 : i32, i32
  }
  func.func @transform_3(%arg0: i32) -> (i32, i32) {
    %c0_i32 = arith.constant 0 : i32
    %c0_i32_0 = arith.constant 0 : i32
    return %arg0, %c0_i32 : i32, i32
  }
}

module attributes {stable_mosaic.version = 11 : i64} {
  func.func @_attn_apply_kernel(%arg0: i32, %arg1: i32, %arg2: memref<1x32x8xbf16, #tpu.memory_space<vmem>>, %arg3: memref<1x8x8xbf16, #tpu.memory_space<vmem>>, %arg4: memref<1x32x8xbf16, #tpu.memory_space<vmem>>) attributes {dimension_semantics = [#tpu.dimension_semantics<parallel>, #tpu.dimension_semantics<parallel>], iteration_bounds = array<i64: 2, 1>, scalar_prefetch = 0 : i64, scratch_operands = 0 : i64, tpu.core_type = #tpu.core_type<tc>, window_params = [{transform_indices = @transform_0, window_bounds = array<i64: 1, 32, 8>}, {transform_indices = @transform_1, window_bounds = array<i64: 1, 8, 8>}, {transform_indices = @transform_2, window_bounds = array<i64: 1, 32, 8>}]} {
    %c0 = arith.constant 0 : index
    %c0_0 = arith.constant 0 : index
    %c0_1 = arith.constant 0 : index
    %0 = vector.load %arg2[%c0, %c0_0, %c0_1] : memref<1x32x8xbf16, #tpu.memory_space<vmem>>, vector<1x32x8xbf16>
    %1 = vector.shape_cast %0 : vector<1x32x8xbf16> to vector<32x8xbf16>
    %c0_2 = arith.constant 0 : index
    %c0_3 = arith.constant 0 : index
    %c0_4 = arith.constant 0 : index
    %2 = vector.load %arg3[%c0_2, %c0_3, %c0_4] : memref<1x8x8xbf16, #tpu.memory_space<vmem>>, vector<1x8x8xbf16>
    %3 = vector.shape_cast %2 : vector<1x8x8xbf16> to vector<8x8xbf16>
    %cst = arith.constant dense<0.000000e+00> : vector<32x8xf32>
    %4 = tpu.matmul %1, %3, %cst {dimension_numbers = #tpu.dot_dimension_numbers<[1], [1], [0], [0], [0, 0, 1, 0], [], []>} : vector<32x8xbf16>, vector<8x8xbf16>, vector<32x8xf32> -> vector<32x8xf32>
    %5 = arith.truncf %4 : vector<32x8xf32> to vector<32x8xbf16>
    %c0_5 = arith.constant 0 : index
    %c0_6 = arith.constant 0 : index
    %c0_7 = arith.constant 0 : index
    %6 = vector.load %arg4[%c0_5, %c0_6, %c0_7] : memref<1x32x8xbf16, #tpu.memory_space<vmem>>, vector<1x32x8xbf16>
    %7 = vector.shape_cast %6 : vector<1x32x8xbf16> to vector<32x8xbf16>
    %8 = vector.shape_cast %5 : vector<32x8xbf16> to vector<1x32x8xbf16>
    tpu.vector_store %arg4[%c0_5, %c0_6, %c0_7], %8 {strides = array<i32>} : memref<1x32x8xbf16, #tpu.memory_space<vmem>>, vector<1x32x8xbf16>,
    return
  }
  func.func @transform_0(%arg0: i32, %arg1: i32) -> (i32, i32, i32) {
    %c0_i32 = arith.constant 0 : i32
    %c0_i32_0 = arith.constant 0 : i32
    return %arg0, %arg1, %c0_i32 : i32, i32, i32
  }
  func.func @transform_1(%arg0: i32, %arg1: i32) -> (i32, i32, i32) {
    %c0_i32 = arith.constant 0 : i32
    %c0_i32_0 = arith.constant 0 : i32
    %c0_i32_1 = arith.constant 0 : i32
    return %arg0, %c0_i32, %c0_i32_0 : i32, i32, i32
  }
  func.func @transform_2(%arg0: i32, %arg1: i32) -> (i32, i32, i32) {
    %c0_i32 = arith.constant 0 : i32
    %c0_i32_0 = arith.constant 0 : i32
    return %arg0, %arg1, %c0_i32 : i32, i32, i32
  }
}

module attributes {stable_mosaic.version = 11 : i64} {
  func.func @_attn_logits_kernel(%arg0: i32, %arg1: i32, %arg2: memref<1x32x8xbf16, #tpu.memory_space<vmem>>, %arg3: memref<1x32x8xbf16, #tpu.memory_space<vmem>>, %arg4: memref<1x8x8xbf16, #tpu.memory_space<vmem>>, %arg5: memref<8x8xf32, #tpu.memory_space<vmem>>) attributes {dimension_semantics = [#tpu.dimension_semantics<parallel>, #tpu.dimension_semantics<arbitrary>], iteration_bounds = array<i64: 2, 1>, scalar_prefetch = 0 : i64, scratch_operands = 1 : i64, tpu.core_type = #tpu.core_type<tc>, window_params = [{transform_indices = @transform_0, window_bounds = array<i64: 1, 32, 8>}, {transform_indices = @transform_1, window_bounds = array<i64: 1, 32, 8>}, {transform_indices = @transform_2, window_bounds = array<i64: 1, 8, 8>}]} {
    %c0_i32 = arith.constant 0 : i32
    %0 = arith.cmpi eq, %arg1, %c0_i32 : i32
    %1 = arith.extui %0 : i1 to i32
    %c0_i32_0 = arith.constant 0 : i32
    %2 = arith.cmpi ne, %1, %c0_i32_0 : i32
    scf.if %2 {
      %cst_12 = arith.constant 0.000000e+00 : f32
      %14 = vector.broadcast %cst_12 : f32 to vector<8x8xf32>
      %c0_13 = arith.constant 0 : index
      %c0_14 = arith.constant 0 : index
      %15 = vector.load %arg5[%c0_13, %c0_14] : memref<8x8xf32, #tpu.memory_space<vmem>>, vector<8x8xf32>
      tpu.vector_store %arg5[%c0_13, %c0_14], %14 {strides = array<i32>} : memref<8x8xf32, #tpu.memory_space<vmem>>, vector<8x8xf32>,
    } else {
    }
    %c0 = arith.constant 0 : index
    %c0_1 = arith.constant 0 : index
    %3 = vector.load %arg5[%c0, %c0_1] : memref<8x8xf32, #tpu.memory_space<vmem>>, vector<8x8xf32>
    %c0_2 = arith.constant 0 : index
    %c0_3 = arith.constant 0 : index
    %c0_4 = arith.constant 0 : index
    %4 = vector.load %arg2[%c0_2, %c0_3, %c0_4] : memref<1x32x8xbf16, #tpu.memory_space<vmem>>, vector<1x32x8xbf16>
    %5 = vector.shape_cast %4 : vector<1x32x8xbf16> to vector<32x8xbf16>
    %c0_5 = arith.constant 0 : index
    %c0_6 = arith.constant 0 : index
    %c0_7 = arith.constant 0 : index
    %6 = vector.load %arg3[%c0_5, %c0_6, %c0_7] : memref<1x32x8xbf16, #tpu.memory_space<vmem>>, vector<1x32x8xbf16>
    %7 = vector.shape_cast %6 : vector<1x32x8xbf16> to vector<32x8xbf16>
    %cst = arith.constant dense<0.000000e+00> : vector<8x8xf32>
    %8 = tpu.matmul %5, %7, %cst {dimension_numbers = #tpu.dot_dimension_numbers<[0], [0], [1], [1], [0, 1, 1, 1], [], []>} : vector<32x8xbf16>, vector<32x8xbf16>, vector<8x8xf32> -> vector<8x8xf32>
    %9 = arith.addf %3, %8 : vector<8x8xf32>
    %c0_8 = arith.constant 0 : index
    %c0_9 = arith.constant 0 : index
    %10 = vector.load %arg5[%c0_8, %c0_9] : memref<8x8xf32, #tpu.memory_space<vmem>>, vector<8x8xf32>
    tpu.vector_store %arg5[%c0_8, %c0_9], %9 {strides = array<i32>} : memref<8x8xf32, #tpu.memory_space<vmem>>, vector<8x8xf32>,
    %c0_i32_10 = arith.constant 0 : i32
    %11 = arith.cmpi eq, %arg1, %c0_i32_10 : i32
    %12 = arith.extui %11 : i1 to i32
    %c0_i32_11 = arith.constant 0 : i32
    %13 = arith.cmpi ne, %12, %c0_i32_11 : i32
    scf.if %13 {
      %c0_12 = arith.constant 0 : index
      %c0_13 = arith.constant 0 : index
      %14 = vector.load %arg5[%c0_12, %c0_13] : memref<8x8xf32, #tpu.memory_space<vmem>>, vector<8x8xf32>
      %cst_14 = arith.constant 0.353553385 : f32
      %15 = vector.broadcast %cst_14 : f32 to vector<8x8xf32>
      %16 = arith.mulf %14, %15 : vector<8x8xf32>
      %cst_15 = arith.constant dense<0xFF800000> : vector<8xf32>
      %17 = vector.multi_reduction <maximumf>, %16, %cst_15 [1] : vector<8x8xf32> to vector<8xf32>
      %18 = vector.shape_cast %17 : vector<8xf32> to vector<8x1xf32>
      %19 = vector.broadcast %18 : vector<8x1xf32> to vector<8x8xf32>
      %20 = arith.subf %16, %19 : vector<8x8xf32>
      %21 = math.exp %20 : vector<8x8xf32>
      %cst_16 = arith.constant dense<0.000000e+00> : vector<8xf32>
      %22 = vector.multi_reduction <add>, %21, %cst_16 [1] : vector<8x8xf32> to vector<8xf32>
      %23 = vector.shape_cast %22 : vector<8xf32> to vector<8x1xf32>
      %24 = tpu.reciprocal %23 {approx = true} : vector<8x1xf32> -> vector<8x1xf32>
      %25 = vector.broadcast %24 : vector<8x1xf32> to vector<8x8xf32>
      %26 = arith.mulf %21, %25 : vector<8x8xf32>
      %27 = arith.truncf %26 : vector<8x8xf32> to vector<8x8xbf16>
      %c0_17 = arith.constant 0 : index
      %c0_18 = arith.constant 0 : index
      %c0_19 = arith.constant 0 : index
      %28 = vector.load %arg4[%c0_17, %c0_18, %c0_19] : memref<1x8x8xbf16, #tpu.memory_space<vmem>>, vector<1x8x8xbf16>
      %29 = vector.shape_cast %28 : vector<1x8x8xbf16> to vector<8x8xbf16>
      %30 = vector.shape_cast %27 : vector<8x8xbf16> to vector<1x8x8xbf16>
      tpu.vector_store %arg4[%c0_17, %c0_18, %c0_19], %30 {strides = array<i32>} : memref<1x8x8xbf16, #tpu.memory_space<vmem>>, vector<1x8x8xbf16>,
    } else {
    }
    return
  }
  func.func @transform_0(%arg0: i32, %arg1: i32) -> (i32, i32, i32) {
    %c0_i32 = arith.constant 0 : i32
    %c0_i32_0 = arith.constant 0 : i32
    return %arg0, %arg1, %c0_i32 : i32, i32, i32
  }
  func.func @transform_1(%arg0: i32, %arg1: i32) -> (i32, i32, i32) {
    %c0_i32 = arith.constant 0 : i32
    %c0_i32_0 = arith.constant 0 : i32
    return %arg0, %arg1, %c0_i32 : i32, i32, i32
  }
  func.func @transform_2(%arg0: i32, %arg1: i32) -> (i32, i32, i32) {
    %c0_i32 = arith.constant 0 : i32
    %c0_i32_0 = arith.constant 0 : i32
    %c0_i32_1 = arith.constant 0 : i32
    return %arg0, %c0_i32, %c0_i32_0 : i32, i32, i32
  }
}

module attributes {stable_mosaic.version = 11 : i64} {
  func.func @_matmul_kernel(%arg0: i32, %arg1: i32, %arg2: i32, %arg3: memref<64x128xbf16, #tpu.memory_space<vmem>>, %arg4: memref<128x128xbf16, #tpu.memory_space<vmem>>, %arg5: memref<1x128xf32, #tpu.memory_space<vmem>>, %arg6: memref<64x128xbf16, #tpu.memory_space<vmem>>, %arg7: memref<64x128xbf16, #tpu.memory_space<vmem>>, %arg8: memref<64x128xf32, #tpu.memory_space<vmem>>) attributes {dimension_semantics = [#tpu.dimension_semantics<parallel>, #tpu.dimension_semantics<parallel>, #tpu.dimension_semantics<arbitrary>], iteration_bounds = array<i64: 1, 1, 1>, scalar_prefetch = 0 : i64, scratch_operands = 1 : i64, tpu.core_type = #tpu.core_type<tc>, window_params = [{transform_indices = @transform_0, window_bounds = array<i64: 64, 128>}, {transform_indices = @transform_1, window_bounds = array<i64: 128, 128>}, {transform_indices = @transform_2, window_bounds = array<i64: 1, 128>}, {transform_indices = @transform_3, window_bounds = array<i64: 64, 128>}, {transform_indices = @transform_4, window_bounds = array<i64: 64, 128>}]} {
    %c0_i32 = arith.constant 0 : i32
    %0 = arith.cmpi eq, %arg2, %c0_i32 : i32
    %1 = arith.extui %0 : i1 to i32
    %c0_i32_0 = arith.constant 0 : i32
    %2 = arith.cmpi ne, %1, %c0_i32_0 : i32
    scf.if %2 {
      %cst_10 = arith.constant 0.000000e+00 : f32
      %12 = vector.broadcast %cst_10 : f32 to vector<64x128xf32>
      %c0_11 = arith.constant 0 : index
      %c0_12 = arith.constant 0 : index
      %13 = vector.load %arg8[%c0_11, %c0_12] : memref<64x128xf32, #tpu.memory_space<vmem>>, vector<64x128xf32>
      tpu.vector_store %arg8[%c0_11, %c0_12], %12 {strides = array<i32>} : memref<64x128xf32, #tpu.memory_space<vmem>>, vector<64x128xf32>,
    } else {
    }
    %c0 = arith.constant 0 : index
    %c0_1 = arith.constant 0 : index
    %3 = vector.load %arg8[%c0, %c0_1] : memref<64x128xf32, #tpu.memory_space<vmem>>, vector<64x128xf32>
    %c0_2 = arith.constant 0 : index
    %c0_3 = arith.constant 0 : index
    %4 = vector.load %arg3[%c0_2, %c0_3] : memref<64x128xbf16, #tpu.memory_space<vmem>>, vector<64x128xbf16>
    %c0_4 = arith.constant 0 : index
    %c0_5 = arith.constant 0 : index
    %5 = vector.load %arg4[%c0_4, %c0_5] : memref<128x128xbf16, #tpu.memory_space<vmem>>, vector<128x128xbf16>
    %cst = arith.constant dense<0.000000e+00> : vector<64x128xf32>
    %6 = tpu.matmul %4, %5, %cst {dimension_numbers = #tpu.dot_dimension_numbers<[1], [0], [0], [1], [0, 0, 1, 1], [], []>} : vector<64x128xbf16>, vector<128x128xbf16>, vector<64x128xf32> -> vector<64x128xf32>
    %7 = arith.addf %3, %6 : vector<64x128xf32>
    %c0_6 = arith.constant 0 : index
    %c0_7 = arith.constant 0 : index
    %8 = vector.load %arg8[%c0_6, %c0_7] : memref<64x128xf32, #tpu.memory_space<vmem>>, vector<64x128xf32>
    tpu.vector_store %arg8[%c0_6, %c0_7], %7 {strides = array<i32>} : memref<64x128xf32, #tpu.memory_space<vmem>>, vector<64x128xf32>,
    %c0_i32_8 = arith.constant 0 : i32
    %9 = arith.cmpi eq, %arg2, %c0_i32_8 : i32
    %10 = arith.extui %9 : i1 to i32
    %c0_i32_9 = arith.constant 0 : i32
    %11 = arith.cmpi ne, %10, %c0_i32_9 : i32
    scf.if %11 {
      %c0_10 = arith.constant 0 : index
      %c0_11 = arith.constant 0 : index
      %12 = vector.load %arg8[%c0_10, %c0_11] : memref<64x128xf32, #tpu.memory_space<vmem>>, vector<64x128xf32>
      %c0_12 = arith.constant 0 : index
      %c0_13 = arith.constant 0 : index
      %13 = vector.load %arg5[%c0_12, %c0_13] : memref<1x128xf32, #tpu.memory_space<vmem>>, vector<1x128xf32>
      %14 = vector.broadcast %13 : vector<1x128xf32> to vector<64x128xf32>
      %15 = arith.addf %12, %14 : vector<64x128xf32>
      %c0_14 = arith.constant 0 : index
      %c0_15 = arith.constant 0 : index
      %16 = vector.load %arg6[%c0_14, %c0_15] : memref<64x128xbf16, #tpu.memory_space<vmem>>, vector<64x128xbf16>
      %17 = arith.extf %16 : vector<64x128xbf16> to vector<64x128xf32>
      %18 = arith.addf %15, %17 : vector<64x128xf32>
      %19 = arith.truncf %18 : vector<64x128xf32> to vector<64x128xbf16>
      %c0_16 = arith.constant 0 : index
      %c0_17 = arith.constant 0 : index
      %20 = vector.load %arg7[%c0_16, %c0_17] : memref<64x128xbf16, #tpu.memory_space<vmem>>, vector<64x128xbf16>
      tpu.vector_store %arg7[%c0_16, %c0_17], %19 {strides = array<i32>} : memref<64x128xbf16, #tpu.memory_space<vmem>>, vector<64x128xbf16>,
    } else {
    }
    return
  }
  func.func @transform_0(%arg0: i32, %arg1: i32, %arg2: i32) -> (i32, i32) {
    %c0_i32 = arith.constant 0 : i32
    return %arg0, %arg2 : i32, i32
  }
  func.func @transform_1(%arg0: i32, %arg1: i32, %arg2: i32) -> (i32, i32) {
    %c0_i32 = arith.constant 0 : i32
    return %arg2, %arg1 : i32, i32
  }
  func.func @transform_2(%arg0: i32, %arg1: i32, %arg2: i32) -> (i32, i32) {
    %c0_i32 = arith.constant 0 : i32
    %c0_i32_0 = arith.constant 0 : i32
    return %c0_i32, %arg1 : i32, i32
  }
  func.func @transform_3(%arg0: i32, %arg1: i32, %arg2: i32) -> (i32, i32) {
    %c0_i32 = arith.constant 0 : i32
    return %arg0, %arg1 : i32, i32
  }
  func.func @transform_4(%arg0: i32, %arg1: i32, %arg2: i32) -> (i32, i32) {
    %c0_i32 = arith.constant 0 : i32
    return %arg0, %arg1 : i32, i32
  }
}

module attributes {stable_mosaic.version = 11 : i64} {
  func.func @_matmul_kernel(%arg0: i32, %arg1: i32, %arg2: i32, %arg3: memref<432x128xbf16, #tpu.memory_space<vmem>>, %arg4: memref<128x128xbf16, #tpu.memory_space<vmem>>, %arg5: memref<1x128xf32, #tpu.memory_space<vmem>>, %arg6: memref<432x128xbf16, #tpu.memory_space<vmem>>, %arg7: memref<432x128xf32, #tpu.memory_space<vmem>>) attributes {dimension_semantics = [#tpu.dimension_semantics<parallel>, #tpu.dimension_semantics<parallel>, #tpu.dimension_semantics<arbitrary>], iteration_bounds = array<i64: 1, 1, 1>, scalar_prefetch = 0 : i64, scratch_operands = 1 : i64, tpu.core_type = #tpu.core_type<tc>, window_params = [{transform_indices = @transform_0, window_bounds = array<i64: 432, 128>}, {transform_indices = @transform_1, window_bounds = array<i64: 128, 128>}, {transform_indices = @transform_2, window_bounds = array<i64: 1, 128>}, {transform_indices = @transform_3, window_bounds = array<i64: 432, 128>}]} {
    %c0_i32 = arith.constant 0 : i32
    %0 = arith.cmpi eq, %arg2, %c0_i32 : i32
    %1 = arith.extui %0 : i1 to i32
    %c0_i32_0 = arith.constant 0 : i32
    %2 = arith.cmpi ne, %1, %c0_i32_0 : i32
    scf.if %2 {
      %cst_10 = arith.constant 0.000000e+00 : f32
      %12 = vector.broadcast %cst_10 : f32 to vector<432x128xf32>
      %c0_11 = arith.constant 0 : index
      %c0_12 = arith.constant 0 : index
      %13 = vector.load %arg7[%c0_11, %c0_12] : memref<432x128xf32, #tpu.memory_space<vmem>>, vector<432x128xf32>
      tpu.vector_store %arg7[%c0_11, %c0_12], %12 {strides = array<i32>} : memref<432x128xf32, #tpu.memory_space<vmem>>, vector<432x128xf32>,
    } else {
    }
    %c0 = arith.constant 0 : index
    %c0_1 = arith.constant 0 : index
    %3 = vector.load %arg7[%c0, %c0_1] : memref<432x128xf32, #tpu.memory_space<vmem>>, vector<432x128xf32>
    %c0_2 = arith.constant 0 : index
    %c0_3 = arith.constant 0 : index
    %4 = vector.load %arg3[%c0_2, %c0_3] : memref<432x128xbf16, #tpu.memory_space<vmem>>, vector<432x128xbf16>
    %c0_4 = arith.constant 0 : index
    %c0_5 = arith.constant 0 : index
    %5 = vector.load %arg4[%c0_4, %c0_5] : memref<128x128xbf16, #tpu.memory_space<vmem>>, vector<128x128xbf16>
    %cst = arith.constant dense<0.000000e+00> : vector<432x128xf32>
    %6 = tpu.matmul %4, %5, %cst {dimension_numbers = #tpu.dot_dimension_numbers<[1], [0], [0], [1], [0, 0, 1, 1], [], []>} : vector<432x128xbf16>, vector<128x128xbf16>, vector<432x128xf32> -> vector<432x128xf32>
    %7 = arith.addf %3, %6 : vector<432x128xf32>
    %c0_6 = arith.constant 0 : index
    %c0_7 = arith.constant 0 : index
    %8 = vector.load %arg7[%c0_6, %c0_7] : memref<432x128xf32, #tpu.memory_space<vmem>>, vector<432x128xf32>
    tpu.vector_store %arg7[%c0_6, %c0_7], %7 {strides = array<i32>} : memref<432x128xf32, #tpu.memory_space<vmem>>, vector<432x128xf32>,
    %c0_i32_8 = arith.constant 0 : i32
    %9 = arith.cmpi eq, %arg2, %c0_i32_8 : i32
    %10 = arith.extui %9 : i1 to i32
    %c0_i32_9 = arith.constant 0 : i32
    %11 = arith.cmpi ne, %10, %c0_i32_9 : i32
    scf.if %11 {
      %c0_10 = arith.constant 0 : index
      %c0_11 = arith.constant 0 : index
      %12 = vector.load %arg7[%c0_10, %c0_11] : memref<432x128xf32, #tpu.memory_space<vmem>>, vector<432x128xf32>
      %c0_12 = arith.constant 0 : index
      %c0_13 = arith.constant 0 : index
      %13 = vector.load %arg5[%c0_12, %c0_13] : memref<1x128xf32, #tpu.memory_space<vmem>>, vector<1x128xf32>
      %14 = vector.broadcast %13 : vector<1x128xf32> to vector<432x128xf32>
      %15 = arith.addf %12, %14 : vector<432x128xf32>
      %16 = arith.truncf %15 : vector<432x128xf32> to vector<432x128xbf16>
      %c0_14 = arith.constant 0 : index
      %c0_15 = arith.constant 0 : index
      %17 = vector.load %arg6[%c0_14, %c0_15] : memref<432x128xbf16, #tpu.memory_space<vmem>>, vector<432x128xbf16>
      tpu.vector_store %arg6[%c0_14, %c0_15], %16 {strides = array<i32>} : memref<432x128xbf16, #tpu.memory_space<vmem>>, vector<432x128xbf16>,
    } else {
    }
    return
  }
  func.func @transform_0(%arg0: i32, %arg1: i32, %arg2: i32) -> (i32, i32) {
    %c0_i32 = arith.constant 0 : i32
    return %arg0, %arg2 : i32, i32
  }
  func.func @transform_1(%arg0: i32, %arg1: i32, %arg2: i32) -> (i32, i32) {
    %c0_i32 = arith.constant 0 : i32
    return %arg2, %arg1 : i32, i32
  }
  func.func @transform_2(%arg0: i32, %arg1: i32, %arg2: i32) -> (i32, i32) {
    %c0_i32 = arith.constant 0 : i32
    %c0_i32_0 = arith.constant 0 : i32
    return %c0_i32, %arg1 : i32, i32
  }
  func.func @transform_3(%arg0: i32, %arg1: i32, %arg2: i32) -> (i32, i32) {
    %c0_i32 = arith.constant 0 : i32
    return %arg0, %arg1 : i32, i32
  }
}

</mosaic_0001>

<bundles_post_ra>
// kernel: encoder_forward.39
= control target key start
LH: loop header
LB: loop body
LE: loop exit
PB: predicated region body
PF: predicated region fallthrough
CT: control target
= control target key end

     0   :  { %s956_s9 = smov 0   ;;  %s958_s10 = smov 0   ;;  %s1701_s0 = inlined_call_operand.vmem [shape: bf16[1024,4], index: 0, kind: input, shape index: {}]   ;;  %s1702_s1 = inlined_call_operand.vmem [shape: f32[2,1,4], index: 1, kind: output, shape index: {0}]   ;;  %s1703_s2 = inlined_call_operand.vmem [shape: f32[2,1,4], index: 2, kind: output, shape index: {1}]  }
   0x1   :  { %s960_s11 = smov 0  }
   0x2 LB: > { %s25_s12 = sadd.s32 1, %s934_s10  ;;  %p727_p0 = scmp.ge.s32.totalorder %s938_s11, 1  ;;  %s938_s11 = sphi %s960_s11, %s13_s11   ;;  %s934_s10 = sphi %s958_s10, %s1831_s10   ;;  %s930_s9 = sphi %s956_s9, %s1830_s9  }
   0x3   : > { %p27_p1 = scmp.ge.s32.totalorder %s25_s12, 2  ;;  %p132_p2 = scmp.lt.s32.totalorder %s938_s11, 3 }
   0x5   : > { %s1833_s12 = smov (%p27_p1, %s25_s12), 0  ;;  %p133_p3 = pnand %p727_p0, %p132_p2 }
   0x7   : > { %136 = sbr.rel (%p133_p3) target bundleno = 209 (0xd1), region = 24 }
   0xe   : > { %s728_s13 = sshll.u32 %s930_s9, 6  ;;  %p164_p4 = scmp.lt.s32.totalorder %s930_s9, 1  ;;  %vm174_vm0 = vcmask 24576   ;;  %v940_v0 = vmov 0.0   ;;  %vm306_vm1 = vcmask 31744  }
   0xf   : > { %p158_p5 = scmp.lt.s32.totalorder %s728_s13, 127 }
  0x10   : > { %s1835_s9 = smov (!%p164_p4, %s930_s9), 1 }
  0x11   : > { %s977_s16 = scalar_lea.vmem %s1702_s1, %s1835_s9  ;;  %s982_s19 = scalar_lea.vmem %s1703_s2, %s1835_s9 }
  0x12   : > { %175 = vst.msk [vmem:[%s977_s16] sm:$0x1] %vm174_vm0, %v940_v0  ;;  %176 = vst.msk [vmem:[%s982_s19] sm:$0x1] %vm174_vm0, %v940_v0  ;;  %s1837_s13 = smov (!%p158_p5, %s728_s13), 127 }
  0x13   : > { %s729_s20 = sshll.u32 %s1837_s13, 2 }
  0x14   : > { %s991_s23 = scalar_lea.vmem %s1701_s0, %s729_s20 }
  0x15   : > { %v733_v1 = vld [vmem:[%s991_s23] sm:$0xff]   ;;  %v860_v2 = vld [vmem:[%s991_s23 + $0x8] sm:$0xff]   ;;  %v861_v3 = vld [vmem:[%s991_s23 + $0x10] sm:$0xff]  }
  0x16   : > { %v862_v4 = vld [vmem:[%s991_s23 + $0x18] sm:$0xff]   ;;  %v863_v5 = vld [vmem:[%s991_s23 + $0x20] sm:$0xff]   ;;  %v864_v6 = vld [vmem:[%s991_s23 + $0x28] sm:$0xff]   ;;  %v999_v7 = vunpack.c.l.bf16 %v733_v1  ;;  %v1001_v8 = vunpack.c.h.bf16 %v733_v1  ;;  %v1003_v9 = vunpack.c.l.bf16 %v860_v2  ;;  %v1007_v12 = vunpack.c.h.bf16 %v860_v2 }
  0x17   : > { %v876_v10 = vld [vmem:[%s991_s23 + $0x88] sm:$0xff]   ;;  %v877_v11 = vld [vmem:[%s991_s23 + $0x90] sm:$0xff]   ;;  %v1009_v13 = vunpack.c.l.bf16 %v861_v3  ;;  %v1011_v14 = vunpack.c.h.bf16 %v861_v3  ;;  %v1013_v15 = vunpack.c.l.bf16 %v862_v4  ;;  %v878_v16 = vld [vmem:[%s991_s23 + $0x98] sm:$0xff]   ;;  %v1017_v18 = vunpack.c.h.bf16 %v862_v4 }
  0x18   : > { %v879_v17 = vld [vmem:[%s991_s23 + $0xa0] sm:$0xff]   ;;  %v1019_v19 = vunpack.c.l.bf16 %v863_v5  ;;  %v1021_v20 = vunpack.c.h.bf16 %v863_v5  ;;  %v1023_v21 = vunpack.c.l.bf16 %v864_v6  ;;  %v1025_v22 = vunpack.c.h.bf16 %v864_v6  ;;  %v880_v26 = vld [vmem:[%s991_s23 + $0xa8] sm:$0xff]   ;;  %v881_v27 = vld [vmem:[%s991_s23 + $0xb0] sm:$0xff]  }
  0x19   : > { %v1027_v23 = vunpack.c.l.bf16 %v876_v10  ;;  %v1029_v24 = vunpack.c.h.bf16 %v876_v10  ;;  %v1031_v25 = vunpack.c.l.bf16 %v877_v11  ;;  %v1035_v28 = vunpack.c.h.bf16 %v877_v11  ;;  %v882_v32 = vld [vmem:[%s991_s23 + $0xb8] sm:$0xff]   ;;  %v883_v34 = vld [vmem:[%s991_s23 + $0xc0] sm:$0xff]   ;;  %v884_v35 = vld [vmem:[%s991_s23 + $0xc8] sm:$0xff]  }
  0x1a   : > { %v1037_v29 = vunpack.c.l.bf16 %v878_v16  ;;  %v1039_v30 = vunpack.c.h.bf16 %v878_v16  ;;  %v1041_v31 = vunpack.c.l.bf16 %v879_v17  ;;  %v1044_v33 = vunpack.c.h.bf16 %v879_v17  ;;  %v885_v42 = vld [vmem:[%s991_s23 + $0xd0] sm:$0xff]   ;;  %v886_v47 = vld [vmem:[%s991_s23 + $0xd8] sm:$0xff]   ;;  %v887_v48 = vld [vmem:[%s991_s23 + $0xe0] sm:$0xff]  }
  0x1b   : > { %v307_v36 = vsel %vm306_vm1, %v999_v7, 0.0  ;;  %v308_v37 = vsel %vm306_vm1, %v1001_v8, 0.0  ;;  %v310_v38 = vsel %vm306_vm1, %v1003_v9, 0.0  ;;  %v1054_v39 = vunpack.c.l.bf16 %v880_v26  ;;  %v888_v53 = vld [vmem:[%s991_s23 + $0xe8] sm:$0xff]   ;;  %v889_v58 = vld [vmem:[%s991_s23 + $0xf0] sm:$0xff]   ;;  %v890_v59 = vld [vmem:[%s991_s23 + $0xf8] sm:$0xff]  }
  0x1c   : > { %v1056_v40 = vunpack.c.h.bf16 %v880_v26  ;;  %v1058_v41 = vunpack.c.l.bf16 %v881_v27  ;;  %v309_v43 = vadd.f32 %v308_v37, %v307_v36  ;;  %v1061_v44 = vunpack.c.h.bf16 %v881_v27 }
  0x1d   : > { %v1063_v45 = vunpack.c.l.bf16 %v882_v32  ;;  %v1065_v46 = vunpack.c.h.bf16 %v882_v32  ;;  %v312_v49 = vsel %vm306_vm1, %v1007_v12, 0.0  ;;  %v1071_v50 = vunpack.c.l.bf16 %v883_v34 }
  0x1e   : > { %v1073_v51 = vunpack.c.h.bf16 %v883_v34  ;;  %v1075_v52 = vunpack.c.l.bf16 %v884_v35  ;;  %v311_v54 = vadd.f32 %v310_v38, %v309_v43  ;;  %v1078_v55 = vunpack.c.h.bf16 %v884_v35 }
  0x1f   : > { %v1080_v56 = vunpack.c.l.bf16 %v885_v42  ;;  %v1082_v57 = vunpack.c.h.bf16 %v885_v42  ;;  %v314_v60 = vsel %vm306_vm1, %v1009_v13, 0.0  ;;  %v1088_v61 = vunpack.c.l.bf16 %v886_v47 }
  0x20   : > { %v1090_v62 = vunpack.c.h.bf16 %v886_v47  ;;  %v1092_v63 = vunpack.c.l.bf16 %v887_v48  ;;  %v313_v0 = vadd.f32 %v312_v49, %v311_v54  ;;  %v1094_v1 = vunpack.c.h.bf16 %v887_v48 }
  0x21   : > { %v1096_v2 = vunpack.c.l.bf16 %v888_v53  ;;  %v1098_v3 = vunpack.c.h.bf16 %v888_v53  ;;  %v316_v4 = vsel %vm306_vm1, %v1011_v14, 0.0  ;;  %v1102_v5 = vunpack.c.l.bf16 %v889_v58 }
  0x22   : > { %1726 = vst [vmem:[#allocation2_spill] sm:$0xff] %v1090_v62  ;;  %1727 = vst [vmem:[#allocation3_spill] sm:$0xff] %v1092_v63  ;;  %v1104_v6 = vunpack.c.h.bf16 %v889_v58  ;;  %v1106_v10 = vunpack.c.l.bf16 %v890_v59  ;;  %v315_v11 = vadd.f32 %v314_v60, %v313_v0  ;;  %v1108_v16 = vunpack.c.h.bf16 %v890_v59 }
  0x23   : > { %1728 = vst [vmem:[#allocation4_spill] sm:$0xff] %v1094_v1  ;;  %1729 = vst [vmem:[#allocation5_spill] sm:$0xff] %v1096_v2  ;;  %v318_v17 = vsel %vm306_vm1, %v1013_v15, 0.0  ;;  %v320_v26 = vsel %vm306_vm1, %v1017_v18, 0.0  ;;  %v322_v27 = vsel %vm306_vm1, %v1019_v19, 0.0  ;;  %v324_v34 = vsel %vm306_vm1, %v1021_v20, 0.0 }
  0x24   : > { %1730 = vst [vmem:[#allocation6_spill] sm:$0xff] %v1098_v3  ;;  %1731 = vst [vmem:[#allocation7_spill] sm:$0xff] %v1102_v5  ;;  %v317_v32 = vadd.f32 %v316_v4, %v315_v11  ;;  %v326_v35 = vsel %vm306_vm1, %v1023_v21, 0.0  ;;  %v1122_v36 = vsel %vm306_vm1, %v1027_v23, 0.0  ;;  %v1126_v37 = vsel %vm306_vm1, %v1029_v24, 0.0 }
  0x25   : > { %1732 = vst [vmem:[#allocation8_spill] sm:$0xff] %v1104_v6  ;;  %1733 = vst [vmem:[#allocation9_spill] sm:$0xff] %v1106_v10  ;;  %v1130_v38 = vsel %vm306_vm1, %v1031_v25, 0.0  ;;  %v1134_v42 = vsel %vm306_vm1, %v1035_v28, 0.0  ;;  %v1138_v43 = vsel %vm306_vm1, %v1037_v29, 0.0  ;;  %v1142_v48 = vsel %vm306_vm1, %v1039_v30, 0.0 }
  0x26   : > { %1734 = vst [vmem:[#allocation10_spill] sm:$0xff] %v1108_v16  ;;  %1735 = vst [vmem:[#allocation11_spill] sm:$0xff] %v1122_v36  ;;  %v319_v47 = vadd.f32 %v318_v17, %v317_v32  ;;  %v1146_v49 = vsel %vm306_vm1, %v1041_v31, 0.0  ;;  %v1150_v53 = vsel %vm306_vm1, %v1044_v33, 0.0  ;;  %v1154_v54 = vsel %vm306_vm1, %v1054_v39, 0.0 }
  0x27   : > { %1736 = vst [vmem:[#allocation12_spill] sm:$0xff] %v1126_v37  ;;  %1737 = vst [vmem:[#allocation13_spill] sm:$0xff] %v1130_v38  ;;  %v1158_v58 = vsel %vm306_vm1, %v1056_v40, 0.0  ;;  %v1162_v59 = vsel %vm306_vm1, %v1058_v41, 0.0  ;;  %v1166_v60 = vsel %vm306_vm1, %v1061_v44, 0.0  ;;  %v1170_v4 = vsel %vm306_vm1, %v1063_v45, 0.0 }
  0x28   : > { %1738 = vst [vmem:[#allocation14_spill] sm:$0xff] %v1134_v42  ;;  %1739 = vst [vmem:[#allocation15_spill] sm:$0xff] %v1138_v43  ;;  %v321_v0 = vadd.f32 %v320_v26, %v319_v47  ;;  %v1174_v11 = vsel %vm306_vm1, %v1065_v46, 0.0  ;;  %v1178_v17 = vsel %vm306_vm1, %v1071_v50, 0.0  ;;  %v1182_v32 = vsel %vm306_vm1, %v1073_v51, 0.0  ;;  %v872_v38 = vld [vmem:[%s991_s23 + $0x68] sm:$0xff]  }
  0x29   : > { %1740 = vst [vmem:[#allocation16_spill] sm:$0xff] %v1142_v48  ;;  %1741 = vst [vmem:[#allocation17_spill] sm:$0xff] %v1146_v49  ;;  %v1186_v26 = vsel %vm306_vm1, %v1075_v52, 0.0  ;;  %v1190_v47 = vsel %vm306_vm1, %v1078_v55, 0.0  ;;  %v871_v49 = vld [vmem:[%s991_s23 + $0x60] sm:$0xff]   ;;  %v873_v37 = vld [vmem:[%s991_s23 + $0x70] sm:$0xff]  }
  0x2a   : > { %1742 = vst [vmem:[#allocation18_spill] sm:$0xff] %v1150_v53  ;;  %1743 = vst [vmem:[#allocation19_spill] sm:$0xff] %v1154_v54 }
  0x2b   : > { %1744 = vst [vmem:[#allocation20_spill] sm:$0xff] %v1158_v58  ;;  %1745 = vst [vmem:[#allocation21_spill] sm:$0xff] %v1162_v59  ;;  %v867_v59 = vld [vmem:[%s991_s23 + $0x40] sm:$0xff]   ;;  %v1230_v58 = vsel %vm306_vm1, %v1102_v5, 0.0  ;;  %v1284_v5 = vunpack.c.l.bf16 %v872_v38 }
  0x2c   : > { %1746 = vst [vmem:[#allocation22_spill] sm:$0xff] %v1166_v60  ;;  %1747 = vst [vmem:[#allocation23_spill] sm:$0xff] %v1170_v4  ;;  %v865_v4 = vld [vmem:[%s991_s23 + $0x30] sm:$0xff]   ;;  %v323_v60 = vadd.f32 %v322_v27, %v321_v0  ;;  %v1217_v27 = vsel %vm306_vm1, %v1094_v1, 0.0  ;;  %v1221_v0 = vsel %vm306_vm1, %v1096_v2, 0.0  ;;  %v1288_v2 = vunpack.c.l.bf16 %v873_v37 }
  0x2d   : > { %1748 = vst [vmem:[#allocation24_spill] sm:$0xff] %v1174_v11  ;;  %1749 = vst [vmem:[#allocation25_spill] sm:$0xff] %v1178_v17  ;;  %v1194_v11 = vsel %vm306_vm1, %v1080_v56, 0.0  ;;  %v1199_v17 = vsel %vm306_vm1, %v1082_v57, 0.0  ;;  %v1242_v54 = vunpack.c.h.bf16 %v865_v4  ;;  %v1290_v1 = vunpack.c.h.bf16 %v873_v37 }
  0x2e   : > { %1750 = vst [vmem:[#allocation26_spill] sm:$0xff] %v1182_v32  ;;  %1751 = vst [vmem:[#allocation27_spill] sm:$0xff] %v1186_v26  ;;  %v1203_v32 = vsel %vm306_vm1, %v1088_v61, 0.0  ;;  %v1207_v26 = vsel %vm306_vm1, %v1090_v62, 0.0 }
  0x2f   : > { %1752 = vst [vmem:[#allocation28_spill] sm:$0xff] %v1190_v47  ;;  %1753 = vst [vmem:[#allocation29_spill] sm:$0xff] %v1194_v11  ;;  %v866_v47 = vld [vmem:[%s991_s23 + $0x38] sm:$0xff]   ;;  %v1213_v11 = vsel %vm306_vm1, %v1092_v63, 0.0 }
  0x30   : > { %1754 = vst [vmem:[#allocation30_spill] sm:$0xff] %v1199_v17  ;;  %1755 = vst [vmem:[#allocation31_spill] sm:$0xff] %v1203_v32  ;;  %v1225_v32 = vsel %vm306_vm1, %v1098_v3, 0.0  ;;  %v325_v17 = vadd.f32 %v324_v34, %v323_v60  ;;  %v870_v34 = vld [vmem:[%s991_s23 + $0x58] sm:$0xff]   ;;  %v328_v60 = vsel %vm306_vm1, %v1025_v22, 0.0  ;;  %v1254_v53 = vunpack.c.h.bf16 %v866_v47 }
  0x31   : > { %1756 = vst [vmem:[#allocation32_spill] sm:$0xff] %v1207_v26  ;;  %1757 = vst [vmem:[#allocation33_spill] sm:$0xff] %v1213_v11  ;;  %v868_v26 = vld [vmem:[%s991_s23 + $0x48] sm:$0xff]   ;;  %v1234_v11 = vsel %vm306_vm1, %v1104_v6, 0.0  ;;  %v1286_v3 = vunpack.c.h.bf16 %v872_v38 }
  0x32   : > { %1758 = vst [vmem:[#allocation34_spill] sm:$0xff] %v1217_v27  ;;  %1759 = vst [vmem:[#allocation35_spill] sm:$0xff] %v1221_v0  ;;  %v1238_v27 = vsel %vm306_vm1, %v1106_v10, 0.0  ;;  %v1240_v0 = vunpack.c.l.bf16 %v865_v4  ;;  %v327_v48 = vadd.f32 %v326_v35, %v325_v17  ;;  %v1259_v4 = vunpack.c.h.bf16 %v867_v59  ;;  %v874_v10 = vld [vmem:[%s991_s23 + $0x78] sm:$0xff]  }
  0x33   : > { %1760 = vst [vmem:[#allocation36_spill] sm:$0xff] %v1225_v32  ;;  %1761 = vst [vmem:[#allocation37_spill] sm:$0xff] %v1230_v58  ;;  %v869_v32 = vld [vmem:[%s991_s23 + $0x50] sm:$0xff]   ;;  %v1250_v58 = vsel %vm306_vm1, %v1108_v16, 0.0  ;;  %v1261_v43 = vunpack.c.l.bf16 %v868_v26  ;;  %v1263_v42 = vunpack.c.h.bf16 %v868_v26  ;;  %v1276_v35 = vunpack.c.h.bf16 %v870_v34 }
  0x34   : > { %1762 = vst [vmem:[#allocation38_spill] sm:$0xff] %v1234_v11  ;;  %1763 = vst [vmem:[#allocation39_spill] sm:$0xff] %v1238_v27  ;;  %v1252_v11 = vunpack.c.l.bf16 %v866_v47  ;;  %v1256_v27 = vunpack.c.l.bf16 %v867_v59  ;;  %v330_v36 = vsel %vm306_vm1, %v1240_v0, 0.0  ;;  %v1271_v16 = vunpack.c.h.bf16 %v869_v32 }
  0x35   : > { %1764 = vst [vmem:[#allocation40_spill] sm:$0xff] %v1250_v58  ;;  %1765 = vst [vmem:[#allocation41_spill] sm:$0xff] %v1259_v4  ;;  %v1269_v58 = vunpack.c.l.bf16 %v869_v32  ;;  %v1273_v47 = vunpack.c.l.bf16 %v870_v34  ;;  %v329_v6 = vadd.f32 %v328_v60, %v327_v48  ;;  %v1278_v59 = vunpack.c.l.bf16 %v871_v49 }
  0x36   : > { %1766 = vst [vmem:[#allocation42_spill] sm:$0xff] %v1261_v43  ;;  %1767 = vst [vmem:[#allocation43_spill] sm:$0xff] %v1263_v42  ;;  %v1280_v17 = vunpack.c.h.bf16 %v871_v49  ;;  %v332_v26 = vsel %vm306_vm1, %v1242_v54, 0.0  ;;  %v1292_v63 = vunpack.c.l.bf16 %v874_v10  ;;  %v1294_v48 = vunpack.c.h.bf16 %v874_v10 }
  0x37   : > { %1768 = vst [vmem:[#allocation44_spill] sm:$0xff] %v1271_v16  ;;  %1769 = vst [vmem:[#allocation45_spill] sm:$0xff] %v1273_v47  ;;  %v331_v32 = vadd.f32 %v330_v36, %v329_v6  ;;  %v334_v49 = vsel %vm306_vm1, %v1252_v11, 0.0  ;;  %v336_v60 = vsel %vm306_vm1, %v1254_v53, 0.0  ;;  %v338_v38 = vsel %vm306_vm1, %v1256_v27, 0.0 }
  0x38   : > { %1770 = vst [vmem:[#allocation46_spill] sm:$0xff] %v1276_v35  ;;  %1771 = vst [vmem:[#allocation47_spill] sm:$0xff] %v1278_v59  ;;  %v340_v62 = vsel %vm306_vm1, %v1259_v4, 0.0  ;;  %v342_v6 = vsel %vm306_vm1, %v1261_v43, 0.0  ;;  %v344_v10 = vsel %vm306_vm1, %v1263_v42, 0.0  ;;  %v346_v36 = vsel %vm306_vm1, %v1269_v58, 0.0 }
  0x39   : > { %1772 = vst [vmem:[#allocation48_spill] sm:$0xff] %v1280_v17  ;;  %1773 = vst [vmem:[#allocation49_spill] sm:$0xff] %v1284_v5  ;;  %v333_v34 = vadd.f32 %v332_v26, %v331_v32  ;;  %v348_v37 = vsel %vm306_vm1, %v1271_v16, 0.0  ;;  %v1314_v32 = vsel %vm306_vm1, %v1273_v47, 0.0  ;;  %v1318_v4 = vsel %vm306_vm1, %v1276_v35, 0.0 }
  0x3a   : > { %1774 = vst [vmem:[#allocation50_spill] sm:$0xff] %v1286_v3  ;;  %1775 = vst [vmem:[#allocation51_spill] sm:$0xff] %v1288_v2  ;;  %v1322_v43 = vsel %vm306_vm1, %v1278_v59, 0.0  ;;  %v1326_v42 = vsel %vm306_vm1, %v1280_v17, 0.0  ;;  %v1330_v16 = vsel %vm306_vm1, %v1284_v5, 0.0  ;;  %v1342_v59 = vsel %vm306_vm1, %v1290_v1, 0.0 }
  0x3b   : > { %1776 = vst [vmem:[#allocation52_spill] sm:$0xff] %v1290_v1  ;;  %1777 = vst [vmem:[#allocation53_spill] sm:$0xff] %v1292_v63  ;;  %v335_v26 = vadd.f32 %v334_v49, %v333_v34  ;;  %v1334_v49 = vsel %vm306_vm1, %v1286_v3, 0.0  ;;  %v1338_v34 = vsel %vm306_vm1, %v1288_v2, 0.0  ;;  %v1346_v17 = vsel %vm306_vm1, %v1292_v63, 0.0 }
  0x3c   : > { %v444_v5 = vmul.f32 %v999_v7, %v999_v7  ;;  %v445_v3 = vmul.f32 %v1001_v8, %v1001_v8  ;;  %v446_v47 = vmul.f32 %v1003_v9, %v1003_v9  ;;  %v449_v63 = vmul.f32 %v1011_v14, %v1011_v14 }
  0x3d   : > { %v337_v35 = vadd.f32 %v336_v60, %v335_v26  ;;  %v447_v60 = vmul.f32 %v1007_v12, %v1007_v12  ;;  %v448_v26 = vmul.f32 %v1009_v13, %v1009_v13  ;;  %v450_v2 = vmul.f32 %v1013_v15, %v1013_v15 }
  0x3e   : > { %v451_v7 = vmul.f32 %v1017_v18, %v1017_v18  ;;  %v452_v8 = vmul.f32 %v1019_v19, %v1019_v19  ;;  %v453_v9 = vmul.f32 %v1021_v20, %v1021_v20  ;;  %v454_v12 = vmul.f32 %v1023_v21, %v1023_v21 }
  0x3f   : > { %v339_v1 = vadd.f32 %v338_v38, %v337_v35  ;;  %v455_v13 = vmul.f32 %v1025_v22, %v1025_v22  ;;  %v456_v14 = vmul.f32 %v1240_v0, %v1240_v0  ;;  %v1376_v15 = vmul.f32 %v1242_v54, %v1242_v54 }
  0x40   : > { %v1380_v18 = vmul.f32 %v1252_v11, %v1252_v11  ;;  %v478_v19 = vmul.f32 %v1027_v23, %v1027_v23  ;;  %v479_v20 = vmul.f32 %v1029_v24, %v1029_v24  ;;  %v480_v21 = vmul.f32 %v1031_v25, %v1031_v25 }
  0x41   : > { %v341_v35 = vadd.f32 %v340_v62, %v339_v1  ;;  %v481_v22 = vmul.f32 %v1035_v28, %v1035_v28  ;;  %v482_v1 = vmul.f32 %v1037_v29, %v1037_v29  ;;  %v483_v54 = vmul.f32 %v1039_v30, %v1039_v30 }
  0x42   : > { %v484_v11 = vmul.f32 %v1041_v31, %v1041_v31  ;;  %v485_v23 = vmul.f32 %v1044_v33, %v1044_v33  ;;  %v486_v24 = vmul.f32 %v1054_v39, %v1054_v39  ;;  %v508_v25 = vsel %vm306_vm1, %v444_v5, 0.0 }
  0x43   : > { %v343_v62 = vadd.f32 %v342_v6, %v341_v35  ;;  %v509_v28 = vsel %vm306_vm1, %v445_v3, 0.0  ;;  %v487_v29 = vmul.f32 %v1056_v40, %v1056_v40  ;;  %v511_v30 = vsel %vm306_vm1, %v446_v47, 0.0 }
  0x44   : > { %v510_v38 = vadd.f32 %v509_v28, %v508_v25  ;;  %v488_v31 = vmul.f32 %v1058_v41, %v1058_v41  ;;  %v489_v33 = vmul.f32 %v1061_v44, %v1061_v44  ;;  %v490_v39 = vmul.f32 %v1063_v45, %v1063_v45  ;;  %v1781_v28 = vld [vmem:[#allocation5_spill] sm:$0xff] }
  0x45   : > { %v345_v0 = vadd.f32 %v344_v10, %v343_v62  ;;  %v513_v5 = vsel %vm306_vm1, %v447_v60, 0.0  ;;  %v491_v3 = vmul.f32 %v1065_v46, %v1065_v46  ;;  %v492_v40 = vmul.f32 %v1071_v50, %v1071_v50 }
  0x46   : > { %v512_v10 = vadd.f32 %v511_v30, %v510_v38  ;;  %v493_v47 = vmul.f32 %v1073_v51, %v1073_v51  ;;  %v494_v41 = vmul.f32 %v1075_v52, %v1075_v52  ;;  %v495_v44 = vmul.f32 %v1078_v55, %v1078_v55  ;;  %v1778_v51 = vld [vmem:[#allocation2_spill] sm:$0xff]  ;;  %v1779_v52 = vld [vmem:[#allocation3_spill] sm:$0xff] }
  0x47   : > { %v347_v6 = vadd.f32 %v346_v36, %v345_v0  ;;  %v515_v45 = vsel %vm306_vm1, %v448_v26, 0.0  ;;  %v496_v36 = vmul.f32 %v1080_v56, %v1080_v56  ;;  %v497_v46 = vmul.f32 %v1082_v57, %v1082_v57  ;;  %v1780_v26 = vld [vmem:[#allocation4_spill] sm:$0xff]  ;;  %v1782_v38 = vld [vmem:[#allocation6_spill] sm:$0xff]  ;;  %v1783_v30 = vld [vmem:[#allocation7_spill] sm:$0xff] }
  0x48   : > { %v514_v50 = vadd.f32 %v513_v5, %v512_v10  ;;  %v498_v35 = vmul.f32 %v1088_v61, %v1088_v61  ;;  %v499_v62 = vmul.f32 %v1778_v51, %v1778_v51  ;;  %v500_v25 = vmul.f32 %v1779_v52, %v1779_v52  ;;  %v1786_v52 = vld [vmem:[#allocation10_spill] sm:$0xff] }
  0x49   : > { %v349_v60 = vadd.f32 %v348_v37, %v347_v6  ;;  %v517_v55 = vsel %vm306_vm1, %v449_v63, 0.0  ;;  %v501_v56 = vmul.f32 %v1780_v26, %v1780_v26  ;;  %v502_v57 = vmul.f32 %v1781_v28, %v1781_v28  ;;  %v1784_v6 = vld [vmem:[#allocation8_spill] sm:$0xff] }
  0x4a   : > { %v516_v0 = vadd.f32 %v515_v45, %v514_v50  ;;  %v503_v61 = vmul.f32 %v1782_v38, %v1782_v38  ;;  %v504_v5 = vmul.f32 %v1783_v30, %v1783_v30  ;;  %v505_v10 = vmul.f32 %v1784_v6, %v1784_v6 }
  0x4b   : > { %v351_v37 = vadd.f32 %v1314_v32, %v349_v60  ;;  %v519_v63 = vsel %vm306_vm1, %v450_v2, 0.0  ;;  %v1785_v60 = vld [vmem:[#allocation9_spill] sm:$0xff]  ;;  %v507_v26 = vmul.f32 %v1786_v52, %v1786_v52  ;;  %v521_v50 = vsel %vm306_vm1, %v451_v7, 0.0 }
  0x4c   : > { %v506_v51 = vmul.f32 %v1785_v60, %v1785_v60  ;;  %v518_v45 = vadd.f32 %v517_v55, %v516_v0  ;;  %v523_v28 = vsel %vm306_vm1, %v452_v8, 0.0  ;;  %v525_v38 = vsel %vm306_vm1, %v453_v9, 0.0 }
  0x4d   : > { %v353_v32 = vadd.f32 %v1318_v4, %v351_v37  ;;  %v527_v30 = vsel %vm306_vm1, %v454_v12, 0.0  ;;  %v529_v4 = vsel %vm306_vm1, %v455_v13, 0.0  ;;  %v531_v37 = vsel %vm306_vm1, %v456_v14, 0.0 }
  0x4e   : > { %v520_v2 = vadd.f32 %v519_v63, %v518_v45  ;;  %v1459_v60 = vsel %vm306_vm1, %v478_v19, 0.0  ;;  %v1462_v55 = vsel %vm306_vm1, %v479_v20, 0.0  ;;  %v1465_v7 = vsel %vm306_vm1, %v480_v21, 0.0 }
  0x4f   : > { %v355_v6 = vadd.f32 %v1322_v43, %v353_v32  ;;  %v1468_v8 = vsel %vm306_vm1, %v481_v22, 0.0  ;;  %v1472_v12 = vsel %vm306_vm1, %v482_v1, 0.0  ;;  %v1475_v13 = vsel %vm306_vm1, %v483_v54, 0.0 }
  0x50   : > { %v522_v43 = vadd.f32 %v521_v50, %v520_v2  ;;  %v1478_v14 = vsel %vm306_vm1, %v484_v11, 0.0  ;;  %v1481_v19 = vsel %vm306_vm1, %v485_v23, 0.0  ;;  %v1484_v20 = vsel %vm306_vm1, %v486_v24, 0.0 }
  0x51   : > { %v357_v9 = vadd.f32 %v1326_v42, %v355_v6  ;;  %v1487_v21 = vsel %vm306_vm1, %v487_v29, 0.0  ;;  %v1491_v1 = vsel %vm306_vm1, %v488_v31, 0.0  ;;  %v1494_v54 = vsel %vm306_vm1, %v489_v33, 0.0 }
  0x52   : > { %v524_v22 = vadd.f32 %v523_v28, %v522_v43  ;;  %v1497_v11 = vsel %vm306_vm1, %v490_v39, 0.0  ;;  %v1500_v23 = vsel %vm306_vm1, %v491_v3, 0.0  ;;  %v1503_v24 = vsel %vm306_vm1, %v492_v40, 0.0 }
  0x53   : > { %v359_v42 = vadd.f32 %v1330_v16, %v357_v9  ;;  %v1506_v29 = vsel %vm306_vm1, %v493_v47, 0.0  ;;  %v1510_v31 = vsel %vm306_vm1, %v494_v41, 0.0  ;;  %v1513_v33 = vsel %vm306_vm1, %v495_v44, 0.0 }
  0x54   : > { %v526_v0 = vadd.f32 %v525_v38, %v524_v22  ;;  %v1516_v39 = vsel %vm306_vm1, %v496_v36, 0.0  ;;  %v1519_v3 = vsel %vm306_vm1, %v497_v46, 0.0  ;;  %v1522_v40 = vsel %vm306_vm1, %v498_v35, 0.0 }
  0x55   : > { %v361_v16 = vadd.f32 %v1334_v49, %v359_v42  ;;  %v1525_v47 = vsel %vm306_vm1, %v499_v62, 0.0  ;;  %v875_v49 = vld [vmem:[%s991_s23 + $0x80] sm:$0xff]   ;;  %v1530_v32 = vsel %vm306_vm1, %v500_v25, 0.0  ;;  %v1533_v44 = vsel %vm306_vm1, %v501_v56, 0.0 }
  0x56   : > { %v528_v41 = vadd.f32 %v527_v30, %v526_v0  ;;  %v1536_v36 = vsel %vm306_vm1, %v502_v57, 0.0  ;;  %v1539_v46 = vsel %vm306_vm1, %v503_v61, 0.0  ;;  %v1542_v35 = vsel %vm306_vm1, %v504_v5, 0.0  ;;  %v1790_v0 = vld [vmem:[#allocation11_spill] sm:$0xff] }
  0x57   : > { %v363_v63 = vadd.f32 %v1338_v34, %v361_v16  ;;  %v1545_v62 = vsel %vm306_vm1, %v505_v10, 0.0  ;;  %v1549_v25 = vsel %vm306_vm1, %v506_v51, 0.0  ;;  %v1552_v56 = vsel %vm306_vm1, %v507_v26, 0.0 }
  0x58   : > { %v530_v52 = vadd.f32 %v529_v4, %v528_v41  ;;  %v1554_v57 = vunpack.c.l.bf16 %v875_v49  ;;  %v368_v61 = vsel %vm306_vm1, %v1294_v48, 0.0  ;;  %v459_v5 = vmul.f32 %v1254_v53, %v1254_v53 }
  0x59   : > { %v365_v34 = vadd.f32 %v1342_v59, %v363_v63  ;;  %v533_v10 = vsel %vm306_vm1, %v1376_v15, 0.0  ;;  %v1563_v50 = vunpack.c.h.bf16 %v875_v49  ;;  %v460_v26 = vmul.f32 %v1256_v27, %v1256_v27  ;;  %v1787_v15 = vld [vmem:[#allocation41_spill] sm:$0xff] }
  0x5a   : > { %v532_v45 = vadd.f32 %v531_v37, %v530_v52  ;;  %v370_v51 = vsel %vm306_vm1, %v1554_v57, 0.0  ;;  %v535_v28 = vsel %vm306_vm1, %v1380_v18, 0.0  ;;  %v537_v6 = vsel %vm306_vm1, %v459_v5, 0.0  ;;  %v1788_v37 = vld [vmem:[#allocation42_spill] sm:$0xff]  ;;  %v1789_v18 = vld [vmem:[#allocation43_spill] sm:$0xff]  ;;  %v1791_v52 = vld [vmem:[#allocation12_spill] sm:$0xff] }
  0x5b   : > { %v367_v59 = vadd.f32 %v1346_v17, %v365_v34  ;;  %v372_v53 = vsel %vm306_vm1, %v1563_v50, 0.0  ;;  %v461_v17 = vmul.f32 %v1787_v15, %v1787_v15  ;;  %v462_v9 = vmul.f32 %v1788_v37, %v1788_v37  ;;  %v1795_v15 = vld [vmem:[#allocation14_spill] sm:$0xff]  ;;  %v1797_v37 = vld [vmem:[#allocation15_spill] sm:$0xff] }
  0x5c   : > { %v534_v30 = vadd.f32 %v533_v10, %v532_v45  ;;  %v539_v27 = vsel %vm306_vm1, %v460_v26, 0.0  ;;  %v463_v22 = vmul.f32 %v1789_v18, %v1789_v18  ;;  %v464_v41 = vmul.f32 %v1269_v58, %v1269_v58  ;;  %v1792_v10 = vld [vmem:[#allocation44_spill] sm:$0xff] }
  0x5d   : > { %v369_v38 = vadd.f32 %v368_v61, %v367_v59  ;;  %v541_v16 = vsel %vm306_vm1, %v461_v17, 0.0  ;;  %v543_v34 = vsel %vm306_vm1, %v462_v9, 0.0  ;;  %v465_v59 = vmul.f32 %v1792_v10, %v1792_v10 }
  0x5e   : > { %v536_v4 = vadd.f32 %v535_v28, %v534_v30  ;;  %v545_v45 = vsel %vm306_vm1, %v463_v22, 0.0  ;;  %v1799_v22 = vld [vmem:[#allocation16_spill] sm:$0xff] }
  0x5f   : > { %v371_v2 = vadd.f32 %v370_v51, %v369_v38  ;;  %v1793_v51 = vld [vmem:[#allocation13_spill] sm:$0xff] }
  0x60   : > { %v538_v42 = vadd.f32 %v537_v6, %v536_v4  ;;  %v1794_v38 = vld [vmem:[#allocation45_spill] sm:$0xff]  ;;  %v1796_v6 = vld [vmem:[#allocation46_spill] sm:$0xff]  ;;  %v549_v4 = vsel %vm306_vm1, %v465_v59, 0.0 }
  0x61   : > { %v373_v43 = vadd.f32 %v372_v53, %v371_v2  ;;  %v466_v30 = vmul.f32 %v1794_v38, %v1794_v38  ;;  %v547_v53 = vsel %vm306_vm1, %v464_v41, 0.0  ;;  %v467_v2 = vmul.f32 %v1796_v6, %v1796_v6 }
  0x62   : > { %v540_v63 = vadd.f32 %v539_v27, %v538_v42 }
  0x63   : > { %v375_v49 = vadd.f32 %v1790_v0, %v373_v43  ;;  %v1798_v43 = vld [vmem:[#allocation47_spill] sm:$0xff]  ;;  %v551_v18 = vsel %vm306_vm1, %v466_v30, 0.0  ;;  %v553_v41 = vsel %vm306_vm1, %v467_v2, 0.0 }
  0x64   : > { %v542_v5 = vadd.f32 %v541_v16, %v540_v63  ;;  %v468_v42 = vmul.f32 %v1798_v43, %v1798_v43 }
  0x65   : > { %v377_v61 = vadd.f32 %v1791_v52, %v375_v49  ;;  %v1800_v49 = vld [vmem:[#allocation48_spill] sm:$0xff] }
  0x66   : > { %v544_v28 = vadd.f32 %v543_v34, %v542_v5  ;;  %v469_v63 = vmul.f32 %v1800_v49, %v1800_v49  ;;  %v1801_v34 = vld [vmem:[#allocation17_spill] sm:$0xff]  ;;  %v555_v59 = vsel %vm306_vm1, %v468_v42, 0.0 }
  0x67   : > { %v379_v26 = vadd.f32 %v1793_v51, %v377_v61  ;;  %v1802_v5 = vld [vmem:[#allocation49_spill] sm:$0xff] }
  0x68   : > { %v546_v17 = vadd.f32 %v545_v45, %v544_v28  ;;  %v470_v10 = vmul.f32 %v1802_v5, %v1802_v5  ;;  %v1803_v45 = vld [vmem:[#allocation18_spill] sm:$0xff]  ;;  %v557_v30 = vsel %vm306_vm1, %v469_v63, 0.0 }
  0x69   : > { %v381_v58 = vadd.f32 %v1795_v15, %v379_v26  ;;  %v1804_v28 = vld [vmem:[#allocation50_spill] sm:$0xff] }
  0x6a   : > { %v548_v27 = vadd.f32 %v547_v53, %v546_v17  ;;  %v471_v38 = vmul.f32 %v1804_v28, %v1804_v28  ;;  %v1805_v53 = vld [vmem:[#allocation19_spill] sm:$0xff]  ;;  %v559_v2 = vsel %vm306_vm1, %v470_v10, 0.0  ;;  %v1813_v28 = vld [vmem:[#allocation24_spill] sm:$0xff] }
  0x6b   : > { %v383_v9 = vadd.f32 %v1797_v37, %v381_v58  ;;  %v1806_v17 = vld [vmem:[#allocation51_spill] sm:$0xff] }
  0x6c   : > { %v550_v0 = vadd.f32 %v549_v4, %v548_v27  ;;  %v472_v6 = vmul.f32 %v1806_v17, %v1806_v17  ;;  %v1807_v4 = vld [vmem:[#allocation20_spill] sm:$0xff]  ;;  %v561_v42 = vsel %vm306_vm1, %v471_v38, 0.0  ;;  %v1812_v10 = vld [vmem:[#allocation23_spill] sm:$0xff] }
  0x6d   : > { %v385_v16 = vadd.f32 %v1799_v22, %v383_v9  ;;  %v1808_v27 = vld [vmem:[#allocation52_spill] sm:$0xff] }
  0x6e   : > { %v552_v61 = vadd.f32 %v551_v18, %v550_v0  ;;  %v473_v43 = vmul.f32 %v1808_v27, %v1808_v27  ;;  %v1809_v18 = vld [vmem:[#allocation21_spill] sm:$0xff]  ;;  %v563_v63 = vsel %vm306_vm1, %v472_v6, 0.0 }
  0x6f   : > { %v387_v52 = vadd.f32 %v1801_v34, %v385_v16  ;;  %v1810_v0 = vld [vmem:[#allocation53_spill] sm:$0xff] }
  0x70   : > { %v554_v26 = vadd.f32 %v553_v41, %v552_v61  ;;  %v474_v49 = vmul.f32 %v1810_v0, %v1810_v0  ;;  %v1811_v41 = vld [vmem:[#allocation22_spill] sm:$0xff]  ;;  %v475_v61 = vmul.f32 %v1294_v48, %v1294_v48  ;;  %v565_v5 = vsel %vm306_vm1, %v473_v43, 0.0 }
  0x71   : > { %v389_v51 = vadd.f32 %v1803_v45, %v387_v52 }
  0x72   : > { %v556_v58 = vadd.f32 %v555_v59, %v554_v26  ;;  %v567_v26 = vsel %vm306_vm1, %v474_v49, 0.0  ;;  %v1819_v49 = vld [vmem:[#allocation30_spill] sm:$0xff] }
  0x73   : > { %v391_v15 = vadd.f32 %v1805_v53, %v389_v51  ;;  %v476_v51 = vmul.f32 %v1554_v57, %v1554_v57  ;;  %v477_v53 = vmul.f32 %v1563_v50, %v1563_v50 }
  0x74   : > { %v558_v9 = vadd.f32 %v557_v30, %v556_v58  ;;  %v1814_v58 = vld [vmem:[#allocation25_spill] sm:$0xff] }
  0x75   : > { %v393_v37 = vadd.f32 %v1807_v4, %v391_v15  ;;  %v569_v15 = vsel %vm306_vm1, %v475_v61, 0.0  ;;  %v571_v6 = vsel %vm306_vm1, %v476_v51, 0.0  ;;  %v573_v57 = vsel %vm306_vm1, %v477_v53, 0.0 }
  0x76   : > { %v560_v16 = vadd.f32 %v559_v2, %v558_v9  ;;  %v1815_v2 = vld [vmem:[#allocation26_spill] sm:$0xff]  ;;  %v1816_v9 = vld [vmem:[#allocation27_spill] sm:$0xff] }
  0x77   : > { %v395_v22 = vadd.f32 %v1809_v18, %v393_v37 }
  0x78   : > { %v562_v52 = vadd.f32 %v561_v42, %v560_v16  ;;  %v1817_v42 = vld [vmem:[#allocation28_spill] sm:$0xff]  ;;  %v1818_v16 = vld [vmem:[#allocation29_spill] sm:$0xff] }
  0x79   : > { %v397_v34 = vadd.f32 %v1811_v41, %v395_v22 }
  0x7a   : > { %v564_v45 = vadd.f32 %v563_v63, %v562_v52 }
  0x7b   : > { %v399_v59 = vadd.f32 %v1812_v10, %v397_v34  ;;  %v1820_v34 = vld [vmem:[#allocation31_spill] sm:$0xff] }
  0x7c   : > { %v566_v30 = vadd.f32 %v565_v5, %v564_v45  ;;  %v1821_v5 = vld [vmem:[#allocation32_spill] sm:$0xff]  ;;  %v1822_v45 = vld [vmem:[#allocation33_spill] sm:$0xff] }
  0x7d   : > { %v401_v38 = vadd.f32 %v1813_v28, %v399_v59  ;;  %v1823_v28 = vld [vmem:[#allocation34_spill] sm:$0xff] }
  0x7e   : > { %v568_v17 = vadd.f32 %v567_v26, %v566_v30  ;;  %v1824_v30 = vld [vmem:[#allocation35_spill] sm:$0xff] }
  0x7f   : > { %v403_v48 = vadd.f32 %v1814_v58, %v401_v38 }
  0x80   : > { %v570_v37 = vadd.f32 %v569_v15, %v568_v17  ;;  %v1825_v15 = vld [vmem:[#allocation36_spill] sm:$0xff] }
  0x81   : > { %v405_v4 = vadd.f32 %v1815_v2, %v403_v48  ;;  %v1826_v48 = vld [vmem:[#allocation37_spill] sm:$0xff] }
  0x82   : > { %v572_v43 = vadd.f32 %v571_v6, %v570_v37  ;;  %v1827_v6 = vld [vmem:[#allocation38_spill] sm:$0xff] }
  0x83   : > { %v407_v27 = vadd.f32 %v1816_v9, %v405_v4  ;;  %v1828_v4 = vld [vmem:[#allocation39_spill] sm:$0xff] }
  0x84   : > { %v574_v22 = vadd.f32 %v573_v57, %v572_v43  ;;  %v1829_v57 = vld [vmem:[#allocation40_spill] sm:$0xff] }
  0x85   : > { %v409_v18 = vadd.f32 %v1817_v42, %v407_v27 }
  0x86   : > { %v576_v0 = vadd.f32 %v1459_v60, %v574_v22 }
  0x87   : > { %v411_v50 = vadd.f32 %v1818_v16, %v409_v18 }
  0x88   : > { %v578_v41 = vadd.f32 %v1462_v55, %v576_v0 }
  0x89   : > { %v413_v63 = vadd.f32 %v1819_v49, %v411_v50  ;;  %v305_v50 = vld [vmem:[%s977_s16] sm:$0x1] }
  0x8a   : > { %v580_v61 = vadd.f32 %v1465_v7, %v578_v41 }
  0x8b   : > { %v415_v52 = vadd.f32 %v1820_v34, %v413_v63 }
  0x8c   : > { %v582_v59 = vadd.f32 %v1468_v8, %v580_v61 }
  0x8d   : > { %v417_v10 = vadd.f32 %v1821_v5, %v415_v52 }
  0x8e   : > { %v584_v26 = vadd.f32 %v1472_v12, %v582_v59 }
  0x8f   : > { %v419_v51 = vadd.f32 %v1822_v45, %v417_v10  ;;  %v443_v10 = vld [vmem:[%s982_s19] sm:$0x1] }
  0x90   : > { %v586_v60 = vadd.f32 %v1475_v13, %v584_v26 }
  0x91   : > { %v421_v38 = vadd.f32 %v1823_v28, %v419_v51 }
  0x92   : > { %v588_v55 = vadd.f32 %v1478_v14, %v586_v60 }
  0x93   : > { %v423_v53 = vadd.f32 %v1824_v30, %v421_v38 }
  0x94   : > { %v590_v7 = vadd.f32 %v1481_v19, %v588_v55 }
  0x95   : > { %v425_v58 = vadd.f32 %v1825_v15, %v423_v53 }
  0x96   : > { %v592_v8 = vadd.f32 %v1484_v20, %v590_v7 }
  0x97   : > { %v427_v17 = vadd.f32 %v1826_v48, %v425_v58 }
  0x98   : > { %v594_v12 = vadd.f32 %v1487_v21, %v592_v8 }
  0x99   : > { %v429_v2 = vadd.f32 %v1827_v6, %v427_v17 }
  0x9a   : > { %v596_v13 = vadd.f32 %v1491_v1, %v594_v12 }
  0x9b   : > { %v431_v37 = vadd.f32 %v1828_v4, %v429_v2 }
  0x9c   : > { %v598_v14 = vadd.f32 %v1494_v54, %v596_v13 }
  0x9d   : > { %v433_v9 = vadd.f32 %v1829_v57, %v431_v37 }
  0x9e   : > { %v600_v19 = vadd.f32 %v1497_v11, %v598_v14 }
  0x9f   : > { %v434_v27 = vrot.slane %v433_v9, 4 }
  0xa0   : > { %v602_v20 = vadd.f32 %v1500_v23, %v600_v19 }
  0xa1   : > { %v435_v43 = vadd.f32 %v434_v27, %v433_v9 }
  0xa2   : > { %v604_v18 = vadd.f32 %v1503_v24, %v602_v20 }
  0xa3   : > { %v436_v42 = vrot.slane %v435_v43, 2 }
  0xa4   : > { %v606_v21 = vadd.f32 %v1506_v29, %v604_v18 }
  0xa5   : > { %v437_v22 = vadd.f32 %v436_v42, %v435_v43 }
  0xa6   : > { %v608_v1 = vadd.f32 %v1510_v31, %v606_v21 }
  0xa7   : > { %v438_v16 = vrot.slane %v437_v22, 1 }
  0xa8   : > { %v610_v54 = vadd.f32 %v1513_v33, %v608_v1 }
  0xa9   : > { %v439_v0 = vadd.f32 %v438_v16, %v437_v22 }
  0xaa   : > { %v612_v63 = vadd.f32 %v1516_v39, %v610_v54 }
  0xab   : > { %v440_v49 = vadd.f32 %v439_v0, %v305_v50 }
  0xac   : > { %v614_v11 = vadd.f32 %v1519_v3, %v612_v63 }
  0xad   : > { %442 = vst.msk [vmem:[%s977_s16] sm:$0x1] %vm174_vm0, %v440_v49 }
  0xae   : > { %v616_v23 = vadd.f32 %v1522_v40, %v614_v11 }
  0xb0   : > { %v618_v24 = vadd.f32 %v1525_v47, %v616_v23 }
  0xb2   : > { %v620_v29 = vadd.f32 %v1530_v32, %v618_v24 }
  0xb4   : > { %v622_v31 = vadd.f32 %v1533_v44, %v620_v29 }
  0xb6   : > { %v624_v41 = vadd.f32 %v1536_v36, %v622_v31 }
  0xb8   : > { %v626_v33 = vadd.f32 %v1539_v46, %v624_v41 }
  0xba   : > { %v628_v39 = vadd.f32 %v1542_v35, %v626_v33 }
  0xbc   : > { %v630_v34 = vadd.f32 %v1545_v62, %v628_v39 }
  0xbe   : > { %v632_v3 = vadd.f32 %v1549_v25, %v630_v34 }
  0xc0   : > { %v634_v52 = vadd.f32 %v1552_v56, %v632_v3 }
  0xc2   : > { %v635_v40 = vrot.slane %v634_v52, 4 }
  0xc4   : > { %v636_v61 = vadd.f32 %v635_v40, %v634_v52 }
  0xc6   : > { %v637_v47 = vrot.slane %v636_v61, 2 }
  0xc8   : > { %v638_v5 = vadd.f32 %v637_v47, %v636_v61 }
  0xca   : > { %v639_v32 = vrot.slane %v638_v5, 1 }
  0xcc   : > { %v640_v59 = vadd.f32 %v639_v32, %v638_v5 }
  0xce   : > { %v641_v44 = vadd.f32 %v640_v59, %v443_v10 }
  0xd0   : > { %642 = vst.msk [vmem:[%s982_s19] sm:$0x1] %vm174_vm0, %v641_v44 }
  0xd1 PF: > { %s13_s11 = sadd.s32 1, %s938_s11   ;;  %s1830_s9 = smov %s934_s10 }
  0xd2   : > { %p10_p6 = scmp.ge.s32.totalorder %s13_s11, 4   ;;  %s1831_s10 = smov %s1833_s12 }
  0xd4   :  { %12 = sbr.rel (!%p10_p6) target bundleno = 2 (0x2), region = 70 }

// kernel: encoder_forward.38
= control target key start
LH: loop header
LB: loop body
LE: loop exit
PB: predicated region body
PF: predicated region fallthrough
CT: control target
= control target key end

     0   :  { %s2315_s12 = smov 0   ;;  %s2317_s13 = smov 0   ;;  %s2516_s0 = inlined_call_operand.vmem [shape: bf16[1024,128], index: 0, kind: input, shape index: {}]   ;;  %s2517_s1 = inlined_call_operand.vmem [shape: bf16[128,128], index: 1, kind: input, shape index: {}]   ;;  %s2518_s2 = inlined_call_operand.vmem [shape: f32[1,128], index: 2, kind: input, shape index: {}]   ;;  %s2519_s3 = inlined_call_operand.vmem [shape: bf16[1024,128], index: 3, kind: output, shape index: {}]  }
   0x1   :  { %s2319_s14 = smov 0  }
   0x2 LB: > { %s32_s15 = sadd.s32 1, %s2289_s13  ;;  %p1704_p0 = scmp.ge.s32.totalorder %s2293_s14, 1  ;;  %s2293_s14 = sphi %s2319_s14, %s13_s14   ;;  %s2289_s13 = sphi %s2317_s13, %s2521_s13   ;;  %s2285_s12 = sphi %s2315_s12, %s2520_s12  }
   0x3   : > { %p34_p1 = scmp.ge.s32.totalorder %s32_s15, 2  ;;  %p188_p2 = scmp.lt.s32.totalorder %s2293_s14, 3 }
   0x5   : > { %s2523_s15 = smov (%p34_p1, %s32_s15), 0  ;;  %p189_p3 = pnand %p1704_p0, %p188_p2 }
   0x6   : > { %v2231_v0 = vld [vmem:[%s2517_s1] sm:$0xff] (!%p189_p3)   ;;  %s1705_s18 = sshll.u32 (!%p189_p3), %s2285_s12, 6  ;;  %v2232_v1 = vld [vmem:[%s2517_s1 + $0x8] sm:$0xff] (!%p189_p3)   ;;  %v2233_v2 = vld [vmem:[%s2517_s1 + $0x10] sm:$0xff] (!%p189_p3)  }
   0x7   : > { %192 = sbr.rel (%p189_p3) target bundleno = 315 (0x13b), region = 32  ;;  %p230_p4 = scmp.lt.s32.totalorder (!%p189_p3), %s1705_s18, 127  ;;  %2111 = vmatprep.subr.bf16.mxu0 (!%p189_p3), %v2231_v0  ;;  %2191 = vmatprep.subr.bf16.mxu1 (!%p189_p3), %v2231_v0  ;;  %v2234_v3 = vld [vmem:[%s2517_s1 + $0x18] sm:$0xff] (!%p189_p3)   ;;  %v2235_v6 = vld [vmem:[%s2517_s1 + $0x20] sm:$0xff] (!%p189_p3)   ;;  %v2236_v7 = vld [vmem:[%s2517_s1 + $0x28] sm:$0xff] (!%p189_p3)  }
   0x8   : > { %2112 = vmatpush3.bf16.msra.mxu0 (!%p189_p3), %v2231_v0  ;;  %2199 = vmatpush3.bf16.msra.mxu1 (!%p189_p3), %v2231_v0  ;;  %v2237_v8 = vld [vmem:[%s2517_s1 + $0x30] sm:$0xff] (!%p189_p3)   ;;  %v2238_v9 = vld [vmem:[%s2517_s1 + $0x38] sm:$0xff] (!%p189_p3)   ;;  %v2402_v41 = vld [vmem:[%s2518_s2] ss:$0 sm:$0xff] (!%p189_p3) }
   0x9   : > { %2113 = vmatprep.subr.bf16.mxu0 (!%p189_p3), %v2232_v1  ;;  %2192 = vmatprep.subr.bf16.mxu1 (!%p189_p3), %v2232_v1 }
   0xc   : > { %2114 = vmatpush3.bf16.msra.mxu0 (!%p189_p3), %v2232_v1  ;;  %2200 = vmatpush3.bf16.msra.mxu1 (!%p189_p3), %v2232_v1 }
   0xd   : > { %2115 = vmatprep.subr.bf16.mxu0 (!%p189_p3), %v2233_v2  ;;  %2193 = vmatprep.subr.bf16.mxu1 (!%p189_p3), %v2233_v2 }
   0xe   : > { %s2525_s18 = smov (!%p230_p4, %s1705_s18), 127 }
   0xf   : > { %s1706_s23 = sshll.u32 %s2525_s18, 2 }
  0x10   : > { %s2350_s26 = scalar_lea.vmem %s2516_s0, %s1706_s23  ;;  %2116 = vmatpush3.bf16.msra.mxu0 %v2233_v2  ;;  %2201 = vmatpush3.bf16.msra.mxu1 %v2233_v2  ;;  %s2415_s17 = scalar_lea.vmem %s2519_s3, %s1706_s23 }
  0x11   : > { %v2239_v4 = vld [vmem:[%s2350_s26] sm:$0xff]   ;;  %2117 = vmatprep.subr.bf16.mxu0 %v2234_v3  ;;  %2194 = vmatprep.subr.bf16.mxu1 %v2234_v3  ;;  %v2241_v10 = vld [vmem:[%s2350_s26 + $0x8] sm:$0xff]   ;;  %v2243_v12 = vld [vmem:[%s2350_s26 + $0x10] sm:$0xff]  }
  0x12   : > { %v2240_v5 = vld [vmem:[%s2350_s26 + $0x80] sm:$0xff]   ;;  %2127 = vmatprep.mubr.bf16.mxu0 %v2239_v4  ;;  %v2242_v11 = vld [vmem:[%s2350_s26 + $0x88] sm:$0xff]   ;;  %v2244_v13 = vld [vmem:[%s2350_s26 + $0x90] sm:$0xff]  }
  0x13   : > { %2159 = vmatprep.mubr.bf16.mxu1 %v2240_v5  ;;  %v2245_v14 = vld [vmem:[%s2350_s26 + $0x18] sm:$0xff]   ;;  %v2247_v16 = vld [vmem:[%s2350_s26 + $0x20] sm:$0xff]   ;;  %v2249_v18 = vld [vmem:[%s2350_s26 + $0x28] sm:$0xff]  }
  0x14   : > { %2118 = vmatpush3.bf16.msra.mxu0 %v2234_v3  ;;  %2202 = vmatpush3.bf16.msra.mxu1 %v2234_v3  ;;  %v2246_v15 = vld [vmem:[%s2350_s26 + $0x98] sm:$0xff]   ;;  %v2248_v17 = vld [vmem:[%s2350_s26 + $0xa0] sm:$0xff]   ;;  %v2250_v19 = vld [vmem:[%s2350_s26 + $0xa8] sm:$0xff]  }
  0x15   : > { %2119 = vmatprep.subr.bf16.mxu0 %v2235_v6  ;;  %2195 = vmatprep.subr.bf16.mxu1 %v2235_v6  ;;  %v2251_v20 = vld [vmem:[%s2350_s26 + $0x30] sm:$0xff]   ;;  %v2253_v22 = vld [vmem:[%s2350_s26 + $0x38] sm:$0xff]   ;;  %v2255_v24 = vld [vmem:[%s2350_s26 + $0x40] sm:$0xff]  }
  0x16   : > { %v2252_v21 = vld [vmem:[%s2350_s26 + $0xb0] sm:$0xff]   ;;  %v2254_v23 = vld [vmem:[%s2350_s26 + $0xb8] sm:$0xff]   ;;  %v2256_v25 = vld [vmem:[%s2350_s26 + $0xc0] sm:$0xff]  }
  0x17   : > { %v2257_v26 = vld [vmem:[%s2350_s26 + $0x48] sm:$0xff]   ;;  %v2259_v28 = vld [vmem:[%s2350_s26 + $0x50] sm:$0xff]   ;;  %v2261_v30 = vld [vmem:[%s2350_s26 + $0x58] sm:$0xff]  }
  0x18   : > { %2120 = vmatpush3.bf16.msra.mxu0 %v2235_v6  ;;  %2203 = vmatpush3.bf16.msra.mxu1 %v2235_v6  ;;  %v2258_v27 = vld [vmem:[%s2350_s26 + $0xc8] sm:$0xff]   ;;  %v2260_v29 = vld [vmem:[%s2350_s26 + $0xd0] sm:$0xff]   ;;  %v2262_v31 = vld [vmem:[%s2350_s26 + $0xd8] sm:$0xff]  }
  0x19   : > { %2121 = vmatprep.subr.bf16.mxu0 %v2236_v7  ;;  %2196 = vmatprep.subr.bf16.mxu1 %v2236_v7  ;;  %v2263_v32 = vld [vmem:[%s2350_s26 + $0x60] sm:$0xff]   ;;  %v2265_v34 = vld [vmem:[%s2350_s26 + $0x68] sm:$0xff]   ;;  %v2267_v36 = vld [vmem:[%s2350_s26 + $0x70] sm:$0xff]  }
  0x1a   : > { %v2264_v33 = vld [vmem:[%s2350_s26 + $0xe0] sm:$0xff]   ;;  %v2266_v35 = vld [vmem:[%s2350_s26 + $0xe8] sm:$0xff]   ;;  %v2268_v37 = vld [vmem:[%s2350_s26 + $0xf0] sm:$0xff]  }
  0x1b   : > { %v2269_v38 = vld [vmem:[%s2350_s26 + $0x78] sm:$0xff]  }
  0x1c   : > { %2122 = vmatpush3.bf16.msra.mxu0 %v2236_v7  ;;  %2204 = vmatpush3.bf16.msra.mxu1 %v2236_v7  ;;  %v2270_v39 = vld [vmem:[%s2350_s26 + $0xf8] sm:$0xff]  }
  0x1d   : > { %2123 = vmatprep.subr.bf16.mxu0 %v2237_v8  ;;  %2197 = vmatprep.subr.bf16.mxu1 %v2237_v8 }
  0x20   : > { %2124 = vmatpush3.bf16.msra.mxu0 %v2237_v8  ;;  %2205 = vmatpush3.bf16.msra.mxu1 %v2237_v8 }
  0x21   : > { %2125 = vmatprep.subr.bf16.mxu0 %v2238_v9  ;;  %2198 = vmatprep.subr.bf16.mxu1 %v2238_v9 }
  0x24   : > { %2126 = vmatpush3.bf16.msra.mxu0 %v2238_v9  ;;  %2206 = vmatpush3.bf16.msra.mxu1 %v2238_v9 }
  0x27   : > { %2128 = vmatmul.mubr.bf16.vlgmr.msra.gmra.mrb[0].mxu0 %v2241_v10  ;;  %2160 = vmatmul.mubr.bf16.vlgmr.msra.gmra.mrb[0].mxu1 %v2242_v11 }
  0x28   : > { %2131 = vmatprep.mubr.bf16.mxu0 %v2243_v12  ;;  %2163 = vmatprep.mubr.bf16.mxu1 %v2244_v13 }
  0x2f   : > { %2132 = vmatmul.mubr.bf16.gmra.mrb[4].mxu0 %v2245_v14  ;;  %2164 = vmatmul.mubr.bf16.gmra.mrb[4].mxu1 %v2246_v15 }
  0x30   : > { %2135 = vmatprep.mubr.bf16.mxu0 %v2247_v16  ;;  %2167 = vmatprep.mubr.bf16.mxu1 %v2248_v17 }
  0x37   : > { %2136 = vmatmul.mubr.bf16.gmra.mrb[8].mxu0 %v2249_v18  ;;  %2168 = vmatmul.mubr.bf16.gmra.mrb[8].mxu1 %v2250_v19 }
  0x38   : > { %2139 = vmatprep.mubr.bf16.mxu0 %v2251_v20  ;;  %2171 = vmatprep.mubr.bf16.mxu1 %v2252_v21 }
  0x3f   : > { %2140 = vmatmul.mubr.bf16.gmra.mrb[12].mxu0 %v2253_v22  ;;  %2172 = vmatmul.mubr.bf16.gmra.mrb[12].mxu1 %v2254_v23 }
  0x40   : > { %2143 = vmatprep.mubr.bf16.mxu0 %v2255_v24  ;;  %2175 = vmatprep.mubr.bf16.mxu1 %v2256_v25 }
  0x47   : > { %2144 = vmatmul.mubr.bf16.gmra.mrb[16].mxu0 %v2257_v26  ;;  %2176 = vmatmul.mubr.bf16.gmra.mrb[16].mxu1 %v2258_v27 }
  0x48   : > { %2147 = vmatprep.mubr.bf16.mxu0 %v2259_v28  ;;  %2179 = vmatprep.mubr.bf16.mxu1 %v2260_v29 }
  0x4f   : > { %2148 = vmatmul.mubr.bf16.gmra.mrb[20].mxu0 %v2261_v30  ;;  %2180 = vmatmul.mubr.bf16.gmra.mrb[20].mxu1 %v2262_v31 }
  0x50   : > { %2151 = vmatprep.mubr.bf16.mxu0 %v2263_v32  ;;  %2183 = vmatprep.mubr.bf16.mxu1 %v2264_v33 }
  0x57   : > { %2152 = vmatmul.mubr.bf16.gmra.mrb[24].mxu0 %v2265_v34  ;;  %2184 = vmatmul.mubr.bf16.gmra.mrb[24].mxu1 %v2266_v35 }
  0x58   : > { %2155 = vmatprep.mubr.bf16.mxu0 %v2267_v36  ;;  %2187 = vmatprep.mubr.bf16.mxu1 %v2268_v37 }
  0x5f   : > { %2156 = vmatmul.mubr.bf16.gmra.mrb[28].mxu0 %v2269_v38  ;;  %2188 = vmatmul.mubr.bf16.gmra.mrb[28].mxu1 %v2270_v39 }
  0xfa   : > { %v2129_v40 = vpop.f32.mrb[0].mxu0  ;;  %v2161_v42 = vpop.f32.mrb[0].mxu1 }
  0xfb   : > { %v746_v43 = vpop.f32.mrb[1].mxu0  ;;  %v874_v44 = vpop.f32.mrb[1].mxu1  ;;  %v1205_v47 = vadd.f32 %v2129_v40, %v2402_v41  ;;  %v1237_v48 = vadd.f32 %v2161_v42, %v2402_v41 }
  0xfc   : > { %v2130_v45 = vpop.f32.mrb[2].mxu0  ;;  %v2162_v46 = vpop.f32.mrb[2].mxu1  ;;  %v1203_v53 = vadd.f32 %v2402_v41, %v746_v43  ;;  %v1235_v54 = vadd.f32 %v2402_v41, %v874_v44 }
  0xfd   : > { %v1206_v49 = vadd.f32 %v2130_v45, %v2402_v41  ;;  %v1238_v50 = vadd.f32 %v2162_v46, %v2402_v41  ;;  %v749_v51 = vpop.f32.mrb[3].mxu0  ;;  %v877_v52 = vpop.f32.mrb[3].mxu1 }
  0xfe   : > { %v1204_v55 = vadd.f32 %v2402_v41, %v749_v51  ;;  %v1236_v56 = vadd.f32 %v2402_v41, %v877_v52 }
  0xff   : > { %v1888_v57 = vpack.c.bf16 %v1206_v49, %v1205_v47  ;;  %v1968_v58 = vpack.c.bf16 %v1238_v50, %v1237_v48 }
 0x100   : > { %v1883_v59 = vpack.c.bf16 %v1204_v55, %v1203_v53  ;;  %v1963_v60 = vpack.c.bf16 %v1236_v56, %v1235_v54 }
 0x101   : > { %2040 = vst [vmem:[%s2415_s17 + $0x8] sm:$0xff] %v1888_v57   ;;  %2056 = vst [vmem:[%s2415_s17 + $0x88] sm:$0xff] %v1968_v58  }
 0x102   : > { %1884 = vst [vmem:[%s2415_s17] sm:$0xff] %v1883_v59   ;;  %2055 = vst [vmem:[%s2415_s17 + $0x80] sm:$0xff] %v1963_v60   ;;  %v2133_v61 = vpop.f32.mrb[4].mxu0  ;;  %v2165_v62 = vpop.f32.mrb[4].mxu1 }
 0x103   : > { %v762_v63 = vpop.f32.mrb[5].mxu0  ;;  %v890_v0 = vpop.f32.mrb[5].mxu1  ;;  %v1209_v3 = vadd.f32 %v2133_v61, %v2402_v41  ;;  %v1241_v4 = vadd.f32 %v2165_v62, %v2402_v41 }
 0x104   : > { %v2134_v1 = vpop.f32.mrb[6].mxu0  ;;  %v2166_v2 = vpop.f32.mrb[6].mxu1  ;;  %v1207_v9 = vadd.f32 %v2402_v41, %v762_v63  ;;  %v1239_v10 = vadd.f32 %v2402_v41, %v890_v0 }
 0x105   : > { %v1210_v5 = vadd.f32 %v2134_v1, %v2402_v41  ;;  %v1242_v6 = vadd.f32 %v2166_v2, %v2402_v41  ;;  %v765_v7 = vpop.f32.mrb[7].mxu0  ;;  %v893_v8 = vpop.f32.mrb[7].mxu1 }
 0x106   : > { %v1208_v11 = vadd.f32 %v2402_v41, %v765_v7  ;;  %v1240_v12 = vadd.f32 %v2402_v41, %v893_v8 }
 0x107   : > { %v1898_v13 = vpack.c.bf16 %v1210_v5, %v1209_v3  ;;  %v1978_v14 = vpack.c.bf16 %v1242_v6, %v1241_v4 }
 0x108   : > { %v1893_v15 = vpack.c.bf16 %v1208_v11, %v1207_v9  ;;  %v1973_v16 = vpack.c.bf16 %v1240_v12, %v1239_v10 }
 0x109   : > { %2042 = vst [vmem:[%s2415_s17 + $0x18] sm:$0xff] %v1898_v13   ;;  %2058 = vst [vmem:[%s2415_s17 + $0x98] sm:$0xff] %v1978_v14  }
 0x10a   : > { %2041 = vst [vmem:[%s2415_s17 + $0x10] sm:$0xff] %v1893_v15   ;;  %2057 = vst [vmem:[%s2415_s17 + $0x90] sm:$0xff] %v1973_v16   ;;  %v2137_v17 = vpop.f32.mrb[8].mxu0  ;;  %v2169_v18 = vpop.f32.mrb[8].mxu1 }
 0x10b   : > { %v778_v19 = vpop.f32.mrb[9].mxu0  ;;  %v906_v20 = vpop.f32.mrb[9].mxu1  ;;  %v1213_v23 = vadd.f32 %v2137_v17, %v2402_v41  ;;  %v1245_v24 = vadd.f32 %v2169_v18, %v2402_v41 }
 0x10c   : > { %v2138_v21 = vpop.f32.mrb[10].mxu0  ;;  %v2170_v22 = vpop.f32.mrb[10].mxu1  ;;  %v1211_v29 = vadd.f32 %v2402_v41, %v778_v19  ;;  %v1243_v30 = vadd.f32 %v2402_v41, %v906_v20 }
 0x10d   : > { %v1214_v25 = vadd.f32 %v2138_v21, %v2402_v41  ;;  %v1246_v26 = vadd.f32 %v2170_v22, %v2402_v41  ;;  %v781_v27 = vpop.f32.mrb[11].mxu0  ;;  %v909_v28 = vpop.f32.mrb[11].mxu1 }
 0x10e   : > { %v1212_v31 = vadd.f32 %v2402_v41, %v781_v27  ;;  %v1244_v32 = vadd.f32 %v2402_v41, %v909_v28 }
 0x10f   : > { %v1908_v33 = vpack.c.bf16 %v1214_v25, %v1213_v23  ;;  %v1988_v34 = vpack.c.bf16 %v1246_v26, %v1245_v24 }
 0x110   : > { %v1903_v35 = vpack.c.bf16 %v1212_v31, %v1211_v29  ;;  %v1983_v36 = vpack.c.bf16 %v1244_v32, %v1243_v30 }
 0x111   : > { %2044 = vst [vmem:[%s2415_s17 + $0x28] sm:$0xff] %v1908_v33   ;;  %2060 = vst [vmem:[%s2415_s17 + $0xa8] sm:$0xff] %v1988_v34  }
 0x112   : > { %2043 = vst [vmem:[%s2415_s17 + $0x20] sm:$0xff] %v1903_v35   ;;  %2059 = vst [vmem:[%s2415_s17 + $0xa0] sm:$0xff] %v1983_v36   ;;  %v2141_v37 = vpop.f32.mrb[12].mxu0  ;;  %v2173_v38 = vpop.f32.mrb[12].mxu1 }
 0x113   : > { %v794_v39 = vpop.f32.mrb[13].mxu0  ;;  %v922_v40 = vpop.f32.mrb[13].mxu1  ;;  %v1217_v44 = vadd.f32 %v2141_v37, %v2402_v41  ;;  %v1249_v45 = vadd.f32 %v2173_v38, %v2402_v41 }
 0x114   : > { %v2142_v42 = vpop.f32.mrb[14].mxu0  ;;  %v2174_v43 = vpop.f32.mrb[14].mxu1  ;;  %v1215_v50 = vadd.f32 %v2402_v41, %v794_v39  ;;  %v1247_v51 = vadd.f32 %v2402_v41, %v922_v40 }
 0x115   : > { %v1218_v46 = vadd.f32 %v2142_v42, %v2402_v41  ;;  %v1250_v47 = vadd.f32 %v2174_v43, %v2402_v41  ;;  %v797_v48 = vpop.f32.mrb[15].mxu0  ;;  %v925_v49 = vpop.f32.mrb[15].mxu1 }
 0x116   : > { %v1216_v52 = vadd.f32 %v2402_v41, %v797_v48  ;;  %v1248_v53 = vadd.f32 %v2402_v41, %v925_v49 }
 0x117   : > { %v1918_v54 = vpack.c.bf16 %v1218_v46, %v1217_v44  ;;  %v1998_v55 = vpack.c.bf16 %v1250_v47, %v1249_v45 }
 0x118   : > { %v1913_v56 = vpack.c.bf16 %v1216_v52, %v1215_v50  ;;  %v1993_v57 = vpack.c.bf16 %v1248_v53, %v1247_v51 }
 0x119   : > { %2046 = vst [vmem:[%s2415_s17 + $0x38] sm:$0xff] %v1918_v54   ;;  %2062 = vst [vmem:[%s2415_s17 + $0xb8] sm:$0xff] %v1998_v55  }
 0x11a   : > { %2045 = vst [vmem:[%s2415_s17 + $0x30] sm:$0xff] %v1913_v56   ;;  %2061 = vst [vmem:[%s2415_s17 + $0xb0] sm:$0xff] %v1993_v57   ;;  %v2145_v58 = vpop.f32.mrb[16].mxu0  ;;  %v2177_v59 = vpop.f32.mrb[16].mxu1 }
 0x11b   : > { %v810_v60 = vpop.f32.mrb[17].mxu0  ;;  %v938_v61 = vpop.f32.mrb[17].mxu1  ;;  %v1221_v0 = vadd.f32 %v2145_v58, %v2402_v41  ;;  %v1253_v1 = vadd.f32 %v2177_v59, %v2402_v41 }
 0x11c   : > { %v2146_v62 = vpop.f32.mrb[18].mxu0  ;;  %v2178_v63 = vpop.f32.mrb[18].mxu1  ;;  %v1219_v6 = vadd.f32 %v2402_v41, %v810_v60  ;;  %v1251_v7 = vadd.f32 %v2402_v41, %v938_v61 }
 0x11d   : > { %v1222_v2 = vadd.f32 %v2146_v62, %v2402_v41  ;;  %v1254_v3 = vadd.f32 %v2178_v63, %v2402_v41  ;;  %v813_v4 = vpop.f32.mrb[19].mxu0  ;;  %v941_v5 = vpop.f32.mrb[19].mxu1 }
 0x11e   : > { %v1220_v8 = vadd.f32 %v2402_v41, %v813_v4  ;;  %v1252_v9 = vadd.f32 %v2402_v41, %v941_v5 }
 0x11f   : > { %v1928_v10 = vpack.c.bf16 %v1222_v2, %v1221_v0  ;;  %v2008_v11 = vpack.c.bf16 %v1254_v3, %v1253_v1 }
 0x120   : > { %v1923_v12 = vpack.c.bf16 %v1220_v8, %v1219_v6  ;;  %v2003_v13 = vpack.c.bf16 %v1252_v9, %v1251_v7 }
 0x121   : > { %2048 = vst [vmem:[%s2415_s17 + $0x48] sm:$0xff] %v1928_v10   ;;  %2064 = vst [vmem:[%s2415_s17 + $0xc8] sm:$0xff] %v2008_v11  }
 0x122   : > { %2047 = vst [vmem:[%s2415_s17 + $0x40] sm:$0xff] %v1923_v12   ;;  %2063 = vst [vmem:[%s2415_s17 + $0xc0] sm:$0xff] %v2003_v13   ;;  %v2149_v14 = vpop.f32.mrb[20].mxu0  ;;  %v2181_v15 = vpop.f32.mrb[20].mxu1 }
 0x123   : > { %v826_v16 = vpop.f32.mrb[21].mxu0  ;;  %v954_v17 = vpop.f32.mrb[21].mxu1  ;;  %v1225_v20 = vadd.f32 %v2149_v14, %v2402_v41  ;;  %v1257_v21 = vadd.f32 %v2181_v15, %v2402_v41 }
 0x124   : > { %v2150_v18 = vpop.f32.mrb[22].mxu0  ;;  %v2182_v19 = vpop.f32.mrb[22].mxu1  ;;  %v1223_v26 = vadd.f32 %v2402_v41, %v826_v16  ;;  %v1255_v27 = vadd.f32 %v2402_v41, %v954_v17 }
 0x125   : > { %v1226_v22 = vadd.f32 %v2150_v18, %v2402_v41  ;;  %v1258_v23 = vadd.f32 %v2182_v19, %v2402_v41  ;;  %v829_v24 = vpop.f32.mrb[23].mxu0  ;;  %v957_v25 = vpop.f32.mrb[23].mxu1 }
 0x126   : > { %v1224_v28 = vadd.f32 %v2402_v41, %v829_v24  ;;  %v1256_v29 = vadd.f32 %v2402_v41, %v957_v25 }
 0x127   : > { %v1938_v30 = vpack.c.bf16 %v1226_v22, %v1225_v20  ;;  %v2018_v31 = vpack.c.bf16 %v1258_v23, %v1257_v21 }
 0x128   : > { %v1933_v32 = vpack.c.bf16 %v1224_v28, %v1223_v26  ;;  %v2013_v33 = vpack.c.bf16 %v1256_v29, %v1255_v27 }
 0x129   : > { %2050 = vst [vmem:[%s2415_s17 + $0x58] sm:$0xff] %v1938_v30   ;;  %2066 = vst [vmem:[%s2415_s17 + $0xd8] sm:$0xff] %v2018_v31  }
 0x12a   : > { %2049 = vst [vmem:[%s2415_s17 + $0x50] sm:$0xff] %v1933_v32   ;;  %2065 = vst [vmem:[%s2415_s17 + $0xd0] sm:$0xff] %v2013_v33   ;;  %v2153_v34 = vpop.f32.mrb[24].mxu0  ;;  %v2185_v35 = vpop.f32.mrb[24].mxu1 }
 0x12b   : > { %v842_v36 = vpop.f32.mrb[25].mxu0  ;;  %v970_v37 = vpop.f32.mrb[25].mxu1  ;;  %v1229_v40 = vadd.f32 %v2153_v34, %v2402_v41  ;;  %v1261_v42 = vadd.f32 %v2185_v35, %v2402_v41 }
 0x12c   : > { %v2154_v38 = vpop.f32.mrb[26].mxu0  ;;  %v2186_v39 = vpop.f32.mrb[26].mxu1  ;;  %v1227_v47 = vadd.f32 %v2402_v41, %v842_v36  ;;  %v1259_v48 = vadd.f32 %v2402_v41, %v970_v37 }
 0x12d   : > { %v1230_v43 = vadd.f32 %v2154_v38, %v2402_v41  ;;  %v1262_v44 = vadd.f32 %v2186_v39, %v2402_v41  ;;  %v845_v45 = vpop.f32.mrb[27].mxu0  ;;  %v973_v46 = vpop.f32.mrb[27].mxu1 }
 0x12e   : > { %v1228_v49 = vadd.f32 %v2402_v41, %v845_v45  ;;  %v1260_v50 = vadd.f32 %v2402_v41, %v973_v46 }
 0x12f   : > { %v1948_v51 = vpack.c.bf16 %v1230_v43, %v1229_v40  ;;  %v2028_v52 = vpack.c.bf16 %v1262_v44, %v1261_v42 }
 0x130   : > { %v1943_v53 = vpack.c.bf16 %v1228_v49, %v1227_v47  ;;  %v2023_v54 = vpack.c.bf16 %v1260_v50, %v1259_v48 }
 0x131   : > { %2052 = vst [vmem:[%s2415_s17 + $0x68] sm:$0xff] %v1948_v51   ;;  %2068 = vst [vmem:[%s2415_s17 + $0xe8] sm:$0xff] %v2028_v52  }
 0x132   : > { %2051 = vst [vmem:[%s2415_s17 + $0x60] sm:$0xff] %v1943_v53   ;;  %2067 = vst [vmem:[%s2415_s17 + $0xe0] sm:$0xff] %v2023_v54   ;;  %v2157_v55 = vpop.f32.mrb[28].mxu0  ;;  %v2189_v56 = vpop.f32.mrb[28].mxu1 }
 0x133   : > { %v858_v57 = vpop.f32.mrb[29].mxu0  ;;  %v986_v58 = vpop.f32.mrb[29].mxu1  ;;  %v1233_v61 = vadd.f32 %v2157_v55, %v2402_v41  ;;  %v1265_v62 = vadd.f32 %v2189_v56, %v2402_v41 }
 0x134   : > { %v2158_v59 = vpop.f32.mrb[30].mxu0  ;;  %v2190_v60 = vpop.f32.mrb[30].mxu1  ;;  %v1231_v3 = vadd.f32 %v2402_v41, %v858_v57  ;;  %v1263_v4 = vadd.f32 %v2402_v41, %v986_v58 }
 0x135   : > { %v1234_v63 = vadd.f32 %v2158_v59, %v2402_v41  ;;  %v1266_v0 = vadd.f32 %v2190_v60, %v2402_v41  ;;  %v861_v1 = vpop.f32.mrb[31].mxu0  ;;  %v989_v2 = vpop.f32.mrb[31].mxu1 }
 0x136   : > { %v1232_v5 = vadd.f32 %v2402_v41, %v861_v1  ;;  %v1264_v6 = vadd.f32 %v2402_v41, %v989_v2 }
 0x137   : > { %v1958_v7 = vpack.c.bf16 %v1234_v63, %v1233_v61  ;;  %v2038_v8 = vpack.c.bf16 %v1266_v0, %v1265_v62 }
 0x138   : > { %v1953_v9 = vpack.c.bf16 %v1232_v5, %v1231_v3  ;;  %v2033_v10 = vpack.c.bf16 %v1264_v6, %v1263_v4 }
 0x139   : > { %2054 = vst [vmem:[%s2415_s17 + $0x78] sm:$0xff] %v1958_v7   ;;  %2070 = vst [vmem:[%s2415_s17 + $0xf8] sm:$0xff] %v2038_v8  }
 0x13a   : > { %2053 = vst [vmem:[%s2415_s17 + $0x70] sm:$0xff] %v1953_v9   ;;  %2069 = vst [vmem:[%s2415_s17 + $0xf0] sm:$0xff] %v2033_v10  }
 0x13b PF: > { %s13_s14 = sadd.s32 1, %s2293_s14   ;;  %s2520_s12 = smov %s2289_s13 }
 0x13c   : > { %p10_p5 = scmp.ge.s32.totalorder %s13_s14, 4   ;;  %s2521_s13 = smov %s2523_s15 }
 0x13e   :  { %12 = sbr.rel (!%p10_p5) target bundleno = 2 (0x2), region = 76 }

// kernel: encoder_forward.40
= control target key start
LH: loop header
LB: loop body
LE: loop exit
PB: predicated region body
PF: predicated region fallthrough
CT: control target
= control target key end

     0   :  { %s1799_s12 = smov 0   ;;  %s2417_s0 = inlined_call_operand.vmem [shape: bf16[1024,4], index: 0, kind: input, shape index: {}]   ;;  %s2418_s1 = inlined_call_operand.vmem [shape: f32[1,4], index: 1, kind: input, shape index: {}]   ;;  %s2419_s2 = inlined_call_operand.vmem [shape: f32[1,4], index: 2, kind: input, shape index: {}]   ;;  %s2420_s3 = inlined_call_operand.vmem [shape: bf16[1024,4], index: 3, kind: output, shape index: {}]  }
   0x1 LB: > { %s1205_s13 = sadd.s32 4294967295, %s1777_s12   ;;  %p1209_p0 = scmp.ge.s32.totalorder %s1777_s12, 1  ;;  %s1777_s12 = sphi %s1799_s12, %s13_s12  }
   0x2   : > { %p138_p1 = scmp.lt.s32.totalorder %s1777_s12, 3 }
   0x4   : > { %p139_p2 = pnand %p1209_p0, %p138_p1 }
   0x5   : > { %s1210_s14 = sshll.u32 (!%p139_p2), %s1205_s13, 6  ;;  %v1820_v0 = vld [vmem:[%s2418_s1] ss:$0 sm:$0xff] (!%p139_p2)  ;;  %vm1084_vm0 = vcmask (!%p139_p2), 27648  }
   0x6   : > { %142 = sbr.rel (%p139_p2) target bundleno = 199 (0xc7), region = 32  ;;  %p163_p3 = scmp.lt.s32.totalorder (!%p139_p2), %s1210_s14, 127  ;;  %v1829_v9 = vld [vmem:[%s2419_s2] ss:$0 sm:$0xff] (!%p139_p2) }
   0xd   : > { %s2422_s14 = smov (!%p163_p3, %s1210_s14), 127 }
   0xe   : > { %s1211_s15 = sshll.u32 %s2422_s14, 2 }
   0xf   : > { %s1815_s18 = scalar_lea.vmem %s2417_s0, %s1211_s15  ;;  %s1957_s25 = scalar_lea.vmem %s2420_s3, %s1211_s15 }
  0x10   : > { %v1347_v1 = vld [vmem:[%s1815_s18] sm:$0xff]   ;;  %v1474_v2 = vld [vmem:[%s1815_s18 + $0x8] sm:$0xff]   ;;  %v1475_v3 = vld [vmem:[%s1815_s18 + $0x10] sm:$0xff]  }
  0x11   : > { %v1348_v4 = vunpack.c.l.bf16 %v1347_v1  ;;  %v1349_v5 = vunpack.c.h.bf16 %v1347_v1  ;;  %v1352_v6 = vunpack.c.l.bf16 %v1474_v2  ;;  %v1353_v7 = vunpack.c.h.bf16 %v1474_v2  ;;  %v1476_v8 = vld [vmem:[%s1815_s18 + $0x18] sm:$0xff]   ;;  %v1477_v30 = vld [vmem:[%s1815_s18 + $0x20] sm:$0xff]   ;;  %v1478_v39 = vld [vmem:[%s1815_s18 + $0x28] sm:$0xff]  }
  0x12   : > { %v1356_v10 = vunpack.c.l.bf16 %v1475_v3  ;;  %v1357_v11 = vunpack.c.h.bf16 %v1475_v3  ;;  %v1360_v12 = vunpack.c.l.bf16 %v1476_v8  ;;  %v1361_v13 = vunpack.c.h.bf16 %v1476_v8  ;;  %v1479_v40 = vld [vmem:[%s1815_s18 + $0x30] sm:$0xff]  }
  0x13   : > { %v309_v14 = vmul.f32 %v1348_v4, %v1820_v0  ;;  %v310_v15 = vmul.f32 %v1349_v5, %v1820_v0  ;;  %v311_v16 = vmul.f32 %v1352_v6, %v1820_v0  ;;  %v312_v17 = vmul.f32 %v1353_v7, %v1820_v0  ;;  %v1480_v4 = vld [vmem:[%s1815_s18 + $0x38] sm:$0xff]  }
  0x14   : > { %v313_v18 = vmul.f32 %v1356_v10, %v1820_v0  ;;  %v314_v19 = vmul.f32 %v1357_v11, %v1820_v0  ;;  %v315_v20 = vmul.f32 %v1360_v12, %v1820_v0  ;;  %v316_v21 = vmul.f32 %v1361_v13, %v1820_v0  ;;  %v1481_v12 = vld [vmem:[%s1815_s18 + $0x40] sm:$0xff]  }
  0x15   : > { %v1840_v22 = vadd.f32 %v1829_v9, %v309_v14  ;;  %v1843_v23 = vadd.f32 %v1829_v9, %v310_v15  ;;  %v1846_v24 = vadd.f32 %v1829_v9, %v311_v16  ;;  %v1849_v25 = vadd.f32 %v1829_v9, %v312_v17 }
  0x16   : > { %v1852_v26 = vadd.f32 %v1829_v9, %v313_v18  ;;  %v1855_v27 = vadd.f32 %v1829_v9, %v314_v19  ;;  %v1858_v28 = vadd.f32 %v1829_v9, %v315_v20  ;;  %v1861_v29 = vadd.f32 %v1829_v9, %v316_v21 }
  0x17   : > { %v444_v31 = vsub.f32 0.0, %v1840_v22  ;;  %v445_v32 = vsub.f32 0.0, %v1843_v23  ;;  %v446_v33 = vsub.f32 0.0, %v1846_v24  ;;  %v447_v34 = vsub.f32 0.0, %v1849_v25 }
  0x18   : > { %v448_v35 = vsub.f32 0.0, %v1852_v26  ;;  %v449_v36 = vsub.f32 0.0, %v1855_v27  ;;  %v450_v37 = vsub.f32 0.0, %v1858_v28  ;;  %v451_v38 = vsub.f32 0.0, %v1861_v29 }
  0x19   : > { %v508_v41 = vmul.f32 1.442695, %v444_v31  ;;  %v510_v42 = vmul.f32 1.442695, %v445_v32  ;;  %v512_v43 = vmul.f32 1.442695, %v446_v33  ;;  %v1364_v44 = vunpack.c.l.bf16 %v1477_v30 }
  0x1a   : > { %v514_v45 = vmul.f32 1.442695, %v447_v34  ;;  %v516_v46 = vmul.f32 1.442695, %v448_v35  ;;  %v518_v47 = vmul.f32 1.442695, %v449_v36  ;;  %v1365_v48 = vunpack.c.h.bf16 %v1477_v30 }
  0x1b   : > { %1513 = vpow2.f32 %v508_v41  ;;  %v520_v49 = vmul.f32 1.442695, %v450_v37  ;;  %v522_v50 = vmul.f32 1.442695, %v451_v38  ;;  %v317_v51 = vmul.f32 %v1364_v44, %v1820_v0 }
  0x1c   : > { %1515 = vpow2.f32 %v510_v42  ;;  %v318_v52 = vmul.f32 %v1365_v48, %v1820_v0  ;;  %v1368_v53 = vunpack.c.l.bf16 %v1478_v39  ;;  %v1369_v54 = vunpack.c.h.bf16 %v1478_v39 }
  0x1d   : > { %1517 = vpow2.f32 %v512_v43  ;;  %v1877_v55 = vadd.f32 %v1829_v9, %v317_v51  ;;  %v1372_v56 = vunpack.c.l.bf16 %v1479_v40  ;;  %v1373_v57 = vunpack.c.h.bf16 %v1479_v40 }
  0x1e   : > { %1519 = vpow2.f32 %v514_v45  ;;  %v1880_v58 = vadd.f32 %v1829_v9, %v318_v52  ;;  %v319_v59 = vmul.f32 %v1368_v53, %v1820_v0  ;;  %v320_v60 = vmul.f32 %v1369_v54, %v1820_v0  ;;  %v1482_v52 = vld [vmem:[%s1815_s18 + $0x48] sm:$0xff]  }
  0x1f   : > { %1521 = vpow2.f32 %v516_v46  ;;  %v452_v61 = vsub.f32 0.0, %v1877_v55  ;;  %v321_v62 = vmul.f32 %v1372_v56, %v1820_v0  ;;  %v322_v63 = vmul.f32 %v1373_v57, %v1820_v0 }
  0x20   : > { %1523 = vpow2.f32 %v518_v47  ;;  %v453_v1 = vsub.f32 0.0, %v1880_v58  ;;  %v1889_v2 = vadd.f32 %v1829_v9, %v319_v59  ;;  %v1892_v3 = vadd.f32 %v1829_v9, %v320_v60 }
  0x21   : > { %1525 = vpow2.f32 %v520_v49  ;;  %v524_v5 = vmul.f32 1.442695, %v452_v61  ;;  %v1896_v6 = vadd.f32 %v1829_v9, %v321_v62  ;;  %v1899_v7 = vadd.f32 %v1829_v9, %v322_v63  ;;  %v1483_v63 = vld [vmem:[%s1815_s18 + $0x50] sm:$0xff]  }
  0x22   : > { %1527 = vpow2.f32 %v522_v50  ;;  %v526_v8 = vmul.f32 1.442695, %v453_v1  ;;  %v454_v10 = vsub.f32 0.0, %v1889_v2  ;;  %v455_v11 = vsub.f32 0.0, %v1892_v3 }
  0x23   : > { %1529 = vpow2.f32 %v524_v5  ;;  %v456_v13 = vsub.f32 0.0, %v1896_v6  ;;  %v457_v14 = vsub.f32 0.0, %v1899_v7  ;;  %v1376_v15 = vunpack.c.l.bf16 %v1480_v4 }
  0x24   : > { %1531 = vpow2.f32 %v526_v8  ;;  %v528_v16 = vmul.f32 1.442695, %v454_v10  ;;  %v530_v17 = vmul.f32 1.442695, %v455_v11  ;;  %v1377_v18 = vunpack.c.h.bf16 %v1480_v4  ;;  %v1933_v10 = vld [vmem:[%s1815_s18 + $0x58] sm:$0xff]  }
  0x25   : > { %v1514_v19 = vpop.eup %1513  ;;  %v1906_v20 = vmul.f32 1.442695, %v456_v13  ;;  %v1908_v21 = vmul.f32 1.442695, %v457_v14  ;;  %v323_v30 = vmul.f32 %v1376_v15, %v1820_v0  ;;  %v1380_v31 = vunpack.c.l.bf16 %v1481_v12 }
  0x26   : > { %v1516_v32 = vpop.eup %1515  ;;  %v636_v33 = vadd.f32 1.0, %v1514_v19  ;;  %1533 = vpow2.f32 %v528_v16  ;;  %v324_v34 = vmul.f32 %v1377_v18, %v1820_v0  ;;  %v1381_v35 = vunpack.c.h.bf16 %v1481_v12 }
  0x27   : > { %v1518_v36 = vpop.eup %1517  ;;  %v637_v37 = vadd.f32 1.0, %v1516_v32  ;;  %1535 = vpow2.f32 %v530_v17  ;;  %v1913_v38 = vadd.f32 %v1829_v9, %v323_v30  ;;  %v325_v39 = vmul.f32 %v1380_v31, %v1820_v0 }
  0x28   : > { %v1520_v40 = vpop.eup %1519  ;;  %1537 = vrcp.f32 %v636_v33  ;;  %v638_v41 = vadd.f32 1.0, %v1518_v36  ;;  %v1917_v42 = vadd.f32 %v1829_v9, %v324_v34  ;;  %v326_v43 = vmul.f32 %v1381_v35, %v1820_v0 }
  0x29   : > { %v1522_v44 = vpop.eup %1521  ;;  %1539 = vrcp.f32 %v637_v37  ;;  %v639_v45 = vadd.f32 1.0, %v1520_v40  ;;  %v458_v46 = vsub.f32 0.0, %v1913_v38  ;;  %v1922_v47 = vadd.f32 %v1829_v9, %v325_v39 }
  0x2a   : > { %v1524_v48 = vpop.eup %1523  ;;  %1541 = vrcp.f32 %v638_v41  ;;  %v640_v49 = vadd.f32 1.0, %v1522_v44  ;;  %v459_v50 = vsub.f32 0.0, %v1917_v42  ;;  %v1926_v51 = vadd.f32 %v1829_v9, %v326_v43 }
  0x2b   : > { %v1526_v53 = vpop.eup %1525  ;;  %1543 = vrcp.f32 %v639_v45  ;;  %v641_v54 = vadd.f32 1.0, %v1524_v48  ;;  %v536_v56 = vmul.f32 1.442695, %v458_v46  ;;  %v460_v57 = vsub.f32 0.0, %v1922_v47 }
  0x2c   : > { %v1528_v59 = vpop.eup %1527  ;;  %1545 = vrcp.f32 %v640_v49  ;;  %v642_v60 = vadd.f32 1.0, %v1526_v53  ;;  %v538_v61 = vmul.f32 1.442695, %v459_v50  ;;  %v461_v62 = vsub.f32 0.0, %v1926_v51 }
  0x2d   : > { %v1530_v1 = vpop.eup %1529  ;;  %1547 = vrcp.f32 %v641_v54  ;;  %v643_v4 = vadd.f32 1.0, %v1528_v59  ;;  %v540_v5 = vmul.f32 1.442695, %v460_v57  ;;  %v1384_v8 = vunpack.c.l.bf16 %v1482_v52 }
  0x2e   : > { %v1532_v11 = vpop.eup %1531  ;;  %1549 = vrcp.f32 %v642_v60  ;;  %v644_v12 = vadd.f32 1.0, %v1530_v1  ;;  %v542_v13 = vmul.f32 1.442695, %v461_v62  ;;  %v1385_v14 = vunpack.c.h.bf16 %v1482_v52 }
  0x2f   : > { %1551 = vrcp.f32 %v643_v4  ;;  %v645_v15 = vadd.f32 1.0, %v1532_v11  ;;  %v327_v16 = vmul.f32 %v1384_v8, %v1820_v0  ;;  %v1388_v17 = vunpack.c.l.bf16 %v1483_v63 }
  0x30   : > { %v1534_v18 = vpop.eup %1533  ;;  %1553 = vrcp.f32 %v644_v12  ;;  %v328_v19 = vmul.f32 %v1385_v14, %v1820_v0  ;;  %v1389_v30 = vunpack.c.h.bf16 %v1483_v63  ;;  %v1392_v31 = vunpack.c.l.bf16 %v1933_v10 }
  0x31   : > { %v1536_v32 = vpop.eup %1535  ;;  %1555 = vrcp.f32 %v645_v15  ;;  %v646_v33 = vadd.f32 1.0, %v1534_v18  ;;  %v1939_v34 = vadd.f32 %v1829_v9, %v327_v16  ;;  %v329_v35 = vmul.f32 %v1388_v17, %v1820_v0 }
  0x32   : > { %v1538_v36 = vpop.eup %1537  ;;  %v647_v37 = vadd.f32 1.0, %v1536_v32  ;;  %1557 = vpow2.f32 %v1906_v20  ;;  %v1944_v39 = vadd.f32 %v1829_v9, %v328_v19  ;;  %v330_v40 = vmul.f32 %v1389_v30, %v1820_v0 }
  0x33   : > { %v1540_v41 = vpop.eup %1539  ;;  %v764_v43 = vmul.f32 %v1538_v36, %v1840_v22  ;;  %1559 = vrcp.f32 %v646_v33  ;;  %v462_v44 = vsub.f32 0.0, %v1939_v34  ;;  %v1950_v45 = vadd.f32 %v1829_v9, %v329_v35 }
  0x34   : > { %v1542_v46 = vpop.eup %1541  ;;  %v765_v20 = vmul.f32 %v1540_v41, %v1843_v23  ;;  %1561 = vrcp.f32 %v647_v37  ;;  %v463_v48 = vsub.f32 0.0, %v1944_v39  ;;  %v1962_v22 = vadd.f32 %v1829_v9, %v330_v40 }
  0x35   : > { %v1544_v49 = vpop.eup %1543  ;;  %v1282_v50 = vpack.c.bf16 %v764_v43, %v764_v43  ;;  %v766_v52 = vmul.f32 %v1542_v46, %v1846_v24  ;;  %1563 = vpow2.f32 %v1908_v21  ;;  %v544_v53 = vmul.f32 1.442695, %v462_v44 }
  0x36   : > { %v1546_v54 = vpop.eup %1545  ;;  %v1283_v57 = vpack.c.bf16 %v765_v20, %v765_v20  ;;  %v767_v59 = vmul.f32 %v1544_v49, %v1849_v25  ;;  %1565 = vpow2.f32 %v536_v56  ;;  %v546_v23 = vmul.f32 1.442695, %v463_v48  ;;  %v1486_v49 = vld [vmem:[%s1815_s18 + $0x68] sm:$0xff]  }
  0x37   : > { %v1548_v60 = vpop.eup %1547  ;;  %1085 = vst.msk [vmem:[%s1957_s25] sm:$0xf] %vm1084_vm0, %v1282_v50  ;;  %v1284_v62 = vpack.c.bf16 %v766_v52, %v766_v52  ;;  %v768_v63 = vmul.f32 %v1546_v54, %v1852_v26  ;;  %1567 = vpow2.f32 %v538_v61  ;;  %v464_v24 = vsub.f32 0.0, %v1950_v45 }
  0x38   : > { %v1550_v1 = vpop.eup %1549  ;;  %1086 = vst.msk [vmem:[%s1957_s25 + $0x4] sm:$0xf] %vm1084_vm0, %v1283_v57  ;;  %v1285_v21 = vpack.c.bf16 %v767_v59, %v767_v59  ;;  %v769_v4 = vmul.f32 %v1548_v60, %v1855_v27  ;;  %1569 = vpow2.f32 %v540_v5  ;;  %v465_v25 = vsub.f32 0.0, %v1962_v22 }
  0x39   : > { %v1552_v56 = vpop.eup %1551  ;;  %1087 = vst.msk [vmem:[%s1957_s25 + $0x8] sm:$0xf] %vm1084_vm0, %v1284_v62  ;;  %v1286_v8 = vpack.c.bf16 %v768_v63, %v768_v63  ;;  %v770_v26 = vmul.f32 %v1550_v1, %v1858_v28  ;;  %1571 = vpow2.f32 %v542_v13  ;;  %v548_v61 = vmul.f32 1.442695, %v464_v24  ;;  %v1485_v13 = vld [vmem:[%s1815_s18 + $0x60] sm:$0xff]  }
  0x3a   : > { %v1554_v11 = vpop.eup %1553  ;;  %1088 = vst.msk [vmem:[%s1957_s25 + $0xc] sm:$0xf] %vm1084_vm0, %v1285_v21  ;;  %v1287_v12 = vpack.c.bf16 %v769_v4, %v769_v4  ;;  %v771_v27 = vmul.f32 %v1552_v56, %v1861_v29  ;;  %1573 = vpow2.f32 %v544_v53  ;;  %v550_v5 = vmul.f32 1.442695, %v465_v25 }
  0x3b   : > { %v1556_v14 = vpop.eup %1555  ;;  %1089 = vst.msk [vmem:[%s1957_s25 + $0x10] sm:$0xf] %vm1084_vm0, %v1286_v8  ;;  %v1288_v15 = vpack.c.bf16 %v770_v26, %v770_v26  ;;  %v772_v16 = vmul.f32 %v1554_v11, %v1877_v55  ;;  %1575 = vpow2.f32 %v546_v23  ;;  %v331_v28 = vmul.f32 %v1392_v31, %v1820_v0 }
  0x3c   : > { %v1558_v17 = vpop.eup %1557  ;;  %1090 = vst.msk [vmem:[%s1957_s25 + $0x14] sm:$0xf] %vm1084_vm0, %v1287_v12  ;;  %v1289_v18 = vpack.c.bf16 %v771_v27, %v771_v27  ;;  %v773_v29 = vmul.f32 %v1556_v14, %v1880_v58  ;;  %1577 = vpow2.f32 %v548_v61  ;;  %v1393_v19 = vunpack.c.h.bf16 %v1933_v10  ;;  %v1487_v12 = vld [vmem:[%s1815_s18 + $0x70] sm:$0xff]  }
  0x3d   : > { %v1560_v30 = vpop.eup %1559  ;;  %1091 = vst.msk [vmem:[%s1957_s25 + $0x18] sm:$0xf] %vm1084_vm0, %v1288_v15  ;;  %v1290_v32 = vpack.c.bf16 %v772_v16, %v772_v16  ;;  %v648_v55 = vadd.f32 1.0, %v1558_v17  ;;  %1579 = vpow2.f32 %v550_v5  ;;  %v1993_v31 = vadd.f32 %v1829_v9, %v331_v28  ;;  %v2027_v16 = vld [vmem:[%s1815_s18 + $0x78] sm:$0xff]  }
  0x3e   : > { %v1562_v33 = vpop.eup %1561  ;;  %1092 = vst.msk [vmem:[%s1957_s25 + $0x1c] sm:$0xf] %vm1084_vm0, %v1289_v18  ;;  %v1291_v35 = vpack.c.bf16 %v773_v29, %v773_v29  ;;  %v774_v58 = vmul.f32 %v1560_v30, %v1889_v2  ;;  %v332_v36 = vmul.f32 %v1393_v19, %v1820_v0  ;;  %v1396_v10 = vunpack.c.l.bf16 %v1485_v13 }
  0x3f   : > { %v1564_v37 = vpop.eup %1563  ;;  %1093 = vst.msk [vmem:[%s1957_s25 + $0x20] sm:$0xf] %vm1084_vm0, %v1290_v32  ;;  %v775_v40 = vmul.f32 %v1562_v33, %v1892_v3  ;;  %1581 = vrcp.f32 %v648_v55  ;;  %v466_v41 = vsub.f32 0.0, %v1993_v31  ;;  %v1397_v43 = vunpack.c.h.bf16 %v1485_v13 }
  0x40   : > { %v1566_v44 = vpop.eup %1565  ;;  %1094 = vst.msk [vmem:[%s1957_s25 + $0x24] sm:$0xf] %vm1084_vm0, %v1291_v35  ;;  %v1292_v46 = vpack.c.bf16 %v774_v58, %v774_v58  ;;  %v649_v20 = vadd.f32 1.0, %v1564_v37  ;;  %v2006_v2 = vadd.f32 %v1829_v9, %v332_v36  ;;  %v333_v48 = vmul.f32 %v1396_v10, %v1820_v0 }
  0x41   : > { %v1568_v50 = vpop.eup %1567  ;;  %v1293_v52 = vpack.c.bf16 %v775_v40, %v775_v40  ;;  %v650_v3 = vadd.f32 1.0, %v1566_v44  ;;  %v552_v53 = vmul.f32 1.442695, %v466_v41  ;;  %v334_v54 = vmul.f32 %v1397_v43, %v1820_v0 }
  0x42   : > { %v1570_v57 = vpop.eup %1569  ;;  %1095 = vst.msk [vmem:[%s1957_s25 + $0x28] sm:$0xf] %vm1084_vm0, %v1292_v46  ;;  %1583 = vrcp.f32 %v649_v20  ;;  %v651_v59 = vadd.f32 1.0, %v1568_v50  ;;  %v467_v23 = vsub.f32 0.0, %v2006_v2  ;;  %v2015_v60 = vadd.f32 %v1829_v9, %v333_v48 }
  0x43   : > { %v1572_v62 = vpop.eup %1571  ;;  %1096 = vst.msk [vmem:[%s1957_s25 + $0x2c] sm:$0xf] %vm1084_vm0, %v1293_v52  ;;  %1585 = vrcp.f32 %v650_v3  ;;  %v652_v63 = vadd.f32 1.0, %v1570_v57  ;;  %v2020_v24 = vadd.f32 %v1829_v9, %v334_v54  ;;  %v1400_v1 = vunpack.c.l.bf16 %v1486_v49 }
  0x44   : > { %v1574_v21 = vpop.eup %1573  ;;  %1587 = vrcp.f32 %v651_v59  ;;  %v653_v4 = vadd.f32 1.0, %v1572_v62  ;;  %v554_v25 = vmul.f32 1.442695, %v467_v23  ;;  %v468_v56 = vsub.f32 0.0, %v2015_v60 }
  0x45   : > { %v1576_v8 = vpop.eup %1575  ;;  %1589 = vrcp.f32 %v652_v63  ;;  %v654_v26 = vadd.f32 1.0, %v1574_v21  ;;  %v469_v61 = vsub.f32 0.0, %v2020_v24  ;;  %v335_v11 = vmul.f32 %v1400_v1, %v1820_v0 }
  0x46   : > { %v1578_v27 = vpop.eup %1577  ;;  %1591 = vrcp.f32 %v653_v4  ;;  %v655_v5 = vadd.f32 1.0, %v1576_v8  ;;  %v556_v14 = vmul.f32 1.442695, %v468_v56  ;;  %v1401_v15 = vunpack.c.h.bf16 %v1486_v49  ;;  %v1489_v8 = vld [vmem:[%s1815_s18 + $0x80] sm:$0xff]  }
  0x47   : > { %v1580_v28 = vpop.eup %1579  ;;  %1593 = vrcp.f32 %v654_v26  ;;  %v656_v13 = vadd.f32 1.0, %v1578_v27  ;;  %v558_v17 = vmul.f32 1.442695, %v469_v61  ;;  %v2030_v18 = vadd.f32 %v1829_v9, %v335_v11 }
  0x48   : > { %1595 = vrcp.f32 %v655_v5  ;;  %v657_v29 = vadd.f32 1.0, %v1580_v28  ;;  %v336_v19 = vmul.f32 %v1401_v15, %v1820_v0  ;;  %v1404_v30 = vunpack.c.l.bf16 %v1487_v12 }
  0x49   : > { %v1582_v32 = vpop.eup %1581  ;;  %1597 = vrcp.f32 %v656_v13  ;;  %v470_v55 = vsub.f32 0.0, %v2030_v18  ;;  %v1405_v33 = vunpack.c.h.bf16 %v1487_v12  ;;  %v1408_v35 = vunpack.c.l.bf16 %v2027_v16 }
  0x4a   : > { %v776_v58 = vmul.f32 %v1582_v32, %v1896_v6  ;;  %1599 = vrcp.f32 %v657_v29  ;;  %v2037_v36 = vadd.f32 %v1829_v9, %v336_v19  ;;  %v337_v10 = vmul.f32 %v1404_v30, %v1820_v0 }
  0x4b   : > { %1601 = vpow2.f32 %v552_v53  ;;  %v560_v37 = vmul.f32 1.442695, %v470_v55  ;;  %v338_v40 = vmul.f32 %v1405_v33, %v1820_v0  ;;  %v339_v41 = vmul.f32 %v1408_v35, %v1820_v0 }
  0x4c   : > { %v1584_v43 = vpop.eup %1583  ;;  %v1294_v44 = vpack.c.bf16 %v776_v58, %v776_v58  ;;  %1603 = vpow2.f32 %v554_v25  ;;  %v471_v46 = vsub.f32 0.0, %v2037_v36  ;;  %v2044_v6 = vadd.f32 %v1829_v9, %v337_v10 }
  0x4d   : > { %v1586_v20 = vpop.eup %1585  ;;  %v777_v48 = vmul.f32 %v1584_v43, %v1899_v7  ;;  %1605 = vpow2.f32 %v556_v14  ;;  %v2048_v49 = vadd.f32 %v1829_v9, %v338_v40  ;;  %v2051_v50 = vadd.f32 %v1829_v9, %v339_v41 }
  0x4e   : > { %v1588_v52 = vpop.eup %1587  ;;  %1097 = vst.msk [vmem:[%s1957_s25 + $0x30] sm:$0xf] %vm1084_vm0, %v1294_v44  ;;  %v778_v3 = vmul.f32 %v1586_v20, %v1913_v38  ;;  %1607 = vpow2.f32 %v558_v17  ;;  %v562_v53 = vmul.f32 1.442695, %v471_v46  ;;  %v472_v54 = vsub.f32 0.0, %v2044_v6 }
  0x4f   : > { %v1590_v57 = vpop.eup %1589  ;;  %v1295_v7 = vpack.c.bf16 %v777_v48, %v777_v48  ;;  %v779_v59 = vmul.f32 %v1588_v52, %v1917_v42  ;;  %1609 = vpow2.f32 %v560_v37  ;;  %v473_v23 = vsub.f32 0.0, %v2048_v49 }
  0x50   : > { %v1592_v62 = vpop.eup %1591  ;;  %v1296_v63 = vpack.c.bf16 %v778_v3, %v778_v3  ;;  %v780_v1 = vmul.f32 %v1590_v57, %v1922_v47  ;;  %1611 = vpow2.f32 %v562_v53  ;;  %v564_v38 = vmul.f32 1.442695, %v472_v54  ;;  %v1491_v3 = vld [vmem:[%s1815_s18 + $0x90] sm:$0xff]  }
  0x51   : > { %v1594_v21 = vpop.eup %1593  ;;  %1098 = vst.msk [vmem:[%s1957_s25 + $0x34] sm:$0xf] %vm1084_vm0, %v1295_v7  ;;  %v1297_v4 = vpack.c.bf16 %v779_v59, %v779_v59  ;;  %v781_v25 = vmul.f32 %v1592_v62, %v1926_v51  ;;  %v566_v56 = vmul.f32 1.442695, %v473_v23  ;;  %v474_v42 = vsub.f32 0.0, %v2051_v50 }
  0x52   : > { %v1596_v26 = vpop.eup %1595  ;;  %1099 = vst.msk [vmem:[%s1957_s25 + $0x38] sm:$0xf] %vm1084_vm0, %v1296_v63  ;;  %v1298_v61 = vpack.c.bf16 %v780_v1, %v780_v1  ;;  %v782_v47 = vmul.f32 %v1594_v21, %v1939_v34  ;;  %1613 = vpow2.f32 %v564_v38  ;;  %v1409_v11 = vunpack.c.h.bf16 %v2027_v16  ;;  %v1490_v16 = vld [vmem:[%s1815_s18 + $0x88] sm:$0xff]  }
  0x53   : > { %v1598_v12 = vpop.eup %1597  ;;  %1100 = vst.msk [vmem:[%s1957_s25 + $0x3c] sm:$0xf] %vm1084_vm0, %v1297_v4  ;;  %v1299_v51 = vpack.c.bf16 %v781_v25, %v781_v25  ;;  %v783_v27 = vmul.f32 %v1596_v26, %v1944_v39  ;;  %1615 = vpow2.f32 %v566_v56  ;;  %v568_v5 = vmul.f32 1.442695, %v474_v42  ;;  %v1492_v4 = vld [vmem:[%s1815_s18 + $0x98] sm:$0xff]  }
  0x54   : > { %v1600_v14 = vpop.eup %1599  ;;  %1101 = vst.msk [vmem:[%s1957_s25 + $0x40] sm:$0xf] %vm1084_vm0, %v1298_v61  ;;  %v1300_v15 = vpack.c.bf16 %v782_v47, %v782_v47  ;;  %v784_v28 = vmul.f32 %v1598_v12, %v1950_v45  ;;  %v340_v34 = vmul.f32 %v1409_v11, %v1820_v0  ;;  %v1412_v13 = vunpack.c.l.bf16 %v1489_v8 }
  0x55   : > { %v1602_v17 = vpop.eup %1601  ;;  %1102 = vst.msk [vmem:[%s1957_s25 + $0x44] sm:$0xf] %vm1084_vm0, %v1299_v51  ;;  %v1301_v29 = vpack.c.bf16 %v783_v27, %v783_v27  ;;  %v785_v39 = vmul.f32 %v1600_v14, %v1962_v22  ;;  %1617 = vpow2.f32 %v568_v5  ;;  %v1413_v19 = vunpack.c.h.bf16 %v1489_v8  ;;  %v2112_v5 = vld [vmem:[%s1815_s18 + $0xa0] sm:$0xff]  }
  0x56   : > { %v1604_v30 = vpop.eup %1603  ;;  %1103 = vst.msk [vmem:[%s1957_s25 + $0x48] sm:$0xf] %vm1084_vm0, %v1300_v15  ;;  %v1302_v32 = vpack.c.bf16 %v784_v28, %v784_v28  ;;  %v658_v55 = vadd.f32 1.0, %v1602_v17  ;;  %v2083_v45 = vadd.f32 %v1829_v9, %v340_v34  ;;  %v341_v33 = vmul.f32 %v1412_v13, %v1820_v0 }
  0x57   : > { %v1606_v35 = vpop.eup %1605  ;;  %1104 = vst.msk [vmem:[%s1957_s25 + $0x4c] sm:$0xf] %vm1084_vm0, %v1301_v29  ;;  %v1303_v58 = vpack.c.bf16 %v785_v39, %v785_v39  ;;  %v659_v22 = vadd.f32 1.0, %v1604_v30  ;;  %v342_v10 = vmul.f32 %v1413_v19, %v1820_v0  ;;  %v1416_v37 = vunpack.c.l.bf16 %v1490_v16 }
  0x58   : > { %v1608_v40 = vpop.eup %1607  ;;  %1105 = vst.msk [vmem:[%s1957_s25 + $0x50] sm:$0xf] %vm1084_vm0, %v1302_v32  ;;  %1619 = vrcp.f32 %v658_v55  ;;  %v660_v41 = vadd.f32 1.0, %v1606_v35  ;;  %v475_v43 = vsub.f32 0.0, %v2083_v45  ;;  %v2093_v44 = vadd.f32 %v1829_v9, %v341_v33 }
  0x59   : > { %v1610_v46 = vpop.eup %1609  ;;  %1106 = vst.msk [vmem:[%s1957_s25 + $0x54] sm:$0xf] %vm1084_vm0, %v1303_v58  ;;  %1621 = vrcp.f32 %v659_v22  ;;  %v661_v20 = vadd.f32 1.0, %v1608_v40  ;;  %v2098_v48 = vadd.f32 %v1829_v9, %v342_v10  ;;  %v343_v52 = vmul.f32 %v1416_v37, %v1820_v0 }
  0x5a   : > { %v1612_v53 = vpop.eup %1611  ;;  %1623 = vrcp.f32 %v660_v41  ;;  %v662_v54 = vadd.f32 1.0, %v1610_v46  ;;  %v570_v57 = vmul.f32 1.442695, %v475_v43  ;;  %v476_v7 = vsub.f32 0.0, %v2093_v44 }
  0x5b   : > { %1625 = vrcp.f32 %v661_v20  ;;  %v663_v59 = vadd.f32 1.0, %v1612_v53  ;;  %v477_v23 = vsub.f32 0.0, %v2098_v48  ;;  %v2105_v62 = vadd.f32 %v1829_v9, %v343_v52 }
  0x5c   : > { %v1614_v63 = vpop.eup %1613  ;;  %1627 = vrcp.f32 %v662_v54  ;;  %v572_v1 = vmul.f32 1.442695, %v476_v7  ;;  %v1417_v38 = vunpack.c.h.bf16 %v1490_v16  ;;  %v1420_v21 = vunpack.c.l.bf16 %v1491_v3 }
  0x5d   : > { %v1616_v25 = vpop.eup %1615  ;;  %1629 = vrcp.f32 %v663_v59  ;;  %v664_v56 = vadd.f32 1.0, %v1614_v63  ;;  %v574_v42 = vmul.f32 1.442695, %v477_v23  ;;  %v478_v8 = vsub.f32 0.0, %v2105_v62 }
  0x5e   : > { %v665_v26 = vadd.f32 1.0, %v1616_v25  ;;  %1631 = vpow2.f32 %v570_v57  ;;  %v344_v61 = vmul.f32 %v1417_v38, %v1820_v0  ;;  %v345_v47 = vmul.f32 %v1420_v21, %v1820_v0  ;;  %v1494_v21 = vld [vmem:[%s1815_s18 + $0xa8] sm:$0xff]  }
  0x5f   : > { %v1618_v11 = vpop.eup %1617  ;;  %1633 = vrcp.f32 %v664_v56  ;;  %v576_v12 = vmul.f32 1.442695, %v478_v8  ;;  %v1421_v51 = vunpack.c.h.bf16 %v1491_v3  ;;  %v1424_v27 = vunpack.c.l.bf16 %v1492_v4 }
  0x60   : > { %1635 = vrcp.f32 %v665_v26  ;;  %v666_v14 = vadd.f32 1.0, %v1618_v11  ;;  %v2115_v15 = vadd.f32 %v1829_v9, %v344_v61  ;;  %v2118_v28 = vadd.f32 %v1829_v9, %v345_v47 }
  0x61   : > { %1637 = vpow2.f32 %v572_v1  ;;  %v346_v34 = vmul.f32 %v1421_v51, %v1820_v0  ;;  %v347_v13 = vmul.f32 %v1424_v27, %v1820_v0  ;;  %v1425_v16 = vunpack.c.h.bf16 %v1492_v4 }
  0x62   : > { %v1620_v17 = vpop.eup %1619  ;;  %1639 = vrcp.f32 %v666_v14  ;;  %v479_v29 = vsub.f32 0.0, %v2115_v15  ;;  %v480_v39 = vsub.f32 0.0, %v2118_v28  ;;  %v1428_v19 = vunpack.c.l.bf16 %v2112_v5 }
  0x63   : > { %v1622_v30 = vpop.eup %1621  ;;  %v786_v32 = vmul.f32 %v1620_v17, %v1993_v31  ;;  %1641 = vpow2.f32 %v574_v42  ;;  %v2127_v55 = vadd.f32 %v1829_v9, %v346_v34  ;;  %v2130_v33 = vadd.f32 %v1829_v9, %v347_v13 }
  0x64   : > { %v1624_v35 = vpop.eup %1623  ;;  %v787_v58 = vmul.f32 %v1622_v30, %v2006_v2  ;;  %1643 = vpow2.f32 %v576_v12  ;;  %v578_v22 = vmul.f32 1.442695, %v479_v29  ;;  %v580_v10 = vmul.f32 1.442695, %v480_v39  ;;  %v1495_v39 = vld [vmem:[%s1815_s18 + $0xb0] sm:$0xff]  }
  0x65   : > { %v1626_v37 = vpop.eup %1625  ;;  %v1304_v40 = vpack.c.bf16 %v786_v32, %v786_v32  ;;  %v788_v41 = vmul.f32 %v1624_v35, %v2015_v60  ;;  %v481_v31 = vsub.f32 0.0, %v2127_v55  ;;  %v482_v43 = vsub.f32 0.0, %v2130_v33 }
  0x66   : > { %v1628_v46 = vpop.eup %1627  ;;  %v1305_v20 = vpack.c.bf16 %v787_v58, %v787_v58  ;;  %v789_v52 = vmul.f32 %v1626_v37, %v2020_v24  ;;  %1645 = vpow2.f32 %v578_v22  ;;  %v348_v2 = vmul.f32 %v1425_v16, %v1820_v0 }
  0x67   : > { %v1630_v3 = vpop.eup %1629  ;;  %1107 = vst.msk [vmem:[%s1957_s25 + $0x58] sm:$0xf] %vm1084_vm0, %v1304_v40  ;;  %v1306_v53 = vpack.c.bf16 %v788_v41, %v788_v41  ;;  %v790_v54 = vmul.f32 %v1628_v46, %v2030_v18  ;;  %1647 = vpow2.f32 %v580_v10  ;;  %v582_v60 = vmul.f32 1.442695, %v481_v31 }
  0x68   : > { %v1632_v57 = vpop.eup %1631  ;;  %1108 = vst.msk [vmem:[%s1957_s25 + $0x5c] sm:$0xf] %vm1084_vm0, %v1305_v20  ;;  %v1307_v7 = vpack.c.bf16 %v789_v52, %v789_v52  ;;  %v791_v24 = vmul.f32 %v1630_v3, %v2037_v36  ;;  %v584_v59 = vmul.f32 1.442695, %v482_v43  ;;  %v2145_v23 = vadd.f32 %v1829_v9, %v348_v2 }
  0x69   : > { %v1634_v63 = vpop.eup %1633  ;;  %1109 = vst.msk [vmem:[%s1957_s25 + $0x60] sm:$0xf] %vm1084_vm0, %v1306_v53  ;;  %v1308_v1 = vpack.c.bf16 %v790_v54, %v790_v54  ;;  %v667_v38 = vadd.f32 1.0, %v1632_v57  ;;  %1649 = vpow2.f32 %v582_v60  ;;  %v349_v18 = vmul.f32 %v1428_v19, %v1820_v0  ;;  %v1496_v53 = vld [vmem:[%s1815_s18 + $0xb8] sm:$0xff]  }
  0x6a   : > { %v1636_v4 = vpop.eup %1635  ;;  %1110 = vst.msk [vmem:[%s1957_s25 + $0x64] sm:$0xf] %vm1084_vm0, %v1307_v7  ;;  %v1309_v25 = vpack.c.bf16 %v791_v24, %v791_v24  ;;  %v792_v36 = vmul.f32 %v1634_v63, %v2044_v6  ;;  %1651 = vpow2.f32 %v584_v59  ;;  %v483_v56 = vsub.f32 0.0, %v2145_v23  ;;  %v2199_v63 = vld [vmem:[%s2419_s2] ss:$0 sm:$0xff] }
  0x6b   : > { %v1638_v42 = vpop.eup %1637  ;;  %1111 = vst.msk [vmem:[%s1957_s25 + $0x68] sm:$0xf] %vm1084_vm0, %v1308_v1  ;;  %v793_v8 = vmul.f32 %v1636_v4, %v2048_v49  ;;  %1653 = vrcp.f32 %v667_v38  ;;  %v2159_v26 = vadd.f32 %v1829_v9, %v349_v18  ;;  %v1429_v61 = vunpack.c.h.bf16 %v2112_v5 }
  0x6c   : > { %v1640_v47 = vpop.eup %1639  ;;  %1112 = vst.msk [vmem:[%s1957_s25 + $0x6c] sm:$0xf] %vm1084_vm0, %v1309_v25  ;;  %v1310_v6 = vpack.c.bf16 %v792_v36, %v792_v36  ;;  %v668_v11 = vadd.f32 1.0, %v1638_v42  ;;  %v586_v12 = vmul.f32 1.442695, %v483_v56  ;;  %v1432_v51 = vunpack.c.l.bf16 %v1494_v21 }
  0x6d   : > { %v1642_v27 = vpop.eup %1641  ;;  %v1311_v14 = vpack.c.bf16 %v793_v8, %v793_v8  ;;  %v794_v49 = vmul.f32 %v1640_v47, %v2051_v50  ;;  %v484_v34 = vsub.f32 0.0, %v2159_v26  ;;  %v350_v13 = vmul.f32 %v1429_v61, %v1820_v0 }
  0x6e   : > { %v1644_v16 = vpop.eup %1643  ;;  %1113 = vst.msk [vmem:[%s1957_s25 + $0x70] sm:$0xf] %vm1084_vm0, %v1310_v6  ;;  %1655 = vrcp.f32 %v668_v11  ;;  %v669_v5 = vadd.f32 1.0, %v1642_v27  ;;  %v351_v17 = vmul.f32 %v1432_v51, %v1820_v0  ;;  %v1433_v29 = vunpack.c.h.bf16 %v1494_v21  ;;  %v1497_v6 = vld [vmem:[%s1815_s18 + $0xc0] sm:$0xff]  }
  0x6f   : > { %1114 = vst.msk [vmem:[%s1957_s25 + $0x74] sm:$0xf] %vm1084_vm0, %v1311_v14  ;;  %v1312_v19 = vpack.c.bf16 %v794_v49, %v794_v49  ;;  %v670_v30 = vadd.f32 1.0, %v1644_v16  ;;  %1657 = vpow2.f32 %v586_v12  ;;  %v588_v50 = vmul.f32 1.442695, %v484_v34 }
  0x70   : > { %v1646_v32 = vpop.eup %1645  ;;  %1659 = vrcp.f32 %v669_v5  ;;  %v2174_v35 = vadd.f32 %v1829_v9, %v350_v13  ;;  %v2177_v58 = vadd.f32 %v1829_v9, %v351_v17  ;;  %v352_v22 = vmul.f32 %v1433_v29, %v1820_v0  ;;  %v2190_v0 = vld [vmem:[%s2418_s1] ss:$0 sm:$0xff] }
  0x71   : > { %v1648_v10 = vpop.eup %1647  ;;  %1115 = vst.msk [vmem:[%s1957_s25 + $0x78] sm:$0xf] %vm1084_vm0, %v1312_v19  ;;  %1661 = vrcp.f32 %v670_v30  ;;  %v671_v37 = vadd.f32 1.0, %v1646_v32  ;;  %v1436_v40 = vunpack.c.l.bf16 %v1495_v39  ;;  %v1437_v41 = vunpack.c.h.bf16 %v1495_v39 }
  0x72   : > { %v672_v31 = vadd.f32 1.0, %v1648_v10  ;;  %1663 = vpow2.f32 %v588_v50  ;;  %v485_v43 = vsub.f32 0.0, %v2174_v35  ;;  %v486_v46 = vsub.f32 0.0, %v2177_v58 }
  0x73   : > { %v1650_v20 = vpop.eup %1649  ;;  %1665 = vrcp.f32 %v671_v37  ;;  %v2185_v52 = vadd.f32 %v1829_v9, %v352_v22  ;;  %v353_v2 = vmul.f32 %v2190_v0, %v1436_v40  ;;  %v354_v3 = vmul.f32 %v2190_v0, %v1437_v41  ;;  %v1498_v22 = vld [vmem:[%s1815_s18 + $0xc8] sm:$0xff]  }
  0x74   : > { %v1652_v54 = vpop.eup %1651  ;;  %1667 = vrcp.f32 %v672_v31  ;;  %v673_v60 = vadd.f32 1.0, %v1650_v20  ;;  %v590_v57 = vmul.f32 1.442695, %v485_v43  ;;  %v592_v7 = vmul.f32 1.442695, %v486_v46 }
  0x75   : > { %v1654_v24 = vpop.eup %1653  ;;  %v674_v59 = vadd.f32 1.0, %v1652_v54  ;;  %v487_v9 = vsub.f32 0.0, %v2185_v52  ;;  %v2202_v1 = vadd.f32 %v2199_v63, %v353_v2  ;;  %v2205_v38 = vadd.f32 %v2199_v63, %v354_v3 }
  0x76   : > { %v795_v18 = vmul.f32 %v1654_v24, %v2083_v45  ;;  %1669 = vrcp.f32 %v673_v60  ;;  %v1440_v21 = vunpack.c.l.bf16 %v1496_v53  ;;  %v1441_v4 = vunpack.c.h.bf16 %v1496_v53  ;;  %v2240_v53 = vld [vmem:[%s1815_s18 + $0xd0] sm:$0xff]  }
  0x77   : > { %1671 = vrcp.f32 %v674_v59  ;;  %v594_v25 = vmul.f32 1.442695, %v487_v9  ;;  %v488_v36 = vsub.f32 0.0, %v2202_v1  ;;  %v489_v56 = vsub.f32 0.0, %v2205_v38 }
  0x78   : > { %v1656_v42 = vpop.eup %1655  ;;  %v1313_v8 = vpack.c.bf16 %v795_v18, %v795_v18  ;;  %1673 = vpow2.f32 %v590_v57  ;;  %v355_v61 = vmul.f32 %v2190_v0, %v1440_v21  ;;  %v356_v47 = vmul.f32 %v2190_v0, %v1441_v4 }
  0x79   : > { %v1658_v11 = vpop.eup %1657  ;;  %v796_v45 = vmul.f32 %v1656_v42, %v2093_v44  ;;  %1675 = vpow2.f32 %v592_v7  ;;  %v596_v12 = vmul.f32 1.442695, %v488_v36  ;;  %v598_v51 = vmul.f32 1.442695, %v489_v56 }
  0x7a   : > { %v1660_v27 = vpop.eup %1659  ;;  %1116 = vst.msk [vmem:[%s1957_s25 + $0x7c] sm:$0xf] %vm1084_vm0, %v1313_v8  ;;  %v675_v14 = vadd.f32 1.0, %v1658_v11  ;;  %1677 = vpow2.f32 %v594_v25  ;;  %v2217_v49 = vadd.f32 %v2199_v63, %v355_v61  ;;  %v2220_v34 = vadd.f32 %v2199_v63, %v356_v47 }
  0x7b   : > { %v1662_v13 = vpop.eup %1661  ;;  %v1314_v16 = vpack.c.bf16 %v796_v45, %v796_v45  ;;  %v797_v44 = vmul.f32 %v1660_v27, %v2098_v48  ;;  %1679 = vpow2.f32 %v596_v12  ;;  %v1444_v5 = vunpack.c.l.bf16 %v1497_v6 }
  0x7c   : > { %v1664_v17 = vpop.eup %1663  ;;  %v798_v29 = vmul.f32 %v1662_v13, %v2105_v62  ;;  %1681 = vrcp.f32 %v675_v14  ;;  %v490_v39 = vsub.f32 0.0, %v2217_v49  ;;  %v491_v19 = vsub.f32 0.0, %v2220_v34 }
  0x7d   : > { %v1666_v30 = vpop.eup %1665  ;;  %1117 = vst.msk [vmem:[%s1957_s25 + $0x80] sm:$0xf] %vm1084_vm0, %v1314_v16  ;;  %v1315_v50 = vpack.c.bf16 %v797_v44, %v797_v44  ;;  %v676_v32 = vadd.f32 1.0, %v1664_v17  ;;  %1683 = vpow2.f32 %v598_v51  ;;  %v357_v48 = vmul.f32 %v2190_v0, %v1444_v5  ;;  %v1500_v17 = vld [vmem:[%s1815_s18 + $0xd8] sm:$0xff]  }
  0x7e   : > { %v1668_v10 = vpop.eup %1667  ;;  %v1316_v37 = vpack.c.bf16 %v798_v29, %v798_v29  ;;  %v799_v62 = vmul.f32 %v1666_v30, %v2115_v15  ;;  %v600_v40 = vmul.f32 1.442695, %v490_v39  ;;  %v602_v41 = vmul.f32 1.442695, %v491_v19 }
  0x7f   : > { %1118 = vst.msk [vmem:[%s1957_s25 + $0x84] sm:$0xf] %vm1084_vm0, %v1315_v50  ;;  %v800_v31 = vmul.f32 %v1668_v10, %v2118_v28  ;;  %1685 = vrcp.f32 %v676_v32  ;;  %v2235_v43 = vadd.f32 %v2199_v63, %v357_v48  ;;  %v1445_v46 = vunpack.c.h.bf16 %v1497_v6 }
  0x80   : > { %v1670_v20 = vpop.eup %1669  ;;  %1119 = vst.msk [vmem:[%s1957_s25 + $0x88] sm:$0xf] %vm1084_vm0, %v1316_v37  ;;  %v1317_v2 = vpack.c.bf16 %v799_v62, %v799_v62  ;;  %1687 = vpow2.f32 %v600_v40  ;;  %v1448_v3 = vunpack.c.l.bf16 %v1498_v22  ;;  %v1449_v15 = vunpack.c.h.bf16 %v1498_v22  ;;  %v1501_v62 = vld [vmem:[%s1815_s18 + $0xe0] sm:$0xff]  }
  0x81   : > { %v1672_v54 = vpop.eup %1671  ;;  %v1318_v60 = vpack.c.bf16 %v800_v31, %v800_v31  ;;  %v801_v28 = vmul.f32 %v1670_v20, %v2127_v55  ;;  %1689 = vpow2.f32 %v602_v41  ;;  %v492_v57 = vsub.f32 0.0, %v2235_v43  ;;  %v2282_v20 = vld [vmem:[%s1815_s18 + $0xe8] sm:$0xff]  }
  0x82   : > { %v1674_v7 = vpop.eup %1673  ;;  %1120 = vst.msk [vmem:[%s1957_s25 + $0x8c] sm:$0xf] %vm1084_vm0, %v1317_v2  ;;  %v802_v24 = vmul.f32 %v1672_v54, %v2130_v33  ;;  %v358_v59 = vmul.f32 %v2190_v0, %v1445_v46  ;;  %v359_v9 = vmul.f32 %v2190_v0, %v1448_v3  ;;  %v360_v18 = vmul.f32 %v2190_v0, %v1449_v15 }
  0x83   : > { %v1676_v21 = vpop.eup %1675  ;;  %1121 = vst.msk [vmem:[%s1957_s25 + $0x90] sm:$0xf] %vm1084_vm0, %v1318_v60  ;;  %v1319_v4 = vpack.c.bf16 %v801_v28, %v801_v28  ;;  %v677_v55 = vadd.f32 1.0, %v1674_v7  ;;  %v604_v25 = vmul.f32 1.442695, %v492_v57  ;;  %v1452_v36 = vunpack.c.l.bf16 %v2240_v53 }
  0x84   : > { %v1678_v56 = vpop.eup %1677  ;;  %v1320_v42 = vpack.c.bf16 %v802_v24, %v802_v24  ;;  %v678_v8 = vadd.f32 1.0, %v1676_v21  ;;  %v2254_v33 = vadd.f32 %v2199_v63, %v358_v59  ;;  %v2257_v61 = vadd.f32 %v2199_v63, %v359_v9 }
  0x85   : > { %v1680_v47 = vpop.eup %1679  ;;  %1122 = vst.msk [vmem:[%s1957_s25 + $0x94] sm:$0xf] %vm1084_vm0, %v1319_v4  ;;  %1691 = vrcp.f32 %v677_v55  ;;  %v679_v6 = vadd.f32 1.0, %v1678_v56  ;;  %v2262_v11 = vadd.f32 %v2199_v63, %v360_v18  ;;  %v361_v45 = vmul.f32 %v2190_v0, %v1452_v36 }
  0x86   : > { %v1682_v12 = vpop.eup %1681  ;;  %1123 = vst.msk [vmem:[%s1957_s25 + $0x98] sm:$0xf] %vm1084_vm0, %v1320_v42  ;;  %1693 = vrcp.f32 %v678_v8  ;;  %v680_v51 = vadd.f32 1.0, %v1680_v47  ;;  %v493_v27 = vsub.f32 0.0, %v2254_v33  ;;  %v494_v14 = vsub.f32 0.0, %v2257_v61 }
  0x87   : > { %v1684_v13 = vpop.eup %1683  ;;  %v803_v16 = vmul.f32 %v1682_v12, %v2145_v23  ;;  %1695 = vrcp.f32 %v679_v6  ;;  %v495_v44 = vsub.f32 0.0, %v2262_v11  ;;  %v2272_v5 = vadd.f32 %v2199_v63, %v361_v45 }
  0x88   : > { %1697 = vrcp.f32 %v680_v51  ;;  %v681_v29 = vadd.f32 1.0, %v1684_v13  ;;  %v606_v39 = vmul.f32 1.442695, %v493_v27  ;;  %v608_v19 = vmul.f32 1.442695, %v494_v14 }
  0x89   : > { %v1686_v30 = vpop.eup %1685  ;;  %v1321_v50 = vpack.c.bf16 %v803_v16, %v803_v16  ;;  %1699 = vpow2.f32 %v604_v25  ;;  %v610_v32 = vmul.f32 1.442695, %v495_v44  ;;  %v496_v23 = vsub.f32 0.0, %v2272_v5 }
  0x8a   : > { %v1688_v48 = vpop.eup %1687  ;;  %v804_v22 = vmul.f32 %v1686_v30, %v2159_v26  ;;  %1701 = vrcp.f32 %v681_v29  ;;  %v1453_v10 = vunpack.c.h.bf16 %v2240_v53  ;;  %v1456_v37 = vunpack.c.l.bf16 %v1500_v17 }
  0x8b   : > { %v1690_v40 = vpop.eup %1689  ;;  %1124 = vst.msk [vmem:[%s1957_s25 + $0x9c] sm:$0xf] %vm1084_vm0, %v1321_v50  ;;  %v682_v41 = vadd.f32 1.0, %v1688_v48  ;;  %1703 = vpow2.f32 %v606_v39  ;;  %v612_v31 = vmul.f32 1.442695, %v496_v23  ;;  %v1457_v46 = vunpack.c.h.bf16 %v1500_v17  ;;  %v1503_v48 = vld [vmem:[%s1815_s18 + $0xf0] sm:$0xff]  }
  0x8c   : > { %v1322_v2 = vpack.c.bf16 %v804_v22, %v804_v22  ;;  %v683_v3 = vadd.f32 1.0, %v1690_v40  ;;  %1705 = vpow2.f32 %v608_v19  ;;  %v362_v26 = vmul.f32 %v2190_v0, %v1453_v10 }
  0x8d   : > { %1707 = vrcp.f32 %v682_v41  ;;  %v363_v15 = vmul.f32 %v2190_v0, %v1456_v37  ;;  %v364_v53 = vmul.f32 %v2190_v0, %v1457_v46  ;;  %v1460_v54 = vunpack.c.l.bf16 %v1501_v62 }
  0x8e   : > { %1125 = vst.msk [vmem:[%s1957_s25 + $0xa0] sm:$0xf] %vm1084_vm0, %v1322_v2  ;;  %1709 = vrcp.f32 %v683_v3  ;;  %v2290_v60 = vadd.f32 %v2199_v63, %v362_v26  ;;  %v1461_v28 = vunpack.c.h.bf16 %v1501_v62  ;;  %v1464_v57 = vunpack.c.l.bf16 %v2282_v20 }
  0x8f   : > { %v1692_v7 = vpop.eup %1691  ;;  %1711 = vpow2.f32 %v610_v32  ;;  %v2294_v24 = vadd.f32 %v2199_v63, %v363_v15  ;;  %v2297_v59 = vadd.f32 %v2199_v63, %v364_v53  ;;  %v365_v9 = vmul.f32 %v2190_v0, %v1460_v54 }
  0x90   : > { %v1694_v18 = vpop.eup %1693  ;;  %v805_v21 = vmul.f32 %v1692_v7, %v2174_v35  ;;  %1713 = vpow2.f32 %v612_v31  ;;  %v497_v4 = vsub.f32 0.0, %v2290_v60  ;;  %v366_v55 = vmul.f32 %v2190_v0, %v1461_v28  ;;  %v1504_v28 = vld [vmem:[%s1815_s18 + $0xf8] sm:$0xff]  }
  0x91   : > { %v1696_v25 = vpop.eup %1695  ;;  %v806_v36 = vmul.f32 %v1694_v18, %v2177_v58  ;;  %v498_v56 = vsub.f32 0.0, %v2294_v24  ;;  %v499_v42 = vsub.f32 0.0, %v2297_v59  ;;  %v2307_v8 = vadd.f32 %v2199_v63, %v365_v9 }
  0x92   : > { %v1698_v47 = vpop.eup %1697  ;;  %v1323_v6 = vpack.c.bf16 %v805_v21, %v805_v21  ;;  %v807_v35 = vmul.f32 %v1696_v25, %v2185_v52  ;;  %v614_v45 = vmul.f32 1.442695, %v497_v4  ;;  %v2311_v12 = vadd.f32 %v2199_v63, %v366_v55 }
  0x93   : > { %v1700_v51 = vpop.eup %1699  ;;  %v1324_v27 = vpack.c.bf16 %v806_v36, %v806_v36  ;;  %v808_v58 = vmul.f32 %v1698_v47, %v2202_v1  ;;  %v616_v14 = vmul.f32 1.442695, %v498_v56  ;;  %v618_v13 = vmul.f32 1.442695, %v499_v42 }
  0x94   : > { %v1702_v16 = vpop.eup %1701  ;;  %1126 = vst.msk [vmem:[%s1957_s25 + $0xa4] sm:$0xf] %vm1084_vm0, %v1323_v6  ;;  %v1325_v44 = vpack.c.bf16 %v807_v35, %v807_v35  ;;  %v684_v17 = vadd.f32 1.0, %v1700_v51  ;;  %1715 = vpow2.f32 %v614_v45  ;;  %v500_v52 = vsub.f32 0.0, %v2307_v8 }
  0x95   : > { %v1704_v29 = vpop.eup %1703  ;;  %1127 = vst.msk [vmem:[%s1957_s25 + $0xa8] sm:$0xf] %vm1084_vm0, %v1324_v27  ;;  %v1326_v39 = vpack.c.bf16 %v808_v58, %v808_v58  ;;  %v809_v19 = vmul.f32 %v1702_v16, %v2205_v38  ;;  %1717 = vpow2.f32 %v616_v14  ;;  %v501_v1 = vsub.f32 0.0, %v2311_v12 }
  0x96   : > { %v1706_v30 = vpop.eup %1705  ;;  %1128 = vst.msk [vmem:[%s1957_s25 + $0xac] sm:$0xf] %vm1084_vm0, %v1325_v44  ;;  %1719 = vrcp.f32 %v684_v17  ;;  %v685_v50 = vadd.f32 1.0, %v1704_v29  ;;  %v620_v32 = vmul.f32 1.442695, %v500_v52  ;;  %v367_v23 = vmul.f32 %v2190_v0, %v1464_v57 }
  0x97   : > { %v1708_v22 = vpop.eup %1707  ;;  %1129 = vst.msk [vmem:[%s1957_s25 + $0xb0] sm:$0xf] %vm1084_vm0, %v1326_v39  ;;  %v1327_v10 = vpack.c.bf16 %v809_v19, %v809_v19  ;;  %v686_v37 = vadd.f32 1.0, %v1706_v30  ;;  %1721 = vpow2.f32 %v618_v13  ;;  %v622_v38 = vmul.f32 1.442695, %v501_v1 }
  0x98   : > { %v1710_v62 = vpop.eup %1709  ;;  %v810_v40 = vmul.f32 %v1708_v22, %v2217_v49  ;;  %1723 = vrcp.f32 %v685_v50  ;;  %v2329_v41 = vadd.f32 %v2199_v63, %v367_v23  ;;  %v1465_v31 = vunpack.c.h.bf16 %v2282_v20 }
  0x99   : > { %v1712_v46 = vpop.eup %1711  ;;  %1130 = vst.msk [vmem:[%s1957_s25 + $0xb4] sm:$0xf] %vm1084_vm0, %v1327_v10  ;;  %v811_v2 = vmul.f32 %v1710_v62, %v2220_v34  ;;  %1725 = vrcp.f32 %v686_v37  ;;  %v1468_v3 = vunpack.c.l.bf16 %v1503_v48  ;;  %v1469_v26 = vunpack.c.h.bf16 %v1503_v48 }
  0x9a   : > { %v1714_v15 = vpop.eup %1713  ;;  %v1328_v53 = vpack.c.bf16 %v810_v40, %v810_v40  ;;  %v687_v54 = vadd.f32 1.0, %v1712_v46  ;;  %1727 = vpow2.f32 %v620_v32  ;;  %v502_v49 = vsub.f32 0.0, %v2329_v41 }
  0x9b   : > { %v1329_v57 = vpack.c.bf16 %v811_v2, %v811_v2  ;;  %v688_v7 = vadd.f32 1.0, %v1714_v15  ;;  %1729 = vpow2.f32 %v622_v38  ;;  %v368_v20 = vmul.f32 %v2190_v0, %v1465_v31 }
  0x9c   : > { %1131 = vst.msk [vmem:[%s1957_s25 + $0xb8] sm:$0xf] %vm1084_vm0, %v1328_v53  ;;  %1731 = vrcp.f32 %v687_v54  ;;  %v624_v34 = vmul.f32 1.442695, %v502_v49  ;;  %v369_v9 = vmul.f32 %v2190_v0, %v1468_v3  ;;  %v370_v18 = vmul.f32 %v2190_v0, %v1469_v26 }
  0x9d   : > { %1132 = vst.msk [vmem:[%s1957_s25 + $0xbc] sm:$0xf] %vm1084_vm0, %v1329_v57  ;;  %1733 = vrcp.f32 %v688_v7  ;;  %v2345_v21 = vadd.f32 %v2199_v63, %v368_v20  ;;  %v1472_v4 = vunpack.c.l.bf16 %v1504_v28  ;;  %v1473_v55 = vunpack.c.h.bf16 %v1504_v28 }
  0x9e   : > { %v1716_v25 = vpop.eup %1715  ;;  %1735 = vpow2.f32 %v624_v34  ;;  %v2348_v36 = vadd.f32 %v2199_v63, %v369_v9  ;;  %v2351_v56 = vadd.f32 %v2199_v63, %v370_v18 }
  0x9f   : > { %v1718_v42 = vpop.eup %1717  ;;  %v689_v47 = vadd.f32 1.0, %v1716_v25  ;;  %v503_v6 = vsub.f32 0.0, %v2345_v21  ;;  %v371_v35 = vmul.f32 %v2190_v0, %v1472_v4  ;;  %v372_v14 = vmul.f32 %v2190_v0, %v1473_v55 }
  0xa0   : > { %v1720_v45 = vpop.eup %1719  ;;  %v690_v51 = vadd.f32 1.0, %v1718_v42  ;;  %v504_v27 = vsub.f32 0.0, %v2348_v36  ;;  %v505_v58 = vsub.f32 0.0, %v2351_v56 }
  0xa1   : > { %v1722_v13 = vpop.eup %1721  ;;  %v812_v16 = vmul.f32 %v1720_v45, %v2235_v43  ;;  %1737 = vrcp.f32 %v689_v47  ;;  %v626_v44 = vmul.f32 1.442695, %v503_v6  ;;  %v2360_v17 = vadd.f32 %v2199_v63, %v371_v35 }
  0xa2   : > { %v1724_v52 = vpop.eup %1723  ;;  %1739 = vrcp.f32 %v690_v51  ;;  %v691_v29 = vadd.f32 1.0, %v1722_v13  ;;  %v628_v39 = vmul.f32 1.442695, %v504_v27  ;;  %v630_v19 = vmul.f32 1.442695, %v505_v58 }
  0xa3   : > { %v1726_v1 = vpop.eup %1725  ;;  %v1330_v30 = vpack.c.bf16 %v812_v16, %v812_v16  ;;  %v813_v50 = vmul.f32 %v1724_v52, %v2254_v33  ;;  %1741 = vpow2.f32 %v626_v44  ;;  %v506_v0 = vsub.f32 0.0, %v2360_v17 }
  0xa4   : > { %v1728_v32 = vpop.eup %1727  ;;  %v814_v43 = vmul.f32 %v1726_v1, %v2257_v61  ;;  %1743 = vrcp.f32 %v691_v29  ;;  %v2366_v23 = vadd.f32 %v2199_v63, %v372_v14 }
  0xa5   : > { %v1730_v48 = vpop.eup %1729  ;;  %1133 = vst.msk [vmem:[%s1957_s25 + $0xc0] sm:$0xf] %vm1084_vm0, %v1330_v30  ;;  %v1331_v22 = vpack.c.bf16 %v813_v50, %v813_v50  ;;  %v692_v10 = vadd.f32 1.0, %v1728_v32  ;;  %1745 = vpow2.f32 %v628_v39  ;;  %v632_v37 = vmul.f32 1.442695, %v506_v0 }
  0xa6   : > { %v1732_v33 = vpop.eup %1731  ;;  %v1332_v38 = vpack.c.bf16 %v814_v43, %v814_v43  ;;  %v693_v62 = vadd.f32 1.0, %v1730_v48  ;;  %1747 = vpow2.f32 %v630_v19  ;;  %v507_v40 = vsub.f32 0.0, %v2366_v23 }
  0xa7   : > { %v1734_v61 = vpop.eup %1733  ;;  %1134 = vst.msk [vmem:[%s1957_s25 + $0xc4] sm:$0xf] %vm1084_vm0, %v1331_v22  ;;  %v815_v63 = vmul.f32 %v1732_v33, %v2262_v11  ;;  %1749 = vrcp.f32 %v692_v10 }
  0xa8   : > { %v1736_v31 = vpop.eup %1735  ;;  %1135 = vst.msk [vmem:[%s1957_s25 + $0xc8] sm:$0xf] %vm1084_vm0, %v1332_v38  ;;  %v816_v46 = vmul.f32 %v1734_v61, %v2272_v5  ;;  %1751 = vrcp.f32 %v693_v62  ;;  %v634_v2 = vmul.f32 1.442695, %v507_v40 }
  0xa9   : > { %v1333_v3 = vpack.c.bf16 %v815_v63, %v815_v63  ;;  %v694_v26 = vadd.f32 1.0, %v1736_v31  ;;  %1753 = vpow2.f32 %v632_v37 }
  0xaa   : > { %v1334_v15 = vpack.c.bf16 %v816_v46, %v816_v46  ;;  %1755 = vpow2.f32 %v634_v2 }
  0xab   : > { %v1738_v53 = vpop.eup %1737  ;;  %1136 = vst.msk [vmem:[%s1957_s25 + $0xcc] sm:$0xf] %vm1084_vm0, %v1333_v3  ;;  %1757 = vrcp.f32 %v694_v26 }
  0xac   : > { %v1740_v11 = vpop.eup %1739  ;;  %1137 = vst.msk [vmem:[%s1957_s25 + $0xd0] sm:$0xf] %vm1084_vm0, %v1334_v15  ;;  %v817_v54 = vmul.f32 %v1738_v53, %v2290_v60 }
  0xad   : > { %v1742_v49 = vpop.eup %1741  ;;  %v818_v5 = vmul.f32 %v1740_v11, %v2294_v24 }
  0xae   : > { %v1744_v28 = vpop.eup %1743  ;;  %v1335_v57 = vpack.c.bf16 %v817_v54, %v817_v54  ;;  %v695_v7 = vadd.f32 1.0, %v1742_v49 }
  0xaf   : > { %v1746_v20 = vpop.eup %1745  ;;  %v1336_v34 = vpack.c.bf16 %v818_v5, %v818_v5  ;;  %v819_v9 = vmul.f32 %v1744_v28, %v2297_v59 }
  0xb0   : > { %v1748_v18 = vpop.eup %1747  ;;  %1138 = vst.msk [vmem:[%s1957_s25 + $0xd4] sm:$0xf] %vm1084_vm0, %v1335_v57  ;;  %1759 = vrcp.f32 %v695_v7  ;;  %v696_v4 = vadd.f32 1.0, %v1746_v20 }
  0xb1   : > { %v1750_v55 = vpop.eup %1749  ;;  %1139 = vst.msk [vmem:[%s1957_s25 + $0xd8] sm:$0xf] %vm1084_vm0, %v1336_v34  ;;  %v1337_v60 = vpack.c.bf16 %v819_v9, %v819_v9  ;;  %v697_v25 = vadd.f32 1.0, %v1748_v18 }
  0xb2   : > { %v1752_v24 = vpop.eup %1751  ;;  %v820_v42 = vmul.f32 %v1750_v55, %v2307_v8  ;;  %1761 = vrcp.f32 %v696_v4 }
  0xb3   : > { %v1754_v47 = vpop.eup %1753  ;;  %1140 = vst.msk [vmem:[%s1957_s25 + $0xdc] sm:$0xf] %vm1084_vm0, %v1337_v60  ;;  %v821_v59 = vmul.f32 %v1752_v24, %v2311_v12  ;;  %1763 = vrcp.f32 %v697_v25 }
  0xb4   : > { %v1756_v6 = vpop.eup %1755  ;;  %v1338_v35 = vpack.c.bf16 %v820_v42, %v820_v42  ;;  %v698_v45 = vadd.f32 1.0, %v1754_v47 }
  0xb5   : > { %v1758_v51 = vpop.eup %1757  ;;  %v1339_v27 = vpack.c.bf16 %v821_v59, %v821_v59  ;;  %v699_v58 = vadd.f32 1.0, %v1756_v6 }
  0xb6   : > { %1141 = vst.msk [vmem:[%s1957_s25 + $0xe0] sm:$0xf] %vm1084_vm0, %v1338_v35  ;;  %v822_v14 = vmul.f32 %v1758_v51, %v2329_v41  ;;  %1765 = vrcp.f32 %v698_v45 }
  0xb7   : > { %1142 = vst.msk [vmem:[%s1957_s25 + $0xe4] sm:$0xf] %vm1084_vm0, %v1339_v27  ;;  %1767 = vrcp.f32 %v699_v58 }
  0xb8   : > { %v1340_v8 = vpack.c.bf16 %v822_v14, %v822_v14 }
  0xba   : > { %v1760_v12 = vpop.eup %1759  ;;  %1143 = vst.msk [vmem:[%s1957_s25 + $0xe8] sm:$0xf] %vm1084_vm0, %v1340_v8 }
  0xbb   : > { %v823_v13 = vmul.f32 %v1760_v12, %v2345_v21 }
  0xbc   : > { %v1762_v16 = vpop.eup %1761 }
  0xbd   : > { %v1764_v44 = vpop.eup %1763  ;;  %v1341_v52 = vpack.c.bf16 %v823_v13, %v823_v13  ;;  %v824_v29 = vmul.f32 %v1762_v16, %v2348_v36 }
  0xbe   : > { %v825_v41 = vmul.f32 %v1764_v44, %v2351_v56 }
  0xbf   : > { %1144 = vst.msk [vmem:[%s1957_s25 + $0xec] sm:$0xf] %vm1084_vm0, %v1341_v52  ;;  %v1342_v39 = vpack.c.bf16 %v824_v29, %v824_v29 }
  0xc0   : > { %v1766_v19 = vpop.eup %1765  ;;  %v1343_v1 = vpack.c.bf16 %v825_v41, %v825_v41 }
  0xc1   : > { %v1768_v30 = vpop.eup %1767  ;;  %1145 = vst.msk [vmem:[%s1957_s25 + $0xf0] sm:$0xf] %vm1084_vm0, %v1342_v39  ;;  %v826_v50 = vmul.f32 %v1766_v19, %v2360_v17 }
  0xc2   : > { %1146 = vst.msk [vmem:[%s1957_s25 + $0xf4] sm:$0xf] %vm1084_vm0, %v1343_v1  ;;  %v827_v21 = vmul.f32 %v1768_v30, %v2366_v23 }
  0xc3   : > { %v1344_v0 = vpack.c.bf16 %v826_v50, %v826_v50 }
  0xc4   : > { %v1345_v32 = vpack.c.bf16 %v827_v21, %v827_v21 }
  0xc5   : > { %1147 = vst.msk [vmem:[%s1957_s25 + $0xf8] sm:$0xf] %vm1084_vm0, %v1344_v0 }
  0xc6   : > { %1148 = vst.msk [vmem:[%s1957_s25 + $0xfc] sm:$0xf] %vm1084_vm0, %v1345_v32 }
  0xc7 PF: > { %s13_s12 = sadd.s32 1, %s1777_s12  }
  0xc8   : > { %p10_p4 = scmp.ge.s32.totalorder %s13_s12, 4  }
  0xca   :  { %12 = sbr.rel (!%p10_p4) target bundleno = 1 (0x1), region = 62 }

// kernel: encoder_forward.44
= control target key start
LH: loop header
LB: loop body
LE: loop exit
PB: predicated region body
PF: predicated region fallthrough
CT: control target
= control target key end

     0   :  { %s2748_s15 = smov 0   ;;  %s2750_s16 = smov 0   ;;  %s2984_s0 = inlined_call_operand.vmem [shape: bf16[1024,128], index: 0, kind: input, shape index: {}]   ;;  %s2985_s1 = inlined_call_operand.vmem [shape: bf16[128,128], index: 1, kind: input, shape index: {}]   ;;  %s2986_s2 = inlined_call_operand.vmem [shape: f32[1,128], index: 2, kind: input, shape index: {}]   ;;  %s2987_s3 = inlined_call_operand.vmem [shape: bf16[1024,128], index: 3, kind: input, shape index: {}]   ;;  %s2988_s4 = inlined_call_operand.vmem [shape: bf16[1024,128], index: 4, kind: output, shape index: {}]  }
   0x1   :  { %s2752_s17 = smov 0  }
   0x2 LB: > { %s33_s18 = sadd.s32 1, %s2717_s16  ;;  %p1971_p0 = scmp.ge.s32.totalorder %s2721_s17, 1  ;;  %s2721_s17 = sphi %s2752_s17, %s14_s17   ;;  %s2717_s16 = sphi %s2750_s16, %s2990_s16   ;;  %s2713_s15 = sphi %s2748_s15, %s2989_s15  }
   0x3   : > { %p35_p1 = scmp.ge.s32.totalorder %s33_s18, 2  ;;  %p229_p2 = scmp.lt.s32.totalorder %s2721_s17, 3 }
   0x5   : > { %s2992_s18 = smov (%p35_p1, %s33_s18), 0  ;;  %p230_p3 = pnand %p1971_p0, %p229_p2 }
   0x6   : > { %v2659_v0 = vld [vmem:[%s2985_s1] sm:$0xff] (!%p230_p3)   ;;  %s1972_s21 = sshll.u32 (!%p230_p3), %s2713_s15, 6  ;;  %v2660_v1 = vld [vmem:[%s2985_s1 + $0x8] sm:$0xff] (!%p230_p3)   ;;  %v2661_v2 = vld [vmem:[%s2985_s1 + $0x10] sm:$0xff] (!%p230_p3)  }
   0x7   : > { %233 = sbr.rel (%p230_p3) target bundleno = 317 (0x13d), region = 36  ;;  %p281_p4 = scmp.lt.s32.totalorder (!%p230_p3), %s1972_s21, 127  ;;  %2539 = vmatprep.subr.bf16.mxu0 (!%p230_p3), %v2659_v0  ;;  %2619 = vmatprep.subr.bf16.mxu1 (!%p230_p3), %v2659_v0  ;;  %v2662_v3 = vld [vmem:[%s2985_s1 + $0x18] sm:$0xff] (!%p230_p3)   ;;  %v2663_v6 = vld [vmem:[%s2985_s1 + $0x20] sm:$0xff] (!%p230_p3)   ;;  %v2664_v7 = vld [vmem:[%s2985_s1 + $0x28] sm:$0xff] (!%p230_p3)  }
   0x8   : > { %2540 = vmatpush3.bf16.msra.mxu0 (!%p230_p3), %v2659_v0  ;;  %2627 = vmatpush3.bf16.msra.mxu1 (!%p230_p3), %v2659_v0  ;;  %v2665_v8 = vld [vmem:[%s2985_s1 + $0x30] sm:$0xff] (!%p230_p3)   ;;  %v2666_v9 = vld [vmem:[%s2985_s1 + $0x38] sm:$0xff] (!%p230_p3)   ;;  %v2843_v44 = vld [vmem:[%s2986_s2] ss:$0 sm:$0xff] (!%p230_p3) }
   0x9   : > { %2541 = vmatprep.subr.bf16.mxu0 (!%p230_p3), %v2660_v1  ;;  %2620 = vmatprep.subr.bf16.mxu1 (!%p230_p3), %v2660_v1 }
   0xc   : > { %2542 = vmatpush3.bf16.msra.mxu0 (!%p230_p3), %v2660_v1  ;;  %2628 = vmatpush3.bf16.msra.mxu1 (!%p230_p3), %v2660_v1 }
   0xd   : > { %2543 = vmatprep.subr.bf16.mxu0 (!%p230_p3), %v2661_v2  ;;  %2621 = vmatprep.subr.bf16.mxu1 (!%p230_p3), %v2661_v2 }
   0xe   : > { %s2994_s21 = smov (!%p281_p4, %s1972_s21), 127 }
   0xf   : > { %s2775_s26 = sshll.u32 %s2994_s21, 2 }
  0x10   : > { %s2781_s29 = scalar_lea.vmem %s2984_s0, %s2775_s26  ;;  %2544 = vmatpush3.bf16.msra.mxu0 %v2661_v2  ;;  %2629 = vmatpush3.bf16.msra.mxu1 %v2661_v2  ;;  %s2834_s19 = scalar_lea.vmem %s2987_s3, %s2775_s26 }
  0x11   : > { %v2667_v4 = vld [vmem:[%s2781_s29] sm:$0xff]   ;;  %2545 = vmatprep.subr.bf16.mxu0 %v2662_v3  ;;  %2622 = vmatprep.subr.bf16.mxu1 %v2662_v3  ;;  %v2669_v10 = vld [vmem:[%s2781_s29 + $0x8] sm:$0xff]   ;;  %v2671_v12 = vld [vmem:[%s2781_s29 + $0x10] sm:$0xff]   ;;  %s2861_s24 = scalar_lea.vmem %s2988_s4, %s2775_s26 }
  0x12   : > { %v2668_v5 = vld [vmem:[%s2781_s29 + $0x80] sm:$0xff]   ;;  %2555 = vmatprep.mubr.bf16.mxu0 %v2667_v4  ;;  %v2670_v11 = vld [vmem:[%s2781_s29 + $0x88] sm:$0xff]   ;;  %v2672_v13 = vld [vmem:[%s2781_s29 + $0x90] sm:$0xff]  }
  0x13   : > { %2587 = vmatprep.mubr.bf16.mxu1 %v2668_v5  ;;  %v2673_v14 = vld [vmem:[%s2781_s29 + $0x18] sm:$0xff]   ;;  %v2675_v16 = vld [vmem:[%s2781_s29 + $0x20] sm:$0xff]   ;;  %v2677_v18 = vld [vmem:[%s2781_s29 + $0x28] sm:$0xff]  }
  0x14   : > { %2546 = vmatpush3.bf16.msra.mxu0 %v2662_v3  ;;  %2630 = vmatpush3.bf16.msra.mxu1 %v2662_v3  ;;  %v2674_v15 = vld [vmem:[%s2781_s29 + $0x98] sm:$0xff]   ;;  %v2676_v17 = vld [vmem:[%s2781_s29 + $0xa0] sm:$0xff]   ;;  %v2678_v19 = vld [vmem:[%s2781_s29 + $0xa8] sm:$0xff]  }
  0x15   : > { %2547 = vmatprep.subr.bf16.mxu0 %v2663_v6  ;;  %2623 = vmatprep.subr.bf16.mxu1 %v2663_v6  ;;  %v2679_v20 = vld [vmem:[%s2781_s29 + $0x30] sm:$0xff]   ;;  %v2681_v22 = vld [vmem:[%s2781_s29 + $0x38] sm:$0xff]   ;;  %v2683_v24 = vld [vmem:[%s2781_s29 + $0x40] sm:$0xff]  }
  0x16   : > { %v2680_v21 = vld [vmem:[%s2781_s29 + $0xb0] sm:$0xff]   ;;  %v2682_v23 = vld [vmem:[%s2781_s29 + $0xb8] sm:$0xff]   ;;  %v2684_v25 = vld [vmem:[%s2781_s29 + $0xc0] sm:$0xff]  }
  0x17   : > { %v2685_v26 = vld [vmem:[%s2781_s29 + $0x48] sm:$0xff]   ;;  %v2687_v28 = vld [vmem:[%s2781_s29 + $0x50] sm:$0xff]   ;;  %v2689_v30 = vld [vmem:[%s2781_s29 + $0x58] sm:$0xff]  }
  0x18   : > { %2548 = vmatpush3.bf16.msra.mxu0 %v2663_v6  ;;  %2631 = vmatpush3.bf16.msra.mxu1 %v2663_v6  ;;  %v2686_v27 = vld [vmem:[%s2781_s29 + $0xc8] sm:$0xff]   ;;  %v2688_v29 = vld [vmem:[%s2781_s29 + $0xd0] sm:$0xff]   ;;  %v2690_v31 = vld [vmem:[%s2781_s29 + $0xd8] sm:$0xff]  }
  0x19   : > { %2549 = vmatprep.subr.bf16.mxu0 %v2664_v7  ;;  %2624 = vmatprep.subr.bf16.mxu1 %v2664_v7  ;;  %v2691_v32 = vld [vmem:[%s2781_s29 + $0x60] sm:$0xff]   ;;  %v2693_v34 = vld [vmem:[%s2781_s29 + $0x68] sm:$0xff]   ;;  %v2695_v36 = vld [vmem:[%s2781_s29 + $0x70] sm:$0xff]  }
  0x1a   : > { %v2692_v33 = vld [vmem:[%s2781_s29 + $0xe0] sm:$0xff]   ;;  %v2694_v35 = vld [vmem:[%s2781_s29 + $0xe8] sm:$0xff]   ;;  %v2696_v37 = vld [vmem:[%s2781_s29 + $0xf0] sm:$0xff]  }
  0x1b   : > { %v2697_v38 = vld [vmem:[%s2781_s29 + $0x78] sm:$0xff]   ;;  %v2437_v40 = vld [vmem:[%s2834_s19 + $0x8] sm:$0xff]   ;;  %v2150_v42 = vld [vmem:[%s2834_s19] sm:$0xff]  }
  0x1c   : > { %2550 = vmatpush3.bf16.msra.mxu0 %v2664_v7  ;;  %2632 = vmatpush3.bf16.msra.mxu1 %v2664_v7  ;;  %v2698_v39 = vld [vmem:[%s2781_s29 + $0xf8] sm:$0xff]   ;;  %v2453_v41 = vld [vmem:[%s2834_s19 + $0x88] sm:$0xff]   ;;  %v2452_v43 = vld [vmem:[%s2834_s19 + $0x80] sm:$0xff]   ;;  %v2155_v46 = vunpack.c.l.bf16 %v2437_v40  ;;  %v2151_v49 = vunpack.c.l.bf16 %v2150_v42  ;;  %v2156_v55 = vunpack.c.h.bf16 %v2437_v40  ;;  %v2152_v61 = vunpack.c.h.bf16 %v2150_v42 }
  0x1d   : > { %2551 = vmatprep.subr.bf16.mxu0 %v2665_v8  ;;  %2625 = vmatprep.subr.bf16.mxu1 %v2665_v8  ;;  %v2219_v48 = vunpack.c.l.bf16 %v2453_v41  ;;  %v2215_v50 = vunpack.c.l.bf16 %v2452_v43  ;;  %v2220_v56 = vunpack.c.h.bf16 %v2453_v41  ;;  %v2216_v62 = vunpack.c.h.bf16 %v2452_v43  ;;  %v2439_v5 = vld [vmem:[%s2834_s19 + $0x18] sm:$0xff]  }
  0x1e   : > { %v2455_v6 = vld [vmem:[%s2834_s19 + $0x98] sm:$0xff]  }
  0x20   : > { %2552 = vmatpush3.bf16.msra.mxu0 %v2665_v8  ;;  %2633 = vmatpush3.bf16.msra.mxu1 %v2665_v8 }
  0x21   : > { %2553 = vmatprep.subr.bf16.mxu0 %v2666_v9  ;;  %2626 = vmatprep.subr.bf16.mxu1 %v2666_v9 }
  0x24   : > { %2554 = vmatpush3.bf16.msra.mxu0 %v2666_v9  ;;  %2634 = vmatpush3.bf16.msra.mxu1 %v2666_v9 }
  0x27   : > { %2556 = vmatmul.mubr.bf16.vlgmr.msra.gmra.mrb[0].mxu0 %v2669_v10  ;;  %2588 = vmatmul.mubr.bf16.vlgmr.msra.gmra.mrb[0].mxu1 %v2670_v11  ;;  %v2438_v11 = vld [vmem:[%s2834_s19 + $0x10] sm:$0xff]  }
  0x28   : > { %2559 = vmatprep.mubr.bf16.mxu0 %v2671_v12  ;;  %2591 = vmatprep.mubr.bf16.mxu1 %v2672_v13  ;;  %v2454_v12 = vld [vmem:[%s2834_s19 + $0x90] sm:$0xff]  }
  0x2f   : > { %2560 = vmatmul.mubr.bf16.gmra.mrb[4].mxu0 %v2673_v14  ;;  %2592 = vmatmul.mubr.bf16.gmra.mrb[4].mxu1 %v2674_v15 }
  0x30   : > { %2563 = vmatprep.mubr.bf16.mxu0 %v2675_v16  ;;  %2595 = vmatprep.mubr.bf16.mxu1 %v2676_v17 }
  0x37   : > { %2564 = vmatmul.mubr.bf16.gmra.mrb[8].mxu0 %v2677_v18  ;;  %2596 = vmatmul.mubr.bf16.gmra.mrb[8].mxu1 %v2678_v19  ;;  %v2163_v19 = vunpack.c.l.bf16 %v2439_v5 }
  0x38   : > { %2567 = vmatprep.mubr.bf16.mxu0 %v2679_v20  ;;  %2599 = vmatprep.mubr.bf16.mxu1 %v2680_v21  ;;  %v2227_v20 = vunpack.c.l.bf16 %v2455_v6 }
  0x3f   : > { %2568 = vmatmul.mubr.bf16.gmra.mrb[12].mxu0 %v2681_v22  ;;  %2600 = vmatmul.mubr.bf16.gmra.mrb[12].mxu1 %v2682_v23 }
  0x40   : > { %2571 = vmatprep.mubr.bf16.mxu0 %v2683_v24  ;;  %2603 = vmatprep.mubr.bf16.mxu1 %v2684_v25  ;;  %v2159_v25 = vunpack.c.l.bf16 %v2438_v11 }
  0x47   : > { %2572 = vmatmul.mubr.bf16.gmra.mrb[16].mxu0 %v2685_v26  ;;  %2604 = vmatmul.mubr.bf16.gmra.mrb[16].mxu1 %v2686_v27  ;;  %v2223_v26 = vunpack.c.l.bf16 %v2454_v12 }
  0x48   : > { %2575 = vmatprep.mubr.bf16.mxu0 %v2687_v28  ;;  %2607 = vmatprep.mubr.bf16.mxu1 %v2688_v29 }
  0x4f   : > { %2576 = vmatmul.mubr.bf16.gmra.mrb[20].mxu0 %v2689_v30  ;;  %2608 = vmatmul.mubr.bf16.gmra.mrb[20].mxu1 %v2690_v31  ;;  %v2164_v31 = vunpack.c.h.bf16 %v2439_v5 }
  0x50   : > { %2579 = vmatprep.mubr.bf16.mxu0 %v2691_v32  ;;  %2611 = vmatprep.mubr.bf16.mxu1 %v2692_v33  ;;  %v2228_v32 = vunpack.c.h.bf16 %v2455_v6 }
  0x57   : > { %2580 = vmatmul.mubr.bf16.gmra.mrb[24].mxu0 %v2693_v34  ;;  %2612 = vmatmul.mubr.bf16.gmra.mrb[24].mxu1 %v2694_v35 }
  0x58   : > { %2583 = vmatprep.mubr.bf16.mxu0 %v2695_v36  ;;  %2615 = vmatprep.mubr.bf16.mxu1 %v2696_v37  ;;  %v2160_v37 = vunpack.c.h.bf16 %v2438_v11 }
  0x5f   : > { %2584 = vmatmul.mubr.bf16.gmra.mrb[28].mxu0 %v2697_v38  ;;  %2616 = vmatmul.mubr.bf16.gmra.mrb[28].mxu1 %v2698_v39  ;;  %v2224_v38 = vunpack.c.h.bf16 %v2454_v12 }
  0xfa   : > { %v2557_v45 = vpop.f32.mrb[0].mxu0  ;;  %v2589_v47 = vpop.f32.mrb[0].mxu1 }
  0xfb   : > { %v1265_v51 = vadd.f32 %v2557_v45, %v2843_v44  ;;  %v1297_v52 = vadd.f32 %v2589_v47, %v2843_v44  ;;  %v806_v53 = vpop.f32.mrb[1].mxu0  ;;  %v934_v54 = vpop.f32.mrb[1].mxu1  ;;  %v2457_v47 = vld [vmem:[%s2834_s19 + $0xa8] sm:$0xff]  }
  0xfc   : > { %v1263_v57 = vadd.f32 %v2843_v44, %v806_v53  ;;  %v1295_v58 = vadd.f32 %v2843_v44, %v934_v54  ;;  %v2558_v59 = vpop.f32.mrb[2].mxu0  ;;  %v2590_v60 = vpop.f32.mrb[2].mxu1  ;;  %v2456_v53 = vld [vmem:[%s2834_s19 + $0xa0] sm:$0xff]  }
  0xfd   : > { %v1266_v63 = vadd.f32 %v2558_v59, %v2843_v44  ;;  %v1298_v0 = vadd.f32 %v2590_v60, %v2843_v44  ;;  %v809_v1 = vpop.f32.mrb[3].mxu0  ;;  %v937_v2 = vpop.f32.mrb[3].mxu1  ;;  %v1457_v7 = vadd.f32 %v2155_v46, %v1265_v51  ;;  %v1489_v8 = vadd.f32 %v2219_v48, %v1297_v52  ;;  %v2441_v46 = vld [vmem:[%s2834_s19 + $0x28] sm:$0xff]   ;;  %v2440_v52 = vld [vmem:[%s2834_s19 + $0x20] sm:$0xff]  }
  0xfe   : > { %v1264_v3 = vadd.f32 %v2843_v44, %v809_v1  ;;  %v1296_v4 = vadd.f32 %v2843_v44, %v937_v2  ;;  %v1455_v13 = vadd.f32 %v2151_v49, %v1263_v57  ;;  %v1487_v14 = vadd.f32 %v2215_v50, %v1295_v58 }
  0xff   : > { %v1458_v9 = vadd.f32 %v2156_v55, %v1266_v63  ;;  %v1490_v10 = vadd.f32 %v2220_v56, %v1298_v0  ;;  %v2171_v60 = vunpack.c.l.bf16 %v2441_v46  ;;  %v2167_v2 = vunpack.c.l.bf16 %v2440_v52 }
 0x100   : > { %v1456_v15 = vadd.f32 %v2152_v61, %v1264_v3  ;;  %v1488_v16 = vadd.f32 %v2216_v62, %v1296_v4  ;;  %v2235_v61 = vunpack.c.l.bf16 %v2457_v47  ;;  %v2231_v3 = vunpack.c.l.bf16 %v2456_v53 }
 0x101   : > { %v2285_v17 = vpack.c.bf16 %v1458_v9, %v1457_v7  ;;  %v2365_v18 = vpack.c.bf16 %v1490_v10, %v1489_v8  ;;  %v2172_v8 = vunpack.c.h.bf16 %v2441_v46  ;;  %v2236_v9 = vunpack.c.h.bf16 %v2457_v47 }
 0x102   : > { %v2280_v21 = vpack.c.bf16 %v1456_v15, %v1455_v13  ;;  %v2360_v22 = vpack.c.bf16 %v1488_v16, %v1487_v14  ;;  %v2561_v23 = vpop.f32.mrb[4].mxu0  ;;  %v2593_v24 = vpop.f32.mrb[4].mxu1  ;;  %v2168_v14 = vunpack.c.h.bf16 %v2440_v52  ;;  %v2232_v15 = vunpack.c.h.bf16 %v2456_v53 }
 0x103   : > { %2468 = vst [vmem:[%s2861_s24 + $0x8] sm:$0xff] %v2285_v17   ;;  %2484 = vst [vmem:[%s2861_s24 + $0x88] sm:$0xff] %v2365_v18   ;;  %v1269_v27 = vadd.f32 %v2561_v23, %v2843_v44  ;;  %v1301_v28 = vadd.f32 %v2593_v24, %v2843_v44  ;;  %v822_v29 = vpop.f32.mrb[5].mxu0  ;;  %v950_v30 = vpop.f32.mrb[5].mxu1  ;;  %v2459_v23 = vld [vmem:[%s2834_s19 + $0xb8] sm:$0xff]  }
 0x104   : > { %2281 = vst [vmem:[%s2861_s24] sm:$0xff] %v2280_v21   ;;  %2483 = vst [vmem:[%s2861_s24 + $0x80] sm:$0xff] %v2360_v22   ;;  %v1267_v33 = vadd.f32 %v2843_v44, %v822_v29  ;;  %v1299_v34 = vadd.f32 %v2843_v44, %v950_v30  ;;  %v2562_v35 = vpop.f32.mrb[6].mxu0  ;;  %v2594_v36 = vpop.f32.mrb[6].mxu1  ;;  %v2443_v22 = vld [vmem:[%s2834_s19 + $0x38] sm:$0xff]   ;;  %v2458_v29 = vld [vmem:[%s2834_s19 + $0xb0] sm:$0xff]  }
 0x105   : > { %v1270_v39 = vadd.f32 %v2562_v35, %v2843_v44  ;;  %v1302_v40 = vadd.f32 %v2594_v36, %v2843_v44  ;;  %v825_v41 = vpop.f32.mrb[7].mxu0  ;;  %v953_v42 = vpop.f32.mrb[7].mxu1  ;;  %v1461_v48 = vadd.f32 %v2163_v19, %v1269_v27  ;;  %v1493_v49 = vadd.f32 %v2227_v20, %v1301_v28  ;;  %v2442_v28 = vld [vmem:[%s2834_s19 + $0x30] sm:$0xff]  }
 0x106   : > { %v1268_v43 = vadd.f32 %v2843_v44, %v825_v41  ;;  %v1300_v45 = vadd.f32 %v2843_v44, %v953_v42  ;;  %v1459_v54 = vadd.f32 %v2159_v25, %v1267_v33  ;;  %v1491_v55 = vadd.f32 %v2223_v26, %v1299_v34 }
 0x107   : > { %v1462_v50 = vadd.f32 %v2164_v31, %v1270_v39  ;;  %v1494_v51 = vadd.f32 %v2228_v32, %v1302_v40  ;;  %v2179_v36 = vunpack.c.l.bf16 %v2443_v22  ;;  %v2175_v42 = vunpack.c.l.bf16 %v2442_v28 }
 0x108   : > { %v1460_v56 = vadd.f32 %v2160_v37, %v1268_v43  ;;  %v1492_v57 = vadd.f32 %v2224_v38, %v1300_v45  ;;  %v2243_v37 = vunpack.c.l.bf16 %v2459_v23  ;;  %v2239_v43 = vunpack.c.l.bf16 %v2458_v29 }
 0x109   : > { %v2295_v58 = vpack.c.bf16 %v1462_v50, %v1461_v48  ;;  %v2375_v59 = vpack.c.bf16 %v1494_v51, %v1493_v49  ;;  %v2180_v49 = vunpack.c.h.bf16 %v2443_v22  ;;  %v2244_v50 = vunpack.c.h.bf16 %v2459_v23 }
 0x10a   : > { %v2290_v62 = vpack.c.bf16 %v1460_v56, %v1459_v54  ;;  %v2370_v63 = vpack.c.bf16 %v1492_v57, %v1491_v55  ;;  %v2565_v0 = vpop.f32.mrb[8].mxu0  ;;  %v2597_v1 = vpop.f32.mrb[8].mxu1  ;;  %v2176_v55 = vunpack.c.h.bf16 %v2442_v28  ;;  %v2240_v56 = vunpack.c.h.bf16 %v2458_v29 }
 0x10b   : > { %2470 = vst [vmem:[%s2861_s24 + $0x18] sm:$0xff] %v2295_v58   ;;  %2486 = vst [vmem:[%s2861_s24 + $0x98] sm:$0xff] %v2375_v59   ;;  %v1273_v4 = vadd.f32 %v2565_v0, %v2843_v44  ;;  %v1305_v5 = vadd.f32 %v2597_v1, %v2843_v44  ;;  %v838_v6 = vpop.f32.mrb[9].mxu0  ;;  %v966_v7 = vpop.f32.mrb[9].mxu1  ;;  %v2461_v0 = vld [vmem:[%s2834_s19 + $0xc8] sm:$0xff]  }
 0x10c   : > { %2469 = vst [vmem:[%s2861_s24 + $0x10] sm:$0xff] %v2290_v62   ;;  %2485 = vst [vmem:[%s2861_s24 + $0x90] sm:$0xff] %v2370_v63   ;;  %v1271_v10 = vadd.f32 %v2843_v44, %v838_v6  ;;  %v1303_v11 = vadd.f32 %v2843_v44, %v966_v7  ;;  %v2566_v12 = vpop.f32.mrb[10].mxu0  ;;  %v2598_v13 = vpop.f32.mrb[10].mxu1  ;;  %v2445_v63 = vld [vmem:[%s2834_s19 + $0x48] sm:$0xff]   ;;  %v2460_v6 = vld [vmem:[%s2834_s19 + $0xc0] sm:$0xff]  }
 0x10d   : > { %v1274_v16 = vadd.f32 %v2566_v12, %v2843_v44  ;;  %v1306_v17 = vadd.f32 %v2598_v13, %v2843_v44  ;;  %v841_v18 = vpop.f32.mrb[11].mxu0  ;;  %v969_v19 = vpop.f32.mrb[11].mxu1  ;;  %v1465_v24 = vadd.f32 %v2171_v60, %v1273_v4  ;;  %v1497_v25 = vadd.f32 %v2235_v61, %v1305_v5  ;;  %v2444_v5 = vld [vmem:[%s2834_s19 + $0x40] sm:$0xff]  }
 0x10e   : > { %v1272_v20 = vadd.f32 %v2843_v44, %v841_v18  ;;  %v1304_v21 = vadd.f32 %v2843_v44, %v969_v19  ;;  %v1463_v30 = vadd.f32 %v2167_v2, %v1271_v10  ;;  %v1495_v31 = vadd.f32 %v2231_v3, %v1303_v11 }
 0x10f   : > { %v1466_v26 = vadd.f32 %v2172_v8, %v1274_v16  ;;  %v1498_v27 = vadd.f32 %v2236_v9, %v1306_v17  ;;  %v2187_v13 = vunpack.c.l.bf16 %v2445_v63  ;;  %v2183_v19 = vunpack.c.l.bf16 %v2444_v5 }
 0x110   : > { %v1464_v32 = vadd.f32 %v2168_v14, %v1272_v20  ;;  %v1496_v33 = vadd.f32 %v2232_v15, %v1304_v21  ;;  %v2251_v14 = vunpack.c.l.bf16 %v2461_v0  ;;  %v2247_v20 = vunpack.c.l.bf16 %v2460_v6 }
 0x111   : > { %v2305_v34 = vpack.c.bf16 %v1466_v26, %v1465_v24  ;;  %v2385_v35 = vpack.c.bf16 %v1498_v27, %v1497_v25  ;;  %v2188_v25 = vunpack.c.h.bf16 %v2445_v63  ;;  %v2252_v26 = vunpack.c.h.bf16 %v2461_v0 }
 0x112   : > { %v2300_v38 = vpack.c.bf16 %v1464_v32, %v1463_v30  ;;  %v2380_v39 = vpack.c.bf16 %v1496_v33, %v1495_v31  ;;  %v2569_v40 = vpop.f32.mrb[12].mxu0  ;;  %v2601_v41 = vpop.f32.mrb[12].mxu1  ;;  %v2184_v31 = vunpack.c.h.bf16 %v2444_v5  ;;  %v2248_v32 = vunpack.c.h.bf16 %v2460_v6 }
 0x113   : > { %2472 = vst [vmem:[%s2861_s24 + $0x28] sm:$0xff] %v2305_v34   ;;  %2488 = vst [vmem:[%s2861_s24 + $0xa8] sm:$0xff] %v2385_v35   ;;  %v1277_v45 = vadd.f32 %v2569_v40, %v2843_v44  ;;  %v1309_v46 = vadd.f32 %v2601_v41, %v2843_v44  ;;  %v854_v47 = vpop.f32.mrb[13].mxu0  ;;  %v982_v48 = vpop.f32.mrb[13].mxu1  ;;  %v2463_v40 = vld [vmem:[%s2834_s19 + $0xd8] sm:$0xff]  }
 0x114   : > { %2471 = vst [vmem:[%s2861_s24 + $0x20] sm:$0xff] %v2300_v38   ;;  %2487 = vst [vmem:[%s2861_s24 + $0xa0] sm:$0xff] %v2380_v39   ;;  %v1275_v51 = vadd.f32 %v2843_v44, %v854_v47  ;;  %v1307_v52 = vadd.f32 %v2843_v44, %v982_v48  ;;  %v2570_v53 = vpop.f32.mrb[14].mxu0  ;;  %v2602_v54 = vpop.f32.mrb[14].mxu1  ;;  %v2447_v39 = vld [vmem:[%s2834_s19 + $0x58] sm:$0xff]   ;;  %v2462_v47 = vld [vmem:[%s2834_s19 + $0xd0] sm:$0xff]  }
 0x115   : > { %v1278_v57 = vadd.f32 %v2570_v53, %v2843_v44  ;;  %v1310_v58 = vadd.f32 %v2602_v54, %v2843_v44  ;;  %v857_v59 = vpop.f32.mrb[15].mxu0  ;;  %v985_v60 = vpop.f32.mrb[15].mxu1  ;;  %v1469_v1 = vadd.f32 %v2179_v36, %v1277_v45  ;;  %v1501_v2 = vadd.f32 %v2243_v37, %v1309_v46  ;;  %v2446_v46 = vld [vmem:[%s2834_s19 + $0x50] sm:$0xff]  }
 0x116   : > { %v1276_v61 = vadd.f32 %v2843_v44, %v857_v59  ;;  %v1308_v62 = vadd.f32 %v2843_v44, %v985_v60  ;;  %v1467_v7 = vadd.f32 %v2175_v42, %v1275_v51  ;;  %v1499_v8 = vadd.f32 %v2239_v43, %v1307_v52 }
 0x117   : > { %v1470_v3 = vadd.f32 %v2180_v49, %v1278_v57  ;;  %v1502_v4 = vadd.f32 %v2244_v50, %v1310_v58  ;;  %v2195_v54 = vunpack.c.l.bf16 %v2447_v39  ;;  %v2191_v60 = vunpack.c.l.bf16 %v2446_v46 }
 0x118   : > { %v1468_v9 = vadd.f32 %v2176_v55, %v1276_v61  ;;  %v1500_v10 = vadd.f32 %v2240_v56, %v1308_v62  ;;  %v2259_v55 = vunpack.c.l.bf16 %v2463_v40  ;;  %v2255_v61 = vunpack.c.l.bf16 %v2462_v47 }
 0x119   : > { %v2315_v11 = vpack.c.bf16 %v1470_v3, %v1469_v1  ;;  %v2395_v12 = vpack.c.bf16 %v1502_v4, %v1501_v2  ;;  %v2196_v2 = vunpack.c.h.bf16 %v2447_v39  ;;  %v2260_v3 = vunpack.c.h.bf16 %v2463_v40 }
 0x11a   : > { %v2310_v15 = vpack.c.bf16 %v1468_v9, %v1467_v7  ;;  %v2390_v16 = vpack.c.bf16 %v1500_v10, %v1499_v8  ;;  %v2573_v17 = vpop.f32.mrb[16].mxu0  ;;  %v2605_v18 = vpop.f32.mrb[16].mxu1  ;;  %v2192_v8 = vunpack.c.h.bf16 %v2446_v46  ;;  %v2256_v9 = vunpack.c.h.bf16 %v2462_v47 }
 0x11b   : > { %2474 = vst [vmem:[%s2861_s24 + $0x38] sm:$0xff] %v2315_v11   ;;  %2490 = vst [vmem:[%s2861_s24 + $0xb8] sm:$0xff] %v2395_v12   ;;  %v1281_v21 = vadd.f32 %v2573_v17, %v2843_v44  ;;  %v1313_v22 = vadd.f32 %v2605_v18, %v2843_v44  ;;  %v870_v23 = vpop.f32.mrb[17].mxu0  ;;  %v998_v24 = vpop.f32.mrb[17].mxu1  ;;  %v2465_v17 = vld [vmem:[%s2834_s19 + $0xe8] sm:$0xff]  }
 0x11c   : > { %2473 = vst [vmem:[%s2861_s24 + $0x30] sm:$0xff] %v2310_v15   ;;  %2489 = vst [vmem:[%s2861_s24 + $0xb0] sm:$0xff] %v2390_v16   ;;  %v1279_v27 = vadd.f32 %v2843_v44, %v870_v23  ;;  %v1311_v28 = vadd.f32 %v2843_v44, %v998_v24  ;;  %v2574_v29 = vpop.f32.mrb[18].mxu0  ;;  %v2606_v30 = vpop.f32.mrb[18].mxu1  ;;  %v2449_v16 = vld [vmem:[%s2834_s19 + $0x68] sm:$0xff]   ;;  %v2464_v23 = vld [vmem:[%s2834_s19 + $0xe0] sm:$0xff]  }
 0x11d   : > { %v1282_v33 = vadd.f32 %v2574_v29, %v2843_v44  ;;  %v1314_v34 = vadd.f32 %v2606_v30, %v2843_v44  ;;  %v873_v35 = vpop.f32.mrb[19].mxu0  ;;  %v1001_v36 = vpop.f32.mrb[19].mxu1  ;;  %v1473_v41 = vadd.f32 %v2187_v13, %v1281_v21  ;;  %v1505_v42 = vadd.f32 %v2251_v14, %v1313_v22  ;;  %v2448_v22 = vld [vmem:[%s2834_s19 + $0x60] sm:$0xff]  }
 0x11e   : > { %v1280_v37 = vadd.f32 %v2843_v44, %v873_v35  ;;  %v1312_v38 = vadd.f32 %v2843_v44, %v1001_v36  ;;  %v1471_v48 = vadd.f32 %v2183_v19, %v1279_v27  ;;  %v1503_v49 = vadd.f32 %v2247_v20, %v1311_v28 }
 0x11f   : > { %v1474_v43 = vadd.f32 %v2188_v25, %v1282_v33  ;;  %v1506_v45 = vadd.f32 %v2252_v26, %v1314_v34  ;;  %v2203_v30 = vunpack.c.l.bf16 %v2449_v16  ;;  %v2199_v36 = vunpack.c.l.bf16 %v2448_v22 }
 0x120   : > { %v1472_v50 = vadd.f32 %v2184_v31, %v1280_v37  ;;  %v1504_v51 = vadd.f32 %v2248_v32, %v1312_v38  ;;  %v2267_v31 = vunpack.c.l.bf16 %v2465_v17  ;;  %v2263_v37 = vunpack.c.l.bf16 %v2464_v23 }
 0x121   : > { %v2325_v52 = vpack.c.bf16 %v1474_v43, %v1473_v41  ;;  %v2405_v53 = vpack.c.bf16 %v1506_v45, %v1505_v42  ;;  %v2204_v42 = vunpack.c.h.bf16 %v2449_v16  ;;  %v2268_v43 = vunpack.c.h.bf16 %v2465_v17 }
 0x122   : > { %v2320_v56 = vpack.c.bf16 %v1472_v50, %v1471_v48  ;;  %v2400_v57 = vpack.c.bf16 %v1504_v51, %v1503_v49  ;;  %v2577_v58 = vpop.f32.mrb[20].mxu0  ;;  %v2609_v59 = vpop.f32.mrb[20].mxu1  ;;  %v2200_v49 = vunpack.c.h.bf16 %v2448_v22  ;;  %v2264_v50 = vunpack.c.h.bf16 %v2464_v23 }
 0x123   : > { %2476 = vst [vmem:[%s2861_s24 + $0x48] sm:$0xff] %v2325_v52   ;;  %2492 = vst [vmem:[%s2861_s24 + $0xc8] sm:$0xff] %v2405_v53   ;;  %v1285_v62 = vadd.f32 %v2577_v58, %v2843_v44  ;;  %v1317_v63 = vadd.f32 %v2609_v59, %v2843_v44  ;;  %v886_v0 = vpop.f32.mrb[21].mxu0  ;;  %v1014_v1 = vpop.f32.mrb[21].mxu1  ;;  %v2467_v58 = vld [vmem:[%s2834_s19 + $0xf8] sm:$0xff]  }
 0x124   : > { %2475 = vst [vmem:[%s2861_s24 + $0x40] sm:$0xff] %v2320_v56   ;;  %2491 = vst [vmem:[%s2861_s24 + $0xc0] sm:$0xff] %v2400_v57   ;;  %v1283_v4 = vadd.f32 %v2843_v44, %v886_v0  ;;  %v1315_v5 = vadd.f32 %v2843_v44, %v1014_v1  ;;  %v2578_v6 = vpop.f32.mrb[22].mxu0  ;;  %v2610_v7 = vpop.f32.mrb[22].mxu1  ;;  %v2451_v57 = vld [vmem:[%s2834_s19 + $0x78] sm:$0xff]   ;;  %v2466_v0 = vld [vmem:[%s2834_s19 + $0xf0] sm:$0xff]  }
 0x125   : > { %v1286_v10 = vadd.f32 %v2578_v6, %v2843_v44  ;;  %v1318_v11 = vadd.f32 %v2610_v7, %v2843_v44  ;;  %v889_v12 = vpop.f32.mrb[23].mxu0  ;;  %v1017_v13 = vpop.f32.mrb[23].mxu1  ;;  %v1477_v18 = vadd.f32 %v2195_v54, %v1285_v62  ;;  %v1509_v19 = vadd.f32 %v2259_v55, %v1317_v63  ;;  %v2450_v63 = vld [vmem:[%s2834_s19 + $0x70] sm:$0xff]  }
 0x126   : > { %v1284_v14 = vadd.f32 %v2843_v44, %v889_v12  ;;  %v1316_v15 = vadd.f32 %v2843_v44, %v1017_v13  ;;  %v1475_v24 = vadd.f32 %v2191_v60, %v1283_v4  ;;  %v1507_v25 = vadd.f32 %v2255_v61, %v1315_v5 }
 0x127   : > { %v1478_v20 = vadd.f32 %v2196_v2, %v1286_v10  ;;  %v1510_v21 = vadd.f32 %v2260_v3, %v1318_v11  ;;  %v2211_v7 = vunpack.c.l.bf16 %v2451_v57  ;;  %v2207_v13 = vunpack.c.l.bf16 %v2450_v63 }
 0x128   : > { %v1476_v26 = vadd.f32 %v2192_v8, %v1284_v14  ;;  %v1508_v27 = vadd.f32 %v2256_v9, %v1316_v15  ;;  %v2275_v8 = vunpack.c.l.bf16 %v2467_v58  ;;  %v2271_v14 = vunpack.c.l.bf16 %v2466_v0 }
 0x129   : > { %v2335_v28 = vpack.c.bf16 %v1478_v20, %v1477_v18  ;;  %v2415_v29 = vpack.c.bf16 %v1510_v21, %v1509_v19  ;;  %v2212_v19 = vunpack.c.h.bf16 %v2451_v57  ;;  %v2276_v20 = vunpack.c.h.bf16 %v2467_v58 }
 0x12a   : > { %v2330_v32 = vpack.c.bf16 %v1476_v26, %v1475_v24  ;;  %v2410_v33 = vpack.c.bf16 %v1508_v27, %v1507_v25  ;;  %v2581_v34 = vpop.f32.mrb[24].mxu0  ;;  %v2613_v35 = vpop.f32.mrb[24].mxu1  ;;  %v2208_v25 = vunpack.c.h.bf16 %v2450_v63  ;;  %v2272_v26 = vunpack.c.h.bf16 %v2466_v0 }
 0x12b   : > { %2478 = vst [vmem:[%s2861_s24 + $0x58] sm:$0xff] %v2335_v28   ;;  %2494 = vst [vmem:[%s2861_s24 + $0xd8] sm:$0xff] %v2415_v29   ;;  %v1289_v38 = vadd.f32 %v2581_v34, %v2843_v44  ;;  %v1321_v39 = vadd.f32 %v2613_v35, %v2843_v44  ;;  %v902_v40 = vpop.f32.mrb[25].mxu0  ;;  %v1030_v41 = vpop.f32.mrb[25].mxu1 }
 0x12c   : > { %2477 = vst [vmem:[%s2861_s24 + $0x50] sm:$0xff] %v2330_v32   ;;  %2493 = vst [vmem:[%s2861_s24 + $0xd0] sm:$0xff] %v2410_v33   ;;  %v1287_v45 = vadd.f32 %v2843_v44, %v902_v40  ;;  %v1319_v46 = vadd.f32 %v2843_v44, %v1030_v41  ;;  %v2582_v47 = vpop.f32.mrb[26].mxu0  ;;  %v2614_v48 = vpop.f32.mrb[26].mxu1 }
 0x12d   : > { %v1290_v51 = vadd.f32 %v2582_v47, %v2843_v44  ;;  %v1322_v52 = vadd.f32 %v2614_v48, %v2843_v44  ;;  %v905_v53 = vpop.f32.mrb[27].mxu0  ;;  %v1033_v54 = vpop.f32.mrb[27].mxu1  ;;  %v1481_v59 = vadd.f32 %v2203_v30, %v1289_v38  ;;  %v1513_v60 = vadd.f32 %v2267_v31, %v1321_v39 }
 0x12e   : > { %v1288_v55 = vadd.f32 %v2843_v44, %v905_v53  ;;  %v1320_v56 = vadd.f32 %v2843_v44, %v1033_v54  ;;  %v1479_v1 = vadd.f32 %v2199_v36, %v1287_v45  ;;  %v1511_v2 = vadd.f32 %v2263_v37, %v1319_v46 }
 0x12f   : > { %v1482_v61 = vadd.f32 %v2204_v42, %v1290_v51  ;;  %v1514_v62 = vadd.f32 %v2268_v43, %v1322_v52 }
 0x130   : > { %v1480_v3 = vadd.f32 %v2200_v49, %v1288_v55  ;;  %v1512_v4 = vadd.f32 %v2264_v50, %v1320_v56 }
 0x131   : > { %v2345_v5 = vpack.c.bf16 %v1482_v61, %v1481_v59  ;;  %v2425_v6 = vpack.c.bf16 %v1514_v62, %v1513_v60 }
 0x132   : > { %v2340_v9 = vpack.c.bf16 %v1480_v3, %v1479_v1  ;;  %v2420_v10 = vpack.c.bf16 %v1512_v4, %v1511_v2  ;;  %v2585_v11 = vpop.f32.mrb[28].mxu0  ;;  %v2617_v12 = vpop.f32.mrb[28].mxu1 }
 0x133   : > { %2480 = vst [vmem:[%s2861_s24 + $0x68] sm:$0xff] %v2345_v5   ;;  %2496 = vst [vmem:[%s2861_s24 + $0xe8] sm:$0xff] %v2425_v6   ;;  %v1293_v15 = vadd.f32 %v2585_v11, %v2843_v44  ;;  %v1325_v16 = vadd.f32 %v2617_v12, %v2843_v44  ;;  %v918_v17 = vpop.f32.mrb[29].mxu0  ;;  %v1046_v18 = vpop.f32.mrb[29].mxu1 }
 0x134   : > { %2479 = vst [vmem:[%s2861_s24 + $0x60] sm:$0xff] %v2340_v9   ;;  %2495 = vst [vmem:[%s2861_s24 + $0xe0] sm:$0xff] %v2420_v10   ;;  %v1291_v21 = vadd.f32 %v2843_v44, %v918_v17  ;;  %v1323_v22 = vadd.f32 %v2843_v44, %v1046_v18  ;;  %v2586_v23 = vpop.f32.mrb[30].mxu0  ;;  %v2618_v24 = vpop.f32.mrb[30].mxu1 }
 0x135   : > { %v1294_v27 = vadd.f32 %v2586_v23, %v2843_v44  ;;  %v1326_v28 = vadd.f32 %v2618_v24, %v2843_v44  ;;  %v921_v29 = vpop.f32.mrb[31].mxu0  ;;  %v1049_v30 = vpop.f32.mrb[31].mxu1  ;;  %v1485_v33 = vadd.f32 %v2211_v7, %v1293_v15  ;;  %v1517_v34 = vadd.f32 %v2275_v8, %v1325_v16 }
 0x136   : > { %v1292_v31 = vadd.f32 %v2843_v44, %v921_v29  ;;  %v1324_v32 = vadd.f32 %v2843_v44, %v1049_v30  ;;  %v1483_v37 = vadd.f32 %v2207_v13, %v1291_v21  ;;  %v1515_v38 = vadd.f32 %v2271_v14, %v1323_v22 }
 0x137   : > { %v1486_v35 = vadd.f32 %v2212_v19, %v1294_v27  ;;  %v1518_v36 = vadd.f32 %v2276_v20, %v1326_v28 }
 0x138   : > { %v1484_v39 = vadd.f32 %v2208_v25, %v1292_v31  ;;  %v1516_v40 = vadd.f32 %v2272_v26, %v1324_v32 }
 0x139   : > { %v2355_v41 = vpack.c.bf16 %v1486_v35, %v1485_v33  ;;  %v2435_v42 = vpack.c.bf16 %v1518_v36, %v1517_v34 }
 0x13a   : > { %v2350_v43 = vpack.c.bf16 %v1484_v39, %v1483_v37  ;;  %v2430_v45 = vpack.c.bf16 %v1516_v40, %v1515_v38 }
 0x13b   : > { %2482 = vst [vmem:[%s2861_s24 + $0x78] sm:$0xff] %v2355_v41   ;;  %2498 = vst [vmem:[%s2861_s24 + $0xf8] sm:$0xff] %v2435_v42  }
 0x13c   : > { %2481 = vst [vmem:[%s2861_s24 + $0x70] sm:$0xff] %v2350_v43   ;;  %2497 = vst [vmem:[%s2861_s24 + $0xf0] sm:$0xff] %v2430_v45  }
 0x13d PF: > { %s14_s17 = sadd.s32 1, %s2721_s17   ;;  %s2989_s15 = smov %s2717_s16 }
 0x13e   : > { %p11_p5 = scmp.ge.s32.totalorder %s14_s17, 4   ;;  %s2990_s16 = smov %s2992_s18 }
 0x140   :  { %13 = sbr.rel (!%p11_p5) target bundleno = 2 (0x2), region = 83 }

// kernel: encoder_forward.46
= control target key start
LH: loop header
LB: loop body
LE: loop exit
PB: predicated region body
PF: predicated region fallthrough
CT: control target
= control target key end

     0   :  { %s424_s9 = smov 0   ;;  %s426_s10 = smov 0   ;;  %s490_s0 = inlined_call_operand.vmem [shape: bf16[128,4], index: 0, kind: input, shape index: {}]   ;;  %s491_s1 = inlined_call_operand.vmem [shape: f32[2,1,4], index: 1, kind: output, shape index: {0}]   ;;  %s492_s2 = inlined_call_operand.vmem [shape: f32[2,1,4], index: 2, kind: output, shape index: {1}]  }
   0x1   :  { %s428_s11 = smov 0  }
   0x2 LB: > { %s25_s12 = sadd.s32 1, %s402_s10  ;;  %p335_p0 = scmp.ge.s32.totalorder %s406_s11, 1  ;;  %s406_s11 = sphi %s428_s11, %s13_s11   ;;  %s402_s10 = sphi %s426_s10, %s494_s10   ;;  %s398_s9 = sphi %s424_s9, %s493_s9  }
   0x3   : > { %p27_p1 = scmp.ge.s32.totalorder %s25_s12, 2  ;;  %p132_p2 = scmp.lt.s32.totalorder %s406_s11, 3 }
   0x5   : > { %s496_s12 = smov (%p27_p1, %s25_s12), 0  ;;  %p133_p3 = pnand %p335_p0, %p132_p2 }
   0x6   : > { %s336_s13 = sshll.u32 (!%p133_p3), %s398_s9, 3  ;;  %p164_p4 = scmp.lt.s32.totalorder (!%p133_p3), %s398_s9, 1  ;;  %vm174_vm0 = vcmask (!%p133_p3), 24576   ;;  %v408_v0 = vmov (!%p133_p3), 0.0   ;;  %vm194_vm1 = vcmask (!%p133_p3), 31744  }
   0x7   : > { %136 = sbr.rel (%p133_p3) target bundleno = 54 (0x36), region = 24  ;;  %p158_p5 = scmp.lt.s32.totalorder (!%p133_p3), %s336_s13, 15 }
   0xe   : > { %s498_s9 = smov (!%p164_p4, %s398_s9), 1  ;;  %s500_s13 = smov (!%p158_p5, %s336_s13), 15 }
   0xf   : > { %s445_s16 = scalar_lea.vmem %s491_s1, %s498_s9  ;;  %s450_s19 = scalar_lea.vmem %s492_s2, %s498_s9 }
  0x10   : > { %s337_s20 = sshll.u32 %s500_s13, 2  ;;  %175 = vst.msk [vmem:[%s445_s16] sm:$0x1] %vm174_vm0, %v408_v0  ;;  %176 = vst.msk [vmem:[%s450_s19] sm:$0x1] %vm174_vm0, %v408_v0 }
  0x11   : > { %s161_s23 = scalar_lea.vmem %s490_s0, %s337_s20 }
  0x12   : > { %v341_v1 = vld [vmem:[%s161_s23] sm:$0xff]   ;;  %v356_v2 = vld [vmem:[%s161_s23 + $0x8] sm:$0xff]   ;;  %v357_v3 = vld [vmem:[%s161_s23 + $0x10] sm:$0xff]  }
  0x13   : > { %v342_v4 = vunpack.c.l.bf16 %v341_v1  ;;  %v343_v5 = vunpack.c.h.bf16 %v341_v1  ;;  %v346_v6 = vunpack.c.l.bf16 %v356_v2  ;;  %v347_v7 = vunpack.c.h.bf16 %v356_v2  ;;  %v358_v9 = vld [vmem:[%s161_s23 + $0x18] sm:$0xff]  }
  0x14   : > { %v350_v8 = vunpack.c.l.bf16 %v357_v3  ;;  %v351_v13 = vunpack.c.h.bf16 %v357_v3  ;;  %v354_v19 = vunpack.c.l.bf16 %v358_v9  ;;  %v355_v29 = vunpack.c.h.bf16 %v358_v9 }
  0x15   : > { %v195_v10 = vsel %vm194_vm1, %v342_v4, 0.0  ;;  %v196_v11 = vsel %vm194_vm1, %v343_v5, 0.0  ;;  %v198_v12 = vsel %vm194_vm1, %v346_v6, 0.0  ;;  %v200_v15 = vsel %vm194_vm1, %v347_v7, 0.0 }
  0x16   : > { %v197_v14 = vadd.f32 %v196_v11, %v195_v10  ;;  %v220_v16 = vmul.f32 %v342_v4, %v342_v4  ;;  %v221_v17 = vmul.f32 %v343_v5, %v343_v5  ;;  %v222_v18 = vmul.f32 %v346_v6, %v346_v6 }
  0x17   : > { %v223_v21 = vmul.f32 %v347_v7, %v347_v7  ;;  %v202_v22 = vsel %vm194_vm1, %v350_v8, 0.0  ;;  %v224_v23 = vmul.f32 %v350_v8, %v350_v8  ;;  %v204_v30 = vsel %vm194_vm1, %v351_v13, 0.0  ;;  %v193_v59 = vld [vmem:[%s445_s16] sm:$0x1] }
  0x18   : > { %v199_v20 = vadd.f32 %v198_v12, %v197_v14  ;;  %v228_v24 = vsel %vm194_vm1, %v220_v16, 0.0  ;;  %v229_v25 = vsel %vm194_vm1, %v221_v17, 0.0  ;;  %v231_v28 = vsel %vm194_vm1, %v222_v18, 0.0  ;;  %v219_v0 = vld [vmem:[%s450_s19] sm:$0x1] }
  0x19   : > { %v230_v27 = vadd.f32 %v229_v25, %v228_v24  ;;  %v225_v31 = vmul.f32 %v351_v13, %v351_v13  ;;  %v233_v32 = vsel %vm194_vm1, %v223_v21, 0.0  ;;  %v206_v35 = vsel %vm194_vm1, %v354_v19, 0.0 }
  0x1a   : > { %v201_v26 = vadd.f32 %v200_v15, %v199_v20  ;;  %v226_v36 = vmul.f32 %v354_v19, %v354_v19  ;;  %v235_v37 = vsel %vm194_vm1, %v224_v23, 0.0  ;;  %v208_v40 = vsel %vm194_vm1, %v355_v29, 0.0 }
  0x1b   : > { %v232_v34 = vadd.f32 %v231_v28, %v230_v27  ;;  %v227_v41 = vmul.f32 %v355_v29, %v355_v29  ;;  %v237_v42 = vsel %vm194_vm1, %v225_v31, 0.0 }
  0x1c   : > { %v203_v33 = vadd.f32 %v202_v22, %v201_v26  ;;  %v239_v45 = vsel %vm194_vm1, %v226_v36, 0.0 }
  0x1d   : > { %v234_v39 = vadd.f32 %v233_v32, %v232_v34  ;;  %v241_v48 = vsel %vm194_vm1, %v227_v41, 0.0 }
  0x1e   : > { %v205_v38 = vadd.f32 %v204_v30, %v203_v33 }
  0x1f   : > { %v236_v44 = vadd.f32 %v235_v37, %v234_v39 }
  0x20   : > { %v207_v43 = vadd.f32 %v206_v35, %v205_v38 }
  0x21   : > { %v238_v47 = vadd.f32 %v237_v42, %v236_v44 }
  0x22   : > { %v209_v46 = vadd.f32 %v208_v40, %v207_v43 }
  0x23   : > { %v240_v50 = vadd.f32 %v239_v45, %v238_v47 }
  0x24   : > { %v210_v49 = vrot.slane %v209_v46, 4 }
  0x25   : > { %v242_v52 = vadd.f32 %v241_v48, %v240_v50 }
  0x26   : > { %v211_v51 = vadd.f32 %v210_v49, %v209_v46 }
  0x27   : > { %v243_v54 = vrot.slane %v242_v52, 4 }
  0x28   : > { %v212_v53 = vrot.slane %v211_v51, 2 }
  0x29   : > { %v244_v56 = vadd.f32 %v243_v54, %v242_v52 }
  0x2a   : > { %v213_v55 = vadd.f32 %v212_v53, %v211_v51 }
  0x2b   : > { %v245_v58 = vrot.slane %v244_v56, 2 }
  0x2c   : > { %v214_v57 = vrot.slane %v213_v55, 1 }
  0x2d   : > { %v246_v61 = vadd.f32 %v245_v58, %v244_v56 }
  0x2e   : > { %v215_v60 = vadd.f32 %v214_v57, %v213_v55 }
  0x2f   : > { %v247_v63 = vrot.slane %v246_v61, 1 }
  0x30   : > { %v216_v62 = vadd.f32 %v215_v60, %v193_v59 }
  0x31   : > { %v248_v1 = vadd.f32 %v247_v63, %v246_v61 }
  0x32   : > { %218 = vst.msk [vmem:[%s445_s16] sm:$0x1] %vm174_vm0, %v216_v62 }
  0x33   : > { %v249_v2 = vadd.f32 %v248_v1, %v219_v0 }
  0x35   : > { %250 = vst.msk [vmem:[%s450_s19] sm:$0x1] %vm174_vm0, %v249_v2 }
  0x36 PF: > { %s13_s11 = sadd.s32 1, %s406_s11   ;;  %s493_s9 = smov %s402_s10 }
  0x37   : > { %p10_p6 = scmp.ge.s32.totalorder %s13_s11, 4   ;;  %s494_s10 = smov %s496_s12 }
  0x39   :  { %12 = sbr.rel (!%p10_p6) target bundleno = 2 (0x2), region = 70 }

// kernel: encoder_forward.45
= control target key start
LH: loop header
LB: loop body
LE: loop exit
PB: predicated region body
PF: predicated region fallthrough
CT: control target
= control target key end

     0   :  { %s469_s1 = inlined_call_operand.vmem [shape: bf16[128,128], index: 1, kind: input, shape index: {}]   ;;  %s470_s0 = inlined_call_operand.vmem [shape: bf16[64,128], index: 0, kind: input, shape index: {}]   ;;  %s471_s2 = inlined_call_operand.vmem [shape: f32[1,128], index: 2, kind: input, shape index: {}]   ;;  %s472_s3 = inlined_call_operand.vmem [shape: bf16[64,128], index: 3, kind: output, shape index: {}]  }
   0x1   :  { %v386_v0 = vld [vmem:[%s469_s1] sm:$0xff]   ;;  %v387_v1 = vld [vmem:[%s469_s1 + $0x8] sm:$0xff]   ;;  %v388_v2 = vld [vmem:[%s469_s1 + $0x10] sm:$0xff]  }
   0x2   :  { %346 = vmatprep.subr.bf16.mxu0 %v386_v0  ;;  %370 = vmatprep.subr.bf16.mxu1 %v386_v0  ;;  %v389_v3 = vld [vmem:[%s469_s1 + $0x18] sm:$0xff]   ;;  %v394_v4 = vld [vmem:[%s470_s0] sm:$0xff]   ;;  %v395_v5 = vld [vmem:[%s470_s0 + $0x10] sm:$0xff]  }
   0x3   :  { %347 = vmatpush3.bf16.msra.mxu0 %v386_v0  ;;  %378 = vmatpush3.bf16.msra.mxu1 %v386_v0  ;;  %v390_v6 = vld [vmem:[%s469_s1 + $0x20] sm:$0xff]   ;;  %v391_v7 = vld [vmem:[%s469_s1 + $0x28] sm:$0xff]   ;;  %v392_v8 = vld [vmem:[%s469_s1 + $0x30] sm:$0xff]  }
   0x4   :  { %348 = vmatprep.subr.bf16.mxu0 %v387_v1  ;;  %371 = vmatprep.subr.bf16.mxu1 %v387_v1  ;;  %v393_v9 = vld [vmem:[%s469_s1 + $0x38] sm:$0xff]   ;;  %v396_v10 = vld [vmem:[%s470_s0 + $0x8] sm:$0xff]   ;;  %v294_v13 = vld [vmem:[%s471_s2] ss:$0 sm:$0xff] }
   0x5   :  { %362 = vmatprep.mubr.bf16.mxu0 %v394_v4  ;;  %366 = vmatprep.mubr.bf16.mxu1 %v395_v5  ;;  %v397_v11 = vld [vmem:[%s470_s0 + $0x18] sm:$0xff]  }
   0x7   :  { %349 = vmatpush3.bf16.msra.mxu0 %v387_v1  ;;  %379 = vmatpush3.bf16.msra.mxu1 %v387_v1 }
   0x8   :  { %350 = vmatprep.subr.bf16.mxu0 %v388_v2  ;;  %372 = vmatprep.subr.bf16.mxu1 %v388_v2 }
   0xb   :  { %351 = vmatpush3.bf16.msra.mxu0 %v388_v2  ;;  %380 = vmatpush3.bf16.msra.mxu1 %v388_v2 }
   0xc   :  { %352 = vmatprep.subr.bf16.mxu0 %v389_v3  ;;  %373 = vmatprep.subr.bf16.mxu1 %v389_v3 }
   0xf   :  { %353 = vmatpush3.bf16.msra.mxu0 %v389_v3  ;;  %381 = vmatpush3.bf16.msra.mxu1 %v389_v3 }
  0x10   :  { %354 = vmatprep.subr.bf16.mxu0 %v390_v6  ;;  %374 = vmatprep.subr.bf16.mxu1 %v390_v6 }
  0x13   :  { %355 = vmatpush3.bf16.msra.mxu0 %v390_v6  ;;  %382 = vmatpush3.bf16.msra.mxu1 %v390_v6 }
  0x14   :  { %356 = vmatprep.subr.bf16.mxu0 %v391_v7  ;;  %375 = vmatprep.subr.bf16.mxu1 %v391_v7 }
  0x17   :  { %357 = vmatpush3.bf16.msra.mxu0 %v391_v7  ;;  %383 = vmatpush3.bf16.msra.mxu1 %v391_v7 }
  0x18   :  { %358 = vmatprep.subr.bf16.mxu0 %v392_v8  ;;  %376 = vmatprep.subr.bf16.mxu1 %v392_v8 }
  0x1b   :  { %359 = vmatpush3.bf16.msra.mxu0 %v392_v8  ;;  %384 = vmatpush3.bf16.msra.mxu1 %v392_v8 }
  0x1c   :  { %360 = vmatprep.subr.bf16.mxu0 %v393_v9  ;;  %377 = vmatprep.subr.bf16.mxu1 %v393_v9 }
  0x1f   :  { %361 = vmatpush3.bf16.msra.mxu0 %v393_v9  ;;  %385 = vmatpush3.bf16.msra.mxu1 %v393_v9 }
  0x22   :  { %363 = vmatmul.mubr.bf16.vlgmr.msra.gmra.mrb[0].mxu0 %v396_v10  ;;  %367 = vmatmul.mubr.bf16.vlgmr.msra.gmra.mrb[0].mxu1 %v397_v11 }
  0xf5   :  { %v364_v12 = vpop.f32.mrb[0].mxu0  ;;  %v368_v14 = vpop.f32.mrb[0].mxu1 }
  0xf6   :  { %v165_v15 = vpop.f32.mrb[1].mxu0  ;;  %v181_v16 = vpop.f32.mrb[1].mxu1  ;;  %v232_v19 = vadd.f32 %v364_v12, %v294_v13  ;;  %v236_v20 = vadd.f32 %v368_v14, %v294_v13 }
  0xf7   :  { %v365_v17 = vpop.f32.mrb[2].mxu0  ;;  %v369_v18 = vpop.f32.mrb[2].mxu1  ;;  %v230_v25 = vadd.f32 %v294_v13, %v165_v15  ;;  %v234_v26 = vadd.f32 %v294_v13, %v181_v16 }
  0xf8   :  { %v233_v21 = vadd.f32 %v365_v17, %v294_v13  ;;  %v237_v22 = vadd.f32 %v369_v18, %v294_v13  ;;  %v168_v23 = vpop.f32.mrb[3].mxu0  ;;  %v184_v24 = vpop.f32.mrb[3].mxu1 }
  0xf9   :  { %v231_v27 = vadd.f32 %v294_v13, %v168_v23  ;;  %v235_v28 = vadd.f32 %v294_v13, %v184_v24 }
  0xfa   :  { %v319_v29 = vpack.c.bf16 %v233_v21, %v232_v19  ;;  %v329_v30 = vpack.c.bf16 %v237_v22, %v236_v20 }
  0xfb   :  { %v314_v31 = vpack.c.bf16 %v231_v27, %v230_v25  ;;  %v324_v32 = vpack.c.bf16 %v235_v28, %v234_v26 }
  0xfc   :  { %331 = vst [vmem:[%s472_s3 + $0x8] sm:$0xff] %v319_v29   ;;  %333 = vst [vmem:[%s472_s3 + $0x18] sm:$0xff] %v329_v30  }
  0xfd   :  { %315 = vst [vmem:[%s472_s3] sm:$0xff] %v314_v31   ;;  %332 = vst [vmem:[%s472_s3 + $0x10] sm:$0xff] %v324_v32  }

// kernel: encoder_forward.47
= control target key start
LH: loop header
LB: loop body
LE: loop exit
PB: predicated region body
PF: predicated region fallthrough
CT: control target
= control target key end

     0   :  { %s481_s12 = smov 0   ;;  %s543_s0 = inlined_call_operand.vmem [shape: bf16[128,4], index: 0, kind: input, shape index: {}]   ;;  %s544_s1 = inlined_call_operand.vmem [shape: f32[1,4], index: 1, kind: input, shape index: {}]   ;;  %s545_s2 = inlined_call_operand.vmem [shape: f32[1,4], index: 2, kind: input, shape index: {}]   ;;  %s546_s3 = inlined_call_operand.vmem [shape: bf16[128,4], index: 3, kind: output, shape index: {}]  }
   0x1 LB: > { %s365_s13 = sadd.s32 4294967295, %s459_s12   ;;  %p369_p0 = scmp.ge.s32.totalorder %s459_s12, 1  ;;  %s459_s12 = sphi %s481_s12, %s13_s12  }
   0x2   : > { %p138_p1 = scmp.lt.s32.totalorder %s459_s12, 3 }
   0x4   : > { %p139_p2 = pnand %p369_p0, %p138_p1 }
   0x5   : > { %s370_s14 = sshll.u32 (!%p139_p2), %s365_s13, 3  ;;  %v374_v0 = vld [vmem:[%s544_s1] ss:$0 sm:$0xff] (!%p139_p2)  ;;  %vm300_vm0 = vcmask (!%p139_p2), 27648  }
   0x6   : > { %142 = sbr.rel (%p139_p2) target bundleno = 63 (0x3f), region = 32  ;;  %p163_p3 = scmp.lt.s32.totalorder (!%p139_p2), %s370_s14, 15  ;;  %v375_v9 = vld [vmem:[%s545_s2] ss:$0 sm:$0xff] (!%p139_p2) }
   0xd   : > { %s548_s14 = smov (!%p163_p3, %s370_s14), 15 }
   0xe   : > { %s371_s15 = sshll.u32 %s548_s14, 2 }
   0xf   : > { %s166_s18 = scalar_lea.vmem %s543_s0, %s371_s15  ;;  %s172_s25 = scalar_lea.vmem %s546_s3, %s371_s15 }
  0x10   : > { %v395_v1 = vld [vmem:[%s166_s18] sm:$0xff]   ;;  %v410_v2 = vld [vmem:[%s166_s18 + $0x8] sm:$0xff]   ;;  %v411_v3 = vld [vmem:[%s166_s18 + $0x10] sm:$0xff]  }
  0x11   : > { %v396_v4 = vunpack.c.l.bf16 %v395_v1  ;;  %v397_v5 = vunpack.c.h.bf16 %v395_v1  ;;  %v400_v6 = vunpack.c.l.bf16 %v410_v2  ;;  %v401_v7 = vunpack.c.h.bf16 %v410_v2  ;;  %v412_v8 = vld [vmem:[%s166_s18 + $0x18] sm:$0xff]  }
  0x12   : > { %v404_v10 = vunpack.c.l.bf16 %v411_v3  ;;  %v405_v11 = vunpack.c.h.bf16 %v411_v3  ;;  %v408_v12 = vunpack.c.l.bf16 %v412_v8  ;;  %v409_v13 = vunpack.c.h.bf16 %v412_v8 }
  0x13   : > { %v197_v14 = vmul.f32 %v396_v4, %v374_v0  ;;  %v198_v15 = vmul.f32 %v397_v5, %v374_v0  ;;  %v199_v16 = vmul.f32 %v400_v6, %v374_v0  ;;  %v200_v17 = vmul.f32 %v401_v7, %v374_v0 }
  0x14   : > { %v201_v18 = vmul.f32 %v404_v10, %v374_v0  ;;  %v202_v19 = vmul.f32 %v405_v11, %v374_v0  ;;  %v203_v20 = vmul.f32 %v408_v12, %v374_v0  ;;  %v204_v21 = vmul.f32 %v409_v13, %v374_v0 }
  0x15   : > { %v212_v22 = vadd.f32 %v375_v9, %v197_v14  ;;  %v213_v23 = vadd.f32 %v375_v9, %v198_v15  ;;  %v503_v24 = vadd.f32 %v375_v9, %v199_v16  ;;  %v505_v25 = vadd.f32 %v375_v9, %v200_v17 }
  0x16   : > { %v507_v26 = vadd.f32 %v375_v9, %v201_v18  ;;  %v509_v27 = vadd.f32 %v375_v9, %v202_v19  ;;  %v511_v28 = vadd.f32 %v375_v9, %v203_v20  ;;  %v513_v29 = vadd.f32 %v375_v9, %v204_v21 }
  0x17   : > { %v220_v30 = vsub.f32 0.0, %v212_v22  ;;  %v221_v31 = vsub.f32 0.0, %v213_v23  ;;  %v222_v32 = vsub.f32 0.0, %v503_v24  ;;  %v223_v33 = vsub.f32 0.0, %v505_v25 }
  0x18   : > { %v224_v34 = vsub.f32 0.0, %v507_v26  ;;  %v225_v35 = vsub.f32 0.0, %v509_v27  ;;  %v226_v36 = vsub.f32 0.0, %v511_v28  ;;  %v227_v41 = vsub.f32 0.0, %v513_v29 }
  0x19   : > { %v228_v37 = vmul.f32 1.442695, %v220_v30  ;;  %v230_v38 = vmul.f32 1.442695, %v221_v31  ;;  %v232_v39 = vmul.f32 1.442695, %v222_v32 }
  0x1a   : > { %v234_v40 = vmul.f32 1.442695, %v223_v33  ;;  %v236_v42 = vmul.f32 1.442695, %v224_v34  ;;  %v238_v43 = vmul.f32 1.442695, %v225_v35 }
  0x1b   : > { %421 = vpow2.f32 %v228_v37  ;;  %v240_v44 = vmul.f32 1.442695, %v226_v36  ;;  %v242_v45 = vmul.f32 1.442695, %v227_v41 }
  0x1c   : > { %423 = vpow2.f32 %v230_v38 }
  0x1d   : > { %425 = vpow2.f32 %v232_v39 }
  0x1e   : > { %427 = vpow2.f32 %v234_v40 }
  0x1f   : > { %429 = vpow2.f32 %v236_v42 }
  0x20   : > { %431 = vpow2.f32 %v238_v43 }
  0x21   : > { %433 = vpow2.f32 %v240_v44 }
  0x22   : > { %435 = vpow2.f32 %v242_v45 }
  0x25   : > { %v422_v46 = vpop.eup %421 }
  0x26   : > { %v424_v47 = vpop.eup %423  ;;  %v244_v48 = vadd.f32 1.0, %v422_v46 }
  0x27   : > { %v426_v49 = vpop.eup %425  ;;  %v245_v50 = vadd.f32 1.0, %v424_v47 }
  0x28   : > { %v428_v51 = vpop.eup %427  ;;  %437 = vrcp.f32 %v244_v48  ;;  %v246_v52 = vadd.f32 1.0, %v426_v49 }
  0x29   : > { %v430_v53 = vpop.eup %429  ;;  %439 = vrcp.f32 %v245_v50  ;;  %v247_v54 = vadd.f32 1.0, %v428_v51 }
  0x2a   : > { %v432_v55 = vpop.eup %431  ;;  %441 = vrcp.f32 %v246_v52  ;;  %v248_v56 = vadd.f32 1.0, %v430_v53 }
  0x2b   : > { %v434_v57 = vpop.eup %433  ;;  %443 = vrcp.f32 %v247_v54  ;;  %v249_v58 = vadd.f32 1.0, %v432_v55 }
  0x2c   : > { %v436_v59 = vpop.eup %435  ;;  %445 = vrcp.f32 %v248_v56  ;;  %v250_v60 = vadd.f32 1.0, %v434_v57 }
  0x2d   : > { %447 = vrcp.f32 %v249_v58  ;;  %v251_v61 = vadd.f32 1.0, %v436_v59 }
  0x2e   : > { %449 = vrcp.f32 %v250_v60 }
  0x2f   : > { %451 = vrcp.f32 %v251_v61 }
  0x32   : > { %v438_v62 = vpop.eup %437 }
  0x33   : > { %v440_v63 = vpop.eup %439  ;;  %v260_v0 = vmul.f32 %v438_v62, %v212_v22 }
  0x34   : > { %v442_v1 = vpop.eup %441  ;;  %v261_v2 = vmul.f32 %v440_v63, %v213_v23 }
  0x35   : > { %v444_v3 = vpop.eup %443  ;;  %v386_v4 = vpack.c.bf16 %v260_v0, %v260_v0  ;;  %v262_v5 = vmul.f32 %v442_v1, %v503_v24 }
  0x36   : > { %v446_v6 = vpop.eup %445  ;;  %v387_v7 = vpack.c.bf16 %v261_v2, %v261_v2  ;;  %v263_v8 = vmul.f32 %v444_v3, %v505_v25 }
  0x37   : > { %v448_v9 = vpop.eup %447  ;;  %301 = vst.msk [vmem:[%s172_s25] sm:$0xf] %vm300_vm0, %v386_v4  ;;  %v388_v10 = vpack.c.bf16 %v262_v5, %v262_v5  ;;  %v264_v11 = vmul.f32 %v446_v6, %v507_v26 }
  0x38   : > { %v450_v12 = vpop.eup %449  ;;  %302 = vst.msk [vmem:[%s172_s25 + $0x4] sm:$0xf] %vm300_vm0, %v387_v7  ;;  %v389_v13 = vpack.c.bf16 %v263_v8, %v263_v8  ;;  %v265_v14 = vmul.f32 %v448_v9, %v509_v27 }
  0x39   : > { %v452_v15 = vpop.eup %451  ;;  %303 = vst.msk [vmem:[%s172_s25 + $0x8] sm:$0xf] %vm300_vm0, %v388_v10  ;;  %v390_v16 = vpack.c.bf16 %v264_v11, %v264_v11  ;;  %v266_v17 = vmul.f32 %v450_v12, %v511_v28 }
  0x3a   : > { %304 = vst.msk [vmem:[%s172_s25 + $0xc] sm:$0xf] %vm300_vm0, %v389_v13  ;;  %v391_v18 = vpack.c.bf16 %v265_v14, %v265_v14  ;;  %v267_v19 = vmul.f32 %v452_v15, %v513_v29 }
  0x3b   : > { %305 = vst.msk [vmem:[%s172_s25 + $0x10] sm:$0xf] %vm300_vm0, %v390_v16  ;;  %v392_v20 = vpack.c.bf16 %v266_v17, %v266_v17 }
  0x3c   : > { %306 = vst.msk [vmem:[%s172_s25 + $0x14] sm:$0xf] %vm300_vm0, %v391_v18  ;;  %v393_v21 = vpack.c.bf16 %v267_v19, %v267_v19 }
  0x3d   : > { %307 = vst.msk [vmem:[%s172_s25 + $0x18] sm:$0xf] %vm300_vm0, %v392_v20 }
  0x3e   : > { %308 = vst.msk [vmem:[%s172_s25 + $0x1c] sm:$0xf] %vm300_vm0, %v393_v21 }
  0x3f PF: > { %s13_s12 = sadd.s32 1, %s459_s12  }
  0x40   : > { %p10_p4 = scmp.ge.s32.totalorder %s13_s12, 4  }
  0x42   :  { %12 = sbr.rel (!%p10_p4) target bundleno = 1 (0x1), region = 62 }

// kernel: encoder_forward.49
= control target key start
LH: loop header
LB: loop body
LE: loop exit
PB: predicated region body
PF: predicated region fallthrough
CT: control target
= control target key end

     0   :  { %s424_s9 = smov 0   ;;  %s426_s10 = smov 0   ;;  %s490_s0 = inlined_call_operand.vmem [shape: bf16[128,8], index: 0, kind: input, shape index: {}]   ;;  %s491_s1 = inlined_call_operand.vmem [shape: f32[2,1,8], index: 1, kind: output, shape index: {0}]   ;;  %s492_s2 = inlined_call_operand.vmem [shape: f32[2,1,8], index: 2, kind: output, shape index: {1}]  }
   0x1   :  { %s428_s11 = smov 0  }
   0x2 LB: > { %s25_s12 = sadd.s32 1, %s402_s10  ;;  %p335_p0 = scmp.ge.s32.totalorder %s406_s11, 1  ;;  %s406_s11 = sphi %s428_s11, %s13_s11   ;;  %s402_s10 = sphi %s426_s10, %s494_s10   ;;  %s398_s9 = sphi %s424_s9, %s493_s9  }
   0x3   : > { %p27_p1 = scmp.ge.s32.totalorder %s25_s12, 2  ;;  %p132_p2 = scmp.lt.s32.totalorder %s406_s11, 3 }
   0x5   : > { %s496_s12 = smov (%p27_p1, %s25_s12), 0  ;;  %p133_p3 = pnand %p335_p0, %p132_p2 }
   0x6   : > { %s336_s13 = sshll.u32 (!%p133_p3), %s398_s9, 3  ;;  %p164_p4 = scmp.lt.s32.totalorder (!%p133_p3), %s398_s9, 1  ;;  %vm174_vm0 = vcmask (!%p133_p3), 57344   ;;  %v408_v0 = vmov (!%p133_p3), 0.0   ;;  %vm194_vm1 = vcmask (!%p133_p3), 64512  }
   0x7   : > { %136 = sbr.rel (%p133_p3) target bundleno = 54 (0x36), region = 24  ;;  %p158_p5 = scmp.lt.s32.totalorder (!%p133_p3), %s336_s13, 15 }
   0xe   : > { %s498_s9 = smov (!%p164_p4, %s398_s9), 1  ;;  %s500_s13 = smov (!%p158_p5, %s336_s13), 15 }
   0xf   : > { %s445_s16 = scalar_lea.vmem %s491_s1, %s498_s9  ;;  %s450_s19 = scalar_lea.vmem %s492_s2, %s498_s9 }
  0x10   : > { %s337_s20 = sshll.u32 %s500_s13, 2  ;;  %175 = vst.msk [vmem:[%s445_s16] sm:$0x1] %vm174_vm0, %v408_v0  ;;  %176 = vst.msk [vmem:[%s450_s19] sm:$0x1] %vm174_vm0, %v408_v0 }
  0x11   : > { %s161_s23 = scalar_lea.vmem %s490_s0, %s337_s20 }
  0x12   : > { %v341_v1 = vld [vmem:[%s161_s23] sm:$0xff]   ;;  %v356_v2 = vld [vmem:[%s161_s23 + $0x8] sm:$0xff]   ;;  %v357_v3 = vld [vmem:[%s161_s23 + $0x10] sm:$0xff]  }
  0x13   : > { %v342_v4 = vunpack.c.l.bf16 %v341_v1  ;;  %v343_v5 = vunpack.c.h.bf16 %v341_v1  ;;  %v346_v6 = vunpack.c.l.bf16 %v356_v2  ;;  %v347_v7 = vunpack.c.h.bf16 %v356_v2  ;;  %v358_v9 = vld [vmem:[%s161_s23 + $0x18] sm:$0xff]  }
  0x14   : > { %v350_v8 = vunpack.c.l.bf16 %v357_v3  ;;  %v351_v13 = vunpack.c.h.bf16 %v357_v3  ;;  %v354_v19 = vunpack.c.l.bf16 %v358_v9  ;;  %v355_v29 = vunpack.c.h.bf16 %v358_v9 }
  0x15   : > { %v195_v10 = vsel %vm194_vm1, %v342_v4, 0.0  ;;  %v196_v11 = vsel %vm194_vm1, %v343_v5, 0.0  ;;  %v198_v12 = vsel %vm194_vm1, %v346_v6, 0.0  ;;  %v200_v15 = vsel %vm194_vm1, %v347_v7, 0.0 }
  0x16   : > { %v197_v14 = vadd.f32 %v196_v11, %v195_v10  ;;  %v220_v16 = vmul.f32 %v342_v4, %v342_v4  ;;  %v221_v17 = vmul.f32 %v343_v5, %v343_v5  ;;  %v222_v18 = vmul.f32 %v346_v6, %v346_v6 }
  0x17   : > { %v223_v21 = vmul.f32 %v347_v7, %v347_v7  ;;  %v202_v22 = vsel %vm194_vm1, %v350_v8, 0.0  ;;  %v224_v23 = vmul.f32 %v350_v8, %v350_v8  ;;  %v204_v30 = vsel %vm194_vm1, %v351_v13, 0.0  ;;  %v193_v59 = vld [vmem:[%s445_s16] sm:$0x1] }
  0x18   : > { %v199_v20 = vadd.f32 %v198_v12, %v197_v14  ;;  %v228_v24 = vsel %vm194_vm1, %v220_v16, 0.0  ;;  %v229_v25 = vsel %vm194_vm1, %v221_v17, 0.0  ;;  %v231_v28 = vsel %vm194_vm1, %v222_v18, 0.0  ;;  %v219_v0 = vld [vmem:[%s450_s19] sm:$0x1] }
  0x19   : > { %v230_v27 = vadd.f32 %v229_v25, %v228_v24  ;;  %v225_v31 = vmul.f32 %v351_v13, %v351_v13  ;;  %v233_v32 = vsel %vm194_vm1, %v223_v21, 0.0  ;;  %v206_v35 = vsel %vm194_vm1, %v354_v19, 0.0 }
  0x1a   : > { %v201_v26 = vadd.f32 %v200_v15, %v199_v20  ;;  %v226_v36 = vmul.f32 %v354_v19, %v354_v19  ;;  %v235_v37 = vsel %vm194_vm1, %v224_v23, 0.0  ;;  %v208_v40 = vsel %vm194_vm1, %v355_v29, 0.0 }
  0x1b   : > { %v232_v34 = vadd.f32 %v231_v28, %v230_v27  ;;  %v227_v41 = vmul.f32 %v355_v29, %v355_v29  ;;  %v237_v42 = vsel %vm194_vm1, %v225_v31, 0.0 }
  0x1c   : > { %v203_v33 = vadd.f32 %v202_v22, %v201_v26  ;;  %v239_v45 = vsel %vm194_vm1, %v226_v36, 0.0 }
  0x1d   : > { %v234_v39 = vadd.f32 %v233_v32, %v232_v34  ;;  %v241_v48 = vsel %vm194_vm1, %v227_v41, 0.0 }
  0x1e   : > { %v205_v38 = vadd.f32 %v204_v30, %v203_v33 }
  0x1f   : > { %v236_v44 = vadd.f32 %v235_v37, %v234_v39 }
  0x20   : > { %v207_v43 = vadd.f32 %v206_v35, %v205_v38 }
  0x21   : > { %v238_v47 = vadd.f32 %v237_v42, %v236_v44 }
  0x22   : > { %v209_v46 = vadd.f32 %v208_v40, %v207_v43 }
  0x23   : > { %v240_v50 = vadd.f32 %v239_v45, %v238_v47 }
  0x24   : > { %v210_v49 = vrot.slane %v209_v46, 4 }
  0x25   : > { %v242_v52 = vadd.f32 %v241_v48, %v240_v50 }
  0x26   : > { %v211_v51 = vadd.f32 %v210_v49, %v209_v46 }
  0x27   : > { %v243_v54 = vrot.slane %v242_v52, 4 }
  0x28   : > { %v212_v53 = vrot.slane %v211_v51, 2 }
  0x29   : > { %v244_v56 = vadd.f32 %v243_v54, %v242_v52 }
  0x2a   : > { %v213_v55 = vadd.f32 %v212_v53, %v211_v51 }
  0x2b   : > { %v245_v58 = vrot.slane %v244_v56, 2 }
  0x2c   : > { %v214_v57 = vrot.slane %v213_v55, 1 }
  0x2d   : > { %v246_v61 = vadd.f32 %v245_v58, %v244_v56 }
  0x2e   : > { %v215_v60 = vadd.f32 %v214_v57, %v213_v55 }
  0x2f   : > { %v247_v63 = vrot.slane %v246_v61, 1 }
  0x30   : > { %v216_v62 = vadd.f32 %v215_v60, %v193_v59 }
  0x31   : > { %v248_v1 = vadd.f32 %v247_v63, %v246_v61 }
  0x32   : > { %218 = vst.msk [vmem:[%s445_s16] sm:$0x1] %vm174_vm0, %v216_v62 }
  0x33   : > { %v249_v2 = vadd.f32 %v248_v1, %v219_v0 }
  0x35   : > { %250 = vst.msk [vmem:[%s450_s19] sm:$0x1] %vm174_vm0, %v249_v2 }
  0x36 PF: > { %s13_s11 = sadd.s32 1, %s406_s11   ;;  %s493_s9 = smov %s402_s10 }
  0x37   : > { %p10_p6 = scmp.ge.s32.totalorder %s13_s11, 4   ;;  %s494_s10 = smov %s496_s12 }
  0x39   :  { %12 = sbr.rel (!%p10_p6) target bundleno = 2 (0x2), region = 70 }

// kernel: encoder_forward.50
= control target key start
LH: loop header
LB: loop body
LE: loop exit
PB: predicated region body
PF: predicated region fallthrough
CT: control target
= control target key end

     0   :  { %s481_s12 = smov 0   ;;  %s543_s0 = inlined_call_operand.vmem [shape: bf16[128,8], index: 0, kind: input, shape index: {}]   ;;  %s544_s1 = inlined_call_operand.vmem [shape: f32[1,8], index: 1, kind: input, shape index: {}]   ;;  %s545_s2 = inlined_call_operand.vmem [shape: f32[1,8], index: 2, kind: input, shape index: {}]   ;;  %s546_s3 = inlined_call_operand.vmem [shape: bf16[128,8], index: 3, kind: output, shape index: {}]  }
   0x1 LB: > { %s365_s13 = sadd.s32 4294967295, %s459_s12   ;;  %p369_p0 = scmp.ge.s32.totalorder %s459_s12, 1  ;;  %s459_s12 = sphi %s481_s12, %s13_s12  }
   0x2   : > { %p138_p1 = scmp.lt.s32.totalorder %s459_s12, 3 }
   0x4   : > { %p139_p2 = pnand %p369_p0, %p138_p1 }
   0x5   : > { %s370_s14 = sshll.u32 (!%p139_p2), %s365_s13, 3  ;;  %v374_v0 = vld [vmem:[%s544_s1] ss:$0 sm:$0xff] (!%p139_p2)  ;;  %vm300_vm0 = vcmask (!%p139_p2), 60416  }
   0x6   : > { %142 = sbr.rel (%p139_p2) target bundleno = 63 (0x3f), region = 32  ;;  %p163_p3 = scmp.lt.s32.totalorder (!%p139_p2), %s370_s14, 15  ;;  %v375_v9 = vld [vmem:[%s545_s2] ss:$0 sm:$0xff] (!%p139_p2) }
   0xd   : > { %s548_s14 = smov (!%p163_p3, %s370_s14), 15 }
   0xe   : > { %s371_s15 = sshll.u32 %s548_s14, 2 }
   0xf   : > { %s166_s18 = scalar_lea.vmem %s543_s0, %s371_s15  ;;  %s172_s25 = scalar_lea.vmem %s546_s3, %s371_s15 }
  0x10   : > { %v395_v1 = vld [vmem:[%s166_s18] sm:$0xff]   ;;  %v410_v2 = vld [vmem:[%s166_s18 + $0x8] sm:$0xff]   ;;  %v411_v3 = vld [vmem:[%s166_s18 + $0x10] sm:$0xff]  }
  0x11   : > { %v396_v4 = vunpack.c.l.bf16 %v395_v1  ;;  %v397_v5 = vunpack.c.h.bf16 %v395_v1  ;;  %v400_v6 = vunpack.c.l.bf16 %v410_v2  ;;  %v401_v7 = vunpack.c.h.bf16 %v410_v2  ;;  %v412_v8 = vld [vmem:[%s166_s18 + $0x18] sm:$0xff]  }
  0x12   : > { %v404_v10 = vunpack.c.l.bf16 %v411_v3  ;;  %v405_v11 = vunpack.c.h.bf16 %v411_v3  ;;  %v408_v12 = vunpack.c.l.bf16 %v412_v8  ;;  %v409_v13 = vunpack.c.h.bf16 %v412_v8 }
  0x13   : > { %v197_v14 = vmul.f32 %v396_v4, %v374_v0  ;;  %v198_v15 = vmul.f32 %v397_v5, %v374_v0  ;;  %v199_v16 = vmul.f32 %v400_v6, %v374_v0  ;;  %v200_v17 = vmul.f32 %v401_v7, %v374_v0 }
  0x14   : > { %v201_v18 = vmul.f32 %v404_v10, %v374_v0  ;;  %v202_v19 = vmul.f32 %v405_v11, %v374_v0  ;;  %v203_v20 = vmul.f32 %v408_v12, %v374_v0  ;;  %v204_v21 = vmul.f32 %v409_v13, %v374_v0 }
  0x15   : > { %v212_v22 = vadd.f32 %v375_v9, %v197_v14  ;;  %v213_v23 = vadd.f32 %v375_v9, %v198_v15  ;;  %v503_v24 = vadd.f32 %v375_v9, %v199_v16  ;;  %v505_v25 = vadd.f32 %v375_v9, %v200_v17 }
  0x16   : > { %v507_v26 = vadd.f32 %v375_v9, %v201_v18  ;;  %v509_v27 = vadd.f32 %v375_v9, %v202_v19  ;;  %v511_v28 = vadd.f32 %v375_v9, %v203_v20  ;;  %v513_v29 = vadd.f32 %v375_v9, %v204_v21 }
  0x17   : > { %v220_v30 = vsub.f32 0.0, %v212_v22  ;;  %v221_v31 = vsub.f32 0.0, %v213_v23  ;;  %v222_v32 = vsub.f32 0.0, %v503_v24  ;;  %v223_v33 = vsub.f32 0.0, %v505_v25 }
  0x18   : > { %v224_v34 = vsub.f32 0.0, %v507_v26  ;;  %v225_v35 = vsub.f32 0.0, %v509_v27  ;;  %v226_v36 = vsub.f32 0.0, %v511_v28  ;;  %v227_v41 = vsub.f32 0.0, %v513_v29 }
  0x19   : > { %v228_v37 = vmul.f32 1.442695, %v220_v30  ;;  %v230_v38 = vmul.f32 1.442695, %v221_v31  ;;  %v232_v39 = vmul.f32 1.442695, %v222_v32 }
  0x1a   : > { %v234_v40 = vmul.f32 1.442695, %v223_v33  ;;  %v236_v42 = vmul.f32 1.442695, %v224_v34  ;;  %v238_v43 = vmul.f32 1.442695, %v225_v35 }
  0x1b   : > { %421 = vpow2.f32 %v228_v37  ;;  %v240_v44 = vmul.f32 1.442695, %v226_v36  ;;  %v242_v45 = vmul.f32 1.442695, %v227_v41 }
  0x1c   : > { %423 = vpow2.f32 %v230_v38 }
  0x1d   : > { %425 = vpow2.f32 %v232_v39 }
  0x1e   : > { %427 = vpow2.f32 %v234_v40 }
  0x1f   : > { %429 = vpow2.f32 %v236_v42 }
  0x20   : > { %431 = vpow2.f32 %v238_v43 }
  0x21   : > { %433 = vpow2.f32 %v240_v44 }
  0x22   : > { %435 = vpow2.f32 %v242_v45 }
  0x25   : > { %v422_v46 = vpop.eup %421 }
  0x26   : > { %v424_v47 = vpop.eup %423  ;;  %v244_v48 = vadd.f32 1.0, %v422_v46 }
  0x27   : > { %v426_v49 = vpop.eup %425  ;;  %v245_v50 = vadd.f32 1.0, %v424_v47 }
  0x28   : > { %v428_v51 = vpop.eup %427  ;;  %437 = vrcp.f32 %v244_v48  ;;  %v246_v52 = vadd.f32 1.0, %v426_v49 }
  0x29   : > { %v430_v53 = vpop.eup %429  ;;  %439 = vrcp.f32 %v245_v50  ;;  %v247_v54 = vadd.f32 1.0, %v428_v51 }
  0x2a   : > { %v432_v55 = vpop.eup %431  ;;  %441 = vrcp.f32 %v246_v52  ;;  %v248_v56 = vadd.f32 1.0, %v430_v53 }
  0x2b   : > { %v434_v57 = vpop.eup %433  ;;  %443 = vrcp.f32 %v247_v54  ;;  %v249_v58 = vadd.f32 1.0, %v432_v55 }
  0x2c   : > { %v436_v59 = vpop.eup %435  ;;  %445 = vrcp.f32 %v248_v56  ;;  %v250_v60 = vadd.f32 1.0, %v434_v57 }
  0x2d   : > { %447 = vrcp.f32 %v249_v58  ;;  %v251_v61 = vadd.f32 1.0, %v436_v59 }
  0x2e   : > { %449 = vrcp.f32 %v250_v60 }
  0x2f   : > { %451 = vrcp.f32 %v251_v61 }
  0x32   : > { %v438_v62 = vpop.eup %437 }
  0x33   : > { %v440_v63 = vpop.eup %439  ;;  %v260_v0 = vmul.f32 %v438_v62, %v212_v22 }
  0x34   : > { %v442_v1 = vpop.eup %441  ;;  %v261_v2 = vmul.f32 %v440_v63, %v213_v23 }
  0x35   : > { %v444_v3 = vpop.eup %443  ;;  %v386_v4 = vpack.c.bf16 %v260_v0, %v260_v0  ;;  %v262_v5 = vmul.f32 %v442_v1, %v503_v24 }
  0x36   : > { %v446_v6 = vpop.eup %445  ;;  %v387_v7 = vpack.c.bf16 %v261_v2, %v261_v2  ;;  %v263_v8 = vmul.f32 %v444_v3, %v505_v25 }
  0x37   : > { %v448_v9 = vpop.eup %447  ;;  %301 = vst.msk [vmem:[%s172_s25] sm:$0xf] %vm300_vm0, %v386_v4  ;;  %v388_v10 = vpack.c.bf16 %v262_v5, %v262_v5  ;;  %v264_v11 = vmul.f32 %v446_v6, %v507_v26 }
  0x38   : > { %v450_v12 = vpop.eup %449  ;;  %302 = vst.msk [vmem:[%s172_s25 + $0x4] sm:$0xf] %vm300_vm0, %v387_v7  ;;  %v389_v13 = vpack.c.bf16 %v263_v8, %v263_v8  ;;  %v265_v14 = vmul.f32 %v448_v9, %v509_v27 }
  0x39   : > { %v452_v15 = vpop.eup %451  ;;  %303 = vst.msk [vmem:[%s172_s25 + $0x8] sm:$0xf] %vm300_vm0, %v388_v10  ;;  %v390_v16 = vpack.c.bf16 %v264_v11, %v264_v11  ;;  %v266_v17 = vmul.f32 %v450_v12, %v511_v28 }
  0x3a   : > { %304 = vst.msk [vmem:[%s172_s25 + $0xc] sm:$0xf] %vm300_vm0, %v389_v13  ;;  %v391_v18 = vpack.c.bf16 %v265_v14, %v265_v14  ;;  %v267_v19 = vmul.f32 %v452_v15, %v513_v29 }
  0x3b   : > { %305 = vst.msk [vmem:[%s172_s25 + $0x10] sm:$0xf] %vm300_vm0, %v390_v16  ;;  %v392_v20 = vpack.c.bf16 %v266_v17, %v266_v17 }
  0x3c   : > { %306 = vst.msk [vmem:[%s172_s25 + $0x14] sm:$0xf] %vm300_vm0, %v391_v18  ;;  %v393_v21 = vpack.c.bf16 %v267_v19, %v267_v19 }
  0x3d   : > { %307 = vst.msk [vmem:[%s172_s25 + $0x18] sm:$0xf] %vm300_vm0, %v392_v20 }
  0x3e   : > { %308 = vst.msk [vmem:[%s172_s25 + $0x1c] sm:$0xf] %vm300_vm0, %v393_v21 }
  0x3f PF: > { %s13_s12 = sadd.s32 1, %s459_s12  }
  0x40   : > { %p10_p4 = scmp.ge.s32.totalorder %s13_s12, 4  }
  0x42   :  { %12 = sbr.rel (!%p10_p4) target bundleno = 1 (0x1), region = 62 }

// kernel: encoder_forward.52
= control target key start
LH: loop header
LB: loop body
LE: loop exit
PB: predicated region body
PF: predicated region fallthrough
CT: control target
= control target key end

     0   :  { %s680_s1 = inlined_call_operand.vmem [shape: bf16[256,128], index: 1, kind: input, shape index: {}]   ;;  %s681_s0 = inlined_call_operand.vmem [shape: bf16[64,256], index: 0, kind: input, shape index: {}]   ;;  %s682_s3 = inlined_call_operand.vmem [shape: bf16[64,128], index: 3, kind: input, shape index: {}]   ;;  %s683_s2 = inlined_call_operand.vmem [shape: f32[1,128], index: 2, kind: input, shape index: {}]   ;;  %s684_s4 = inlined_call_operand.vmem [shape: bf16[64,128], index: 4, kind: output, shape index: {}]  }
   0x1   :  { %v528_v0 = vld [vmem:[%s680_s1 + $0x40] sm:$0xff]   ;;  %v530_v2 = vld [vmem:[%s680_s1 + $0x48] sm:$0xff]   ;;  %v532_v4 = vld [vmem:[%s680_s1 + $0x50] sm:$0xff]  }
   0x2   :  { %v529_v1 = vld [vmem:[%s680_s1] sm:$0xff]   ;;  %472 = vmatprep.subr.bf16.mxu0 %v528_v0  ;;  %512 = vmatprep.subr.bf16.mxu1 %v528_v0  ;;  %v531_v3 = vld [vmem:[%s680_s1 + $0x8] sm:$0xff]   ;;  %v533_v5 = vld [vmem:[%s680_s1 + $0x10] sm:$0xff]  }
   0x3   :  { %473 = vmatpush3.bf16.msra.mxu0 %v529_v1  ;;  %520 = vmatpush3.bf16.msra.mxu1 %v529_v1  ;;  %v534_v6 = vld [vmem:[%s680_s1 + $0x58] sm:$0xff]   ;;  %v536_v8 = vld [vmem:[%s680_s1 + $0x60] sm:$0xff]   ;;  %v538_v10 = vld [vmem:[%s680_s1 + $0x68] sm:$0xff]  }
   0x4   :  { %474 = vmatprep.subr.bf16.mxu0 %v530_v2  ;;  %513 = vmatprep.subr.bf16.mxu1 %v530_v2  ;;  %v535_v7 = vld [vmem:[%s680_s1 + $0x18] sm:$0xff]   ;;  %v537_v9 = vld [vmem:[%s680_s1 + $0x20] sm:$0xff]   ;;  %v539_v13 = vld [vmem:[%s680_s1 + $0x28] sm:$0xff]  }
   0x5   :  { %v546_v11 = vld [vmem:[%s681_s0 + $0x4] ss:$8 sps:$4 sm:$0xff]   ;;  %v540_v14 = vld [vmem:[%s680_s1 + $0x70] sm:$0xff]   ;;  %v542_v16 = vld [vmem:[%s680_s1 + $0x78] sm:$0xff]  }
   0x6   :  { %v549_v12 = vld [vmem:[%s681_s0 + $0x24] ss:$8 sps:$4 sm:$0xff]   ;;  %246 = vmatprep.mubr.bf16.mxu0 %v546_v11  ;;  %v541_v15 = vld [vmem:[%s680_s1 + $0x30] sm:$0xff]   ;;  %v543_v17 = vld [vmem:[%s680_s1 + $0x38] sm:$0xff]  }
   0x7   :  { %475 = vmatpush3.bf16.msra.mxu0 %v531_v3  ;;  %521 = vmatpush3.bf16.msra.mxu1 %v531_v3  ;;  %v544_v18 = vld [vmem:[%s681_s0] ss:$8 sps:$4 sm:$0xff]   ;;  %v550_v20 = vld [vmem:[%s681_s0 + $0x14] ss:$8 sps:$4 sm:$0xff]   ;;  %v554_v22 = vld [vmem:[%s681_s0 + $0x10] ss:$8 sps:$4 sm:$0xff]  }
   0x8   :  { %476 = vmatprep.subr.bf16.mxu0 %v532_v4  ;;  %514 = vmatprep.subr.bf16.mxu1 %v532_v4  ;;  %v547_v19 = vld [vmem:[%s681_s0 + $0x20] ss:$8 sps:$4 sm:$0xff]   ;;  %v552_v21 = vld [vmem:[%s681_s0 + $0x34] ss:$8 sps:$4 sm:$0xff]   ;;  %v555_v23 = vld [vmem:[%s681_s0 + $0x30] ss:$8 sps:$4 sm:$0xff]  }
   0x9   :  { %262 = vmatprep.mubr.bf16.mxu1 %v549_v12  ;;  %v431_v26 = vld [vmem:[%s682_s3] sm:$0xff]   ;;  %v467_v27 = vld [vmem:[%s682_s3 + $0x10] sm:$0xff]   ;;  %v466_v53 = vld [vmem:[%s682_s3 + $0x8] sm:$0xff]  }
   0xa   :  { %v413_v29 = vld [vmem:[%s683_s2] ss:$0 sm:$0xff]  ;;  %v432_v35 = vunpack.c.l.bf16 %v431_v26  ;;  %v440_v36 = vunpack.c.l.bf16 %v467_v27  ;;  %v433_v38 = vunpack.c.h.bf16 %v431_v26  ;;  %v441_v40 = vunpack.c.h.bf16 %v467_v27  ;;  %v468_v54 = vld [vmem:[%s682_s3 + $0x18] sm:$0xff]  }
   0xb   :  { %477 = vmatpush3.bf16.msra.mxu0 %v533_v5  ;;  %522 = vmatpush3.bf16.msra.mxu1 %v533_v5  ;;  %v436_v63 = vunpack.c.l.bf16 %v466_v53  ;;  %v444_v0 = vunpack.c.l.bf16 %v468_v54  ;;  %v437_v2 = vunpack.c.h.bf16 %v466_v53  ;;  %v445_v4 = vunpack.c.h.bf16 %v468_v54 }
   0xc   :  { %478 = vmatprep.subr.bf16.mxu0 %v534_v6  ;;  %515 = vmatprep.subr.bf16.mxu1 %v534_v6 }
   0xf   :  { %479 = vmatpush3.bf16.msra.mxu0 %v535_v7  ;;  %523 = vmatpush3.bf16.msra.mxu1 %v535_v7 }
  0x10   :  { %480 = vmatprep.subr.bf16.mxu0 %v536_v8  ;;  %516 = vmatprep.subr.bf16.mxu1 %v536_v8 }
  0x13   :  { %481 = vmatpush3.bf16.msra.mxu0 %v537_v9  ;;  %524 = vmatpush3.bf16.msra.mxu1 %v537_v9 }
  0x14   :  { %482 = vmatprep.subr.bf16.mxu0 %v538_v10  ;;  %517 = vmatprep.subr.bf16.mxu1 %v538_v10 }
  0x17   :  { %483 = vmatpush3.bf16.msra.mxu0 %v539_v13  ;;  %525 = vmatpush3.bf16.msra.mxu1 %v539_v13 }
  0x18   :  { %484 = vmatprep.subr.bf16.mxu0 %v540_v14  ;;  %518 = vmatprep.subr.bf16.mxu1 %v540_v14 }
  0x1b   :  { %485 = vmatpush3.bf16.msra.mxu0 %v541_v15  ;;  %526 = vmatpush3.bf16.msra.mxu1 %v541_v15 }
  0x1c   :  { %486 = vmatprep.subr.bf16.mxu0 %v542_v16  ;;  %519 = vmatprep.subr.bf16.mxu1 %v542_v16 }
  0x1f   :  { %487 = vmatpush3.bf16.msra.mxu0 %v543_v17  ;;  %527 = vmatpush3.bf16.msra.mxu1 %v543_v17 }
  0x22   :  { %247 = vmatmul.mubr.bf16.vlgmr.msra.gmra.mrb[0].mxu0 %v544_v18  ;;  %263 = vmatmul.mubr.bf16.vlgmr.msra.gmra.mrb[0].mxu1 %v547_v19 }
  0x23   :  { %254 = vmatprep.mubr.bf16.mxu0 %v550_v20  ;;  %270 = vmatprep.mubr.bf16.mxu1 %v552_v21 }
  0x2a   :  { %255 = vmatmul.mubr.bf16.gmra.mrb[4].mxu0 %v554_v22  ;;  %271 = vmatmul.mubr.bf16.gmra.mrb[4].mxu1 %v555_v23 }
  0xf5   :  { %v488_v24 = vpop.f32.mrb[0].mxu0  ;;  %v500_v25 = vpop.f32.mrb[0].mxu1 }
  0xf6   :  { %v489_v28 = vpop.f32.mrb[1].mxu0  ;;  %v501_v30 = vpop.f32.mrb[1].mxu1 }
  0xf7   :  { %v490_v31 = vadd.f32 %v489_v28, %v488_v24  ;;  %v502_v32 = vadd.f32 %v501_v30, %v500_v25  ;;  %v491_v33 = vpop.f32.mrb[2].mxu0  ;;  %v503_v34 = vpop.f32.mrb[2].mxu1 }
  0xf8   :  { %v492_v37 = vpop.f32.mrb[3].mxu0  ;;  %v504_v39 = vpop.f32.mrb[3].mxu1 }
  0xf9   :  { %v313_v41 = vadd.f32 %v490_v31, %v413_v29  ;;  %v317_v42 = vadd.f32 %v502_v32, %v413_v29  ;;  %v493_v43 = vadd.f32 %v492_v37, %v491_v33  ;;  %v505_v44 = vadd.f32 %v504_v39, %v503_v34 }
  0xfb   :  { %v314_v45 = vadd.f32 %v493_v43, %v413_v29  ;;  %v318_v46 = vadd.f32 %v505_v44, %v413_v29  ;;  %v337_v47 = vadd.f32 %v432_v35, %v313_v41  ;;  %v341_v48 = vadd.f32 %v440_v36, %v317_v42 }
  0xfd   :  { %v338_v49 = vadd.f32 %v433_v38, %v314_v45  ;;  %v342_v50 = vadd.f32 %v441_v40, %v318_v46  ;;  %v494_v51 = vpop.f32.mrb[4].mxu0  ;;  %v506_v52 = vpop.f32.mrb[4].mxu1 }
  0xfe   :  { %v495_v55 = vpop.f32.mrb[5].mxu0  ;;  %v507_v56 = vpop.f32.mrb[5].mxu1 }
  0xff   :  { %v449_v57 = vpack.c.bf16 %v338_v49, %v337_v47  ;;  %v459_v58 = vpack.c.bf16 %v342_v50, %v341_v48  ;;  %v496_v59 = vadd.f32 %v495_v55, %v494_v51  ;;  %v508_v60 = vadd.f32 %v507_v56, %v506_v52  ;;  %v497_v61 = vpop.f32.mrb[6].mxu0  ;;  %v509_v62 = vpop.f32.mrb[6].mxu1 }
 0x100   :  { %v498_v1 = vpop.f32.mrb[7].mxu0  ;;  %v510_v3 = vpop.f32.mrb[7].mxu1 }
 0x101   :  { %450 = vst [vmem:[%s684_s4] sm:$0xff] %v449_v57   ;;  %470 = vst [vmem:[%s684_s4 + $0x10] sm:$0xff] %v459_v58   ;;  %v315_v5 = vadd.f32 %v496_v59, %v413_v29  ;;  %v319_v6 = vadd.f32 %v508_v60, %v413_v29  ;;  %v499_v7 = vadd.f32 %v498_v1, %v497_v61 }
 0x102   :  { %v511_v8 = vadd.f32 %v510_v3, %v509_v62 }
 0x103   :  { %v316_v9 = vadd.f32 %v499_v7, %v413_v29  ;;  %v339_v11 = vadd.f32 %v436_v63, %v315_v5  ;;  %v343_v12 = vadd.f32 %v444_v0, %v319_v6 }
 0x104   :  { %v320_v10 = vadd.f32 %v511_v8, %v413_v29 }
 0x105   :  { %v340_v13 = vadd.f32 %v437_v2, %v316_v9 }
 0x106   :  { %v344_v14 = vadd.f32 %v445_v4, %v320_v10 }
 0x107   :  { %v454_v15 = vpack.c.bf16 %v340_v13, %v339_v11 }
 0x108   :  { %v464_v16 = vpack.c.bf16 %v344_v14, %v343_v12 }
 0x109   :  { %469 = vst [vmem:[%s684_s4 + $0x8] sm:$0xff] %v454_v15  }
 0x10a   :  { %471 = vst [vmem:[%s684_s4 + $0x18] sm:$0xff] %v464_v16  }

// kernel: encoder_forward.55
= control target key start
LH: loop header
LB: loop body
LE: loop exit
PB: predicated region body
PF: predicated region fallthrough
CT: control target
= control target key end

     0   :  { %s617_s1 = inlined_call_operand.vmem [shape: bf16[256,128], index: 1, kind: input, shape index: {}]   ;;  %s618_s0 = inlined_call_operand.vmem [shape: bf16[64,256], index: 0, kind: input, shape index: {}]   ;;  %s619_s2 = inlined_call_operand.vmem [shape: f32[1,128], index: 2, kind: input, shape index: {}]   ;;  %s620_s3 = inlined_call_operand.vmem [shape: bf16[64,128], index: 3, kind: output, shape index: {}]  }
   0x1   :  { %v482_v0 = vld [vmem:[%s617_s1 + $0x40] sm:$0xff]   ;;  %v484_v2 = vld [vmem:[%s617_s1 + $0x48] sm:$0xff]   ;;  %v486_v4 = vld [vmem:[%s617_s1 + $0x50] sm:$0xff]  }
   0x2   :  { %v483_v1 = vld [vmem:[%s617_s1] sm:$0xff]   ;;  %426 = vmatprep.subr.bf16.mxu0 %v482_v0  ;;  %466 = vmatprep.subr.bf16.mxu1 %v482_v0  ;;  %v485_v3 = vld [vmem:[%s617_s1 + $0x8] sm:$0xff]   ;;  %v487_v5 = vld [vmem:[%s617_s1 + $0x10] sm:$0xff]  }
   0x3   :  { %427 = vmatpush3.bf16.msra.mxu0 %v483_v1  ;;  %474 = vmatpush3.bf16.msra.mxu1 %v483_v1  ;;  %v488_v6 = vld [vmem:[%s617_s1 + $0x58] sm:$0xff]   ;;  %v490_v8 = vld [vmem:[%s617_s1 + $0x60] sm:$0xff]   ;;  %v492_v10 = vld [vmem:[%s617_s1 + $0x68] sm:$0xff]  }
   0x4   :  { %428 = vmatprep.subr.bf16.mxu0 %v484_v2  ;;  %467 = vmatprep.subr.bf16.mxu1 %v484_v2  ;;  %v489_v7 = vld [vmem:[%s617_s1 + $0x18] sm:$0xff]   ;;  %v491_v9 = vld [vmem:[%s617_s1 + $0x20] sm:$0xff]   ;;  %v493_v13 = vld [vmem:[%s617_s1 + $0x28] sm:$0xff]  }
   0x5   :  { %v500_v11 = vld [vmem:[%s618_s0 + $0x4] ss:$8 sps:$4 sm:$0xff]   ;;  %v494_v14 = vld [vmem:[%s617_s1 + $0x70] sm:$0xff]   ;;  %v496_v16 = vld [vmem:[%s617_s1 + $0x78] sm:$0xff]  }
   0x6   :  { %v503_v12 = vld [vmem:[%s618_s0 + $0x24] ss:$8 sps:$4 sm:$0xff]   ;;  %243 = vmatprep.mubr.bf16.mxu0 %v500_v11  ;;  %v495_v15 = vld [vmem:[%s617_s1 + $0x30] sm:$0xff]   ;;  %v497_v17 = vld [vmem:[%s617_s1 + $0x38] sm:$0xff]  }
   0x7   :  { %429 = vmatpush3.bf16.msra.mxu0 %v485_v3  ;;  %475 = vmatpush3.bf16.msra.mxu1 %v485_v3  ;;  %v498_v18 = vld [vmem:[%s618_s0] ss:$8 sps:$4 sm:$0xff]   ;;  %v504_v20 = vld [vmem:[%s618_s0 + $0x14] ss:$8 sps:$4 sm:$0xff]   ;;  %v508_v22 = vld [vmem:[%s618_s0 + $0x10] ss:$8 sps:$4 sm:$0xff]  }
   0x8   :  { %430 = vmatprep.subr.bf16.mxu0 %v486_v4  ;;  %468 = vmatprep.subr.bf16.mxu1 %v486_v4  ;;  %v501_v19 = vld [vmem:[%s618_s0 + $0x20] ss:$8 sps:$4 sm:$0xff]   ;;  %v506_v21 = vld [vmem:[%s618_s0 + $0x34] ss:$8 sps:$4 sm:$0xff]   ;;  %v509_v23 = vld [vmem:[%s618_s0 + $0x30] ss:$8 sps:$4 sm:$0xff]  }
   0x9   :  { %259 = vmatprep.mubr.bf16.mxu1 %v503_v12  ;;  %v386_v32 = vld [vmem:[%s619_s2] ss:$0 sm:$0xff] }
   0xb   :  { %431 = vmatpush3.bf16.msra.mxu0 %v487_v5  ;;  %476 = vmatpush3.bf16.msra.mxu1 %v487_v5 }
   0xc   :  { %432 = vmatprep.subr.bf16.mxu0 %v488_v6  ;;  %469 = vmatprep.subr.bf16.mxu1 %v488_v6 }
   0xf   :  { %433 = vmatpush3.bf16.msra.mxu0 %v489_v7  ;;  %477 = vmatpush3.bf16.msra.mxu1 %v489_v7 }
  0x10   :  { %434 = vmatprep.subr.bf16.mxu0 %v490_v8  ;;  %470 = vmatprep.subr.bf16.mxu1 %v490_v8 }
  0x13   :  { %435 = vmatpush3.bf16.msra.mxu0 %v491_v9  ;;  %478 = vmatpush3.bf16.msra.mxu1 %v491_v9 }
  0x14   :  { %436 = vmatprep.subr.bf16.mxu0 %v492_v10  ;;  %471 = vmatprep.subr.bf16.mxu1 %v492_v10 }
  0x17   :  { %437 = vmatpush3.bf16.msra.mxu0 %v493_v13  ;;  %479 = vmatpush3.bf16.msra.mxu1 %v493_v13 }
  0x18   :  { %438 = vmatprep.subr.bf16.mxu0 %v494_v14  ;;  %472 = vmatprep.subr.bf16.mxu1 %v494_v14 }
  0x1b   :  { %439 = vmatpush3.bf16.msra.mxu0 %v495_v15  ;;  %480 = vmatpush3.bf16.msra.mxu1 %v495_v15 }
  0x1c   :  { %440 = vmatprep.subr.bf16.mxu0 %v496_v16  ;;  %473 = vmatprep.subr.bf16.mxu1 %v496_v16 }
  0x1f   :  { %441 = vmatpush3.bf16.msra.mxu0 %v497_v17  ;;  %481 = vmatpush3.bf16.msra.mxu1 %v497_v17 }
  0x22   :  { %244 = vmatmul.mubr.bf16.vlgmr.msra.gmra.mrb[0].mxu0 %v498_v18  ;;  %260 = vmatmul.mubr.bf16.vlgmr.msra.gmra.mrb[0].mxu1 %v501_v19 }
  0x23   :  { %251 = vmatprep.mubr.bf16.mxu0 %v504_v20  ;;  %267 = vmatprep.mubr.bf16.mxu1 %v506_v21 }
  0x2a   :  { %252 = vmatmul.mubr.bf16.gmra.mrb[4].mxu0 %v508_v22  ;;  %268 = vmatmul.mubr.bf16.gmra.mrb[4].mxu1 %v509_v23 }
  0xf5   :  { %v442_v24 = vpop.f32.mrb[0].mxu0  ;;  %v454_v25 = vpop.f32.mrb[0].mxu1 }
  0xf6   :  { %v443_v26 = vpop.f32.mrb[1].mxu0  ;;  %v455_v27 = vpop.f32.mrb[1].mxu1 }
  0xf7   :  { %v444_v28 = vadd.f32 %v443_v26, %v442_v24  ;;  %v456_v29 = vadd.f32 %v455_v27, %v454_v25  ;;  %v445_v30 = vpop.f32.mrb[2].mxu0  ;;  %v457_v31 = vpop.f32.mrb[2].mxu1 }
  0xf8   :  { %v446_v33 = vpop.f32.mrb[3].mxu0  ;;  %v458_v34 = vpop.f32.mrb[3].mxu1 }
  0xf9   :  { %v447_v35 = vadd.f32 %v446_v33, %v445_v30  ;;  %v459_v36 = vadd.f32 %v458_v34, %v457_v31  ;;  %v310_v37 = vadd.f32 %v444_v28, %v386_v32  ;;  %v314_v38 = vadd.f32 %v456_v29, %v386_v32 }
  0xfb   :  { %v311_v39 = vadd.f32 %v447_v35, %v386_v32  ;;  %v315_v40 = vadd.f32 %v459_v36, %v386_v32 }
  0xfd   :  { %v406_v41 = vpack.c.bf16 %v311_v39, %v310_v37  ;;  %v416_v42 = vpack.c.bf16 %v315_v40, %v314_v38  ;;  %v448_v43 = vpop.f32.mrb[4].mxu0  ;;  %v460_v44 = vpop.f32.mrb[4].mxu1 }
  0xfe   :  { %v449_v45 = vpop.f32.mrb[5].mxu0  ;;  %v461_v46 = vpop.f32.mrb[5].mxu1 }
  0xff   :  { %407 = vst [vmem:[%s620_s3] sm:$0xff] %v406_v41   ;;  %424 = vst [vmem:[%s620_s3 + $0x10] sm:$0xff] %v416_v42   ;;  %v450_v47 = vadd.f32 %v449_v45, %v448_v43  ;;  %v462_v48 = vadd.f32 %v461_v46, %v460_v44  ;;  %v451_v49 = vpop.f32.mrb[6].mxu0  ;;  %v463_v50 = vpop.f32.mrb[6].mxu1 }
 0x100   :  { %v452_v51 = vpop.f32.mrb[7].mxu0  ;;  %v464_v52 = vpop.f32.mrb[7].mxu1 }
 0x101   :  { %v453_v53 = vadd.f32 %v452_v51, %v451_v49  ;;  %v465_v54 = vadd.f32 %v464_v52, %v463_v50  ;;  %v312_v55 = vadd.f32 %v450_v47, %v386_v32  ;;  %v316_v56 = vadd.f32 %v462_v48, %v386_v32 }
 0x103   :  { %v313_v57 = vadd.f32 %v453_v53, %v386_v32  ;;  %v317_v58 = vadd.f32 %v465_v54, %v386_v32 }
 0x105   :  { %v411_v59 = vpack.c.bf16 %v313_v57, %v312_v55  ;;  %v421_v60 = vpack.c.bf16 %v317_v58, %v316_v56 }
 0x107   :  { %423 = vst [vmem:[%s620_s3 + $0x8] sm:$0xff] %v411_v59   ;;  %425 = vst [vmem:[%s620_s3 + $0x18] sm:$0xff] %v421_v60  }

// kernel: encoder_forward.60
= control target key start
LH: loop header
LB: loop body
LE: loop exit
PB: predicated region body
PF: predicated region fallthrough
CT: control target
= control target key end

     0   :  { %s401_s12 = smov 0   ;;  %s439_s0 = inlined_call_operand.vmem [shape: bf16[128,8], index: 0, kind: input, shape index: {}]   ;;  %s440_s1 = inlined_call_operand.vmem [shape: f32[1,8], index: 1, kind: input, shape index: {}]   ;;  %s441_s2 = inlined_call_operand.vmem [shape: f32[1,8], index: 2, kind: input, shape index: {}]   ;;  %s442_s3 = inlined_call_operand.vmem [shape: bf16[128,8], index: 3, kind: output, shape index: {}]  }
   0x1 LB: > { %s317_s13 = sadd.s32 4294967295, %s379_s12   ;;  %p321_p0 = scmp.ge.s32.totalorder %s379_s12, 1  ;;  %s379_s12 = sphi %s401_s12, %s13_s12  }
   0x2   : > { %p138_p1 = scmp.lt.s32.totalorder %s379_s12, 3 }
   0x4   : > { %p139_p2 = pnand %p321_p0, %p138_p1 }
   0x5   : > { %s322_s14 = sshll.u32 (!%p139_p2), %s317_s13, 3  ;;  %v326_v0 = vld [vmem:[%s440_s1] ss:$0 sm:$0xff] (!%p139_p2)  ;;  %vm252_vm0 = vcmask (!%p139_p2), 60416  }
   0x6   : > { %142 = sbr.rel (%p139_p2) target bundleno = 29 (0x1d), region = 32  ;;  %p163_p3 = scmp.lt.s32.totalorder (!%p139_p2), %s322_s14, 15  ;;  %v327_v9 = vld [vmem:[%s441_s2] ss:$0 sm:$0xff] (!%p139_p2) }
   0xd   : > { %s444_s14 = smov (!%p163_p3, %s322_s14), 15 }
   0xe   : > { %s323_s15 = sshll.u32 %s444_s14, 2 }
   0xf   : > { %s166_s18 = scalar_lea.vmem %s439_s0, %s323_s15  ;;  %s172_s25 = scalar_lea.vmem %s442_s3, %s323_s15 }
  0x10   : > { %v347_v1 = vld [vmem:[%s166_s18] sm:$0xff]   ;;  %v362_v2 = vld [vmem:[%s166_s18 + $0x8] sm:$0xff]   ;;  %v363_v3 = vld [vmem:[%s166_s18 + $0x10] sm:$0xff]  }
  0x11   : > { %v348_v4 = vunpack.c.l.bf16 %v347_v1  ;;  %v349_v5 = vunpack.c.h.bf16 %v347_v1  ;;  %v352_v6 = vunpack.c.l.bf16 %v362_v2  ;;  %v353_v7 = vunpack.c.h.bf16 %v362_v2  ;;  %v364_v8 = vld [vmem:[%s166_s18 + $0x18] sm:$0xff]  }
  0x12   : > { %v356_v10 = vunpack.c.l.bf16 %v363_v3  ;;  %v357_v11 = vunpack.c.h.bf16 %v363_v3  ;;  %v360_v12 = vunpack.c.l.bf16 %v364_v8  ;;  %v361_v13 = vunpack.c.h.bf16 %v364_v8 }
  0x13   : > { %v197_v14 = vmul.f32 %v348_v4, %v326_v0  ;;  %v198_v15 = vmul.f32 %v349_v5, %v326_v0  ;;  %v199_v16 = vmul.f32 %v352_v6, %v326_v0  ;;  %v200_v17 = vmul.f32 %v353_v7, %v326_v0 }
  0x14   : > { %v201_v18 = vmul.f32 %v356_v10, %v326_v0  ;;  %v202_v19 = vmul.f32 %v357_v11, %v326_v0  ;;  %v203_v20 = vmul.f32 %v360_v12, %v326_v0  ;;  %v204_v21 = vmul.f32 %v361_v13, %v326_v0 }
  0x15   : > { %v212_v22 = vadd.f32 %v327_v9, %v197_v14  ;;  %v213_v23 = vadd.f32 %v327_v9, %v198_v15  ;;  %v214_v24 = vadd.f32 %v327_v9, %v199_v16  ;;  %v215_v25 = vadd.f32 %v327_v9, %v200_v17 }
  0x16   : > { %v216_v26 = vadd.f32 %v327_v9, %v201_v18  ;;  %v217_v27 = vadd.f32 %v327_v9, %v202_v19  ;;  %v218_v28 = vadd.f32 %v327_v9, %v203_v20  ;;  %v219_v29 = vadd.f32 %v327_v9, %v204_v21 }
  0x17   : > { %v338_v30 = vpack.c.bf16 %v212_v22, %v212_v22  ;;  %v339_v31 = vpack.c.bf16 %v213_v23, %v213_v23  ;;  %v340_v32 = vpack.c.bf16 %v214_v24, %v214_v24  ;;  %v341_v33 = vpack.c.bf16 %v215_v25, %v215_v25 }
  0x18   : > { %v342_v34 = vpack.c.bf16 %v216_v26, %v216_v26  ;;  %v343_v35 = vpack.c.bf16 %v217_v27, %v217_v27  ;;  %v344_v36 = vpack.c.bf16 %v218_v28, %v218_v28  ;;  %v345_v37 = vpack.c.bf16 %v219_v29, %v219_v29 }
  0x19   : > { %253 = vst.msk [vmem:[%s172_s25] sm:$0xf] %vm252_vm0, %v338_v30  ;;  %254 = vst.msk [vmem:[%s172_s25 + $0x4] sm:$0xf] %vm252_vm0, %v339_v31 }
  0x1a   : > { %255 = vst.msk [vmem:[%s172_s25 + $0x8] sm:$0xf] %vm252_vm0, %v340_v32  ;;  %256 = vst.msk [vmem:[%s172_s25 + $0xc] sm:$0xf] %vm252_vm0, %v341_v33 }
  0x1b   : > { %257 = vst.msk [vmem:[%s172_s25 + $0x10] sm:$0xf] %vm252_vm0, %v342_v34  ;;  %258 = vst.msk [vmem:[%s172_s25 + $0x14] sm:$0xf] %vm252_vm0, %v343_v35 }
  0x1c   : > { %259 = vst.msk [vmem:[%s172_s25 + $0x18] sm:$0xf] %vm252_vm0, %v344_v36  ;;  %260 = vst.msk [vmem:[%s172_s25 + $0x1c] sm:$0xf] %vm252_vm0, %v345_v37 }
  0x1d PF: > { %s13_s12 = sadd.s32 1, %s379_s12  }
  0x1e   : > { %p10_p4 = scmp.ge.s32.totalorder %s13_s12, 4  }
  0x20   :  { %12 = sbr.rel (!%p10_p4) target bundleno = 1 (0x1), region = 62 }

// kernel: encoder_forward.65
= control target key start
LH: loop header
LB: loop body
LE: loop exit
PB: predicated region body
PF: predicated region fallthrough
CT: control target
= control target key end

     0   :  { %s496_s9 = smov 0   ;;  %s498_s10 = smov 0   ;;  %s532_s0 = inlined_call_operand.vmem [shape: bf16[2,32,8], index: 0, kind: input, shape index: {}]   ;;  %s533_s1 = inlined_call_operand.vmem [shape: bf16[2,8,8], index: 1, kind: input, shape index: {}]   ;;  %s534_s2 = inlined_call_operand.vmem [shape: bf16[2,32,8], index: 2, kind: output, shape index: {}]  }
   0x1   :  { %s500_s11 = smov 0  }
   0x2 LB: > { %s24_s12 = sadd.s32 1, %s475_s10  ;;  %p399_p0 = scmp.ge.s32.totalorder %s479_s11, 1  ;;  %s479_s11 = sphi %s500_s11, %s12_s11   ;;  %s475_s10 = sphi %s498_s10, %s536_s10   ;;  %s471_s9 = sphi %s496_s9, %s535_s9  }
   0x3   : > { %p26_p1 = scmp.ge.s32.totalorder %s24_s12, 2  ;;  %p142_p2 = scmp.lt.s32.totalorder %s479_s11, 3 }
   0x5   : > { %s538_s12 = smov (%p26_p1, %s24_s12), 0  ;;  %p143_p3 = pnand %p399_p0, %p142_p2 }
   0x6   : > { %p177_p4 = scmp.lt.s32.totalorder (!%p143_p3), %s471_s9, 1  ;;  %vm216_vm0 = vcmask (!%p143_p3), 64512   ;;  %vm291_vm1 = vcmask (!%p143_p3), 60416  }
   0x7   : > { %146 = sbr.rel (%p143_p3) target bundleno = 244 (0xf4), region = 28 }
   0xe   : > { %s540_s9 = smov (!%p177_p4, %s471_s9), 1 }
   0xf   : > { %s415_s13 = sshll.u32 %s540_s9, 4  ;;  %s402_s14 = sshll.u32 %s540_s9, 2 }
  0x10   : > { %s184_s17 = scalar_lea.vmem %s532_s0, %s415_s13  ;;  %s189_s20 = scalar_lea.vmem %s533_s1, %s402_s14 }
  0x11   : > { %v205_v0 = vld [vmem:[%s189_s20] sm:$0xf]  ;;  %v456_v3 = vld [vmem:[%s184_s17 + $0x8] sm:$0xff]   ;;  %s198_s23 = scalar_lea.vmem %s534_s2, %s415_s13 }
  0x12   : > { %430 = vmatprep.subr.msk.bf16.mxu0 %vm216_vm0, %v205_v0  ;;  %v224_v1 = vsel %vm216_vm0, %v205_v0, 0  ;;  %v455_v2 = vld [vmem:[%s184_s17] sm:$0xff]  }
  0x13   : > { %425 = vmatpush3.bf16.xpose.msra.mxu0 %v224_v1  ;;  %426 = vmatprep.mubr.msk.bf16.mxu0 %vm216_vm0, %v455_v2 }
  0x1a   : > { %427 = vmatmul.mubr.msk.bf16.vlgmr.msra.gmra.mrb[0].mxu0 %vm216_vm0, %v456_v3 }
  0xed   : > { %v428_v4 = vpop.f32.mrb[0].mxu0 }
  0xee   : > { %v419_v5 = vpack.c.bf16 %v428_v4, %v428_v4  ;;  %v260_v6 = vpop.f32.mrb[1].mxu0 }
  0xef   : > { %v417_v7 = vpack.c.bf16 %v260_v6, %v260_v6  ;;  %v429_v8 = vpop.f32.mrb[2].mxu0 }
  0xf0   : > { %294 = vst.msk [vmem:[%s198_s23 + $0x8] sm:$0xf] %vm291_vm1, %v419_v5  ;;  %v420_v9 = vpack.c.bf16 %v429_v8, %v429_v8  ;;  %v263_v10 = vpop.f32.mrb[3].mxu0 }
  0xf1   : > { %292 = vst.msk [vmem:[%s198_s23] sm:$0xf] %vm291_vm1, %v417_v7  ;;  %v418_v11 = vpack.c.bf16 %v263_v10, %v263_v10 }
  0xf2   : > { %295 = vst.msk [vmem:[%s198_s23 + $0xc] sm:$0xf] %vm291_vm1, %v420_v9 }
  0xf3   : > { %293 = vst.msk [vmem:[%s198_s23 + $0x4] sm:$0xf] %vm291_vm1, %v418_v11 }
  0xf4 PF: > { %s12_s11 = sadd.s32 1, %s479_s11   ;;  %s535_s9 = smov %s475_s10 }
  0xf5   : > { %p9_p5 = scmp.ge.s32.totalorder %s12_s11, 4   ;;  %s536_s10 = smov %s538_s12 }
  0xf7   :  { %11 = sbr.rel (!%p9_p5) target bundleno = 2 (0x2), region = 61 }

// kernel: encoder_forward.64
= control target key start
LH: loop header
LB: loop body
LE: loop exit
PB: predicated region body
PF: predicated region fallthrough
CT: control target
= control target key end

     0   :  { %s519_s9 = smov 0   ;;  %s521_s10 = smov 0   ;;  %s563_s0 = inlined_call_operand.vmem [shape: bf16[2,32,8], index: 0, kind: input, shape index: {}]   ;;  %s564_s1 = inlined_call_operand.vmem [shape: bf16[2,32,8], index: 1, kind: input, shape index: {}]   ;;  %s565_s2 = inlined_call_operand.vmem [shape: bf16[2,8,8], index: 2, kind: output, shape index: {}]  }
   0x1   :  { %s523_s11 = smov 0  }
   0x2 LB: > { %s24_s12 = sadd.s32 1, %s496_s10  ;;  %p417_p0 = scmp.ge.s32.totalorder %s500_s11, 1  ;;  %s500_s11 = sphi %s523_s11, %s12_s11   ;;  %s496_s10 = sphi %s521_s10, %s567_s10   ;;  %s492_s9 = sphi %s519_s9, %s566_s9  }
   0x3   : > { %p26_p1 = scmp.ge.s32.totalorder %s24_s12, 2  ;;  %p148_p2 = scmp.lt.s32.totalorder %s500_s11, 3 }
   0x5   : > { %s569_s12 = smov (%p26_p1, %s24_s12), 0  ;;  %p149_p3 = pnand %p417_p0, %p148_p2 }
   0x6   : > { %p183_p4 = scmp.lt.s32.totalorder (!%p149_p3), %s492_s9, 1  ;;  %v502_v0 = vmov (!%p149_p3), 0.0   ;;  %vm503_vm0 = vmmov (!%p149_p3), 0   ;;  %vm211_vm1 = vcmask (!%p149_p3), 64512   ;;  %vm262_vm2 = vcmask (!%p149_p3), 261120  }
   0x7   : > { %152 = sbr.rel (%p149_p3) target bundleno = 662 (0x296), region = 28  ;;  %435 = vmatprep.subr.bf16.mxu0 (!%p149_p3), %v502_v0  ;;  %439 = vmatprep.mubr.msk.bf16.mxu0 (!%p149_p3), %vm503_vm0, %v502_v0  ;;  %212 = vst.msk [vmem:[#allocation2] sm:$0xff] (!%p149_p3), %vm211_vm1, %v502_v0  ;;  %vm326_vm3 = vcmask (!%p149_p3), 60416  }
   0xe   : > { %s571_s9 = smov (!%p183_p4, %s492_s9), 1  ;;  %v213_v6 = vld [vmem:[#allocation2] sm:$0xff] }
   0xf   : > { %s430_s13 = sshll.u32 %s571_s9, 4  ;;  %s422_s20 = sshll.u32 %s571_s9, 2 }
  0x10   : > { %s190_s16 = scalar_lea.vmem %s563_s0, %s430_s13  ;;  %s200_s19 = scalar_lea.vmem %s564_s1, %s430_s13 }
  0x11   : > { %v470_v1 = vld [vmem:[%s190_s16] sm:$0xff]   ;;  %v471_v2 = vld [vmem:[%s190_s16 + $0x8] sm:$0xff]   ;;  %s205_s23 = scalar_lea.vmem %s565_s2, %s422_s20 }
  0x12   : > { %234 = vxpose.xlu0.c.b16.start [1/2] (short) (narrow) %v470_v1, 16  ;;  %v472_v3 = vld [vmem:[%s200_s19] sm:$0xff]   ;;  %v473_v4 = vld [vmem:[%s200_s19 + $0x8] sm:$0xff]  }
  0x13   : > { %436 = vmatpush3.bf16.msra.mxu0 %v472_v3 }
  0x14   : > { %437 = vmatprep.subr.bf16.mxu0 %v502_v0 }
  0x16   : > { %235 = vxpose.xlu0.c.b16.end [2/2] (short) (narrow) %v471_v2, 16 }
  0x17   : > { %438 = vmatpush3.bf16.msra.mxu0 %v473_v4 }
  0x78   : > { %v242_v5 = vpop.trf.xlu0 }
  0x79   : > { %440 = vmatmul.mubr.msk.bf16.vlgmr.msra.gmra.mrb[0].mxu0 %vm262_vm2, %v242_v5 }
 0x14c   : > { %v300_v7 = vpop.f32.mrb[0].mxu0 }
 0x14d   : > { %v306_v8 = vadd.f32 %v300_v7, %v213_v6  ;;  %v441_v9 = vpop.f32.mrb[1].mxu0 }
 0x14e   : > { %v303_v10 = vpop.f32.mrb[2].mxu0 }
 0x14f   : > { %308 = vst.msk [vmem:[#allocation2] sm:$0xff] %vm211_vm1, %v306_v8  ;;  %v442_v11 = vpop.f32.mrb[3].mxu0 }
 0x156   : > { %v312_v12 = vld [vmem:[#allocation2] sm:$0xff] }
 0x157   : > { %v313_v13 = vmul.f32 0.35355338, %v312_v12 }
 0x159   : > { %v314_v14 = vsel %vm211_vm1, %v313_v13, -inf }
 0x15a   : > { %315 = vmax.xlane.f32.xlu1 %v314_v14 }
 0x1e7   : > { %v316_v15 = vpop.xlane.xlu1 %315 }
 0x1e8   : > { %v317_v16 = vsub.f32 %v313_v13, %v316_v15 }
 0x1ea   : > { %v318_v17 = vmul.f32 1.442695, %v317_v16 }
 0x1ec   : > { %474 = vpow2.f32 %v318_v17 }
 0x1f6   : > { %v475_v18 = vpop.eup %474 }
 0x1f7   : > { %v320_v19 = vsel %vm211_vm1, %v475_v18, 0.0 }
 0x1f8   : > { %321 = vadd.xlane.f32.xlu1 %v320_v19 }
 0x285   : > { %v322_v20 = vpop.xlane.xlu1 %321 }
 0x286   : > { %476 = vrcp.f32 %v322_v20 }
 0x290   : > { %v477_v21 = vpop.eup %476 }
 0x291   : > { %v324_v22 = vmul.f32 %v477_v21, %v475_v18 }
 0x293   : > { %v325_v23 = vpack.c.bf16 %v324_v22, %v324_v22 }
 0x295   : > { %327 = vst.msk [vmem:[%s205_s23] sm:$0xf] %vm326_vm3, %v325_v23 }
 0x296 PF: > { %s12_s11 = sadd.s32 1, %s500_s11   ;;  %s566_s9 = smov %s496_s10 }
 0x297   : > { %p9_p5 = scmp.ge.s32.totalorder %s12_s11, 4   ;;  %s567_s10 = smov %s569_s12 }
 0x299   :  { %11 = sbr.rel (!%p9_p5) target bundleno = 2 (0x2), region = 69 }

// kernel: encoder_forward.66
= control target key start
LH: loop header
LB: loop body
LE: loop exit
PB: predicated region body
PF: predicated region fallthrough
CT: control target
= control target key end

     0   :  { %s532_s1 = inlined_call_operand.vmem [shape: bf16[128,128], index: 1, kind: input, shape index: {}]   ;;  %s533_s0 = inlined_call_operand.vmem [shape: bf16[64,128], index: 0, kind: input, shape index: {}]   ;;  %s534_s3 = inlined_call_operand.vmem [shape: bf16[64,128], index: 3, kind: input, shape index: {}]   ;;  %s535_s2 = inlined_call_operand.vmem [shape: f32[1,128], index: 2, kind: input, shape index: {}]   ;;  %s536_s4 = inlined_call_operand.vmem [shape: bf16[64,128], index: 4, kind: output, shape index: {}]  }
   0x1   :  { %v432_v0 = vld [vmem:[%s532_s1] sm:$0xff]   ;;  %v433_v1 = vld [vmem:[%s532_s1 + $0x8] sm:$0xff]   ;;  %v434_v2 = vld [vmem:[%s532_s1 + $0x10] sm:$0xff]  }
   0x2   :  { %392 = vmatprep.subr.bf16.mxu0 %v432_v0  ;;  %416 = vmatprep.subr.bf16.mxu1 %v432_v0  ;;  %v435_v3 = vld [vmem:[%s532_s1 + $0x18] sm:$0xff]   ;;  %v440_v4 = vld [vmem:[%s533_s0] sm:$0xff]   ;;  %v441_v5 = vld [vmem:[%s533_s0 + $0x10] sm:$0xff]  }
   0x3   :  { %393 = vmatpush3.bf16.msra.mxu0 %v432_v0  ;;  %424 = vmatpush3.bf16.msra.mxu1 %v432_v0  ;;  %v436_v6 = vld [vmem:[%s532_s1 + $0x20] sm:$0xff]   ;;  %v437_v7 = vld [vmem:[%s532_s1 + $0x28] sm:$0xff]   ;;  %v438_v8 = vld [vmem:[%s532_s1 + $0x30] sm:$0xff]  }
   0x4   :  { %394 = vmatprep.subr.bf16.mxu0 %v433_v1  ;;  %417 = vmatprep.subr.bf16.mxu1 %v433_v1  ;;  %v439_v9 = vld [vmem:[%s532_s1 + $0x38] sm:$0xff]   ;;  %v442_v10 = vld [vmem:[%s533_s0 + $0x8] sm:$0xff]   ;;  %v339_v14 = vld [vmem:[%s534_s3] sm:$0xff]  }
   0x5   :  { %408 = vmatprep.mubr.bf16.mxu0 %v440_v4  ;;  %412 = vmatprep.mubr.bf16.mxu1 %v441_v5  ;;  %v443_v11 = vld [vmem:[%s533_s0 + $0x18] sm:$0xff]   ;;  %v374_v12 = vld [vmem:[%s534_s3 + $0x8] sm:$0xff]   ;;  %v375_v15 = vld [vmem:[%s534_s3 + $0x10] sm:$0xff]   ;;  %v340_v21 = vunpack.c.l.bf16 %v339_v14  ;;  %v341_v33 = vunpack.c.h.bf16 %v339_v14 }
   0x6   :  { %v376_v13 = vld [vmem:[%s534_s3 + $0x18] sm:$0xff]   ;;  %v321_v16 = vld [vmem:[%s535_s2] ss:$0 sm:$0xff]  ;;  %v344_v18 = vunpack.c.l.bf16 %v374_v12  ;;  %v348_v22 = vunpack.c.l.bf16 %v375_v15  ;;  %v345_v27 = vunpack.c.h.bf16 %v374_v12  ;;  %v349_v34 = vunpack.c.h.bf16 %v375_v15 }
   0x7   :  { %395 = vmatpush3.bf16.msra.mxu0 %v433_v1  ;;  %425 = vmatpush3.bf16.msra.mxu1 %v433_v1  ;;  %v352_v20 = vunpack.c.l.bf16 %v376_v13  ;;  %v353_v28 = vunpack.c.h.bf16 %v376_v13 }
   0x8   :  { %396 = vmatprep.subr.bf16.mxu0 %v434_v2  ;;  %418 = vmatprep.subr.bf16.mxu1 %v434_v2 }
   0xb   :  { %397 = vmatpush3.bf16.msra.mxu0 %v434_v2  ;;  %426 = vmatpush3.bf16.msra.mxu1 %v434_v2 }
   0xc   :  { %398 = vmatprep.subr.bf16.mxu0 %v435_v3  ;;  %419 = vmatprep.subr.bf16.mxu1 %v435_v3 }
   0xf   :  { %399 = vmatpush3.bf16.msra.mxu0 %v435_v3  ;;  %427 = vmatpush3.bf16.msra.mxu1 %v435_v3 }
  0x10   :  { %400 = vmatprep.subr.bf16.mxu0 %v436_v6  ;;  %420 = vmatprep.subr.bf16.mxu1 %v436_v6 }
  0x13   :  { %401 = vmatpush3.bf16.msra.mxu0 %v436_v6  ;;  %428 = vmatpush3.bf16.msra.mxu1 %v436_v6 }
  0x14   :  { %402 = vmatprep.subr.bf16.mxu0 %v437_v7  ;;  %421 = vmatprep.subr.bf16.mxu1 %v437_v7 }
  0x17   :  { %403 = vmatpush3.bf16.msra.mxu0 %v437_v7  ;;  %429 = vmatpush3.bf16.msra.mxu1 %v437_v7 }
  0x18   :  { %404 = vmatprep.subr.bf16.mxu0 %v438_v8  ;;  %422 = vmatprep.subr.bf16.mxu1 %v438_v8 }
  0x1b   :  { %405 = vmatpush3.bf16.msra.mxu0 %v438_v8  ;;  %430 = vmatpush3.bf16.msra.mxu1 %v438_v8 }
  0x1c   :  { %406 = vmatprep.subr.bf16.mxu0 %v439_v9  ;;  %423 = vmatprep.subr.bf16.mxu1 %v439_v9 }
  0x1f   :  { %407 = vmatpush3.bf16.msra.mxu0 %v439_v9  ;;  %431 = vmatpush3.bf16.msra.mxu1 %v439_v9 }
  0x22   :  { %409 = vmatmul.mubr.bf16.vlgmr.msra.gmra.mrb[0].mxu0 %v442_v10  ;;  %413 = vmatmul.mubr.bf16.vlgmr.msra.gmra.mrb[0].mxu1 %v443_v11 }
  0xf5   :  { %v410_v17 = vpop.f32.mrb[0].mxu0  ;;  %v414_v19 = vpop.f32.mrb[0].mxu1 }
  0xf6   :  { %v235_v23 = vadd.f32 %v410_v17, %v321_v16  ;;  %v239_v24 = vadd.f32 %v414_v19, %v321_v16  ;;  %v168_v25 = vpop.f32.mrb[1].mxu0  ;;  %v184_v26 = vpop.f32.mrb[1].mxu1 }
  0xf7   :  { %v233_v29 = vadd.f32 %v321_v16, %v168_v25  ;;  %v237_v30 = vadd.f32 %v321_v16, %v184_v26  ;;  %v411_v31 = vpop.f32.mrb[2].mxu0  ;;  %v415_v32 = vpop.f32.mrb[2].mxu1 }
  0xf8   :  { %v236_v35 = vadd.f32 %v411_v31, %v321_v16  ;;  %v240_v36 = vadd.f32 %v415_v32, %v321_v16  ;;  %v171_v37 = vpop.f32.mrb[3].mxu0  ;;  %v187_v38 = vpop.f32.mrb[3].mxu1  ;;  %v259_v41 = vadd.f32 %v344_v18, %v235_v23  ;;  %v263_v42 = vadd.f32 %v352_v20, %v239_v24 }
  0xf9   :  { %v234_v39 = vadd.f32 %v321_v16, %v171_v37  ;;  %v238_v40 = vadd.f32 %v321_v16, %v187_v38  ;;  %v257_v45 = vadd.f32 %v340_v21, %v233_v29  ;;  %v261_v46 = vadd.f32 %v348_v22, %v237_v30 }
  0xfa   :  { %v260_v43 = vadd.f32 %v345_v27, %v236_v35  ;;  %v264_v44 = vadd.f32 %v353_v28, %v240_v36 }
  0xfb   :  { %v258_v47 = vadd.f32 %v341_v33, %v234_v39  ;;  %v262_v48 = vadd.f32 %v349_v34, %v238_v40 }
  0xfc   :  { %v362_v49 = vpack.c.bf16 %v260_v43, %v259_v41  ;;  %v372_v50 = vpack.c.bf16 %v264_v44, %v263_v42 }
  0xfd   :  { %v357_v51 = vpack.c.bf16 %v258_v47, %v257_v45  ;;  %v367_v52 = vpack.c.bf16 %v262_v48, %v261_v46 }
  0xfe   :  { %377 = vst [vmem:[%s536_s4 + $0x8] sm:$0xff] %v362_v49   ;;  %379 = vst [vmem:[%s536_s4 + $0x18] sm:$0xff] %v372_v50  }
  0xff   :  { %358 = vst [vmem:[%s536_s4] sm:$0xff] %v357_v51   ;;  %378 = vst [vmem:[%s536_s4 + $0x10] sm:$0xff] %v367_v52  }

// kernel: encoder_forward.75
= control target key start
LH: loop header
LB: loop body
LE: loop exit
PB: predicated region body
PF: predicated region fallthrough
CT: control target
= control target key end

     0   :  { %v1673_v0 = vmov 0.0   ;;  %vm1674_vm0 = vmmov 0   ;;  %s2010_s1 = inlined_call_operand.vmem [shape: bf16[128,128], index: 1, kind: input, shape index: {}]   ;;  %s2011_s0 = inlined_call_operand.vmem [shape: bf16[432,128], index: 0, kind: input, shape index: {}]   ;;  %s2012_s2 = inlined_call_operand.vmem [shape: f32[1,128], index: 2, kind: input, shape index: {}]   ;;  %s2013_s3 = inlined_call_operand.vmem [shape: bf16[432,128], index: 3, kind: output, shape index: {}]  }
   0x1   :  { %1496 = vmatprep.subr.bf16.mxu0 %v1673_v0  ;;  %v1638_v1 = vld [vmem:[%s2010_s1] sm:$0xff]   ;;  %1620 = vmatprep.subr.bf16.mxu1 %v1673_v0  ;;  %v1639_v2 = vld [vmem:[%s2010_s1 + $0x8] sm:$0xff]   ;;  %v1640_v3 = vld [vmem:[%s2010_s1 + $0x10] sm:$0xff]  }
   0x2   :  { %1512 = vmatprep.mubr.msk.bf16.mxu0 %vm1674_vm0, %v1673_v0  ;;  %1568 = vmatprep.mubr.msk.bf16.mxu1 %vm1674_vm0, %v1673_v0  ;;  %v1641_v4 = vld [vmem:[%s2010_s1 + $0x18] sm:$0xff]   ;;  %v1642_v5 = vld [vmem:[%s2010_s1 + $0x20] sm:$0xff]   ;;  %v1643_v6 = vld [vmem:[%s2010_s1 + $0x28] sm:$0xff]  }
   0x3   :  { %1497 = vmatpush3.bf16.msra.mxu0 %v1638_v1  ;;  %1628 = vmatpush3.bf16.msra.mxu1 %v1638_v1  ;;  %v1644_v7 = vld [vmem:[%s2010_s1 + $0x30] sm:$0xff]   ;;  %v1645_v8 = vld [vmem:[%s2010_s1 + $0x38] sm:$0xff]   ;;  %v1646_v9 = vld [vmem:[%s2011_s0] sm:$0xff]  }
   0x4   :  { %1498 = vmatprep.subr.bf16.mxu0 %v1673_v0  ;;  %1621 = vmatprep.subr.bf16.mxu1 %v1673_v0  ;;  %v1647_v10 = vld [vmem:[%s2011_s0 + $0x70] sm:$0xff]   ;;  %v1648_v11 = vld [vmem:[%s2011_s0 + $0x8] sm:$0xff]   ;;  %v1649_v12 = vld [vmem:[%s2011_s0 + $0x78] sm:$0xff]  }
   0x5   :  { %v1650_v13 = vld [vmem:[%s2011_s0 + $0x10] sm:$0xff]   ;;  %v1651_v14 = vld [vmem:[%s2011_s0 + $0x80] sm:$0xff]   ;;  %v1652_v15 = vld [vmem:[%s2011_s0 + $0x18] sm:$0xff]  }
   0x6   :  { %v1653_v16 = vld [vmem:[%s2011_s0 + $0x88] sm:$0xff]   ;;  %v1654_v17 = vld [vmem:[%s2011_s0 + $0x20] sm:$0xff]   ;;  %v1655_v18 = vld [vmem:[%s2011_s0 + $0x90] sm:$0xff]  }
   0x7   :  { %1499 = vmatpush3.bf16.msra.mxu0 %v1639_v2  ;;  %1629 = vmatpush3.bf16.msra.mxu1 %v1639_v2  ;;  %v1656_v19 = vld [vmem:[%s2011_s0 + $0x28] sm:$0xff]   ;;  %v1657_v20 = vld [vmem:[%s2011_s0 + $0x98] sm:$0xff]   ;;  %v1658_v21 = vld [vmem:[%s2011_s0 + $0x30] sm:$0xff]  }
   0x8   :  { %1500 = vmatprep.subr.bf16.mxu0 %v1673_v0  ;;  %1622 = vmatprep.subr.bf16.mxu1 %v1673_v0  ;;  %v1659_v22 = vld [vmem:[%s2011_s0 + $0xa0] sm:$0xff]   ;;  %v1660_v23 = vld [vmem:[%s2011_s0 + $0x38] sm:$0xff]   ;;  %v1661_v24 = vld [vmem:[%s2011_s0 + $0xa8] sm:$0xff]  }
   0x9   :  { %v1662_v25 = vld [vmem:[%s2011_s0 + $0x40] sm:$0xff]   ;;  %v1663_v26 = vld [vmem:[%s2011_s0 + $0xb0] sm:$0xff]   ;;  %v1664_v27 = vld [vmem:[%s2011_s0 + $0x48] sm:$0xff]  }
   0xa   :  { %v1665_v28 = vld [vmem:[%s2011_s0 + $0xb8] sm:$0xff]   ;;  %v1666_v29 = vld [vmem:[%s2011_s0 + $0x50] sm:$0xff]   ;;  %v1667_v30 = vld [vmem:[%s2011_s0 + $0xc0] sm:$0xff]  }
   0xb   :  { %1501 = vmatpush3.bf16.msra.mxu0 %v1640_v3  ;;  %1630 = vmatpush3.bf16.msra.mxu1 %v1640_v3  ;;  %v1668_v31 = vld [vmem:[%s2011_s0 + $0x58] sm:$0xff]   ;;  %v1669_v32 = vld [vmem:[%s2011_s0 + $0xc8] sm:$0xff]   ;;  %v1670_v33 = vld [vmem:[%s2011_s0 + $0x60] sm:$0xff]  }
   0xc   :  { %1502 = vmatprep.subr.bf16.mxu0 %v1673_v0  ;;  %1623 = vmatprep.subr.bf16.mxu1 %v1673_v0  ;;  %v1671_v34 = vld [vmem:[%s2011_s0 + $0xd0] sm:$0xff]   ;;  %v1672_v35 = vld [vmem:[%s2011_s0 + $0x68] sm:$0xff]   ;;  %v1873_v37 = vld [vmem:[%s2012_s2] ss:$0 sm:$0xff] }
   0xf   :  { %1503 = vmatpush3.bf16.msra.mxu0 %v1641_v4  ;;  %1631 = vmatpush3.bf16.msra.mxu1 %v1641_v4 }
  0x10   :  { %1504 = vmatprep.subr.bf16.mxu0 %v1673_v0  ;;  %1624 = vmatprep.subr.bf16.mxu1 %v1673_v0 }
  0x13   :  { %1505 = vmatpush3.bf16.msra.mxu0 %v1642_v5  ;;  %1632 = vmatpush3.bf16.msra.mxu1 %v1642_v5 }
  0x14   :  { %1506 = vmatprep.subr.bf16.mxu0 %v1673_v0  ;;  %1625 = vmatprep.subr.bf16.mxu1 %v1673_v0 }
  0x17   :  { %1507 = vmatpush3.bf16.msra.mxu0 %v1643_v6  ;;  %1633 = vmatpush3.bf16.msra.mxu1 %v1643_v6 }
  0x18   :  { %1508 = vmatprep.subr.bf16.mxu0 %v1673_v0  ;;  %1626 = vmatprep.subr.bf16.mxu1 %v1673_v0 }
  0x1b   :  { %1509 = vmatpush3.bf16.msra.mxu0 %v1644_v7  ;;  %1634 = vmatpush3.bf16.msra.mxu1 %v1644_v7 }
  0x1c   :  { %1510 = vmatprep.subr.bf16.mxu0 %v1673_v0  ;;  %1627 = vmatprep.subr.bf16.mxu1 %v1673_v0 }
  0x1f   :  { %1511 = vmatpush3.bf16.msra.mxu0 %v1645_v8  ;;  %1635 = vmatpush3.bf16.msra.mxu1 %v1645_v8 }
  0x22   :  { %1513 = vmatmul.mubr.bf16.vlgmr.msra.gmra.mrb[0].mxu0 %v1646_v9  ;;  %1569 = vmatmul.mubr.bf16.vlgmr.msra.gmra.mrb[0].mxu1 %v1647_v10 }
  0x23   :  { %1516 = vmatprep.mubr.msk.bf16.mxu0 %vm1674_vm0, %v1673_v0  ;;  %1572 = vmatprep.mubr.msk.bf16.mxu1 %vm1674_vm0, %v1673_v0 }
  0x2a   :  { %1517 = vmatmul.mubr.bf16.gmra.mrb[4].mxu0 %v1648_v11  ;;  %1573 = vmatmul.mubr.bf16.gmra.mrb[4].mxu1 %v1649_v12 }
  0x2b   :  { %1520 = vmatprep.mubr.msk.bf16.mxu0 %vm1674_vm0, %v1673_v0  ;;  %1576 = vmatprep.mubr.msk.bf16.mxu1 %vm1674_vm0, %v1673_v0 }
  0x32   :  { %1521 = vmatmul.mubr.bf16.gmra.mrb[8].mxu0 %v1650_v13  ;;  %1577 = vmatmul.mubr.bf16.gmra.mrb[8].mxu1 %v1651_v14 }
  0x33   :  { %1524 = vmatprep.mubr.msk.bf16.mxu0 %vm1674_vm0, %v1673_v0  ;;  %1580 = vmatprep.mubr.msk.bf16.mxu1 %vm1674_vm0, %v1673_v0 }
  0x3a   :  { %1525 = vmatmul.mubr.bf16.gmra.mrb[12].mxu0 %v1652_v15  ;;  %1581 = vmatmul.mubr.bf16.gmra.mrb[12].mxu1 %v1653_v16 }
  0x3b   :  { %1528 = vmatprep.mubr.msk.bf16.mxu0 %vm1674_vm0, %v1673_v0  ;;  %1584 = vmatprep.mubr.msk.bf16.mxu1 %vm1674_vm0, %v1673_v0 }
  0x42   :  { %1529 = vmatmul.mubr.bf16.gmra.mrb[16].mxu0 %v1654_v17  ;;  %1585 = vmatmul.mubr.bf16.gmra.mrb[16].mxu1 %v1655_v18 }
  0x43   :  { %1532 = vmatprep.mubr.msk.bf16.mxu0 %vm1674_vm0, %v1673_v0  ;;  %1588 = vmatprep.mubr.msk.bf16.mxu1 %vm1674_vm0, %v1673_v0 }
  0x4a   :  { %1533 = vmatmul.mubr.bf16.gmra.mrb[20].mxu0 %v1656_v19  ;;  %1589 = vmatmul.mubr.bf16.gmra.mrb[20].mxu1 %v1657_v20 }
  0x4b   :  { %1536 = vmatprep.mubr.msk.bf16.mxu0 %vm1674_vm0, %v1673_v0  ;;  %1592 = vmatprep.mubr.msk.bf16.mxu1 %vm1674_vm0, %v1673_v0 }
  0x52   :  { %1537 = vmatmul.mubr.bf16.gmra.mrb[24].mxu0 %v1658_v21  ;;  %1593 = vmatmul.mubr.bf16.gmra.mrb[24].mxu1 %v1659_v22 }
  0x53   :  { %1540 = vmatprep.mubr.msk.bf16.mxu0 %vm1674_vm0, %v1673_v0  ;;  %1596 = vmatprep.mubr.msk.bf16.mxu1 %vm1674_vm0, %v1673_v0 }
  0x5a   :  { %1541 = vmatmul.mubr.bf16.gmra.mrb[28].mxu0 %v1660_v23  ;;  %1597 = vmatmul.mubr.bf16.gmra.mrb[28].mxu1 %v1661_v24 }
  0x5b   :  { %1544 = vmatprep.mubr.msk.bf16.mxu0 %vm1674_vm0, %v1673_v0  ;;  %1600 = vmatprep.mubr.msk.bf16.mxu1 %vm1674_vm0, %v1673_v0 }
  0x62   :  { %1545 = vmatmul.mubr.bf16.gmra.mrb[32].mxu0 %v1662_v25  ;;  %1601 = vmatmul.mubr.bf16.gmra.mrb[32].mxu1 %v1663_v26 }
  0x63   :  { %1548 = vmatprep.mubr.msk.bf16.mxu0 %vm1674_vm0, %v1673_v0  ;;  %1604 = vmatprep.mubr.msk.bf16.mxu1 %vm1674_vm0, %v1673_v0 }
  0x6a   :  { %1549 = vmatmul.mubr.bf16.gmra.mrb[36].mxu0 %v1664_v27  ;;  %1605 = vmatmul.mubr.bf16.gmra.mrb[36].mxu1 %v1665_v28 }
  0x6b   :  { %1552 = vmatprep.mubr.msk.bf16.mxu0 %vm1674_vm0, %v1673_v0  ;;  %1608 = vmatprep.mubr.msk.bf16.mxu1 %vm1674_vm0, %v1673_v0 }
  0x72   :  { %1553 = vmatmul.mubr.bf16.gmra.mrb[40].mxu0 %v1666_v29  ;;  %1609 = vmatmul.mubr.bf16.gmra.mrb[40].mxu1 %v1667_v30 }
  0x73   :  { %1556 = vmatprep.mubr.msk.bf16.mxu0 %vm1674_vm0, %v1673_v0  ;;  %1612 = vmatprep.mubr.msk.bf16.mxu1 %vm1674_vm0, %v1673_v0 }
  0x7a   :  { %1557 = vmatmul.mubr.bf16.gmra.mrb[44].mxu0 %v1668_v31  ;;  %1613 = vmatmul.mubr.bf16.gmra.mrb[44].mxu1 %v1669_v32 }
  0x7b   :  { %1560 = vmatprep.mubr.msk.bf16.mxu0 %vm1674_vm0, %v1673_v0  ;;  %1616 = vmatprep.mubr.msk.bf16.mxu1 %vm1674_vm0, %v1673_v0 }
  0x82   :  { %1561 = vmatmul.mubr.bf16.gmra.mrb[48].mxu0 %v1670_v33  ;;  %1617 = vmatmul.mubr.bf16.gmra.mrb[48].mxu1 %v1671_v34 }
  0x83   :  { %1564 = vmatprep.mubr.msk.bf16.mxu0 %vm1674_vm0, %v1673_v0 }
  0x8a   :  { %1565 = vmatmul.mubr.bf16.gmra.mrb[52].mxu0 %v1672_v35 }
  0xf5   :  { %v441_v36 = vpop.f32.mrb[0].mxu0  ;;  %v553_v38 = vpop.f32.mrb[0].mxu1 }
  0xf6   :  { %v1514_v39 = vpop.f32.mrb[1].mxu0  ;;  %v856_v40 = vadd.f32 %v1873_v37, %v553_v38  ;;  %v1570_v41 = vpop.f32.mrb[1].mxu1  ;;  %v828_v44 = vadd.f32 %v1873_v37, %v441_v36 }
  0xf7   :  { %v444_v42 = vpop.f32.mrb[2].mxu0  ;;  %v556_v43 = vpop.f32.mrb[2].mxu1 }
  0xf8   :  { %v829_v45 = vadd.f32 %v1873_v37, %v444_v42  ;;  %v1515_v46 = vpop.f32.mrb[3].mxu0  ;;  %v857_v47 = vadd.f32 %v1873_v37, %v556_v43  ;;  %v1571_v48 = vpop.f32.mrb[3].mxu1 }
  0xfa   :  { %v1303_v49 = vpack.c.bf16 %v829_v45, %v828_v44  ;;  %v1373_v50 = vpack.c.bf16 %v857_v47, %v856_v40 }
  0xfc   :  { %1304 = vst [vmem:[%s2013_s3] sm:$0xff] %v1303_v49   ;;  %1448 = vst [vmem:[%s2013_s3 + $0x70] sm:$0xff] %v1373_v50  }
  0xfd   :  { %v449_v51 = vpop.f32.mrb[4].mxu0  ;;  %v561_v52 = vpop.f32.mrb[4].mxu1 }
  0xfe   :  { %v1518_v53 = vpop.f32.mrb[5].mxu0  ;;  %v858_v54 = vadd.f32 %v1873_v37, %v561_v52  ;;  %v1574_v55 = vpop.f32.mrb[5].mxu1  ;;  %v830_v58 = vadd.f32 %v1873_v37, %v449_v51 }
  0xff   :  { %v452_v56 = vpop.f32.mrb[6].mxu0  ;;  %v564_v57 = vpop.f32.mrb[6].mxu1 }
 0x100   :  { %v831_v59 = vadd.f32 %v1873_v37, %v452_v56  ;;  %v1519_v60 = vpop.f32.mrb[7].mxu0  ;;  %v859_v61 = vadd.f32 %v1873_v37, %v564_v57  ;;  %v1575_v62 = vpop.f32.mrb[7].mxu1 }
 0x102   :  { %v1308_v63 = vpack.c.bf16 %v831_v59, %v830_v58  ;;  %v1378_v0 = vpack.c.bf16 %v859_v61, %v858_v54 }
 0x104   :  { %1435 = vst [vmem:[%s2013_s3 + $0x8] sm:$0xff] %v1308_v63   ;;  %1449 = vst [vmem:[%s2013_s3 + $0x78] sm:$0xff] %v1378_v0  }
 0x105   :  { %v457_v1 = vpop.f32.mrb[8].mxu0  ;;  %v569_v2 = vpop.f32.mrb[8].mxu1 }
 0x106   :  { %v1522_v3 = vpop.f32.mrb[9].mxu0  ;;  %v860_v4 = vadd.f32 %v1873_v37, %v569_v2  ;;  %v1578_v5 = vpop.f32.mrb[9].mxu1  ;;  %v832_v8 = vadd.f32 %v1873_v37, %v457_v1 }
 0x107   :  { %v460_v6 = vpop.f32.mrb[10].mxu0  ;;  %v572_v7 = vpop.f32.mrb[10].mxu1 }
 0x108   :  { %v833_v9 = vadd.f32 %v1873_v37, %v460_v6  ;;  %v1523_v10 = vpop.f32.mrb[11].mxu0  ;;  %v861_v11 = vadd.f32 %v1873_v37, %v572_v7  ;;  %v1579_v12 = vpop.f32.mrb[11].mxu1 }
 0x10a   :  { %v1313_v13 = vpack.c.bf16 %v833_v9, %v832_v8  ;;  %v1383_v14 = vpack.c.bf16 %v861_v11, %v860_v4 }
 0x10c   :  { %1436 = vst [vmem:[%s2013_s3 + $0x10] sm:$0xff] %v1313_v13   ;;  %1450 = vst [vmem:[%s2013_s3 + $0x80] sm:$0xff] %v1383_v14  }
 0x10d   :  { %v465_v15 = vpop.f32.mrb[12].mxu0  ;;  %v577_v16 = vpop.f32.mrb[12].mxu1 }
 0x10e   :  { %v1526_v17 = vpop.f32.mrb[13].mxu0  ;;  %v862_v18 = vadd.f32 %v1873_v37, %v577_v16  ;;  %v1582_v19 = vpop.f32.mrb[13].mxu1  ;;  %v834_v22 = vadd.f32 %v1873_v37, %v465_v15 }
 0x10f   :  { %v468_v20 = vpop.f32.mrb[14].mxu0  ;;  %v580_v21 = vpop.f32.mrb[14].mxu1 }
 0x110   :  { %v835_v23 = vadd.f32 %v1873_v37, %v468_v20  ;;  %v1527_v24 = vpop.f32.mrb[15].mxu0  ;;  %v863_v25 = vadd.f32 %v1873_v37, %v580_v21  ;;  %v1583_v26 = vpop.f32.mrb[15].mxu1 }
 0x112   :  { %v1318_v27 = vpack.c.bf16 %v835_v23, %v834_v22  ;;  %v1388_v28 = vpack.c.bf16 %v863_v25, %v862_v18 }
 0x114   :  { %1437 = vst [vmem:[%s2013_s3 + $0x18] sm:$0xff] %v1318_v27   ;;  %1451 = vst [vmem:[%s2013_s3 + $0x88] sm:$0xff] %v1388_v28  }
 0x115   :  { %v473_v29 = vpop.f32.mrb[16].mxu0  ;;  %v585_v30 = vpop.f32.mrb[16].mxu1 }
 0x116   :  { %v1530_v31 = vpop.f32.mrb[17].mxu0  ;;  %v864_v32 = vadd.f32 %v1873_v37, %v585_v30  ;;  %v1586_v33 = vpop.f32.mrb[17].mxu1  ;;  %v836_v36 = vadd.f32 %v1873_v37, %v473_v29 }
 0x117   :  { %v476_v34 = vpop.f32.mrb[18].mxu0  ;;  %v588_v35 = vpop.f32.mrb[18].mxu1 }
 0x118   :  { %v837_v38 = vadd.f32 %v1873_v37, %v476_v34  ;;  %v1531_v39 = vpop.f32.mrb[19].mxu0  ;;  %v865_v40 = vadd.f32 %v1873_v37, %v588_v35  ;;  %v1587_v41 = vpop.f32.mrb[19].mxu1 }
 0x11a   :  { %v1323_v42 = vpack.c.bf16 %v837_v38, %v836_v36  ;;  %v1393_v43 = vpack.c.bf16 %v865_v40, %v864_v32 }
 0x11c   :  { %1438 = vst [vmem:[%s2013_s3 + $0x20] sm:$0xff] %v1323_v42   ;;  %1452 = vst [vmem:[%s2013_s3 + $0x90] sm:$0xff] %v1393_v43  }
 0x11d   :  { %v481_v44 = vpop.f32.mrb[20].mxu0  ;;  %v593_v45 = vpop.f32.mrb[20].mxu1 }
 0x11e   :  { %v1534_v46 = vpop.f32.mrb[21].mxu0  ;;  %v866_v47 = vadd.f32 %v1873_v37, %v593_v45  ;;  %v1590_v48 = vpop.f32.mrb[21].mxu1  ;;  %v838_v51 = vadd.f32 %v1873_v37, %v481_v44 }
 0x11f   :  { %v484_v49 = vpop.f32.mrb[22].mxu0  ;;  %v596_v50 = vpop.f32.mrb[22].mxu1 }
 0x120   :  { %v839_v52 = vadd.f32 %v1873_v37, %v484_v49  ;;  %v1535_v53 = vpop.f32.mrb[23].mxu0  ;;  %v867_v54 = vadd.f32 %v1873_v37, %v596_v50  ;;  %v1591_v55 = vpop.f32.mrb[23].mxu1 }
 0x122   :  { %v1328_v56 = vpack.c.bf16 %v839_v52, %v838_v51  ;;  %v1398_v57 = vpack.c.bf16 %v867_v54, %v866_v47 }
 0x124   :  { %1439 = vst [vmem:[%s2013_s3 + $0x28] sm:$0xff] %v1328_v56   ;;  %1453 = vst [vmem:[%s2013_s3 + $0x98] sm:$0xff] %v1398_v57  }
 0x125   :  { %v489_v58 = vpop.f32.mrb[24].mxu0  ;;  %v601_v59 = vpop.f32.mrb[24].mxu1 }
 0x126   :  { %v1538_v60 = vpop.f32.mrb[25].mxu0  ;;  %v868_v61 = vadd.f32 %v1873_v37, %v601_v59  ;;  %v1594_v62 = vpop.f32.mrb[25].mxu1  ;;  %v840_v1 = vadd.f32 %v1873_v37, %v489_v58 }
 0x127   :  { %v492_v63 = vpop.f32.mrb[26].mxu0  ;;  %v604_v0 = vpop.f32.mrb[26].mxu1 }
 0x128   :  { %v841_v2 = vadd.f32 %v1873_v37, %v492_v63  ;;  %v1539_v3 = vpop.f32.mrb[27].mxu0  ;;  %v869_v4 = vadd.f32 %v1873_v37, %v604_v0  ;;  %v1595_v5 = vpop.f32.mrb[27].mxu1 }
 0x12a   :  { %v1333_v6 = vpack.c.bf16 %v841_v2, %v840_v1  ;;  %v1403_v7 = vpack.c.bf16 %v869_v4, %v868_v61 }
 0x12c   :  { %1440 = vst [vmem:[%s2013_s3 + $0x30] sm:$0xff] %v1333_v6   ;;  %1454 = vst [vmem:[%s2013_s3 + $0xa0] sm:$0xff] %v1403_v7  }
 0x12d   :  { %v497_v8 = vpop.f32.mrb[28].mxu0  ;;  %v609_v9 = vpop.f32.mrb[28].mxu1 }
 0x12e   :  { %v1542_v10 = vpop.f32.mrb[29].mxu0  ;;  %v870_v11 = vadd.f32 %v1873_v37, %v609_v9  ;;  %v1598_v12 = vpop.f32.mrb[29].mxu1  ;;  %v842_v15 = vadd.f32 %v1873_v37, %v497_v8 }
 0x12f   :  { %v500_v13 = vpop.f32.mrb[30].mxu0  ;;  %v612_v14 = vpop.f32.mrb[30].mxu1 }
 0x130   :  { %v843_v16 = vadd.f32 %v1873_v37, %v500_v13  ;;  %v1543_v17 = vpop.f32.mrb[31].mxu0  ;;  %v871_v18 = vadd.f32 %v1873_v37, %v612_v14  ;;  %v1599_v19 = vpop.f32.mrb[31].mxu1 }
 0x132   :  { %v1338_v20 = vpack.c.bf16 %v843_v16, %v842_v15  ;;  %v1408_v21 = vpack.c.bf16 %v871_v18, %v870_v11 }
 0x134   :  { %1441 = vst [vmem:[%s2013_s3 + $0x38] sm:$0xff] %v1338_v20   ;;  %1455 = vst [vmem:[%s2013_s3 + $0xa8] sm:$0xff] %v1408_v21  }
 0x135   :  { %v505_v22 = vpop.f32.mrb[32].mxu0  ;;  %v617_v23 = vpop.f32.mrb[32].mxu1 }
 0x136   :  { %v1546_v24 = vpop.f32.mrb[33].mxu0  ;;  %v872_v25 = vadd.f32 %v1873_v37, %v617_v23  ;;  %v1602_v26 = vpop.f32.mrb[33].mxu1  ;;  %v844_v29 = vadd.f32 %v1873_v37, %v505_v22 }
 0x137   :  { %v508_v27 = vpop.f32.mrb[34].mxu0  ;;  %v620_v28 = vpop.f32.mrb[34].mxu1 }
 0x138   :  { %v845_v30 = vadd.f32 %v1873_v37, %v508_v27  ;;  %v1547_v31 = vpop.f32.mrb[35].mxu0  ;;  %v873_v32 = vadd.f32 %v1873_v37, %v620_v28  ;;  %v1603_v33 = vpop.f32.mrb[35].mxu1 }
 0x13a   :  { %v1343_v34 = vpack.c.bf16 %v845_v30, %v844_v29  ;;  %v1413_v35 = vpack.c.bf16 %v873_v32, %v872_v25 }
 0x13c   :  { %1442 = vst [vmem:[%s2013_s3 + $0x40] sm:$0xff] %v1343_v34   ;;  %1456 = vst [vmem:[%s2013_s3 + $0xb0] sm:$0xff] %v1413_v35  }
 0x13d   :  { %v513_v36 = vpop.f32.mrb[36].mxu0  ;;  %v625_v38 = vpop.f32.mrb[36].mxu1 }
 0x13e   :  { %v1550_v39 = vpop.f32.mrb[37].mxu0  ;;  %v874_v40 = vadd.f32 %v1873_v37, %v625_v38  ;;  %v1606_v41 = vpop.f32.mrb[37].mxu1  ;;  %v846_v44 = vadd.f32 %v1873_v37, %v513_v36 }
 0x13f   :  { %v516_v42 = vpop.f32.mrb[38].mxu0  ;;  %v628_v43 = vpop.f32.mrb[38].mxu1 }
 0x140   :  { %v847_v45 = vadd.f32 %v1873_v37, %v516_v42  ;;  %v1551_v46 = vpop.f32.mrb[39].mxu0  ;;  %v875_v47 = vadd.f32 %v1873_v37, %v628_v43  ;;  %v1607_v48 = vpop.f32.mrb[39].mxu1 }
 0x142   :  { %v1348_v49 = vpack.c.bf16 %v847_v45, %v846_v44  ;;  %v1418_v50 = vpack.c.bf16 %v875_v47, %v874_v40 }
 0x144   :  { %1443 = vst [vmem:[%s2013_s3 + $0x48] sm:$0xff] %v1348_v49   ;;  %1457 = vst [vmem:[%s2013_s3 + $0xb8] sm:$0xff] %v1418_v50  }
 0x145   :  { %v521_v51 = vpop.f32.mrb[40].mxu0  ;;  %v633_v52 = vpop.f32.mrb[40].mxu1 }
 0x146   :  { %v1554_v53 = vpop.f32.mrb[41].mxu0  ;;  %v876_v54 = vadd.f32 %v1873_v37, %v633_v52  ;;  %v1610_v55 = vpop.f32.mrb[41].mxu1  ;;  %v848_v58 = vadd.f32 %v1873_v37, %v521_v51 }
 0x147   :  { %v524_v56 = vpop.f32.mrb[42].mxu0  ;;  %v636_v57 = vpop.f32.mrb[42].mxu1 }
 0x148   :  { %v849_v59 = vadd.f32 %v1873_v37, %v524_v56  ;;  %v1555_v60 = vpop.f32.mrb[43].mxu0  ;;  %v877_v61 = vadd.f32 %v1873_v37, %v636_v57  ;;  %v1611_v62 = vpop.f32.mrb[43].mxu1 }
 0x14a   :  { %v1353_v63 = vpack.c.bf16 %v849_v59, %v848_v58  ;;  %v1423_v0 = vpack.c.bf16 %v877_v61, %v876_v54 }
 0x14c   :  { %1444 = vst [vmem:[%s2013_s3 + $0x50] sm:$0xff] %v1353_v63   ;;  %1458 = vst [vmem:[%s2013_s3 + $0xc0] sm:$0xff] %v1423_v0  }
 0x14d   :  { %v529_v1 = vpop.f32.mrb[44].mxu0  ;;  %v641_v2 = vpop.f32.mrb[44].mxu1 }
 0x14e   :  { %v1558_v3 = vpop.f32.mrb[45].mxu0  ;;  %v878_v4 = vadd.f32 %v1873_v37, %v641_v2  ;;  %v1614_v5 = vpop.f32.mrb[45].mxu1  ;;  %v850_v8 = vadd.f32 %v1873_v37, %v529_v1 }
 0x14f   :  { %v532_v6 = vpop.f32.mrb[46].mxu0  ;;  %v644_v7 = vpop.f32.mrb[46].mxu1 }
 0x150   :  { %v851_v9 = vadd.f32 %v1873_v37, %v532_v6  ;;  %v1559_v10 = vpop.f32.mrb[47].mxu0  ;;  %v879_v11 = vadd.f32 %v1873_v37, %v644_v7  ;;  %v1615_v12 = vpop.f32.mrb[47].mxu1 }
 0x152   :  { %v1358_v13 = vpack.c.bf16 %v851_v9, %v850_v8  ;;  %v1428_v14 = vpack.c.bf16 %v879_v11, %v878_v4 }
 0x154   :  { %1445 = vst [vmem:[%s2013_s3 + $0x58] sm:$0xff] %v1358_v13   ;;  %1459 = vst [vmem:[%s2013_s3 + $0xc8] sm:$0xff] %v1428_v14  }
 0x155   :  { %v537_v15 = vpop.f32.mrb[48].mxu0  ;;  %v649_v16 = vpop.f32.mrb[48].mxu1 }
 0x156   :  { %v1562_v17 = vpop.f32.mrb[49].mxu0  ;;  %v880_v18 = vadd.f32 %v1873_v37, %v649_v16  ;;  %v1618_v19 = vpop.f32.mrb[49].mxu1  ;;  %v852_v22 = vadd.f32 %v1873_v37, %v537_v15 }
 0x157   :  { %v540_v20 = vpop.f32.mrb[50].mxu0  ;;  %v652_v21 = vpop.f32.mrb[50].mxu1 }
 0x158   :  { %v853_v23 = vadd.f32 %v1873_v37, %v540_v20  ;;  %v1563_v24 = vpop.f32.mrb[51].mxu0  ;;  %v881_v25 = vadd.f32 %v1873_v37, %v652_v21  ;;  %v1619_v26 = vpop.f32.mrb[51].mxu1 }
 0x15a   :  { %v1363_v27 = vpack.c.bf16 %v853_v23, %v852_v22  ;;  %v1433_v28 = vpack.c.bf16 %v881_v25, %v880_v18 }
 0x15c   :  { %1446 = vst [vmem:[%s2013_s3 + $0x60] sm:$0xff] %v1363_v27   ;;  %1460 = vst [vmem:[%s2013_s3 + $0xd0] sm:$0xff] %v1433_v28  }
 0x15d   :  { %v545_v29 = vpop.f32.mrb[52].mxu0 }
 0x15e   :  { %v1566_v30 = vpop.f32.mrb[53].mxu0  ;;  %v854_v32 = vadd.f32 %v1873_v37, %v545_v29 }
 0x15f   :  { %v548_v31 = vpop.f32.mrb[54].mxu0 }
 0x160   :  { %v855_v33 = vadd.f32 %v1873_v37, %v548_v31  ;;  %v1567_v34 = vpop.f32.mrb[55].mxu0 }
 0x162   :  { %v1368_v35 = vpack.c.bf16 %v855_v33, %v854_v32 }
 0x164   :  { %1447 = vst [vmem:[%s2013_s3 + $0x68] sm:$0xff] %v1368_v35  }

</bundles_post_ra>
